<compile_context>
chip_gen: v7x
topology: tpu7x:2x2x1
jax: 0.10.0
libtpu: 0.0.40
codegen_flags: <defaults>
</compile_context>

<pallas_src>
import functools

import jax
import jax.numpy as jnp
from jax.experimental import pallas as pl
from jax.experimental.pallas import tpu as pltpu

MAX_TM = 256  # row tile cap: multiple of 128 (v5e MXU) and 256 (v6e/v7x MXU)


def _pick_tm(n_rows):
    n8 = ((n_rows + 7) // 8) * 8       # sublane-aligned minimum
    return min(MAX_TM, n8)


def _mlp_kernel(x_ref, t_ref, w1x_ref, w1t_ref, b1_ref, w2_ref, b2_ref,
                w3_ref, b3_ref, wy_ref, by_ref, o_ref, *, tt):
    # Layer-1 x-contribution: computed once per row block, shared by all
    # (1 + mc_samples) t columns.  (TM, D) @ (D, H1) on the MXU.
    h1_pre = (jnp.dot(x_ref[...], w1x_ref[...],
                      preferred_element_type=jnp.float32) + b1_ref[...])

    w1t = w1t_ref[...]          # (1, H1) — last row of W1 (the t weight)
    by = by_ref[...]            # (1, 1)

    # Unrolled static loop over the t columns (1 real t + mc samples).
    for k in range(tt):
        tcol = t_ref[:, k:k + 1]                                   # (TM, 1)
        h = jnp.tanh(h1_pre + tcol * w1t)                          # (TM, H1)
        h = jnp.tanh(jnp.dot(h, w2_ref[...],
                             preferred_element_type=jnp.float32) + b2_ref[...])
        h = jnp.tanh(jnp.dot(h, w3_ref[...],
                             preferred_element_type=jnp.float32) + b3_ref[...])
        # Final Linear(H3, 1) as VPU multiply + cross-lane sum (XLU),
        # avoiding an N=1 MXU matmul that would use 1/128 of the array.
        o_ref[:, k:k + 1] = (
            jnp.sum(h * wy_ref[...], axis=-1, keepdims=True) + by)


def _run_mlp(x, tmat, params):
    """x: (N, D), tmat: (N, TT) -> (N, TT) MLP outputs (one per t column)."""
    (w1, b1), (w2, b2), (w3, b3), (wy, by) = params
    n, d = x.shape
    tt = tmat.shape[1]
    h1, h2, h3 = w1.shape[1], w2.shape[1], w3.shape[1]

    tm = _pick_tm(n)
    n_pad = ((n + tm - 1) // tm) * tm
    x_p = jnp.pad(x, ((0, n_pad - n), (0, 0)))
    t_p = jnp.pad(tmat, ((0, n_pad - n), (0, 0)))

    # Split W1 into its x part and its t row; transpose y-layer weight to a
    # lane row for the in-kernel reduce.
    w1x = w1[:d, :]              # (D, H1)
    w1t = w1[d:d + 1, :]         # (1, H1)
    wy_row = wy.reshape(1, h3)   # (1, H3)

    def fixed(shape):
        return pl.BlockSpec(shape, lambda i: (0, 0))

    out = pl.pallas_call(
        functools.partial(_mlp_kernel, tt=tt),
        out_shape=jax.ShapeDtypeStruct((n_pad, tt), jnp.float32),
        grid_spec=pltpu.PrefetchScalarGridSpec(
            num_scalar_prefetch=0,
            grid=(n_pad // tm,),
            in_specs=[
                pl.BlockSpec((tm, d), lambda i: (i, 0)),    # x rows
                pl.BlockSpec((tm, tt), lambda i: (i, 0)),   # per-row t columns
                fixed((d, h1)), fixed((1, h1)), fixed((1, h1)),
                fixed((h1, h2)), fixed((1, h2)),
                fixed((h2, h3)), fixed((1, h3)),
                fixed((1, h3)), fixed((1, 1)),
            ],
            out_specs=pl.BlockSpec((tm, tt), lambda i: (i, 0)),
        ),
        compiler_params=pltpu.CompilerParams(
            dimension_semantics=("parallel",)),
    )(x_p, t_p, w1x, w1t, b1, w2, b2, w3, b3, wy_row, by)

    return out[:n]


def init_params(key, vector_dim, mlp_dims):
    """PyTorch-Linear-style init: U(-1/sqrt(fan_in), 1/sqrt(fan_in))."""
    dims = [vector_dim + 1] + list(mlp_dims)
    params = []
    for prev, num in zip(dims[:-1], dims[1:]):
        key, kw, kb = jax.random.split(key, 3)
        bound = 1.0 / jnp.sqrt(prev)
        w = jax.random.uniform(kw, (prev, num), jnp.float32, -bound, bound)
        b = jax.random.uniform(kb, (1, num), jnp.float32, -bound, bound)
        params.append((w, b))
    key, kw, kb = jax.random.split(key, 3)
    bound = 1.0 / jnp.sqrt(dims[-1])
    wy = jax.random.uniform(kw, (dims[-1], 1), jnp.float32, -bound, bound)
    by = jax.random.uniform(kb, (1, 1), jnp.float32, -bound, bound)
    params.append((wy, by))
    return params


def learned_pdf_forward(params, x, t, *, target_range, mc_samples, mc_key):
    """Matches learned_pdf_integral_mlp.forward(x, t) -> (y, y_range)."""
    b, _ = x.shape
    lo, hi = target_range

    # t_range = rand(mc_samples) * (hi - lo) + lo
    t_range = jax.random.uniform(
        mc_key, (mc_samples,), jnp.float32) * (hi - lo) + lo

    # Per-row t-column matrix: col 0 = t (real pass), cols 1.. = MC samples.
    tmat = jnp.concatenate(
        [t.reshape(-1, 1),
         jnp.broadcast_to(t_range[None, :], (b, mc_samples))], axis=1)

    out = _run_mlp(x, tmat, params)       # (B, 1 + mc_samples)
    y = out[:, 0]                         # (B,)
    y_range = out[:, 1:]                  # (B, mc_samples)
    return y, y_range


def _reference_forward(params, x, t, t_range):
    """Pure-JAX reference of the PyTorch forward (eval-mode dropout)."""
    (w1, b1), (w2, b2), (w3, b3), (wy, by) = params

    def mlp(rows):
        h = rows
        for w, bb in ((w1, b1), (w2, b2), (w3, b3)):
            h = jnp.tanh(h @ w + bb)
        return (h @ wy + by)[..., 0]

    b, d = x.shape
    mc = t_range.shape[0]
    y = mlp(jnp.concatenate([x, t.reshape(-1, 1)], axis=1))
    x_rep = jnp.broadcast_to(x[:, None, :], (b, mc, d))
    t_rep = jnp.broadcast_to(t_range[None, :, None], (b, mc, 1))
    y_range = mlp(jnp.concatenate([x_rep, t_rep], axis=2))
    return y, y_range


if __name__ == "__main__":
    vector_dim = 13            # len(features)
    mlp_dims = [128, 128, 128]  # small, lane-aligned stand-in for [2048,2048,1024]
    target_range = [0, 12]
    mc_samples = 30
    batch = 16

    key = jax.random.PRNGKey(0)
    k_x, k_t, k_p, k_mc = jax.random.split(key, 4)

    x = jax.random.normal(k_x, (batch, vector_dim), jnp.float32)
    t = jax.random.uniform(k_t, (batch,), jnp.float32) * (
        target_range[1] - target_range[0]) + target_range[0]

    params = init_params(k_p, vector_dim, mlp_dims)

    fwd = jax.jit(functools.partial(
        learned_pdf_forward,
        target_range=target_range,
        mc_samples=mc_samples,
        mc_key=k_mc))

    y, y_range = fwd(params, x, t)
    jax.block_until_ready((y, y_range))

    assert y.shape == (batch,)
    assert y_range.shape == (batch, mc_samples)
    assert jnp.all(jnp.isfinite(y)) and jnp.all(jnp.isfinite(y_range))

    # Cross-check against a pure-JAX reference of the same math.
    lo, hi = target_range
    t_range = jax.random.uniform(
        k_mc, (mc_samples,), jnp.float32) * (hi - lo) + lo
    y_ref, yr_ref = _reference_forward(params, x, t, t_range)
    assert jnp.allclose(y, y_ref, rtol=2e-2, atol=2e-2)
    assert jnp.allclose(y_range, yr_ref, rtol=2e-2, atol=2e-2)

    print("KERNEL_OK")
</pallas_src>

<mosaic_0001>
module attributes {stable_mosaic.version = 11 : i64} {
  func.func @_mlp_kernel(%arg0: i32, %arg1: memref<16x13xf32, #tpu.memory_space<vmem>>, %arg2: memref<16x31xf32, #tpu.memory_space<vmem>>, %arg3: memref<13x128xf32, #tpu.memory_space<vmem>>, %arg4: memref<1x128xf32, #tpu.memory_space<vmem>>, %arg5: memref<1x128xf32, #tpu.memory_space<vmem>>, %arg6: memref<128x128xf32, #tpu.memory_space<vmem>>, %arg7: memref<1x128xf32, #tpu.memory_space<vmem>>, %arg8: memref<128x128xf32, #tpu.memory_space<vmem>>, %arg9: memref<1x128xf32, #tpu.memory_space<vmem>>, %arg10: memref<1x128xf32, #tpu.memory_space<vmem>>, %arg11: memref<1x1xf32, #tpu.memory_space<vmem>>, %arg12: memref<16x31xf32, #tpu.memory_space<vmem>>) attributes {dimension_semantics = [#tpu.dimension_semantics<parallel>], iteration_bounds = array<i64: 1>, scalar_prefetch = 0 : i64, scratch_operands = 0 : i64, tpu.core_type = #tpu.core_type<tc>, window_params = [{transform_indices = @transform_0, window_bounds = array<i64: 16, 13>}, {transform_indices = @transform_1, window_bounds = array<i64: 16, 31>}, {pipeline_mode = #tpu.pipeline_mode<synchronous>, transform_indices = @transform_2, window_bounds = array<i64: 13, 128>}, {pipeline_mode = #tpu.pipeline_mode<synchronous>, transform_indices = @transform_3, window_bounds = array<i64: 1, 128>}, {pipeline_mode = #tpu.pipeline_mode<synchronous>, transform_indices = @transform_4, window_bounds = array<i64: 1, 128>}, {pipeline_mode = #tpu.pipeline_mode<synchronous>, transform_indices = @transform_5, window_bounds = array<i64: 128, 128>}, {pipeline_mode = #tpu.pipeline_mode<synchronous>, transform_indices = @transform_6, window_bounds = array<i64: 1, 128>}, {pipeline_mode = #tpu.pipeline_mode<synchronous>, transform_indices = @transform_7, window_bounds = array<i64: 128, 128>}, {pipeline_mode = #tpu.pipeline_mode<synchronous>, transform_indices = @transform_8, window_bounds = array<i64: 1, 128>}, {pipeline_mode = #tpu.pipeline_mode<synchronous>, transform_indices = @transform_9, window_bounds = array<i64: 1, 128>}, {pipeline_mode = #tpu.pipeline_mode<synchronous>, transform_indices = @transform_10, window_bounds = array<i64: 1, 1>}, {transform_indices = @transform_11, window_bounds = array<i64: 16, 31>}]} {
    %c0 = arith.constant 0 : index
    %c0_0 = arith.constant 0 : index
    %0 = vector.load %arg1[%c0, %c0_0] : memref<16x13xf32, #tpu.memory_space<vmem>>, vector<16x13xf32>
    %c0_1 = arith.constant 0 : index
    %c0_2 = arith.constant 0 : index
    %1 = vector.load %arg3[%c0_1, %c0_2] : memref<13x128xf32, #tpu.memory_space<vmem>>, vector<13x128xf32>
    %cst = arith.constant dense<0.000000e+00> : vector<16x128xf32>
    %2 = tpu.matmul %0, %1, %cst {dimension_numbers = #tpu.dot_dimension_numbers<[1], [0], [0], [1], [0, 0, 1, 1], [], []>} : vector<16x13xf32>, vector<13x128xf32>, vector<16x128xf32> -> vector<16x128xf32>
    %c0_3 = arith.constant 0 : index
    %c0_4 = arith.constant 0 : index
    %3 = vector.load %arg5[%c0_3, %c0_4] : memref<1x128xf32, #tpu.memory_space<vmem>>, vector<1x128xf32>
    %4 = vector.broadcast %3 : vector<1x128xf32> to vector<16x128xf32>
    %5 = arith.addf %2, %4 : vector<16x128xf32>
    %c0_5 = arith.constant 0 : index
    %c0_6 = arith.constant 0 : index
    %6 = vector.load %arg4[%c0_5, %c0_6] : memref<1x128xf32, #tpu.memory_space<vmem>>, vector<1x128xf32>
    %c0_7 = arith.constant 0 : index
    %c0_8 = arith.constant 0 : index
    %7 = vector.load %arg11[%c0_7, %c0_8] : memref<1x1xf32, #tpu.memory_space<vmem>>, vector<1x1xf32>
    %c0_9 = arith.constant 0 : index
    %c0_10 = arith.constant 0 : index
    %8 = vector.load %arg2[%c0_9, %c0_10] : memref<16x31xf32, #tpu.memory_space<vmem>>, vector<16x1xf32>
    %9 = vector.broadcast %8 : vector<16x1xf32> to vector<16x128xf32>
    %10 = vector.broadcast %6 : vector<1x128xf32> to vector<16x128xf32>
    %11 = arith.mulf %9, %10 : vector<16x128xf32>
    %12 = arith.addf %5, %11 : vector<16x128xf32>
    %13 = math.tanh %12 : vector<16x128xf32>
    %c0_11 = arith.constant 0 : index
    %c0_12 = arith.constant 0 : index
    %14 = vector.load %arg6[%c0_11, %c0_12] : memref<128x128xf32, #tpu.memory_space<vmem>>, vector<128x128xf32>
    %cst_13 = arith.constant dense<0.000000e+00> : vector<16x128xf32>
    %15 = tpu.matmul %13, %14, %cst_13 {dimension_numbers = #tpu.dot_dimension_numbers<[1], [0], [0], [1], [0, 0, 1, 1], [], []>} : vector<16x128xf32>, vector<128x128xf32>, vector<16x128xf32> -> vector<16x128xf32>
    %c0_14 = arith.constant 0 : index
    %c0_15 = arith.constant 0 : index
    %16 = vector.load %arg7[%c0_14, %c0_15] : memref<1x128xf32, #tpu.memory_space<vmem>>, vector<1x128xf32>
    %17 = vector.broadcast %16 : vector<1x128xf32> to vector<16x128xf32>
    %18 = arith.addf %15, %17 : vector<16x128xf32>
    %19 = math.tanh %18 : vector<16x128xf32>
    %c0_16 = arith.constant 0 : index
    %c0_17 = arith.constant 0 : index
    %20 = vector.load %arg8[%c0_16, %c0_17] : memref<128x128xf32, #tpu.memory_space<vmem>>, vector<128x128xf32>
    %cst_18 = arith.constant dense<0.000000e+00> : vector<16x128xf32>
    %21 = tpu.matmul %19, %20, %cst_18 {dimension_numbers = #tpu.dot_dimension_numbers<[1], [0], [0], [1], [0, 0, 1, 1], [], []>} : vector<16x128xf32>, vector<128x128xf32>, vector<16x128xf32> -> vector<16x128xf32>
    %c0_19 = arith.constant 0 : index
    %c0_20 = arith.constant 0 : index
    %22 = vector.load %arg9[%c0_19, %c0_20] : memref<1x128xf32, #tpu.memory_space<vmem>>, vector<1x128xf32>
    %23 = vector.broadcast %22 : vector<1x128xf32> to vector<16x128xf32>
    %24 = arith.addf %21, %23 : vector<16x128xf32>
    %25 = math.tanh %24 : vector<16x128xf32>
    %c0_21 = arith.constant 0 : index
    %c0_22 = arith.constant 0 : index
    %26 = vector.load %arg10[%c0_21, %c0_22] : memref<1x128xf32, #tpu.memory_space<vmem>>, vector<1x128xf32>
    %27 = vector.broadcast %26 : vector<1x128xf32> to vector<16x128xf32>
    %28 = arith.mulf %25, %27 : vector<16x128xf32>
    %cst_23 = arith.constant dense<0.000000e+00> : vector<16xf32>
    %29 = vector.multi_reduction <add>, %28, %cst_23 [1] : vector<16x128xf32> to vector<16xf32>
    %30 = vector.shape_cast %29 : vector<16xf32> to vector<16x1xf32>
    %31 = vector.broadcast %7 : vector<1x1xf32> to vector<16x1xf32>
    %32 = arith.addf %30, %31 : vector<16x1xf32>
    %c0_24 = arith.constant 0 : index
    %c0_25 = arith.constant 0 : index
    %33 = vector.load %arg12[%c0_24, %c0_25] : memref<16x31xf32, #tpu.memory_space<vmem>>, vector<16x1xf32>
    tpu.vector_store %arg12[%c0_24, %c0_25], %32 {strides = array<i32>} : memref<16x31xf32, #tpu.memory_space<vmem>>, vector<16x1xf32>,
    %c0_26 = arith.constant 0 : index
    %c1 = arith.constant 1 : index
    %34 = vector.load %arg2[%c0_26, %c1] : memref<16x31xf32, #tpu.memory_space<vmem>>, vector<16x1xf32>
    %35 = vector.broadcast %34 : vector<16x1xf32> to vector<16x128xf32>
    %36 = vector.broadcast %6 : vector<1x128xf32> to vector<16x128xf32>
    %37 = arith.mulf %35, %36 : vector<16x128xf32>
    %38 = arith.addf %5, %37 : vector<16x128xf32>
    %39 = math.tanh %38 : vector<16x128xf32>
    %c0_27 = arith.constant 0 : index
    %c0_28 = arith.constant 0 : index
    %40 = vector.load %arg6[%c0_27, %c0_28] : memref<128x128xf32, #tpu.memory_space<vmem>>, vector<128x128xf32>
    %cst_29 = arith.constant dense<0.000000e+00> : vector<16x128xf32>
    %41 = tpu.matmul %39, %40, %cst_29 {dimension_numbers = #tpu.dot_dimension_numbers<[1], [0], [0], [1], [0, 0, 1, 1], [], []>} : vector<16x128xf32>, vector<128x128xf32>, vector<16x128xf32> -> vector<16x128xf32>
    %c0_30 = arith.constant 0 : index
    %c0_31 = arith.constant 0 : index
    %42 = vector.load %arg7[%c0_30, %c0_31] : memref<1x128xf32, #tpu.memory_space<vmem>>, vector<1x128xf32>
    %43 = vector.broadcast %42 : vector<1x128xf32> to vector<16x128xf32>
    %44 = arith.addf %41, %43 : vector<16x128xf32>
    %45 = math.tanh %44 : vector<16x128xf32>
    %c0_32 = arith.constant 0 : index
    %c0_33 = arith.constant 0 : index
    %46 = vector.load %arg8[%c0_32, %c0_33] : memref<128x128xf32, #tpu.memory_space<vmem>>, vector<128x128xf32>
    %cst_34 = arith.constant dense<0.000000e+00> : vector<16x128xf32>
    %47 = tpu.matmul %45, %46, %cst_34 {dimension_numbers = #tpu.dot_dimension_numbers<[1], [0], [0], [1], [0, 0, 1, 1], [], []>} : vector<16x128xf32>, vector<128x128xf32>, vector<16x128xf32> -> vector<16x128xf32>
    %c0_35 = arith.constant 0 : index
    %c0_36 = arith.constant 0 : index
    %48 = vector.load %arg9[%c0_35, %c0_36] : memref<1x128xf32, #tpu.memory_space<vmem>>, vector<1x128xf32>
    %49 = vector.broadcast %48 : vector<1x128xf32> to vector<16x128xf32>
    %50 = arith.addf %47, %49 : vector<16x128xf32>
    %51 = math.tanh %50 : vector<16x128xf32>
    %c0_37 = arith.constant 0 : index
    %c0_38 = arith.constant 0 : index
    %52 = vector.load %arg10[%c0_37, %c0_38] : memref<1x128xf32, #tpu.memory_space<vmem>>, vector<1x128xf32>
    %53 = vector.broadcast %52 : vector<1x128xf32> to vector<16x128xf32>
    %54 = arith.mulf %51, %53 : vector<16x128xf32>
    %cst_39 = arith.constant dense<0.000000e+00> : vector<16xf32>
    %55 = vector.multi_reduction <add>, %54, %cst_39 [1] : vector<16x128xf32> to vector<16xf32>
    %56 = vector.shape_cast %55 : vector<16xf32> to vector<16x1xf32>
    %57 = vector.broadcast %7 : vector<1x1xf32> to vector<16x1xf32>
    %58 = arith.addf %56, %57 : vector<16x1xf32>
    %c0_40 = arith.constant 0 : index
    %c1_41 = arith.constant 1 : index
    %59 = vector.load %arg12[%c0_40, %c1_41] : memref<16x31xf32, #tpu.memory_space<vmem>>, vector<16x1xf32>
    tpu.vector_store %arg12[%c0_40, %c1_41], %58 {strides = array<i32>} : memref<16x31xf32, #tpu.memory_space<vmem>>, vector<16x1xf32>,
    %c0_42 = arith.constant 0 : index
    %c2 = arith.constant 2 : index
    %60 = vector.load %arg2[%c0_42, %c2] : memref<16x31xf32, #tpu.memory_space<vmem>>, vector<16x1xf32>
    %61 = vector.broadcast %60 : vector<16x1xf32> to vector<16x128xf32>
    %62 = vector.broadcast %6 : vector<1x128xf32> to vector<16x128xf32>
    %63 = arith.mulf %61, %62 : vector<16x128xf32>
    %64 = arith.addf %5, %63 : vector<16x128xf32>
    %65 = math.tanh %64 : vector<16x128xf32>
    %c0_43 = arith.constant 0 : index
    %c0_44 = arith.constant 0 : index
    %66 = vector.load %arg6[%c0_43, %c0_44] : memref<128x128xf32, #tpu.memory_space<vmem>>, vector<128x128xf32>
    %cst_45 = arith.constant dense<0.000000e+00> : vector<16x128xf32>
    %67 = tpu.matmul %65, %66, %cst_45 {dimension_numbers = #tpu.dot_dimension_numbers<[1], [0], [0], [1], [0, 0, 1, 1], [], []>} : vector<16x128xf32>, vector<128x128xf32>, vector<16x128xf32> -> vector<16x128xf32>
    %c0_46 = arith.constant 0 : index
    %c0_47 = arith.constant 0 : index
    %68 = vector.load %arg7[%c0_46, %c0_47] : memref<1x128xf32, #tpu.memory_space<vmem>>, vector<1x128xf32>
    %69 = vector.broadcast %68 : vector<1x128xf32> to vector<16x128xf32>
    %70 = arith.addf %67, %69 : vector<16x128xf32>
    %71 = math.tanh %70 : vector<16x128xf32>
    %c0_48 = arith.constant 0 : index
    %c0_49 = arith.constant 0 : index
    %72 = vector.load %arg8[%c0_48, %c0_49] : memref<128x128xf32, #tpu.memory_space<vmem>>, vector<128x128xf32>
    %cst_50 = arith.constant dense<0.000000e+00> : vector<16x128xf32>
    %73 = tpu.matmul %71, %72, %cst_50 {dimension_numbers = #tpu.dot_dimension_numbers<[1], [0], [0], [1], [0, 0, 1, 1], [], []>} : vector<16x128xf32>, vector<128x128xf32>, vector<16x128xf32> -> vector<16x128xf32>
    %c0_51 = arith.constant 0 : index
    %c0_52 = arith.constant 0 : index
    %74 = vector.load %arg9[%c0_51, %c0_52] : memref<1x128xf32, #tpu.memory_space<vmem>>, vector<1x128xf32>
    %75 = vector.broadcast %74 : vector<1x128xf32> to vector<16x128xf32>
    %76 = arith.addf %73, %75 : vector<16x128xf32>
    %77 = math.tanh %76 : vector<16x128xf32>
    %c0_53 = arith.constant 0 : index
    %c0_54 = arith.constant 0 : index
    %78 = vector.load %arg10[%c0_53, %c0_54] : memref<1x128xf32, #tpu.memory_space<vmem>>, vector<1x128xf32>
    %79 = vector.broadcast %78 : vector<1x128xf32> to vector<16x128xf32>
    %80 = arith.mulf %77, %79 : vector<16x128xf32>
    %cst_55 = arith.constant dense<0.000000e+00> : vector<16xf32>
    %81 = vector.multi_reduction <add>, %80, %cst_55 [1] : vector<16x128xf32> to vector<16xf32>
    %82 = vector.shape_cast %81 : vector<16xf32> to vector<16x1xf32>
    %83 = vector.broadcast %7 : vector<1x1xf32> to vector<16x1xf32>
    %84 = arith.addf %82, %83 : vector<16x1xf32>
    %c0_56 = arith.constant 0 : index
    %c2_57 = arith.constant 2 : index
    %85 = vector.load %arg12[%c0_56, %c2_57] : memref<16x31xf32, #tpu.memory_space<vmem>>, vector<16x1xf32>
    tpu.vector_store %arg12[%c0_56, %c2_57], %84 {strides = array<i32>} : memref<16x31xf32, #tpu.memory_space<vmem>>, vector<16x1xf32>,
    %c0_58 = arith.constant 0 : index
    %c3 = arith.constant 3 : index
    %86 = vector.load %arg2[%c0_58, %c3] : memref<16x31xf32, #tpu.memory_space<vmem>>, vector<16x1xf32>
    %87 = vector.broadcast %86 : vector<16x1xf32> to vector<16x128xf32>
    %88 = vector.broadcast %6 : vector<1x128xf32> to vector<16x128xf32>
    %89 = arith.mulf %87, %88 : vector<16x128xf32>
    %90 = arith.addf %5, %89 : vector<16x128xf32>
    %91 = math.tanh %90 : vector<16x128xf32>
    %c0_59 = arith.constant 0 : index
    %c0_60 = arith.constant 0 : index
    %92 = vector.load %arg6[%c0_59, %c0_60] : memref<128x128xf32, #tpu.memory_space<vmem>>, vector<128x128xf32>
    %cst_61 = arith.constant dense<0.000000e+00> : vector<16x128xf32>
    %93 = tpu.matmul %91, %92, %cst_61 {dimension_numbers = #tpu.dot_dimension_numbers<[1], [0], [0], [1], [0, 0, 1, 1], [], []>} : vector<16x128xf32>, vector<128x128xf32>, vector<16x128xf32> -> vector<16x128xf32>
    %c0_62 = arith.constant 0 : index
    %c0_63 = arith.constant 0 : index
    %94 = vector.load %arg7[%c0_62, %c0_63] : memref<1x128xf32, #tpu.memory_space<vmem>>, vector<1x128xf32>
    %95 = vector.broadcast %94 : vector<1x128xf32> to vector<16x128xf32>
    %96 = arith.addf %93, %95 : vector<16x128xf32>
    %97 = math.tanh %96 : vector<16x128xf32>
    %c0_64 = arith.constant 0 : index
    %c0_65 = arith.constant 0 : index
    %98 = vector.load %arg8[%c0_64, %c0_65] : memref<128x128xf32, #tpu.memory_space<vmem>>, vector<128x128xf32>
    %cst_66 = arith.constant dense<0.000000e+00> : vector<16x128xf32>
    %99 = tpu.matmul %97, %98, %cst_66 {dimension_numbers = #tpu.dot_dimension_numbers<[1], [0], [0], [1], [0, 0, 1, 1], [], []>} : vector<16x128xf32>, vector<128x128xf32>, vector<16x128xf32> -> vector<16x128xf32>
    %c0_67 = arith.constant 0 : index
    %c0_68 = arith.constant 0 : index
    %100 = vector.load %arg9[%c0_67, %c0_68] : memref<1x128xf32, #tpu.memory_space<vmem>>, vector<1x128xf32>
    %101 = vector.broadcast %100 : vector<1x128xf32> to vector<16x128xf32>
    %102 = arith.addf %99, %101 : vector<16x128xf32>
    %103 = math.tanh %102 : vector<16x128xf32>
    %c0_69 = arith.constant 0 : index
    %c0_70 = arith.constant 0 : index
    %104 = vector.load %arg10[%c0_69, %c0_70] : memref<1x128xf32, #tpu.memory_space<vmem>>, vector<1x128xf32>
    %105 = vector.broadcast %104 : vector<1x128xf32> to vector<16x128xf32>
    %106 = arith.mulf %103, %105 : vector<16x128xf32>
    %cst_71 = arith.constant dense<0.000000e+00> : vector<16xf32>
    %107 = vector.multi_reduction <add>, %106, %cst_71 [1] : vector<16x128xf32> to vector<16xf32>
    %108 = vector.shape_cast %107 : vector<16xf32> to vector<16x1xf32>
    %109 = vector.broadcast %7 : vector<1x1xf32> to vector<16x1xf32>
    %110 = arith.addf %108, %109 : vector<16x1xf32>
    %c0_72 = arith.constant 0 : index
    %c3_73 = arith.constant 3 : index
    %111 = vector.load %arg12[%c0_72, %c3_73] : memref<16x31xf32, #tpu.memory_space<vmem>>, vector<16x1xf32>
    tpu.vector_store %arg12[%c0_72, %c3_73], %110 {strides = array<i32>} : memref<16x31xf32, #tpu.memory_space<vmem>>, vector<16x1xf32>,
    %c0_74 = arith.constant 0 : index
    %c4 = arith.constant 4 : index
    %112 = vector.load %arg2[%c0_74, %c4] : memref<16x31xf32, #tpu.memory_space<vmem>>, vector<16x1xf32>
    %113 = vector.broadcast %112 : vector<16x1xf32> to vector<16x128xf32>
    %114 = vector.broadcast %6 : vector<1x128xf32> to vector<16x128xf32>
    %115 = arith.mulf %113, %114 : vector<16x128xf32>
    %116 = arith.addf %5, %115 : vector<16x128xf32>
    %117 = math.tanh %116 : vector<16x128xf32>
    %c0_75 = arith.constant 0 : index
    %c0_76 = arith.constant 0 : index
    %118 = vector.load %arg6[%c0_75, %c0_76] : memref<128x128xf32, #tpu.memory_space<vmem>>, vector<128x128xf32>
    %cst_77 = arith.constant dense<0.000000e+00> : vector<16x128xf32>
    %119 = tpu.matmul %117, %118, %cst_77 {dimension_numbers = #tpu.dot_dimension_numbers<[1], [0], [0], [1], [0, 0, 1, 1], [], []>} : vector<16x128xf32>, vector<128x128xf32>, vector<16x128xf32> -> vector<16x128xf32>
    %c0_78 = arith.constant 0 : index
    %c0_79 = arith.constant 0 : index
    %120 = vector.load %arg7[%c0_78, %c0_79] : memref<1x128xf32, #tpu.memory_space<vmem>>, vector<1x128xf32>
    %121 = vector.broadcast %120 : vector<1x128xf32> to vector<16x128xf32>
    %122 = arith.addf %119, %121 : vector<16x128xf32>
    %123 = math.tanh %122 : vector<16x128xf32>
    %c0_80 = arith.constant 0 : index
    %c0_81 = arith.constant 0 : index
    %124 = vector.load %arg8[%c0_80, %c0_81] : memref<128x128xf32, #tpu.memory_space<vmem>>, vector<128x128xf32>
    %cst_82 = arith.constant dense<0.000000e+00> : vector<16x128xf32>
    %125 = tpu.matmul %123, %124, %cst_82 {dimension_numbers = #tpu.dot_dimension_numbers<[1], [0], [0], [1], [0, 0, 1, 1], [], []>} : vector<16x128xf32>, vector<128x128xf32>, vector<16x128xf32> -> vector<16x128xf32>
    %c0_83 = arith.constant 0 : index
    %c0_84 = arith.constant 0 : index
    %126 = vector.load %arg9[%c0_83, %c0_84] : memref<1x128xf32, #tpu.memory_space<vmem>>, vector<1x128xf32>
    %127 = vector.broadcast %126 : vector<1x128xf32> to vector<16x128xf32>
    %128 = arith.addf %125, %127 : vector<16x128xf32>
    %129 = math.tanh %128 : vector<16x128xf32>
    %c0_85 = arith.constant 0 : index
    %c0_86 = arith.constant 0 : index
    %130 = vector.load %arg10[%c0_85, %c0_86] : memref<1x128xf32, #tpu.memory_space<vmem>>, vector<1x128xf32>
    %131 = vector.broadcast %130 : vector<1x128xf32> to vector<16x128xf32>
    %132 = arith.mulf %129, %131 : vector<16x128xf32>
    %cst_87 = arith.constant dense<0.000000e+00> : vector<16xf32>
    %133 = vector.multi_reduction <add>, %132, %cst_87 [1] : vector<16x128xf32> to vector<16xf32>
    %134 = vector.shape_cast %133 : vector<16xf32> to vector<16x1xf32>
    %135 = vector.broadcast %7 : vector<1x1xf32> to vector<16x1xf32>
    %136 = arith.addf %134, %135 : vector<16x1xf32>
    %c0_88 = arith.constant 0 : index
    %c4_89 = arith.constant 4 : index
    %137 = vector.load %arg12[%c0_88, %c4_89] : memref<16x31xf32, #tpu.memory_space<vmem>>, vector<16x1xf32>
    tpu.vector_store %arg12[%c0_88, %c4_89], %136 {strides = array<i32>} : memref<16x31xf32, #tpu.memory_space<vmem>>, vector<16x1xf32>,
    %c0_90 = arith.constant 0 : index
    %c5 = arith.constant 5 : index
    %138 = vector.load %arg2[%c0_90, %c5] : memref<16x31xf32, #tpu.memory_space<vmem>>, vector<16x1xf32>
    %139 = vector.broadcast %138 : vector<16x1xf32> to vector<16x128xf32>
    %140 = vector.broadcast %6 : vector<1x128xf32> to vector<16x128xf32>
    %141 = arith.mulf %139, %140 : vector<16x128xf32>
    %142 = arith.addf %5, %141 : vector<16x128xf32>
    %143 = math.tanh %142 : vector<16x128xf32>
    %c0_91 = arith.constant 0 : index
    %c0_92 = arith.constant 0 : index
    %144 = vector.load %arg6[%c0_91, %c0_92] : memref<128x128xf32, #tpu.memory_space<vmem>>, vector<128x128xf32>
    %cst_93 = arith.constant dense<0.000000e+00> : vector<16x128xf32>
    %145 = tpu.matmul %143, %144, %cst_93 {dimension_numbers = #tpu.dot_dimension_numbers<[1], [0], [0], [1], [0, 0, 1, 1], [], []>} : vector<16x128xf32>, vector<128x128xf32>, vector<16x128xf32> -> vector<16x128xf32>
    %c0_94 = arith.constant 0 : index
    %c0_95 = arith.constant 0 : index
    %146 = vector.load %arg7[%c0_94, %c0_95] : memref<1x128xf32, #tpu.memory_space<vmem>>, vector<1x128xf32>
    %147 = vector.broadcast %146 : vector<1x128xf32> to vector<16x128xf32>
    %148 = arith.addf %145, %147 : vector<16x128xf32>
    %149 = math.tanh %148 : vector<16x128xf32>
    %c0_96 = arith.constant 0 : index
    %c0_97 = arith.constant 0 : index
    %150 = vector.load %arg8[%c0_96, %c0_97] : memref<128x128xf32, #tpu.memory_space<vmem>>, vector<128x128xf32>
    %cst_98 = arith.constant dense<0.000000e+00> : vector<16x128xf32>
    %151 = tpu.matmul %149, %150, %cst_98 {dimension_numbers = #tpu.dot_dimension_numbers<[1], [0], [0], [1], [0, 0, 1, 1], [], []>} : vector<16x128xf32>, vector<128x128xf32>, vector<16x128xf32> -> vector<16x128xf32>
    %c0_99 = arith.constant 0 : index
    %c0_100 = arith.constant 0 : index
    %152 = vector.load %arg9[%c0_99, %c0_100] : memref<1x128xf32, #tpu.memory_space<vmem>>, vector<1x128xf32>
    %153 = vector.broadcast %152 : vector<1x128xf32> to vector<16x128xf32>
    %154 = arith.addf %151, %153 : vector<16x128xf32>
    %155 = math.tanh %154 : vector<16x128xf32>
    %c0_101 = arith.constant 0 : index
    %c0_102 = arith.constant 0 : index
    %156 = vector.load %arg10[%c0_101, %c0_102] : memref<1x128xf32, #tpu.memory_space<vmem>>, vector<1x128xf32>
    %157 = vector.broadcast %156 : vector<1x128xf32> to vector<16x128xf32>
    %158 = arith.mulf %155, %157 : vector<16x128xf32>
    %cst_103 = arith.constant dense<0.000000e+00> : vector<16xf32>
    %159 = vector.multi_reduction <add>, %158, %cst_103 [1] : vector<16x128xf32> to vector<16xf32>
    %160 = vector.shape_cast %159 : vector<16xf32> to vector<16x1xf32>
    %161 = vector.broadcast %7 : vector<1x1xf32> to vector<16x1xf32>
    %162 = arith.addf %160, %161 : vector<16x1xf32>
    %c0_104 = arith.constant 0 : index
    %c5_105 = arith.constant 5 : index
    %163 = vector.load %arg12[%c0_104, %c5_105] : memref<16x31xf32, #tpu.memory_space<vmem>>, vector<16x1xf32>
    tpu.vector_store %arg12[%c0_104, %c5_105], %162 {strides = array<i32>} : memref<16x31xf32, #tpu.memory_space<vmem>>, vector<16x1xf32>,
    %c0_106 = arith.constant 0 : index
    %c6 = arith.constant 6 : index
    %164 = vector.load %arg2[%c0_106, %c6] : memref<16x31xf32, #tpu.memory_space<vmem>>, vector<16x1xf32>
    %165 = vector.broadcast %164 : vector<16x1xf32> to vector<16x128xf32>
    %166 = vector.broadcast %6 : vector<1x128xf32> to vector<16x128xf32>
    %167 = arith.mulf %165, %166 : vector<16x128xf32>
    %168 = arith.addf %5, %167 : vector<16x128xf32>
    %169 = math.tanh %168 : vector<16x128xf32>
    %c0_107 = arith.constant 0 : index
    %c0_108 = arith.constant 0 : index
    %170 = vector.load %arg6[%c0_107, %c0_108] : memref<128x128xf32, #tpu.memory_space<vmem>>, vector<128x128xf32>
    %cst_109 = arith.constant dense<0.000000e+00> : vector<16x128xf32>
    %171 = tpu.matmul %169, %170, %cst_109 {dimension_numbers = #tpu.dot_dimension_numbers<[1], [0], [0], [1], [0, 0, 1, 1], [], []>} : vector<16x128xf32>, vector<128x128xf32>, vector<16x128xf32> -> vector<16x128xf32>
    %c0_110 = arith.constant 0 : index
    %c0_111 = arith.constant 0 : index
    %172 = vector.load %arg7[%c0_110, %c0_111] : memref<1x128xf32, #tpu.memory_space<vmem>>, vector<1x128xf32>
    %173 = vector.broadcast %172 : vector<1x128xf32> to vector<16x128xf32>
    %174 = arith.addf %171, %173 : vector<16x128xf32>
    %175 = math.tanh %174 : vector<16x128xf32>
    %c0_112 = arith.constant 0 : index
    %c0_113 = arith.constant 0 : index
    %176 = vector.load %arg8[%c0_112, %c0_113] : memref<128x128xf32, #tpu.memory_space<vmem>>, vector<128x128xf32>
    %cst_114 = arith.constant dense<0.000000e+00> : vector<16x128xf32>
    %177 = tpu.matmul %175, %176, %cst_114 {dimension_numbers = #tpu.dot_dimension_numbers<[1], [0], [0], [1], [0, 0, 1, 1], [], []>} : vector<16x128xf32>, vector<128x128xf32>, vector<16x128xf32> -> vector<16x128xf32>
    %c0_115 = arith.constant 0 : index
    %c0_116 = arith.constant 0 : index
    %178 = vector.load %arg9[%c0_115, %c0_116] : memref<1x128xf32, #tpu.memory_space<vmem>>, vector<1x128xf32>
    %179 = vector.broadcast %178 : vector<1x128xf32> to vector<16x128xf32>
    %180 = arith.addf %177, %179 : vector<16x128xf32>
    %181 = math.tanh %180 : vector<16x128xf32>
    %c0_117 = arith.constant 0 : index
    %c0_118 = arith.constant 0 : index
    %182 = vector.load %arg10[%c0_117, %c0_118] : memref<1x128xf32, #tpu.memory_space<vmem>>, vector<1x128xf32>
    %183 = vector.broadcast %182 : vector<1x128xf32> to vector<16x128xf32>
    %184 = arith.mulf %181, %183 : vector<16x128xf32>
    %cst_119 = arith.constant dense<0.000000e+00> : vector<16xf32>
    %185 = vector.multi_reduction <add>, %184, %cst_119 [1] : vector<16x128xf32> to vector<16xf32>
    %186 = vector.shape_cast %185 : vector<16xf32> to vector<16x1xf32>
    %187 = vector.broadcast %7 : vector<1x1xf32> to vector<16x1xf32>
    %188 = arith.addf %186, %187 : vector<16x1xf32>
    %c0_120 = arith.constant 0 : index
    %c6_121 = arith.constant 6 : index
    %189 = vector.load %arg12[%c0_120, %c6_121] : memref<16x31xf32, #tpu.memory_space<vmem>>, vector<16x1xf32>
    tpu.vector_store %arg12[%c0_120, %c6_121], %188 {strides = array<i32>} : memref<16x31xf32, #tpu.memory_space<vmem>>, vector<16x1xf32>,
    %c0_122 = arith.constant 0 : index
    %c7 = arith.constant 7 : index
    %190 = vector.load %arg2[%c0_122, %c7] : memref<16x31xf32, #tpu.memory_space<vmem>>, vector<16x1xf32>
    %191 = vector.broadcast %190 : vector<16x1xf32> to vector<16x128xf32>
    %192 = vector.broadcast %6 : vector<1x128xf32> to vector<16x128xf32>
    %193 = arith.mulf %191, %192 : vector<16x128xf32>
    %194 = arith.addf %5, %193 : vector<16x128xf32>
    %195 = math.tanh %194 : vector<16x128xf32>
    %c0_123 = arith.constant 0 : index
    %c0_124 = arith.constant 0 : index
    %196 = vector.load %arg6[%c0_123, %c0_124] : memref<128x128xf32, #tpu.memory_space<vmem>>, vector<128x128xf32>
    %cst_125 = arith.constant dense<0.000000e+00> : vector<16x128xf32>
    %197 = tpu.matmul %195, %196, %cst_125 {dimension_numbers = #tpu.dot_dimension_numbers<[1], [0], [0], [1], [0, 0, 1, 1], [], []>} : vector<16x128xf32>, vector<128x128xf32>, vector<16x128xf32> -> vector<16x128xf32>
    %c0_126 = arith.constant 0 : index
    %c0_127 = arith.constant 0 : index
    %198 = vector.load %arg7[%c0_126, %c0_127] : memref<1x128xf32, #tpu.memory_space<vmem>>, vector<1x128xf32>
    %199 = vector.broadcast %198 : vector<1x128xf32> to vector<16x128xf32>
    %200 = arith.addf %197, %199 : vector<16x128xf32>
    %201 = math.tanh %200 : vector<16x128xf32>
    %c0_128 = arith.constant 0 : index
    %c0_129 = arith.constant 0 : index
    %202 = vector.load %arg8[%c0_128, %c0_129] : memref<128x128xf32, #tpu.memory_space<vmem>>, vector<128x128xf32>
    %cst_130 = arith.constant dense<0.000000e+00> : vector<16x128xf32>
    %203 = tpu.matmul %201, %202, %cst_130 {dimension_numbers = #tpu.dot_dimension_numbers<[1], [0], [0], [1], [0, 0, 1, 1], [], []>} : vector<16x128xf32>, vector<128x128xf32>, vector<16x128xf32> -> vector<16x128xf32>
    %c0_131 = arith.constant 0 : index
    %c0_132 = arith.constant 0 : index
    %204 = vector.load %arg9[%c0_131, %c0_132] : memref<1x128xf32, #tpu.memory_space<vmem>>, vector<1x128xf32>
    %205 = vector.broadcast %204 : vector<1x128xf32> to vector<16x128xf32>
    %206 = arith.addf %203, %205 : vector<16x128xf32>
    %207 = math.tanh %206 : vector<16x128xf32>
    %c0_133 = arith.constant 0 : index
    %c0_134 = arith.constant 0 : index
    %208 = vector.load %arg10[%c0_133, %c0_134] : memref<1x128xf32, #tpu.memory_space<vmem>>, vector<1x128xf32>
    %209 = vector.broadcast %208 : vector<1x128xf32> to vector<16x128xf32>
    %210 = arith.mulf %207, %209 : vector<16x128xf32>
    %cst_135 = arith.constant dense<0.000000e+00> : vector<16xf32>
    %211 = vector.multi_reduction <add>, %210, %cst_135 [1] : vector<16x128xf32> to vector<16xf32>
    %212 = vector.shape_cast %211 : vector<16xf32> to vector<16x1xf32>
    %213 = vector.broadcast %7 : vector<1x1xf32> to vector<16x1xf32>
    %214 = arith.addf %212, %213 : vector<16x1xf32>
    %c0_136 = arith.constant 0 : index
    %c7_137 = arith.constant 7 : index
    %215 = vector.load %arg12[%c0_136, %c7_137] : memref<16x31xf32, #tpu.memory_space<vmem>>, vector<16x1xf32>
    tpu.vector_store %arg12[%c0_136, %c7_137], %214 {strides = array<i32>} : memref<16x31xf32, #tpu.memory_space<vmem>>, vector<16x1xf32>,
    %c0_138 = arith.constant 0 : index
    %c8 = arith.constant 8 : index
    %216 = vector.load %arg2[%c0_138, %c8] : memref<16x31xf32, #tpu.memory_space<vmem>>, vector<16x1xf32>
    %217 = vector.broadcast %216 : vector<16x1xf32> to vector<16x128xf32>
    %218 = vector.broadcast %6 : vector<1x128xf32> to vector<16x128xf32>
    %219 = arith.mulf %217, %218 : vector<16x128xf32>
    %220 = arith.addf %5, %219 : vector<16x128xf32>
    %221 = math.tanh %220 : vector<16x128xf32>
    %c0_139 = arith.constant 0 : index
    %c0_140 = arith.constant 0 : index
    %222 = vector.load %arg6[%c0_139, %c0_140] : memref<128x128xf32, #tpu.memory_space<vmem>>, vector<128x128xf32>
    %cst_141 = arith.constant dense<0.000000e+00> : vector<16x128xf32>
    %223 = tpu.matmul %221, %222, %cst_141 {dimension_numbers = #tpu.dot_dimension_numbers<[1], [0], [0], [1], [0, 0, 1, 1], [], []>} : vector<16x128xf32>, vector<128x128xf32>, vector<16x128xf32> -> vector<16x128xf32>
    %c0_142 = arith.constant 0 : index
    %c0_143 = arith.constant 0 : index
    %224 = vector.load %arg7[%c0_142, %c0_143] : memref<1x128xf32, #tpu.memory_space<vmem>>, vector<1x128xf32>
    %225 = vector.broadcast %224 : vector<1x128xf32> to vector<16x128xf32>
    %226 = arith.addf %223, %225 : vector<16x128xf32>
    %227 = math.tanh %226 : vector<16x128xf32>
    %c0_144 = arith.constant 0 : index
    %c0_145 = arith.constant 0 : index
    %228 = vector.load %arg8[%c0_144, %c0_145] : memref<128x128xf32, #tpu.memory_space<vmem>>, vector<128x128xf32>
    %cst_146 = arith.constant dense<0.000000e+00> : vector<16x128xf32>
    %229 = tpu.matmul %227, %228, %cst_146 {dimension_numbers = #tpu.dot_dimension_numbers<[1], [0], [0], [1], [0, 0, 1, 1], [], []>} : vector<16x128xf32>, vector<128x128xf32>, vector<16x128xf32> -> vector<16x128xf32>
    %c0_147 = arith.constant 0 : index
    %c0_148 = arith.constant 0 : index
    %230 = vector.load %arg9[%c0_147, %c0_148] : memref<1x128xf32, #tpu.memory_space<vmem>>, vector<1x128xf32>
    %231 = vector.broadcast %230 : vector<1x128xf32> to vector<16x128xf32>
    %232 = arith.addf %229, %231 : vector<16x128xf32>
    %233 = math.tanh %232 : vector<16x128xf32>
    %c0_149 = arith.constant 0 : index
    %c0_150 = arith.constant 0 : index
    %234 = vector.load %arg10[%c0_149, %c0_150] : memref<1x128xf32, #tpu.memory_space<vmem>>, vector<1x128xf32>
    %235 = vector.broadcast %234 : vector<1x128xf32> to vector<16x128xf32>
    %236 = arith.mulf %233, %235 : vector<16x128xf32>
    %cst_151 = arith.constant dense<0.000000e+00> : vector<16xf32>
    %237 = vector.multi_reduction <add>, %236, %cst_151 [1] : vector<16x128xf32> to vector<16xf32>
    %238 = vector.shape_cast %237 : vector<16xf32> to vector<16x1xf32>
    %239 = vector.broadcast %7 : vector<1x1xf32> to vector<16x1xf32>
    %240 = arith.addf %238, %239 : vector<16x1xf32>
    %c0_152 = arith.constant 0 : index
    %c8_153 = arith.constant 8 : index
    %241 = vector.load %arg12[%c0_152, %c8_153] : memref<16x31xf32, #tpu.memory_space<vmem>>, vector<16x1xf32>
    tpu.vector_store %arg12[%c0_152, %c8_153], %240 {strides = array<i32>} : memref<16x31xf32, #tpu.memory_space<vmem>>, vector<16x1xf32>,
    %c0_154 = arith.constant 0 : index
    %c9 = arith.constant 9 : index
    %242 = vector.load %arg2[%c0_154, %c9] : memref<16x31xf32, #tpu.memory_space<vmem>>, vector<16x1xf32>
    %243 = vector.broadcast %242 : vector<16x1xf32> to vector<16x128xf32>
    %244 = vector.broadcast %6 : vector<1x128xf32> to vector<16x128xf32>
    %245 = arith.mulf %243, %244 : vector<16x128xf32>
    %246 = arith.addf %5, %245 : vector<16x128xf32>
    %247 = math.tanh %246 : vector<16x128xf32>
    %c0_155 = arith.constant 0 : index
    %c0_156 = arith.constant 0 : index
    %248 = vector.load %arg6[%c0_155, %c0_156] : memref<128x128xf32, #tpu.memory_space<vmem>>, vector<128x128xf32>
    %cst_157 = arith.constant dense<0.000000e+00> : vector<16x128xf32>
    %249 = tpu.matmul %247, %248, %cst_157 {dimension_numbers = #tpu.dot_dimension_numbers<[1], [0], [0], [1], [0, 0, 1, 1], [], []>} : vector<16x128xf32>, vector<128x128xf32>, vector<16x128xf32> -> vector<16x128xf32>
    %c0_158 = arith.constant 0 : index
    %c0_159 = arith.constant 0 : index
    %250 = vector.load %arg7[%c0_158, %c0_159] : memref<1x128xf32, #tpu.memory_space<vmem>>, vector<1x128xf32>
    %251 = vector.broadcast %250 : vector<1x128xf32> to vector<16x128xf32>
    %252 = arith.addf %249, %251 : vector<16x128xf32>
    %253 = math.tanh %252 : vector<16x128xf32>
    %c0_160 = arith.constant 0 : index
    %c0_161 = arith.constant 0 : index
    %254 = vector.load %arg8[%c0_160, %c0_161] : memref<128x128xf32, #tpu.memory_space<vmem>>, vector<128x128xf32>
    %cst_162 = arith.constant dense<0.000000e+00> : vector<16x128xf32>
    %255 = tpu.matmul %253, %254, %cst_162 {dimension_numbers = #tpu.dot_dimension_numbers<[1], [0], [0], [1], [0, 0, 1, 1], [], []>} : vector<16x128xf32>, vector<128x128xf32>, vector<16x128xf32> -> vector<16x128xf32>
    %c0_163 = arith.constant 0 : index
    %c0_164 = arith.constant 0 : index
    %256 = vector.load %arg9[%c0_163, %c0_164] : memref<1x128xf32, #tpu.memory_space<vmem>>, vector<1x128xf32>
    %257 = vector.broadcast %256 : vector<1x128xf32> to vector<16x128xf32>
    %258 = arith.addf %255, %257 : vector<16x128xf32>
    %259 = math.tanh %258 : vector<16x128xf32>
    %c0_165 = arith.constant 0 : index
    %c0_166 = arith.constant 0 : index
    %260 = vector.load %arg10[%c0_165, %c0_166] : memref<1x128xf32, #tpu.memory_space<vmem>>, vector<1x128xf32>
    %261 = vector.broadcast %260 : vector<1x128xf32> to vector<16x128xf32>
    %262 = arith.mulf %259, %261 : vector<16x128xf32>
    %cst_167 = arith.constant dense<0.000000e+00> : vector<16xf32>
    %263 = vector.multi_reduction <add>, %262, %cst_167 [1] : vector<16x128xf32> to vector<16xf32>
    %264 = vector.shape_cast %263 : vector<16xf32> to vector<16x1xf32>
    %265 = vector.broadcast %7 : vector<1x1xf32> to vector<16x1xf32>
    %266 = arith.addf %264, %265 : vector<16x1xf32>
    %c0_168 = arith.constant 0 : index
    %c9_169 = arith.constant 9 : index
    %267 = vector.load %arg12[%c0_168, %c9_169] : memref<16x31xf32, #tpu.memory_space<vmem>>, vector<16x1xf32>
    tpu.vector_store %arg12[%c0_168, %c9_169], %266 {strides = array<i32>} : memref<16x31xf32, #tpu.memory_space<vmem>>, vector<16x1xf32>,
    %c0_170 = arith.constant 0 : index
    %c10 = arith.constant 10 : index
    %268 = vector.load %arg2[%c0_170, %c10] : memref<16x31xf32, #tpu.memory_space<vmem>>, vector<16x1xf32>
    %269 = vector.broadcast %268 : vector<16x1xf32> to vector<16x128xf32>
    %270 = vector.broadcast %6 : vector<1x128xf32> to vector<16x128xf32>
    %271 = arith.mulf %269, %270 : vector<16x128xf32>
    %272 = arith.addf %5, %271 : vector<16x128xf32>
    %273 = math.tanh %272 : vector<16x128xf32>
    %c0_171 = arith.constant 0 : index
    %c0_172 = arith.constant 0 : index
    %274 = vector.load %arg6[%c0_171, %c0_172] : memref<128x128xf32, #tpu.memory_space<vmem>>, vector<128x128xf32>
    %cst_173 = arith.constant dense<0.000000e+00> : vector<16x128xf32>
    %275 = tpu.matmul %273, %274, %cst_173 {dimension_numbers = #tpu.dot_dimension_numbers<[1], [0], [0], [1], [0, 0, 1, 1], [], []>} : vector<16x128xf32>, vector<128x128xf32>, vector<16x128xf32> -> vector<16x128xf32>
    %c0_174 = arith.constant 0 : index
    %c0_175 = arith.constant 0 : index
    %276 = vector.load %arg7[%c0_174, %c0_175] : memref<1x128xf32, #tpu.memory_space<vmem>>, vector<1x128xf32>
    %277 = vector.broadcast %276 : vector<1x128xf32> to vector<16x128xf32>
    %278 = arith.addf %275, %277 : vector<16x128xf32>
    %279 = math.tanh %278 : vector<16x128xf32>
    %c0_176 = arith.constant 0 : index
    %c0_177 = arith.constant 0 : index
    %280 = vector.load %arg8[%c0_176, %c0_177] : memref<128x128xf32, #tpu.memory_space<vmem>>, vector<128x128xf32>
    %cst_178 = arith.constant dense<0.000000e+00> : vector<16x128xf32>
    %281 = tpu.matmul %279, %280, %cst_178 {dimension_numbers = #tpu.dot_dimension_numbers<[1], [0], [0], [1], [0, 0, 1, 1], [], []>} : vector<16x128xf32>, vector<128x128xf32>, vector<16x128xf32> -> vector<16x128xf32>
    %c0_179 = arith.constant 0 : index
    %c0_180 = arith.constant 0 : index
    %282 = vector.load %arg9[%c0_179, %c0_180] : memref<1x128xf32, #tpu.memory_space<vmem>>, vector<1x128xf32>
    %283 = vector.broadcast %282 : vector<1x128xf32> to vector<16x128xf32>
    %284 = arith.addf %281, %283 : vector<16x128xf32>
    %285 = math.tanh %284 : vector<16x128xf32>
    %c0_181 = arith.constant 0 : index
    %c0_182 = arith.constant 0 : index
    %286 = vector.load %arg10[%c0_181, %c0_182] : memref<1x128xf32, #tpu.memory_space<vmem>>, vector<1x128xf32>
    %287 = vector.broadcast %286 : vector<1x128xf32> to vector<16x128xf32>
    %288 = arith.mulf %285, %287 : vector<16x128xf32>
    %cst_183 = arith.constant dense<0.000000e+00> : vector<16xf32>
    %289 = vector.multi_reduction <add>, %288, %cst_183 [1] : vector<16x128xf32> to vector<16xf32>
    %290 = vector.shape_cast %289 : vector<16xf32> to vector<16x1xf32>
    %291 = vector.broadcast %7 : vector<1x1xf32> to vector<16x1xf32>
    %292 = arith.addf %290, %291 : vector<16x1xf32>
    %c0_184 = arith.constant 0 : index
    %c10_185 = arith.constant 10 : index
    %293 = vector.load %arg12[%c0_184, %c10_185] : memref<16x31xf32, #tpu.memory_space<vmem>>, vector<16x1xf32>
    tpu.vector_store %arg12[%c0_184, %c10_185], %292 {strides = array<i32>} : memref<16x31xf32, #tpu.memory_space<vmem>>, vector<16x1xf32>,
    %c0_186 = arith.constant 0 : index
    %c11 = arith.constant 11 : index
    %294 = vector.load %arg2[%c0_186, %c11] : memref<16x31xf32, #tpu.memory_space<vmem>>, vector<16x1xf32>
    %295 = vector.broadcast %294 : vector<16x1xf32> to vector<16x128xf32>
    %296 = vector.broadcast %6 : vector<1x128xf32> to vector<16x128xf32>
    %297 = arith.mulf %295, %296 : vector<16x128xf32>
    %298 = arith.addf %5, %297 : vector<16x128xf32>
    %299 = math.tanh %298 : vector<16x128xf32>
    %c0_187 = arith.constant 0 : index
    %c0_188 = arith.constant 0 : index
    %300 = vector.load %arg6[%c0_187, %c0_188] : memref<128x128xf32, #tpu.memory_space<vmem>>, vector<128x128xf32>
    %cst_189 = arith.constant dense<0.000000e+00> : vector<16x128xf32>
    %301 = tpu.matmul %299, %300, %cst_189 {dimension_numbers = #tpu.dot_dimension_numbers<[1], [0], [0], [1], [0, 0, 1, 1], [], []>} : vector<16x128xf32>, vector<128x128xf32>, vector<16x128xf32> -> vector<16x128xf32>
    %c0_190 = arith.constant 0 : index
    %c0_191 = arith.constant 0 : index
    %302 = vector.load %arg7[%c0_190, %c0_191] : memref<1x128xf32, #tpu.memory_space<vmem>>, vector<1x128xf32>
    %303 = vector.broadcast %302 : vector<1x128xf32> to vector<16x128xf32>
    %304 = arith.addf %301, %303 : vector<16x128xf32>
    %305 = math.tanh %304 : vector<16x128xf32>
    %c0_192 = arith.constant 0 : index
    %c0_193 = arith.constant 0 : index
    %306 = vector.load %arg8[%c0_192, %c0_193] : memref<128x128xf32, #tpu.memory_space<vmem>>, vector<128x128xf32>
    %cst_194 = arith.constant dense<0.000000e+00> : vector<16x128xf32>
    %307 = tpu.matmul %305, %306, %cst_194 {dimension_numbers = #tpu.dot_dimension_numbers<[1], [0], [0], [1], [0, 0, 1, 1], [], []>} : vector<16x128xf32>, vector<128x128xf32>, vector<16x128xf32> -> vector<16x128xf32>
    %c0_195 = arith.constant 0 : index
    %c0_196 = arith.constant 0 : index
    %308 = vector.load %arg9[%c0_195, %c0_196] : memref<1x128xf32, #tpu.memory_space<vmem>>, vector<1x128xf32>
    %309 = vector.broadcast %308 : vector<1x128xf32> to vector<16x128xf32>
    %310 = arith.addf %307, %309 : vector<16x128xf32>
    %311 = math.tanh %310 : vector<16x128xf32>
    %c0_197 = arith.constant 0 : index
    %c0_198 = arith.constant 0 : index
    %312 = vector.load %arg10[%c0_197, %c0_198] : memref<1x128xf32, #tpu.memory_space<vmem>>, vector<1x128xf32>
    %313 = vector.broadcast %312 : vector<1x128xf32> to vector<16x128xf32>
    %314 = arith.mulf %311, %313 : vector<16x128xf32>
    %cst_199 = arith.constant dense<0.000000e+00> : vector<16xf32>
    %315 = vector.multi_reduction <add>, %314, %cst_199 [1] : vector<16x128xf32> to vector<16xf32>
    %316 = vector.shape_cast %315 : vector<16xf32> to vector<16x1xf32>
    %317 = vector.broadcast %7 : vector<1x1xf32> to vector<16x1xf32>
    %318 = arith.addf %316, %317 : vector<16x1xf32>
    %c0_200 = arith.constant 0 : index
    %c11_201 = arith.constant 11 : index
    %319 = vector.load %arg12[%c0_200, %c11_201] : memref<16x31xf32, #tpu.memory_space<vmem>>, vector<16x1xf32>
    tpu.vector_store %arg12[%c0_200, %c11_201], %318 {strides = array<i32>} : memref<16x31xf32, #tpu.memory_space<vmem>>, vector<16x1xf32>,
    %c0_202 = arith.constant 0 : index
    %c12 = arith.constant 12 : index
    %320 = vector.load %arg2[%c0_202, %c12] : memref<16x31xf32, #tpu.memory_space<vmem>>, vector<16x1xf32>
    %321 = vector.broadcast %320 : vector<16x1xf32> to vector<16x128xf32>
    %322 = vector.broadcast %6 : vector<1x128xf32> to vector<16x128xf32>
    %323 = arith.mulf %321, %322 : vector<16x128xf32>
    %324 = arith.addf %5, %323 : vector<16x128xf32>
    %325 = math.tanh %324 : vector<16x128xf32>
    %c0_203 = arith.constant 0 : index
    %c0_204 = arith.constant 0 : index
    %326 = vector.load %arg6[%c0_203, %c0_204] : memref<128x128xf32, #tpu.memory_space<vmem>>, vector<128x128xf32>
    %cst_205 = arith.constant dense<0.000000e+00> : vector<16x128xf32>
    %327 = tpu.matmul %325, %326, %cst_205 {dimension_numbers = #tpu.dot_dimension_numbers<[1], [0], [0], [1], [0, 0, 1, 1], [], []>} : vector<16x128xf32>, vector<128x128xf32>, vector<16x128xf32> -> vector<16x128xf32>
    %c0_206 = arith.constant 0 : index
    %c0_207 = arith.constant 0 : index
    %328 = vector.load %arg7[%c0_206, %c0_207] : memref<1x128xf32, #tpu.memory_space<vmem>>, vector<1x128xf32>
    %329 = vector.broadcast %328 : vector<1x128xf32> to vector<16x128xf32>
    %330 = arith.addf %327, %329 : vector<16x128xf32>
    %331 = math.tanh %330 : vector<16x128xf32>
    %c0_208 = arith.constant 0 : index
    %c0_209 = arith.constant 0 : index
    %332 = vector.load %arg8[%c0_208, %c0_209] : memref<128x128xf32, #tpu.memory_space<vmem>>, vector<128x128xf32>
    %cst_210 = arith.constant dense<0.000000e+00> : vector<16x128xf32>
    %333 = tpu.matmul %331, %332, %cst_210 {dimension_numbers = #tpu.dot_dimension_numbers<[1], [0], [0], [1], [0, 0, 1, 1], [], []>} : vector<16x128xf32>, vector<128x128xf32>, vector<16x128xf32> -> vector<16x128xf32>
    %c0_211 = arith.constant 0 : index
    %c0_212 = arith.constant 0 : index
    %334 = vector.load %arg9[%c0_211, %c0_212] : memref<1x128xf32, #tpu.memory_space<vmem>>, vector<1x128xf32>
    %335 = vector.broadcast %334 : vector<1x128xf32> to vector<16x128xf32>
    %336 = arith.addf %333, %335 : vector<16x128xf32>
    %337 = math.tanh %336 : vector<16x128xf32>
    %c0_213 = arith.constant 0 : index
    %c0_214 = arith.constant 0 : index
    %338 = vector.load %arg10[%c0_213, %c0_214] : memref<1x128xf32, #tpu.memory_space<vmem>>, vector<1x128xf32>
    %339 = vector.broadcast %338 : vector<1x128xf32> to vector<16x128xf32>
    %340 = arith.mulf %337, %339 : vector<16x128xf32>
    %cst_215 = arith.constant dense<0.000000e+00> : vector<16xf32>
    %341 = vector.multi_reduction <add>, %340, %cst_215 [1] : vector<16x128xf32> to vector<16xf32>
    %342 = vector.shape_cast %341 : vector<16xf32> to vector<16x1xf32>
    %343 = vector.broadcast %7 : vector<1x1xf32> to vector<16x1xf32>
    %344 = arith.addf %342, %343 : vector<16x1xf32>
    %c0_216 = arith.constant 0 : index
    %c12_217 = arith.constant 12 : index
    %345 = vector.load %arg12[%c0_216, %c12_217] : memref<16x31xf32, #tpu.memory_space<vmem>>, vector<16x1xf32>
    tpu.vector_store %arg12[%c0_216, %c12_217], %344 {strides = array<i32>} : memref<16x31xf32, #tpu.memory_space<vmem>>, vector<16x1xf32>,
    %c0_218 = arith.constant 0 : index
    %c13 = arith.constant 13 : index
    %346 = vector.load %arg2[%c0_218, %c13] : memref<16x31xf32, #tpu.memory_space<vmem>>, vector<16x1xf32>
    %347 = vector.broadcast %346 : vector<16x1xf32> to vector<16x128xf32>
    %348 = vector.broadcast %6 : vector<1x128xf32> to vector<16x128xf32>
    %349 = arith.mulf %347, %348 : vector<16x128xf32>
    %350 = arith.addf %5, %349 : vector<16x128xf32>
    %351 = math.tanh %350 : vector<16x128xf32>
    %c0_219 = arith.constant 0 : index
    %c0_220 = arith.constant 0 : index
    %352 = vector.load %arg6[%c0_219, %c0_220] : memref<128x128xf32, #tpu.memory_space<vmem>>, vector<128x128xf32>
    %cst_221 = arith.constant dense<0.000000e+00> : vector<16x128xf32>
    %353 = tpu.matmul %351, %352, %cst_221 {dimension_numbers = #tpu.dot_dimension_numbers<[1], [0], [0], [1], [0, 0, 1, 1], [], []>} : vector<16x128xf32>, vector<128x128xf32>, vector<16x128xf32> -> vector<16x128xf32>
    %c0_222 = arith.constant 0 : index
    %c0_223 = arith.constant 0 : index
    %354 = vector.load %arg7[%c0_222, %c0_223] : memref<1x128xf32, #tpu.memory_space<vmem>>, vector<1x128xf32>
    %355 = vector.broadcast %354 : vector<1x128xf32> to vector<16x128xf32>
    %356 = arith.addf %353, %355 : vector<16x128xf32>
    %357 = math.tanh %356 : vector<16x128xf32>
    %c0_224 = arith.constant 0 : index
    %c0_225 = arith.constant 0 : index
    %358 = vector.load %arg8[%c0_224, %c0_225] : memref<128x128xf32, #tpu.memory_space<vmem>>, vector<128x128xf32>
    %cst_226 = arith.constant dense<0.000000e+00> : vector<16x128xf32>
    %359 = tpu.matmul %357, %358, %cst_226 {dimension_numbers = #tpu.dot_dimension_numbers<[1], [0], [0], [1], [0, 0, 1, 1], [], []>} : vector<16x128xf32>, vector<128x128xf32>, vector<16x128xf32> -> vector<16x128xf32>
    %c0_227 = arith.constant 0 : index
    %c0_228 = arith.constant 0 : index
    %360 = vector.load %arg9[%c0_227, %c0_228] : memref<1x128xf32, #tpu.memory_space<vmem>>, vector<1x128xf32>
    %361 = vector.broadcast %360 : vector<1x128xf32> to vector<16x128xf32>
    %362 = arith.addf %359, %361 : vector<16x128xf32>
    %363 = math.tanh %362 : vector<16x128xf32>
    %c0_229 = arith.constant 0 : index
    %c0_230 = arith.constant 0 : index
    %364 = vector.load %arg10[%c0_229, %c0_230] : memref<1x128xf32, #tpu.memory_space<vmem>>, vector<1x128xf32>
    %365 = vector.broadcast %364 : vector<1x128xf32> to vector<16x128xf32>
    %366 = arith.mulf %363, %365 : vector<16x128xf32>
    %cst_231 = arith.constant dense<0.000000e+00> : vector<16xf32>
    %367 = vector.multi_reduction <add>, %366, %cst_231 [1] : vector<16x128xf32> to vector<16xf32>
    %368 = vector.shape_cast %367 : vector<16xf32> to vector<16x1xf32>
    %369 = vector.broadcast %7 : vector<1x1xf32> to vector<16x1xf32>
    %370 = arith.addf %368, %369 : vector<16x1xf32>
    %c0_232 = arith.constant 0 : index
    %c13_233 = arith.constant 13 : index
    %371 = vector.load %arg12[%c0_232, %c13_233] : memref<16x31xf32, #tpu.memory_space<vmem>>, vector<16x1xf32>
    tpu.vector_store %arg12[%c0_232, %c13_233], %370 {strides = array<i32>} : memref<16x31xf32, #tpu.memory_space<vmem>>, vector<16x1xf32>,
    %c0_234 = arith.constant 0 : index
    %c14 = arith.constant 14 : index
    %372 = vector.load %arg2[%c0_234, %c14] : memref<16x31xf32, #tpu.memory_space<vmem>>, vector<16x1xf32>
    %373 = vector.broadcast %372 : vector<16x1xf32> to vector<16x128xf32>
    %374 = vector.broadcast %6 : vector<1x128xf32> to vector<16x128xf32>
    %375 = arith.mulf %373, %374 : vector<16x128xf32>
    %376 = arith.addf %5, %375 : vector<16x128xf32>
    %377 = math.tanh %376 : vector<16x128xf32>
    %c0_235 = arith.constant 0 : index
    %c0_236 = arith.constant 0 : index
    %378 = vector.load %arg6[%c0_235, %c0_236] : memref<128x128xf32, #tpu.memory_space<vmem>>, vector<128x128xf32>
    %cst_237 = arith.constant dense<0.000000e+00> : vector<16x128xf32>
    %379 = tpu.matmul %377, %378, %cst_237 {dimension_numbers = #tpu.dot_dimension_numbers<[1], [0], [0], [1], [0, 0, 1, 1], [], []>} : vector<16x128xf32>, vector<128x128xf32>, vector<16x128xf32> -> vector<16x128xf32>
    %c0_238 = arith.constant 0 : index
    %c0_239 = arith.constant 0 : index
    %380 = vector.load %arg7[%c0_238, %c0_239] : memref<1x128xf32, #tpu.memory_space<vmem>>, vector<1x128xf32>
    %381 = vector.broadcast %380 : vector<1x128xf32> to vector<16x128xf32>
    %382 = arith.addf %379, %381 : vector<16x128xf32>
    %383 = math.tanh %382 : vector<16x128xf32>
    %c0_240 = arith.constant 0 : index
    %c0_241 = arith.constant 0 : index
    %384 = vector.load %arg8[%c0_240, %c0_241] : memref<128x128xf32, #tpu.memory_space<vmem>>, vector<128x128xf32>
    %cst_242 = arith.constant dense<0.000000e+00> : vector<16x128xf32>
    %385 = tpu.matmul %383, %384, %cst_242 {dimension_numbers = #tpu.dot_dimension_numbers<[1], [0], [0], [1], [0, 0, 1, 1], [], []>} : vector<16x128xf32>, vector<128x128xf32>, vector<16x128xf32> -> vector<16x128xf32>
    %c0_243 = arith.constant 0 : index
    %c0_244 = arith.constant 0 : index
    %386 = vector.load %arg9[%c0_243, %c0_244] : memref<1x128xf32, #tpu.memory_space<vmem>>, vector<1x128xf32>
    %387 = vector.broadcast %386 : vector<1x128xf32> to vector<16x128xf32>
    %388 = arith.addf %385, %387 : vector<16x128xf32>
    %389 = math.tanh %388 : vector<16x128xf32>
    %c0_245 = arith.constant 0 : index
    %c0_246 = arith.constant 0 : index
    %390 = vector.load %arg10[%c0_245, %c0_246] : memref<1x128xf32, #tpu.memory_space<vmem>>, vector<1x128xf32>
    %391 = vector.broadcast %390 : vector<1x128xf32> to vector<16x128xf32>
    %392 = arith.mulf %389, %391 : vector<16x128xf32>
    %cst_247 = arith.constant dense<0.000000e+00> : vector<16xf32>
    %393 = vector.multi_reduction <add>, %392, %cst_247 [1] : vector<16x128xf32> to vector<16xf32>
    %394 = vector.shape_cast %393 : vector<16xf32> to vector<16x1xf32>
    %395 = vector.broadcast %7 : vector<1x1xf32> to vector<16x1xf32>
    %396 = arith.addf %394, %395 : vector<16x1xf32>
    %c0_248 = arith.constant 0 : index
    %c14_249 = arith.constant 14 : index
    %397 = vector.load %arg12[%c0_248, %c14_249] : memref<16x31xf32, #tpu.memory_space<vmem>>, vector<16x1xf32>
    tpu.vector_store %arg12[%c0_248, %c14_249], %396 {strides = array<i32>} : memref<16x31xf32, #tpu.memory_space<vmem>>, vector<16x1xf32>,
    %c0_250 = arith.constant 0 : index
    %c15 = arith.constant 15 : index
    %398 = vector.load %arg2[%c0_250, %c15] : memref<16x31xf32, #tpu.memory_space<vmem>>, vector<16x1xf32>
    %399 = vector.broadcast %398 : vector<16x1xf32> to vector<16x128xf32>
    %400 = vector.broadcast %6 : vector<1x128xf32> to vector<16x128xf32>
    %401 = arith.mulf %399, %400 : vector<16x128xf32>
    %402 = arith.addf %5, %401 : vector<16x128xf32>
    %403 = math.tanh %402 : vector<16x128xf32>
    %c0_251 = arith.constant 0 : index
    %c0_252 = arith.constant 0 : index
    %404 = vector.load %arg6[%c0_251, %c0_252] : memref<128x128xf32, #tpu.memory_space<vmem>>, vector<128x128xf32>
    %cst_253 = arith.constant dense<0.000000e+00> : vector<16x128xf32>
    %405 = tpu.matmul %403, %404, %cst_253 {dimension_numbers = #tpu.dot_dimension_numbers<[1], [0], [0], [1], [0, 0, 1, 1], [], []>} : vector<16x128xf32>, vector<128x128xf32>, vector<16x128xf32> -> vector<16x128xf32>
    %c0_254 = arith.constant 0 : index
    %c0_255 = arith.constant 0 : index
    %406 = vector.load %arg7[%c0_254, %c0_255] : memref<1x128xf32, #tpu.memory_space<vmem>>, vector<1x128xf32>
    %407 = vector.broadcast %406 : vector<1x128xf32> to vector<16x128xf32>
    %408 = arith.addf %405, %407 : vector<16x128xf32>
    %409 = math.tanh %408 : vector<16x128xf32>
    %c0_256 = arith.constant 0 : index
    %c0_257 = arith.constant 0 : index
    %410 = vector.load %arg8[%c0_256, %c0_257] : memref<128x128xf32, #tpu.memory_space<vmem>>, vector<128x128xf32>
    %cst_258 = arith.constant dense<0.000000e+00> : vector<16x128xf32>
    %411 = tpu.matmul %409, %410, %cst_258 {dimension_numbers = #tpu.dot_dimension_numbers<[1], [0], [0], [1], [0, 0, 1, 1], [], []>} : vector<16x128xf32>, vector<128x128xf32>, vector<16x128xf32> -> vector<16x128xf32>
    %c0_259 = arith.constant 0 : index
    %c0_260 = arith.constant 0 : index
    %412 = vector.load %arg9[%c0_259, %c0_260] : memref<1x128xf32, #tpu.memory_space<vmem>>, vector<1x128xf32>
    %413 = vector.broadcast %412 : vector<1x128xf32> to vector<16x128xf32>
    %414 = arith.addf %411, %413 : vector<16x128xf32>
    %415 = math.tanh %414 : vector<16x128xf32>
    %c0_261 = arith.constant 0 : index
    %c0_262 = arith.constant 0 : index
    %416 = vector.load %arg10[%c0_261, %c0_262] : memref<1x128xf32, #tpu.memory_space<vmem>>, vector<1x128xf32>
    %417 = vector.broadcast %416 : vector<1x128xf32> to vector<16x128xf32>
    %418 = arith.mulf %415, %417 : vector<16x128xf32>
    %cst_263 = arith.constant dense<0.000000e+00> : vector<16xf32>
    %419 = vector.multi_reduction <add>, %418, %cst_263 [1] : vector<16x128xf32> to vector<16xf32>
    %420 = vector.shape_cast %419 : vector<16xf32> to vector<16x1xf32>
    %421 = vector.broadcast %7 : vector<1x1xf32> to vector<16x1xf32>
    %422 = arith.addf %420, %421 : vector<16x1xf32>
    %c0_264 = arith.constant 0 : index
    %c15_265 = arith.constant 15 : index
    %423 = vector.load %arg12[%c0_264, %c15_265] : memref<16x31xf32, #tpu.memory_space<vmem>>, vector<16x1xf32>
    tpu.vector_store %arg12[%c0_264, %c15_265], %422 {strides = array<i32>} : memref<16x31xf32, #tpu.memory_space<vmem>>, vector<16x1xf32>,
    %c0_266 = arith.constant 0 : index
    %c16 = arith.constant 16 : index
    %424 = vector.load %arg2[%c0_266, %c16] : memref<16x31xf32, #tpu.memory_space<vmem>>, vector<16x1xf32>
    %425 = vector.broadcast %424 : vector<16x1xf32> to vector<16x128xf32>
    %426 = vector.broadcast %6 : vector<1x128xf32> to vector<16x128xf32>
    %427 = arith.mulf %425, %426 : vector<16x128xf32>
    %428 = arith.addf %5, %427 : vector<16x128xf32>
    %429 = math.tanh %428 : vector<16x128xf32>
    %c0_267 = arith.constant 0 : index
    %c0_268 = arith.constant 0 : index
    %430 = vector.load %arg6[%c0_267, %c0_268] : memref<128x128xf32, #tpu.memory_space<vmem>>, vector<128x128xf32>
    %cst_269 = arith.constant dense<0.000000e+00> : vector<16x128xf32>
    %431 = tpu.matmul %429, %430, %cst_269 {dimension_numbers = #tpu.dot_dimension_numbers<[1], [0], [0], [1], [0, 0, 1, 1], [], []>} : vector<16x128xf32>, vector<128x128xf32>, vector<16x128xf32> -> vector<16x128xf32>
    %c0_270 = arith.constant 0 : index
    %c0_271 = arith.constant 0 : index
    %432 = vector.load %arg7[%c0_270, %c0_271] : memref<1x128xf32, #tpu.memory_space<vmem>>, vector<1x128xf32>
    %433 = vector.broadcast %432 : vector<1x128xf32> to vector<16x128xf32>
    %434 = arith.addf %431, %433 : vector<16x128xf32>
    %435 = math.tanh %434 : vector<16x128xf32>
    %c0_272 = arith.constant 0 : index
    %c0_273 = arith.constant 0 : index
    %436 = vector.load %arg8[%c0_272, %c0_273] : memref<128x128xf32, #tpu.memory_space<vmem>>, vector<128x128xf32>
    %cst_274 = arith.constant dense<0.000000e+00> : vector<16x128xf32>
    %437 = tpu.matmul %435, %436, %cst_274 {dimension_numbers = #tpu.dot_dimension_numbers<[1], [0], [0], [1], [0, 0, 1, 1], [], []>} : vector<16x128xf32>, vector<128x128xf32>, vector<16x128xf32> -> vector<16x128xf32>
    %c0_275 = arith.constant 0 : index
    %c0_276 = arith.constant 0 : index
    %438 = vector.load %arg9[%c0_275, %c0_276] : memref<1x128xf32, #tpu.memory_space<vmem>>, vector<1x128xf32>
    %439 = vector.broadcast %438 : vector<1x128xf32> to vector<16x128xf32>
    %440 = arith.addf %437, %439 : vector<16x128xf32>
    %441 = math.tanh %440 : vector<16x128xf32>
    %c0_277 = arith.constant 0 : index
    %c0_278 = arith.constant 0 : index
    %442 = vector.load %arg10[%c0_277, %c0_278] : memref<1x128xf32, #tpu.memory_space<vmem>>, vector<1x128xf32>
    %443 = vector.broadcast %442 : vector<1x128xf32> to vector<16x128xf32>
    %444 = arith.mulf %441, %443 : vector<16x128xf32>
    %cst_279 = arith.constant dense<0.000000e+00> : vector<16xf32>
    %445 = vector.multi_reduction <add>, %444, %cst_279 [1] : vector<16x128xf32> to vector<16xf32>
    %446 = vector.shape_cast %445 : vector<16xf32> to vector<16x1xf32>
    %447 = vector.broadcast %7 : vector<1x1xf32> to vector<16x1xf32>
    %448 = arith.addf %446, %447 : vector<16x1xf32>
    %c0_280 = arith.constant 0 : index
    %c16_281 = arith.constant 16 : index
    %449 = vector.load %arg12[%c0_280, %c16_281] : memref<16x31xf32, #tpu.memory_space<vmem>>, vector<16x1xf32>
    tpu.vector_store %arg12[%c0_280, %c16_281], %448 {strides = array<i32>} : memref<16x31xf32, #tpu.memory_space<vmem>>, vector<16x1xf32>,
    %c0_282 = arith.constant 0 : index
    %c17 = arith.constant 17 : index
    %450 = vector.load %arg2[%c0_282, %c17] : memref<16x31xf32, #tpu.memory_space<vmem>>, vector<16x1xf32>
    %451 = vector.broadcast %450 : vector<16x1xf32> to vector<16x128xf32>
    %452 = vector.broadcast %6 : vector<1x128xf32> to vector<16x128xf32>
    %453 = arith.mulf %451, %452 : vector<16x128xf32>
    %454 = arith.addf %5, %453 : vector<16x128xf32>
    %455 = math.tanh %454 : vector<16x128xf32>
    %c0_283 = arith.constant 0 : index
    %c0_284 = arith.constant 0 : index
    %456 = vector.load %arg6[%c0_283, %c0_284] : memref<128x128xf32, #tpu.memory_space<vmem>>, vector<128x128xf32>
    %cst_285 = arith.constant dense<0.000000e+00> : vector<16x128xf32>
    %457 = tpu.matmul %455, %456, %cst_285 {dimension_numbers = #tpu.dot_dimension_numbers<[1], [0], [0], [1], [0, 0, 1, 1], [], []>} : vector<16x128xf32>, vector<128x128xf32>, vector<16x128xf32> -> vector<16x128xf32>
    %c0_286 = arith.constant 0 : index
    %c0_287 = arith.constant 0 : index
    %458 = vector.load %arg7[%c0_286, %c0_287] : memref<1x128xf32, #tpu.memory_space<vmem>>, vector<1x128xf32>
    %459 = vector.broadcast %458 : vector<1x128xf32> to vector<16x128xf32>
    %460 = arith.addf %457, %459 : vector<16x128xf32>
    %461 = math.tanh %460 : vector<16x128xf32>
    %c0_288 = arith.constant 0 : index
    %c0_289 = arith.constant 0 : index
    %462 = vector.load %arg8[%c0_288, %c0_289] : memref<128x128xf32, #tpu.memory_space<vmem>>, vector<128x128xf32>
    %cst_290 = arith.constant dense<0.000000e+00> : vector<16x128xf32>
    %463 = tpu.matmul %461, %462, %cst_290 {dimension_numbers = #tpu.dot_dimension_numbers<[1], [0], [0], [1], [0, 0, 1, 1], [], []>} : vector<16x128xf32>, vector<128x128xf32>, vector<16x128xf32> -> vector<16x128xf32>
    %c0_291 = arith.constant 0 : index
    %c0_292 = arith.constant 0 : index
    %464 = vector.load %arg9[%c0_291, %c0_292] : memref<1x128xf32, #tpu.memory_space<vmem>>, vector<1x128xf32>
    %465 = vector.broadcast %464 : vector<1x128xf32> to vector<16x128xf32>
    %466 = arith.addf %463, %465 : vector<16x128xf32>
    %467 = math.tanh %466 : vector<16x128xf32>
    %c0_293 = arith.constant 0 : index
    %c0_294 = arith.constant 0 : index
    %468 = vector.load %arg10[%c0_293, %c0_294] : memref<1x128xf32, #tpu.memory_space<vmem>>, vector<1x128xf32>
    %469 = vector.broadcast %468 : vector<1x128xf32> to vector<16x128xf32>
    %470 = arith.mulf %467, %469 : vector<16x128xf32>
    %cst_295 = arith.constant dense<0.000000e+00> : vector<16xf32>
    %471 = vector.multi_reduction <add>, %470, %cst_295 [1] : vector<16x128xf32> to vector<16xf32>
    %472 = vector.shape_cast %471 : vector<16xf32> to vector<16x1xf32>
    %473 = vector.broadcast %7 : vector<1x1xf32> to vector<16x1xf32>
    %474 = arith.addf %472, %473 : vector<16x1xf32>
    %c0_296 = arith.constant 0 : index
    %c17_297 = arith.constant 17 : index
    %475 = vector.load %arg12[%c0_296, %c17_297] : memref<16x31xf32, #tpu.memory_space<vmem>>, vector<16x1xf32>
    tpu.vector_store %arg12[%c0_296, %c17_297], %474 {strides = array<i32>} : memref<16x31xf32, #tpu.memory_space<vmem>>, vector<16x1xf32>,
    %c0_298 = arith.constant 0 : index
    %c18 = arith.constant 18 : index
    %476 = vector.load %arg2[%c0_298, %c18] : memref<16x31xf32, #tpu.memory_space<vmem>>, vector<16x1xf32>
    %477 = vector.broadcast %476 : vector<16x1xf32> to vector<16x128xf32>
    %478 = vector.broadcast %6 : vector<1x128xf32> to vector<16x128xf32>
    %479 = arith.mulf %477, %478 : vector<16x128xf32>
    %480 = arith.addf %5, %479 : vector<16x128xf32>
    %481 = math.tanh %480 : vector<16x128xf32>
    %c0_299 = arith.constant 0 : index
    %c0_300 = arith.constant 0 : index
    %482 = vector.load %arg6[%c0_299, %c0_300] : memref<128x128xf32, #tpu.memory_space<vmem>>, vector<128x128xf32>
    %cst_301 = arith.constant dense<0.000000e+00> : vector<16x128xf32>
    %483 = tpu.matmul %481, %482, %cst_301 {dimension_numbers = #tpu.dot_dimension_numbers<[1], [0], [0], [1], [0, 0, 1, 1], [], []>} : vector<16x128xf32>, vector<128x128xf32>, vector<16x128xf32> -> vector<16x128xf32>
    %c0_302 = arith.constant 0 : index
    %c0_303 = arith.constant 0 : index
    %484 = vector.load %arg7[%c0_302, %c0_303] : memref<1x128xf32, #tpu.memory_space<vmem>>, vector<1x128xf32>
    %485 = vector.broadcast %484 : vector<1x128xf32> to vector<16x128xf32>
    %486 = arith.addf %483, %485 : vector<16x128xf32>
    %487 = math.tanh %486 : vector<16x128xf32>
    %c0_304 = arith.constant 0 : index
    %c0_305 = arith.constant 0 : index
    %488 = vector.load %arg8[%c0_304, %c0_305] : memref<128x128xf32, #tpu.memory_space<vmem>>, vector<128x128xf32>
    %cst_306 = arith.constant dense<0.000000e+00> : vector<16x128xf32>
    %489 = tpu.matmul %487, %488, %cst_306 {dimension_numbers = #tpu.dot_dimension_numbers<[1], [0], [0], [1], [0, 0, 1, 1], [], []>} : vector<16x128xf32>, vector<128x128xf32>, vector<16x128xf32> -> vector<16x128xf32>
    %c0_307 = arith.constant 0 : index
    %c0_308 = arith.constant 0 : index
    %490 = vector.load %arg9[%c0_307, %c0_308] : memref<1x128xf32, #tpu.memory_space<vmem>>, vector<1x128xf32>
    %491 = vector.broadcast %490 : vector<1x128xf32> to vector<16x128xf32>
    %492 = arith.addf %489, %491 : vector<16x128xf32>
    %493 = math.tanh %492 : vector<16x128xf32>
    %c0_309 = arith.constant 0 : index
    %c0_310 = arith.constant 0 : index
    %494 = vector.load %arg10[%c0_309, %c0_310] : memref<1x128xf32, #tpu.memory_space<vmem>>, vector<1x128xf32>
    %495 = vector.broadcast %494 : vector<1x128xf32> to vector<16x128xf32>
    %496 = arith.mulf %493, %495 : vector<16x128xf32>
    %cst_311 = arith.constant dense<0.000000e+00> : vector<16xf32>
    %497 = vector.multi_reduction <add>, %496, %cst_311 [1] : vector<16x128xf32> to vector<16xf32>
    %498 = vector.shape_cast %497 : vector<16xf32> to vector<16x1xf32>
    %499 = vector.broadcast %7 : vector<1x1xf32> to vector<16x1xf32>
    %500 = arith.addf %498, %499 : vector<16x1xf32>
    %c0_312 = arith.constant 0 : index
    %c18_313 = arith.constant 18 : index
    %501 = vector.load %arg12[%c0_312, %c18_313] : memref<16x31xf32, #tpu.memory_space<vmem>>, vector<16x1xf32>
    tpu.vector_store %arg12[%c0_312, %c18_313], %500 {strides = array<i32>} : memref<16x31xf32, #tpu.memory_space<vmem>>, vector<16x1xf32>,
    %c0_314 = arith.constant 0 : index
    %c19 = arith.constant 19 : index
    %502 = vector.load %arg2[%c0_314, %c19] : memref<16x31xf32, #tpu.memory_space<vmem>>, vector<16x1xf32>
    %503 = vector.broadcast %502 : vector<16x1xf32> to vector<16x128xf32>
    %504 = vector.broadcast %6 : vector<1x128xf32> to vector<16x128xf32>
    %505 = arith.mulf %503, %504 : vector<16x128xf32>
    %506 = arith.addf %5, %505 : vector<16x128xf32>
    %507 = math.tanh %506 : vector<16x128xf32>
    %c0_315 = arith.constant 0 : index
    %c0_316 = arith.constant 0 : index
    %508 = vector.load %arg6[%c0_315, %c0_316] : memref<128x128xf32, #tpu.memory_space<vmem>>, vector<128x128xf32>
    %cst_317 = arith.constant dense<0.000000e+00> : vector<16x128xf32>
    %509 = tpu.matmul %507, %508, %cst_317 {dimension_numbers = #tpu.dot_dimension_numbers<[1], [0], [0], [1], [0, 0, 1, 1], [], []>} : vector<16x128xf32>, vector<128x128xf32>, vector<16x128xf32> -> vector<16x128xf32>
    %c0_318 = arith.constant 0 : index
    %c0_319 = arith.constant 0 : index
    %510 = vector.load %arg7[%c0_318, %c0_319] : memref<1x128xf32, #tpu.memory_space<vmem>>, vector<1x128xf32>
    %511 = vector.broadcast %510 : vector<1x128xf32> to vector<16x128xf32>
    %512 = arith.addf %509, %511 : vector<16x128xf32>
    %513 = math.tanh %512 : vector<16x128xf32>
    %c0_320 = arith.constant 0 : index
    %c0_321 = arith.constant 0 : index
    %514 = vector.load %arg8[%c0_320, %c0_321] : memref<128x128xf32, #tpu.memory_space<vmem>>, vector<128x128xf32>
    %cst_322 = arith.constant dense<0.000000e+00> : vector<16x128xf32>
    %515 = tpu.matmul %513, %514, %cst_322 {dimension_numbers = #tpu.dot_dimension_numbers<[1], [0], [0], [1], [0, 0, 1, 1], [], []>} : vector<16x128xf32>, vector<128x128xf32>, vector<16x128xf32> -> vector<16x128xf32>
    %c0_323 = arith.constant 0 : index
    %c0_324 = arith.constant 0 : index
    %516 = vector.load %arg9[%c0_323, %c0_324] : memref<1x128xf32, #tpu.memory_space<vmem>>, vector<1x128xf32>
    %517 = vector.broadcast %516 : vector<1x128xf32> to vector<16x128xf32>
    %518 = arith.addf %515, %517 : vector<16x128xf32>
    %519 = math.tanh %518 : vector<16x128xf32>
    %c0_325 = arith.constant 0 : index
    %c0_326 = arith.constant 0 : index
    %520 = vector.load %arg10[%c0_325, %c0_326] : memref<1x128xf32, #tpu.memory_space<vmem>>, vector<1x128xf32>
    %521 = vector.broadcast %520 : vector<1x128xf32> to vector<16x128xf32>
    %522 = arith.mulf %519, %521 : vector<16x128xf32>
    %cst_327 = arith.constant dense<0.000000e+00> : vector<16xf32>
    %523 = vector.multi_reduction <add>, %522, %cst_327 [1] : vector<16x128xf32> to vector<16xf32>
    %524 = vector.shape_cast %523 : vector<16xf32> to vector<16x1xf32>
    %525 = vector.broadcast %7 : vector<1x1xf32> to vector<16x1xf32>
    %526 = arith.addf %524, %525 : vector<16x1xf32>
    %c0_328 = arith.constant 0 : index
    %c19_329 = arith.constant 19 : index
    %527 = vector.load %arg12[%c0_328, %c19_329] : memref<16x31xf32, #tpu.memory_space<vmem>>, vector<16x1xf32>
    tpu.vector_store %arg12[%c0_328, %c19_329], %526 {strides = array<i32>} : memref<16x31xf32, #tpu.memory_space<vmem>>, vector<16x1xf32>,
    %c0_330 = arith.constant 0 : index
    %c20 = arith.constant 20 : index
    %528 = vector.load %arg2[%c0_330, %c20] : memref<16x31xf32, #tpu.memory_space<vmem>>, vector<16x1xf32>
    %529 = vector.broadcast %528 : vector<16x1xf32> to vector<16x128xf32>
    %530 = vector.broadcast %6 : vector<1x128xf32> to vector<16x128xf32>
    %531 = arith.mulf %529, %530 : vector<16x128xf32>
    %532 = arith.addf %5, %531 : vector<16x128xf32>
    %533 = math.tanh %532 : vector<16x128xf32>
    %c0_331 = arith.constant 0 : index
    %c0_332 = arith.constant 0 : index
    %534 = vector.load %arg6[%c0_331, %c0_332] : memref<128x128xf32, #tpu.memory_space<vmem>>, vector<128x128xf32>
    %cst_333 = arith.constant dense<0.000000e+00> : vector<16x128xf32>
    %535 = tpu.matmul %533, %534, %cst_333 {dimension_numbers = #tpu.dot_dimension_numbers<[1], [0], [0], [1], [0, 0, 1, 1], [], []>} : vector<16x128xf32>, vector<128x128xf32>, vector<16x128xf32> -> vector<16x128xf32>
    %c0_334 = arith.constant 0 : index
    %c0_335 = arith.constant 0 : index
    %536 = vector.load %arg7[%c0_334, %c0_335] : memref<1x128xf32, #tpu.memory_space<vmem>>, vector<1x128xf32>
    %537 = vector.broadcast %536 : vector<1x128xf32> to vector<16x128xf32>
    %538 = arith.addf %535, %537 : vector<16x128xf32>
    %539 = math.tanh %538 : vector<16x128xf32>
    %c0_336 = arith.constant 0 : index
    %c0_337 = arith.constant 0 : index
    %540 = vector.load %arg8[%c0_336, %c0_337] : memref<128x128xf32, #tpu.memory_space<vmem>>, vector<128x128xf32>
    %cst_338 = arith.constant dense<0.000000e+00> : vector<16x128xf32>
    %541 = tpu.matmul %539, %540, %cst_338 {dimension_numbers = #tpu.dot_dimension_numbers<[1], [0], [0], [1], [0, 0, 1, 1], [], []>} : vector<16x128xf32>, vector<128x128xf32>, vector<16x128xf32> -> vector<16x128xf32>
    %c0_339 = arith.constant 0 : index
    %c0_340 = arith.constant 0 : index
    %542 = vector.load %arg9[%c0_339, %c0_340] : memref<1x128xf32, #tpu.memory_space<vmem>>, vector<1x128xf32>
    %543 = vector.broadcast %542 : vector<1x128xf32> to vector<16x128xf32>
    %544 = arith.addf %541, %543 : vector<16x128xf32>
    %545 = math.tanh %544 : vector<16x128xf32>
    %c0_341 = arith.constant 0 : index
    %c0_342 = arith.constant 0 : index
    %546 = vector.load %arg10[%c0_341, %c0_342] : memref<1x128xf32, #tpu.memory_space<vmem>>, vector<1x128xf32>
    %547 = vector.broadcast %546 : vector<1x128xf32> to vector<16x128xf32>
    %548 = arith.mulf %545, %547 : vector<16x128xf32>
    %cst_343 = arith.constant dense<0.000000e+00> : vector<16xf32>
    %549 = vector.multi_reduction <add>, %548, %cst_343 [1] : vector<16x128xf32> to vector<16xf32>
    %550 = vector.shape_cast %549 : vector<16xf32> to vector<16x1xf32>
    %551 = vector.broadcast %7 : vector<1x1xf32> to vector<16x1xf32>
    %552 = arith.addf %550, %551 : vector<16x1xf32>
    %c0_344 = arith.constant 0 : index
    %c20_345 = arith.constant 20 : index
    %553 = vector.load %arg12[%c0_344, %c20_345] : memref<16x31xf32, #tpu.memory_space<vmem>>, vector<16x1xf32>
    tpu.vector_store %arg12[%c0_344, %c20_345], %552 {strides = array<i32>} : memref<16x31xf32, #tpu.memory_space<vmem>>, vector<16x1xf32>,
    %c0_346 = arith.constant 0 : index
    %c21 = arith.constant 21 : index
    %554 = vector.load %arg2[%c0_346, %c21] : memref<16x31xf32, #tpu.memory_space<vmem>>, vector<16x1xf32>
    %555 = vector.broadcast %554 : vector<16x1xf32> to vector<16x128xf32>
    %556 = vector.broadcast %6 : vector<1x128xf32> to vector<16x128xf32>
    %557 = arith.mulf %555, %556 : vector<16x128xf32>
    %558 = arith.addf %5, %557 : vector<16x128xf32>
    %559 = math.tanh %558 : vector<16x128xf32>
    %c0_347 = arith.constant 0 : index
    %c0_348 = arith.constant 0 : index
    %560 = vector.load %arg6[%c0_347, %c0_348] : memref<128x128xf32, #tpu.memory_space<vmem>>, vector<128x128xf32>
    %cst_349 = arith.constant dense<0.000000e+00> : vector<16x128xf32>
    %561 = tpu.matmul %559, %560, %cst_349 {dimension_numbers = #tpu.dot_dimension_numbers<[1], [0], [0], [1], [0, 0, 1, 1], [], []>} : vector<16x128xf32>, vector<128x128xf32>, vector<16x128xf32> -> vector<16x128xf32>
    %c0_350 = arith.constant 0 : index
    %c0_351 = arith.constant 0 : index
    %562 = vector.load %arg7[%c0_350, %c0_351] : memref<1x128xf32, #tpu.memory_space<vmem>>, vector<1x128xf32>
    %563 = vector.broadcast %562 : vector<1x128xf32> to vector<16x128xf32>
    %564 = arith.addf %561, %563 : vector<16x128xf32>
    %565 = math.tanh %564 : vector<16x128xf32>
    %c0_352 = arith.constant 0 : index
    %c0_353 = arith.constant 0 : index
    %566 = vector.load %arg8[%c0_352, %c0_353] : memref<128x128xf32, #tpu.memory_space<vmem>>, vector<128x128xf32>
    %cst_354 = arith.constant dense<0.000000e+00> : vector<16x128xf32>
    %567 = tpu.matmul %565, %566, %cst_354 {dimension_numbers = #tpu.dot_dimension_numbers<[1], [0], [0], [1], [0, 0, 1, 1], [], []>} : vector<16x128xf32>, vector<128x128xf32>, vector<16x128xf32> -> vector<16x128xf32>
    %c0_355 = arith.constant 0 : index
    %c0_356 = arith.constant 0 : index
    %568 = vector.load %arg9[%c0_355, %c0_356] : memref<1x128xf32, #tpu.memory_space<vmem>>, vector<1x128xf32>
    %569 = vector.broadcast %568 : vector<1x128xf32> to vector<16x128xf32>
    %570 = arith.addf %567, %569 : vector<16x128xf32>
    %571 = math.tanh %570 : vector<16x128xf32>
    %c0_357 = arith.constant 0 : index
    %c0_358 = arith.constant 0 : index
    %572 = vector.load %arg10[%c0_357, %c0_358] : memref<1x128xf32, #tpu.memory_space<vmem>>, vector<1x128xf32>
    %573 = vector.broadcast %572 : vector<1x128xf32> to vector<16x128xf32>
    %574 = arith.mulf %571, %573 : vector<16x128xf32>
    %cst_359 = arith.constant dense<0.000000e+00> : vector<16xf32>
    %575 = vector.multi_reduction <add>, %574, %cst_359 [1] : vector<16x128xf32> to vector<16xf32>
    %576 = vector.shape_cast %575 : vector<16xf32> to vector<16x1xf32>
    %577 = vector.broadcast %7 : vector<1x1xf32> to vector<16x1xf32>
    %578 = arith.addf %576, %577 : vector<16x1xf32>
    %c0_360 = arith.constant 0 : index
    %c21_361 = arith.constant 21 : index
    %579 = vector.load %arg12[%c0_360, %c21_361] : memref<16x31xf32, #tpu.memory_space<vmem>>, vector<16x1xf32>
    tpu.vector_store %arg12[%c0_360, %c21_361], %578 {strides = array<i32>} : memref<16x31xf32, #tpu.memory_space<vmem>>, vector<16x1xf32>,
    %c0_362 = arith.constant 0 : index
    %c22 = arith.constant 22 : index
    %580 = vector.load %arg2[%c0_362, %c22] : memref<16x31xf32, #tpu.memory_space<vmem>>, vector<16x1xf32>
    %581 = vector.broadcast %580 : vector<16x1xf32> to vector<16x128xf32>
    %582 = vector.broadcast %6 : vector<1x128xf32> to vector<16x128xf32>
    %583 = arith.mulf %581, %582 : vector<16x128xf32>
    %584 = arith.addf %5, %583 : vector<16x128xf32>
    %585 = math.tanh %584 : vector<16x128xf32>
    %c0_363 = arith.constant 0 : index
    %c0_364 = arith.constant 0 : index
    %586 = vector.load %arg6[%c0_363, %c0_364] : memref<128x128xf32, #tpu.memory_space<vmem>>, vector<128x128xf32>
    %cst_365 = arith.constant dense<0.000000e+00> : vector<16x128xf32>
    %587 = tpu.matmul %585, %586, %cst_365 {dimension_numbers = #tpu.dot_dimension_numbers<[1], [0], [0], [1], [0, 0, 1, 1], [], []>} : vector<16x128xf32>, vector<128x128xf32>, vector<16x128xf32> -> vector<16x128xf32>
    %c0_366 = arith.constant 0 : index
    %c0_367 = arith.constant 0 : index
    %588 = vector.load %arg7[%c0_366, %c0_367] : memref<1x128xf32, #tpu.memory_space<vmem>>, vector<1x128xf32>
    %589 = vector.broadcast %588 : vector<1x128xf32> to vector<16x128xf32>
    %590 = arith.addf %587, %589 : vector<16x128xf32>
    %591 = math.tanh %590 : vector<16x128xf32>
    %c0_368 = arith.constant 0 : index
    %c0_369 = arith.constant 0 : index
    %592 = vector.load %arg8[%c0_368, %c0_369] : memref<128x128xf32, #tpu.memory_space<vmem>>, vector<128x128xf32>
    %cst_370 = arith.constant dense<0.000000e+00> : vector<16x128xf32>
    %593 = tpu.matmul %591, %592, %cst_370 {dimension_numbers = #tpu.dot_dimension_numbers<[1], [0], [0], [1], [0, 0, 1, 1], [], []>} : vector<16x128xf32>, vector<128x128xf32>, vector<16x128xf32> -> vector<16x128xf32>
    %c0_371 = arith.constant 0 : index
    %c0_372 = arith.constant 0 : index
    %594 = vector.load %arg9[%c0_371, %c0_372] : memref<1x128xf32, #tpu.memory_space<vmem>>, vector<1x128xf32>
    %595 = vector.broadcast %594 : vector<1x128xf32> to vector<16x128xf32>
    %596 = arith.addf %593, %595 : vector<16x128xf32>
    %597 = math.tanh %596 : vector<16x128xf32>
    %c0_373 = arith.constant 0 : index
    %c0_374 = arith.constant 0 : index
    %598 = vector.load %arg10[%c0_373, %c0_374] : memref<1x128xf32, #tpu.memory_space<vmem>>, vector<1x128xf32>
    %599 = vector.broadcast %598 : vector<1x128xf32> to vector<16x128xf32>
    %600 = arith.mulf %597, %599 : vector<16x128xf32>
    %cst_375 = arith.constant dense<0.000000e+00> : vector<16xf32>
    %601 = vector.multi_reduction <add>, %600, %cst_375 [1] : vector<16x128xf32> to vector<16xf32>
    %602 = vector.shape_cast %601 : vector<16xf32> to vector<16x1xf32>
    %603 = vector.broadcast %7 : vector<1x1xf32> to vector<16x1xf32>
    %604 = arith.addf %602, %603 : vector<16x1xf32>
    %c0_376 = arith.constant 0 : index
    %c22_377 = arith.constant 22 : index
    %605 = vector.load %arg12[%c0_376, %c22_377] : memref<16x31xf32, #tpu.memory_space<vmem>>, vector<16x1xf32>
    tpu.vector_store %arg12[%c0_376, %c22_377], %604 {strides = array<i32>} : memref<16x31xf32, #tpu.memory_space<vmem>>, vector<16x1xf32>,
    %c0_378 = arith.constant 0 : index
    %c23 = arith.constant 23 : index
    %606 = vector.load %arg2[%c0_378, %c23] : memref<16x31xf32, #tpu.memory_space<vmem>>, vector<16x1xf32>
    %607 = vector.broadcast %606 : vector<16x1xf32> to vector<16x128xf32>
    %608 = vector.broadcast %6 : vector<1x128xf32> to vector<16x128xf32>
    %609 = arith.mulf %607, %608 : vector<16x128xf32>
    %610 = arith.addf %5, %609 : vector<16x128xf32>
    %611 = math.tanh %610 : vector<16x128xf32>
    %c0_379 = arith.constant 0 : index
    %c0_380 = arith.constant 0 : index
    %612 = vector.load %arg6[%c0_379, %c0_380] : memref<128x128xf32, #tpu.memory_space<vmem>>, vector<128x128xf32>
    %cst_381 = arith.constant dense<0.000000e+00> : vector<16x128xf32>
    %613 = tpu.matmul %611, %612, %cst_381 {dimension_numbers = #tpu.dot_dimension_numbers<[1], [0], [0], [1], [0, 0, 1, 1], [], []>} : vector<16x128xf32>, vector<128x128xf32>, vector<16x128xf32> -> vector<16x128xf32>
    %c0_382 = arith.constant 0 : index
    %c0_383 = arith.constant 0 : index
    %614 = vector.load %arg7[%c0_382, %c0_383] : memref<1x128xf32, #tpu.memory_space<vmem>>, vector<1x128xf32>
    %615 = vector.broadcast %614 : vector<1x128xf32> to vector<16x128xf32>
    %616 = arith.addf %613, %615 : vector<16x128xf32>
    %617 = math.tanh %616 : vector<16x128xf32>
    %c0_384 = arith.constant 0 : index
    %c0_385 = arith.constant 0 : index
    %618 = vector.load %arg8[%c0_384, %c0_385] : memref<128x128xf32, #tpu.memory_space<vmem>>, vector<128x128xf32>
    %cst_386 = arith.constant dense<0.000000e+00> : vector<16x128xf32>
    %619 = tpu.matmul %617, %618, %cst_386 {dimension_numbers = #tpu.dot_dimension_numbers<[1], [0], [0], [1], [0, 0, 1, 1], [], []>} : vector<16x128xf32>, vector<128x128xf32>, vector<16x128xf32> -> vector<16x128xf32>
    %c0_387 = arith.constant 0 : index
    %c0_388 = arith.constant 0 : index
    %620 = vector.load %arg9[%c0_387, %c0_388] : memref<1x128xf32, #tpu.memory_space<vmem>>, vector<1x128xf32>
    %621 = vector.broadcast %620 : vector<1x128xf32> to vector<16x128xf32>
    %622 = arith.addf %619, %621 : vector<16x128xf32>
    %623 = math.tanh %622 : vector<16x128xf32>
    %c0_389 = arith.constant 0 : index
    %c0_390 = arith.constant 0 : index
    %624 = vector.load %arg10[%c0_389, %c0_390] : memref<1x128xf32, #tpu.memory_space<vmem>>, vector<1x128xf32>
    %625 = vector.broadcast %624 : vector<1x128xf32> to vector<16x128xf32>
    %626 = arith.mulf %623, %625 : vector<16x128xf32>
    %cst_391 = arith.constant dense<0.000000e+00> : vector<16xf32>
    %627 = vector.multi_reduction <add>, %626, %cst_391 [1] : vector<16x128xf32> to vector<16xf32>
    %628 = vector.shape_cast %627 : vector<16xf32> to vector<16x1xf32>
    %629 = vector.broadcast %7 : vector<1x1xf32> to vector<16x1xf32>
    %630 = arith.addf %628, %629 : vector<16x1xf32>
    %c0_392 = arith.constant 0 : index
    %c23_393 = arith.constant 23 : index
    %631 = vector.load %arg12[%c0_392, %c23_393] : memref<16x31xf32, #tpu.memory_space<vmem>>, vector<16x1xf32>
    tpu.vector_store %arg12[%c0_392, %c23_393], %630 {strides = array<i32>} : memref<16x31xf32, #tpu.memory_space<vmem>>, vector<16x1xf32>,
    %c0_394 = arith.constant 0 : index
    %c24 = arith.constant 24 : index
    %632 = vector.load %arg2[%c0_394, %c24] : memref<16x31xf32, #tpu.memory_space<vmem>>, vector<16x1xf32>
    %633 = vector.broadcast %632 : vector<16x1xf32> to vector<16x128xf32>
    %634 = vector.broadcast %6 : vector<1x128xf32> to vector<16x128xf32>
    %635 = arith.mulf %633, %634 : vector<16x128xf32>
    %636 = arith.addf %5, %635 : vector<16x128xf32>
    %637 = math.tanh %636 : vector<16x128xf32>
    %c0_395 = arith.constant 0 : index
    %c0_396 = arith.constant 0 : index
    %638 = vector.load %arg6[%c0_395, %c0_396] : memref<128x128xf32, #tpu.memory_space<vmem>>, vector<128x128xf32>
    %cst_397 = arith.constant dense<0.000000e+00> : vector<16x128xf32>
    %639 = tpu.matmul %637, %638, %cst_397 {dimension_numbers = #tpu.dot_dimension_numbers<[1], [0], [0], [1], [0, 0, 1, 1], [], []>} : vector<16x128xf32>, vector<128x128xf32>, vector<16x128xf32> -> vector<16x128xf32>
    %c0_398 = arith.constant 0 : index
    %c0_399 = arith.constant 0 : index
    %640 = vector.load %arg7[%c0_398, %c0_399] : memref<1x128xf32, #tpu.memory_space<vmem>>, vector<1x128xf32>
    %641 = vector.broadcast %640 : vector<1x128xf32> to vector<16x128xf32>
    %642 = arith.addf %639, %641 : vector<16x128xf32>
    %643 = math.tanh %642 : vector<16x128xf32>
    %c0_400 = arith.constant 0 : index
    %c0_401 = arith.constant 0 : index
    %644 = vector.load %arg8[%c0_400, %c0_401] : memref<128x128xf32, #tpu.memory_space<vmem>>, vector<128x128xf32>
    %cst_402 = arith.constant dense<0.000000e+00> : vector<16x128xf32>
    %645 = tpu.matmul %643, %644, %cst_402 {dimension_numbers = #tpu.dot_dimension_numbers<[1], [0], [0], [1], [0, 0, 1, 1], [], []>} : vector<16x128xf32>, vector<128x128xf32>, vector<16x128xf32> -> vector<16x128xf32>
    %c0_403 = arith.constant 0 : index
    %c0_404 = arith.constant 0 : index
    %646 = vector.load %arg9[%c0_403, %c0_404] : memref<1x128xf32, #tpu.memory_space<vmem>>, vector<1x128xf32>
    %647 = vector.broadcast %646 : vector<1x128xf32> to vector<16x128xf32>
    %648 = arith.addf %645, %647 : vector<16x128xf32>
    %649 = math.tanh %648 : vector<16x128xf32>
    %c0_405 = arith.constant 0 : index
    %c0_406 = arith.constant 0 : index
    %650 = vector.load %arg10[%c0_405, %c0_406] : memref<1x128xf32, #tpu.memory_space<vmem>>, vector<1x128xf32>
    %651 = vector.broadcast %650 : vector<1x128xf32> to vector<16x128xf32>
    %652 = arith.mulf %649, %651 : vector<16x128xf32>
    %cst_407 = arith.constant dense<0.000000e+00> : vector<16xf32>
    %653 = vector.multi_reduction <add>, %652, %cst_407 [1] : vector<16x128xf32> to vector<16xf32>
    %654 = vector.shape_cast %653 : vector<16xf32> to vector<16x1xf32>
    %655 = vector.broadcast %7 : vector<1x1xf32> to vector<16x1xf32>
    %656 = arith.addf %654, %655 : vector<16x1xf32>
    %c0_408 = arith.constant 0 : index
    %c24_409 = arith.constant 24 : index
    %657 = vector.load %arg12[%c0_408, %c24_409] : memref<16x31xf32, #tpu.memory_space<vmem>>, vector<16x1xf32>
    tpu.vector_store %arg12[%c0_408, %c24_409], %656 {strides = array<i32>} : memref<16x31xf32, #tpu.memory_space<vmem>>, vector<16x1xf32>,
    %c0_410 = arith.constant 0 : index
    %c25 = arith.constant 25 : index
    %658 = vector.load %arg2[%c0_410, %c25] : memref<16x31xf32, #tpu.memory_space<vmem>>, vector<16x1xf32>
    %659 = vector.broadcast %658 : vector<16x1xf32> to vector<16x128xf32>
    %660 = vector.broadcast %6 : vector<1x128xf32> to vector<16x128xf32>
    %661 = arith.mulf %659, %660 : vector<16x128xf32>
    %662 = arith.addf %5, %661 : vector<16x128xf32>
    %663 = math.tanh %662 : vector<16x128xf32>
    %c0_411 = arith.constant 0 : index
    %c0_412 = arith.constant 0 : index
    %664 = vector.load %arg6[%c0_411, %c0_412] : memref<128x128xf32, #tpu.memory_space<vmem>>, vector<128x128xf32>
    %cst_413 = arith.constant dense<0.000000e+00> : vector<16x128xf32>
    %665 = tpu.matmul %663, %664, %cst_413 {dimension_numbers = #tpu.dot_dimension_numbers<[1], [0], [0], [1], [0, 0, 1, 1], [], []>} : vector<16x128xf32>, vector<128x128xf32>, vector<16x128xf32> -> vector<16x128xf32>
    %c0_414 = arith.constant 0 : index
    %c0_415 = arith.constant 0 : index
    %666 = vector.load %arg7[%c0_414, %c0_415] : memref<1x128xf32, #tpu.memory_space<vmem>>, vector<1x128xf32>
    %667 = vector.broadcast %666 : vector<1x128xf32> to vector<16x128xf32>
    %668 = arith.addf %665, %667 : vector<16x128xf32>
    %669 = math.tanh %668 : vector<16x128xf32>
    %c0_416 = arith.constant 0 : index
    %c0_417 = arith.constant 0 : index
    %670 = vector.load %arg8[%c0_416, %c0_417] : memref<128x128xf32, #tpu.memory_space<vmem>>, vector<128x128xf32>
    %cst_418 = arith.constant dense<0.000000e+00> : vector<16x128xf32>
    %671 = tpu.matmul %669, %670, %cst_418 {dimension_numbers = #tpu.dot_dimension_numbers<[1], [0], [0], [1], [0, 0, 1, 1], [], []>} : vector<16x128xf32>, vector<128x128xf32>, vector<16x128xf32> -> vector<16x128xf32>
    %c0_419 = arith.constant 0 : index
    %c0_420 = arith.constant 0 : index
    %672 = vector.load %arg9[%c0_419, %c0_420] : memref<1x128xf32, #tpu.memory_space<vmem>>, vector<1x128xf32>
    %673 = vector.broadcast %672 : vector<1x128xf32> to vector<16x128xf32>
    %674 = arith.addf %671, %673 : vector<16x128xf32>
    %675 = math.tanh %674 : vector<16x128xf32>
    %c0_421 = arith.constant 0 : index
    %c0_422 = arith.constant 0 : index
    %676 = vector.load %arg10[%c0_421, %c0_422] : memref<1x128xf32, #tpu.memory_space<vmem>>, vector<1x128xf32>
    %677 = vector.broadcast %676 : vector<1x128xf32> to vector<16x128xf32>
    %678 = arith.mulf %675, %677 : vector<16x128xf32>
    %cst_423 = arith.constant dense<0.000000e+00> : vector<16xf32>
    %679 = vector.multi_reduction <add>, %678, %cst_423 [1] : vector<16x128xf32> to vector<16xf32>
    %680 = vector.shape_cast %679 : vector<16xf32> to vector<16x1xf32>
    %681 = vector.broadcast %7 : vector<1x1xf32> to vector<16x1xf32>
    %682 = arith.addf %680, %681 : vector<16x1xf32>
    %c0_424 = arith.constant 0 : index
    %c25_425 = arith.constant 25 : index
    %683 = vector.load %arg12[%c0_424, %c25_425] : memref<16x31xf32, #tpu.memory_space<vmem>>, vector<16x1xf32>
    tpu.vector_store %arg12[%c0_424, %c25_425], %682 {strides = array<i32>} : memref<16x31xf32, #tpu.memory_space<vmem>>, vector<16x1xf32>,
    %c0_426 = arith.constant 0 : index
    %c26 = arith.constant 26 : index
    %684 = vector.load %arg2[%c0_426, %c26] : memref<16x31xf32, #tpu.memory_space<vmem>>, vector<16x1xf32>
    %685 = vector.broadcast %684 : vector<16x1xf32> to vector<16x128xf32>
    %686 = vector.broadcast %6 : vector<1x128xf32> to vector<16x128xf32>
    %687 = arith.mulf %685, %686 : vector<16x128xf32>
    %688 = arith.addf %5, %687 : vector<16x128xf32>
    %689 = math.tanh %688 : vector<16x128xf32>
    %c0_427 = arith.constant 0 : index
    %c0_428 = arith.constant 0 : index
    %690 = vector.load %arg6[%c0_427, %c0_428] : memref<128x128xf32, #tpu.memory_space<vmem>>, vector<128x128xf32>
    %cst_429 = arith.constant dense<0.000000e+00> : vector<16x128xf32>
    %691 = tpu.matmul %689, %690, %cst_429 {dimension_numbers = #tpu.dot_dimension_numbers<[1], [0], [0], [1], [0, 0, 1, 1], [], []>} : vector<16x128xf32>, vector<128x128xf32>, vector<16x128xf32> -> vector<16x128xf32>
    %c0_430 = arith.constant 0 : index
    %c0_431 = arith.constant 0 : index
    %692 = vector.load %arg7[%c0_430, %c0_431] : memref<1x128xf32, #tpu.memory_space<vmem>>, vector<1x128xf32>
    %693 = vector.broadcast %692 : vector<1x128xf32> to vector<16x128xf32>
    %694 = arith.addf %691, %693 : vector<16x128xf32>
    %695 = math.tanh %694 : vector<16x128xf32>
    %c0_432 = arith.constant 0 : index
    %c0_433 = arith.constant 0 : index
    %696 = vector.load %arg8[%c0_432, %c0_433] : memref<128x128xf32, #tpu.memory_space<vmem>>, vector<128x128xf32>
    %cst_434 = arith.constant dense<0.000000e+00> : vector<16x128xf32>
    %697 = tpu.matmul %695, %696, %cst_434 {dimension_numbers = #tpu.dot_dimension_numbers<[1], [0], [0], [1], [0, 0, 1, 1], [], []>} : vector<16x128xf32>, vector<128x128xf32>, vector<16x128xf32> -> vector<16x128xf32>
    %c0_435 = arith.constant 0 : index
    %c0_436 = arith.constant 0 : index
    %698 = vector.load %arg9[%c0_435, %c0_436] : memref<1x128xf32, #tpu.memory_space<vmem>>, vector<1x128xf32>
    %699 = vector.broadcast %698 : vector<1x128xf32> to vector<16x128xf32>
    %700 = arith.addf %697, %699 : vector<16x128xf32>
    %701 = math.tanh %700 : vector<16x128xf32>
    %c0_437 = arith.constant 0 : index
    %c0_438 = arith.constant 0 : index
    %702 = vector.load %arg10[%c0_437, %c0_438] : memref<1x128xf32, #tpu.memory_space<vmem>>, vector<1x128xf32>
    %703 = vector.broadcast %702 : vector<1x128xf32> to vector<16x128xf32>
    %704 = arith.mulf %701, %703 : vector<16x128xf32>
    %cst_439 = arith.constant dense<0.000000e+00> : vector<16xf32>
    %705 = vector.multi_reduction <add>, %704, %cst_439 [1] : vector<16x128xf32> to vector<16xf32>
    %706 = vector.shape_cast %705 : vector<16xf32> to vector<16x1xf32>
    %707 = vector.broadcast %7 : vector<1x1xf32> to vector<16x1xf32>
    %708 = arith.addf %706, %707 : vector<16x1xf32>
    %c0_440 = arith.constant 0 : index
    %c26_441 = arith.constant 26 : index
    %709 = vector.load %arg12[%c0_440, %c26_441] : memref<16x31xf32, #tpu.memory_space<vmem>>, vector<16x1xf32>
    tpu.vector_store %arg12[%c0_440, %c26_441], %708 {strides = array<i32>} : memref<16x31xf32, #tpu.memory_space<vmem>>, vector<16x1xf32>,
    %c0_442 = arith.constant 0 : index
    %c27 = arith.constant 27 : index
    %710 = vector.load %arg2[%c0_442, %c27] : memref<16x31xf32, #tpu.memory_space<vmem>>, vector<16x1xf32>
    %711 = vector.broadcast %710 : vector<16x1xf32> to vector<16x128xf32>
    %712 = vector.broadcast %6 : vector<1x128xf32> to vector<16x128xf32>
    %713 = arith.mulf %711, %712 : vector<16x128xf32>
    %714 = arith.addf %5, %713 : vector<16x128xf32>
    %715 = math.tanh %714 : vector<16x128xf32>
    %c0_443 = arith.constant 0 : index
    %c0_444 = arith.constant 0 : index
    %716 = vector.load %arg6[%c0_443, %c0_444] : memref<128x128xf32, #tpu.memory_space<vmem>>, vector<128x128xf32>
    %cst_445 = arith.constant dense<0.000000e+00> : vector<16x128xf32>
    %717 = tpu.matmul %715, %716, %cst_445 {dimension_numbers = #tpu.dot_dimension_numbers<[1], [0], [0], [1], [0, 0, 1, 1], [], []>} : vector<16x128xf32>, vector<128x128xf32>, vector<16x128xf32> -> vector<16x128xf32>
    %c0_446 = arith.constant 0 : index
    %c0_447 = arith.constant 0 : index
    %718 = vector.load %arg7[%c0_446, %c0_447] : memref<1x128xf32, #tpu.memory_space<vmem>>, vector<1x128xf32>
    %719 = vector.broadcast %718 : vector<1x128xf32> to vector<16x128xf32>
    %720 = arith.addf %717, %719 : vector<16x128xf32>
    %721 = math.tanh %720 : vector<16x128xf32>
    %c0_448 = arith.constant 0 : index
    %c0_449 = arith.constant 0 : index
    %722 = vector.load %arg8[%c0_448, %c0_449] : memref<128x128xf32, #tpu.memory_space<vmem>>, vector<128x128xf32>
    %cst_450 = arith.constant dense<0.000000e+00> : vector<16x128xf32>
    %723 = tpu.matmul %721, %722, %cst_450 {dimension_numbers = #tpu.dot_dimension_numbers<[1], [0], [0], [1], [0, 0, 1, 1], [], []>} : vector<16x128xf32>, vector<128x128xf32>, vector<16x128xf32> -> vector<16x128xf32>
    %c0_451 = arith.constant 0 : index
    %c0_452 = arith.constant 0 : index
    %724 = vector.load %arg9[%c0_451, %c0_452] : memref<1x128xf32, #tpu.memory_space<vmem>>, vector<1x128xf32>
    %725 = vector.broadcast %724 : vector<1x128xf32> to vector<16x128xf32>
    %726 = arith.addf %723, %725 : vector<16x128xf32>
    %727 = math.tanh %726 : vector<16x128xf32>
    %c0_453 = arith.constant 0 : index
    %c0_454 = arith.constant 0 : index
    %728 = vector.load %arg10[%c0_453, %c0_454] : memref<1x128xf32, #tpu.memory_space<vmem>>, vector<1x128xf32>
    %729 = vector.broadcast %728 : vector<1x128xf32> to vector<16x128xf32>
    %730 = arith.mulf %727, %729 : vector<16x128xf32>
    %cst_455 = arith.constant dense<0.000000e+00> : vector<16xf32>
    %731 = vector.multi_reduction <add>, %730, %cst_455 [1] : vector<16x128xf32> to vector<16xf32>
    %732 = vector.shape_cast %731 : vector<16xf32> to vector<16x1xf32>
    %733 = vector.broadcast %7 : vector<1x1xf32> to vector<16x1xf32>
    %734 = arith.addf %732, %733 : vector<16x1xf32>
    %c0_456 = arith.constant 0 : index
    %c27_457 = arith.constant 27 : index
    %735 = vector.load %arg12[%c0_456, %c27_457] : memref<16x31xf32, #tpu.memory_space<vmem>>, vector<16x1xf32>
    tpu.vector_store %arg12[%c0_456, %c27_457], %734 {strides = array<i32>} : memref<16x31xf32, #tpu.memory_space<vmem>>, vector<16x1xf32>,
    %c0_458 = arith.constant 0 : index
    %c28 = arith.constant 28 : index
    %736 = vector.load %arg2[%c0_458, %c28] : memref<16x31xf32, #tpu.memory_space<vmem>>, vector<16x1xf32>
    %737 = vector.broadcast %736 : vector<16x1xf32> to vector<16x128xf32>
    %738 = vector.broadcast %6 : vector<1x128xf32> to vector<16x128xf32>
    %739 = arith.mulf %737, %738 : vector<16x128xf32>
    %740 = arith.addf %5, %739 : vector<16x128xf32>
    %741 = math.tanh %740 : vector<16x128xf32>
    %c0_459 = arith.constant 0 : index
    %c0_460 = arith.constant 0 : index
    %742 = vector.load %arg6[%c0_459, %c0_460] : memref<128x128xf32, #tpu.memory_space<vmem>>, vector<128x128xf32>
    %cst_461 = arith.constant dense<0.000000e+00> : vector<16x128xf32>
    %743 = tpu.matmul %741, %742, %cst_461 {dimension_numbers = #tpu.dot_dimension_numbers<[1], [0], [0], [1], [0, 0, 1, 1], [], []>} : vector<16x128xf32>, vector<128x128xf32>, vector<16x128xf32> -> vector<16x128xf32>
    %c0_462 = arith.constant 0 : index
    %c0_463 = arith.constant 0 : index
    %744 = vector.load %arg7[%c0_462, %c0_463] : memref<1x128xf32, #tpu.memory_space<vmem>>, vector<1x128xf32>
    %745 = vector.broadcast %744 : vector<1x128xf32> to vector<16x128xf32>
    %746 = arith.addf %743, %745 : vector<16x128xf32>
    %747 = math.tanh %746 : vector<16x128xf32>
    %c0_464 = arith.constant 0 : index
    %c0_465 = arith.constant 0 : index
    %748 = vector.load %arg8[%c0_464, %c0_465] : memref<128x128xf32, #tpu.memory_space<vmem>>, vector<128x128xf32>
    %cst_466 = arith.constant dense<0.000000e+00> : vector<16x128xf32>
    %749 = tpu.matmul %747, %748, %cst_466 {dimension_numbers = #tpu.dot_dimension_numbers<[1], [0], [0], [1], [0, 0, 1, 1], [], []>} : vector<16x128xf32>, vector<128x128xf32>, vector<16x128xf32> -> vector<16x128xf32>
    %c0_467 = arith.constant 0 : index
    %c0_468 = arith.constant 0 : index
    %750 = vector.load %arg9[%c0_467, %c0_468] : memref<1x128xf32, #tpu.memory_space<vmem>>, vector<1x128xf32>
    %751 = vector.broadcast %750 : vector<1x128xf32> to vector<16x128xf32>
    %752 = arith.addf %749, %751 : vector<16x128xf32>
    %753 = math.tanh %752 : vector<16x128xf32>
    %c0_469 = arith.constant 0 : index
    %c0_470 = arith.constant 0 : index
    %754 = vector.load %arg10[%c0_469, %c0_470] : memref<1x128xf32, #tpu.memory_space<vmem>>, vector<1x128xf32>
    %755 = vector.broadcast %754 : vector<1x128xf32> to vector<16x128xf32>
    %756 = arith.mulf %753, %755 : vector<16x128xf32>
    %cst_471 = arith.constant dense<0.000000e+00> : vector<16xf32>
    %757 = vector.multi_reduction <add>, %756, %cst_471 [1] : vector<16x128xf32> to vector<16xf32>
    %758 = vector.shape_cast %757 : vector<16xf32> to vector<16x1xf32>
    %759 = vector.broadcast %7 : vector<1x1xf32> to vector<16x1xf32>
    %760 = arith.addf %758, %759 : vector<16x1xf32>
    %c0_472 = arith.constant 0 : index
    %c28_473 = arith.constant 28 : index
    %761 = vector.load %arg12[%c0_472, %c28_473] : memref<16x31xf32, #tpu.memory_space<vmem>>, vector<16x1xf32>
    tpu.vector_store %arg12[%c0_472, %c28_473], %760 {strides = array<i32>} : memref<16x31xf32, #tpu.memory_space<vmem>>, vector<16x1xf32>,
    %c0_474 = arith.constant 0 : index
    %c29 = arith.constant 29 : index
    %762 = vector.load %arg2[%c0_474, %c29] : memref<16x31xf32, #tpu.memory_space<vmem>>, vector<16x1xf32>
    %763 = vector.broadcast %762 : vector<16x1xf32> to vector<16x128xf32>
    %764 = vector.broadcast %6 : vector<1x128xf32> to vector<16x128xf32>
    %765 = arith.mulf %763, %764 : vector<16x128xf32>
    %766 = arith.addf %5, %765 : vector<16x128xf32>
    %767 = math.tanh %766 : vector<16x128xf32>
    %c0_475 = arith.constant 0 : index
    %c0_476 = arith.constant 0 : index
    %768 = vector.load %arg6[%c0_475, %c0_476] : memref<128x128xf32, #tpu.memory_space<vmem>>, vector<128x128xf32>
    %cst_477 = arith.constant dense<0.000000e+00> : vector<16x128xf32>
    %769 = tpu.matmul %767, %768, %cst_477 {dimension_numbers = #tpu.dot_dimension_numbers<[1], [0], [0], [1], [0, 0, 1, 1], [], []>} : vector<16x128xf32>, vector<128x128xf32>, vector<16x128xf32> -> vector<16x128xf32>
    %c0_478 = arith.constant 0 : index
    %c0_479 = arith.constant 0 : index
    %770 = vector.load %arg7[%c0_478, %c0_479] : memref<1x128xf32, #tpu.memory_space<vmem>>, vector<1x128xf32>
    %771 = vector.broadcast %770 : vector<1x128xf32> to vector<16x128xf32>
    %772 = arith.addf %769, %771 : vector<16x128xf32>
    %773 = math.tanh %772 : vector<16x128xf32>
    %c0_480 = arith.constant 0 : index
    %c0_481 = arith.constant 0 : index
    %774 = vector.load %arg8[%c0_480, %c0_481] : memref<128x128xf32, #tpu.memory_space<vmem>>, vector<128x128xf32>
    %cst_482 = arith.constant dense<0.000000e+00> : vector<16x128xf32>
    %775 = tpu.matmul %773, %774, %cst_482 {dimension_numbers = #tpu.dot_dimension_numbers<[1], [0], [0], [1], [0, 0, 1, 1], [], []>} : vector<16x128xf32>, vector<128x128xf32>, vector<16x128xf32> -> vector<16x128xf32>
    %c0_483 = arith.constant 0 : index
    %c0_484 = arith.constant 0 : index
    %776 = vector.load %arg9[%c0_483, %c0_484] : memref<1x128xf32, #tpu.memory_space<vmem>>, vector<1x128xf32>
    %777 = vector.broadcast %776 : vector<1x128xf32> to vector<16x128xf32>
    %778 = arith.addf %775, %777 : vector<16x128xf32>
    %779 = math.tanh %778 : vector<16x128xf32>
    %c0_485 = arith.constant 0 : index
    %c0_486 = arith.constant 0 : index
    %780 = vector.load %arg10[%c0_485, %c0_486] : memref<1x128xf32, #tpu.memory_space<vmem>>, vector<1x128xf32>
    %781 = vector.broadcast %780 : vector<1x128xf32> to vector<16x128xf32>
    %782 = arith.mulf %779, %781 : vector<16x128xf32>
    %cst_487 = arith.constant dense<0.000000e+00> : vector<16xf32>
    %783 = vector.multi_reduction <add>, %782, %cst_487 [1] : vector<16x128xf32> to vector<16xf32>
    %784 = vector.shape_cast %783 : vector<16xf32> to vector<16x1xf32>
    %785 = vector.broadcast %7 : vector<1x1xf32> to vector<16x1xf32>
    %786 = arith.addf %784, %785 : vector<16x1xf32>
    %c0_488 = arith.constant 0 : index
    %c29_489 = arith.constant 29 : index
    %787 = vector.load %arg12[%c0_488, %c29_489] : memref<16x31xf32, #tpu.memory_space<vmem>>, vector<16x1xf32>
    tpu.vector_store %arg12[%c0_488, %c29_489], %786 {strides = array<i32>} : memref<16x31xf32, #tpu.memory_space<vmem>>, vector<16x1xf32>,
    %c0_490 = arith.constant 0 : index
    %c30 = arith.constant 30 : index
    %788 = vector.load %arg2[%c0_490, %c30] : memref<16x31xf32, #tpu.memory_space<vmem>>, vector<16x1xf32>
    %789 = vector.broadcast %788 : vector<16x1xf32> to vector<16x128xf32>
    %790 = vector.broadcast %6 : vector<1x128xf32> to vector<16x128xf32>
    %791 = arith.mulf %789, %790 : vector<16x128xf32>
    %792 = arith.addf %5, %791 : vector<16x128xf32>
    %793 = math.tanh %792 : vector<16x128xf32>
    %c0_491 = arith.constant 0 : index
    %c0_492 = arith.constant 0 : index
    %794 = vector.load %arg6[%c0_491, %c0_492] : memref<128x128xf32, #tpu.memory_space<vmem>>, vector<128x128xf32>
    %cst_493 = arith.constant dense<0.000000e+00> : vector<16x128xf32>
    %795 = tpu.matmul %793, %794, %cst_493 {dimension_numbers = #tpu.dot_dimension_numbers<[1], [0], [0], [1], [0, 0, 1, 1], [], []>} : vector<16x128xf32>, vector<128x128xf32>, vector<16x128xf32> -> vector<16x128xf32>
    %c0_494 = arith.constant 0 : index
    %c0_495 = arith.constant 0 : index
    %796 = vector.load %arg7[%c0_494, %c0_495] : memref<1x128xf32, #tpu.memory_space<vmem>>, vector<1x128xf32>
    %797 = vector.broadcast %796 : vector<1x128xf32> to vector<16x128xf32>
    %798 = arith.addf %795, %797 : vector<16x128xf32>
    %799 = math.tanh %798 : vector<16x128xf32>
    %c0_496 = arith.constant 0 : index
    %c0_497 = arith.constant 0 : index
    %800 = vector.load %arg8[%c0_496, %c0_497] : memref<128x128xf32, #tpu.memory_space<vmem>>, vector<128x128xf32>
    %cst_498 = arith.constant dense<0.000000e+00> : vector<16x128xf32>
    %801 = tpu.matmul %799, %800, %cst_498 {dimension_numbers = #tpu.dot_dimension_numbers<[1], [0], [0], [1], [0, 0, 1, 1], [], []>} : vector<16x128xf32>, vector<128x128xf32>, vector<16x128xf32> -> vector<16x128xf32>
    %c0_499 = arith.constant 0 : index
    %c0_500 = arith.constant 0 : index
    %802 = vector.load %arg9[%c0_499, %c0_500] : memref<1x128xf32, #tpu.memory_space<vmem>>, vector<1x128xf32>
    %803 = vector.broadcast %802 : vector<1x128xf32> to vector<16x128xf32>
    %804 = arith.addf %801, %803 : vector<16x128xf32>
    %805 = math.tanh %804 : vector<16x128xf32>
    %c0_501 = arith.constant 0 : index
    %c0_502 = arith.constant 0 : index
    %806 = vector.load %arg10[%c0_501, %c0_502] : memref<1x128xf32, #tpu.memory_space<vmem>>, vector<1x128xf32>
    %807 = vector.broadcast %806 : vector<1x128xf32> to vector<16x128xf32>
    %808 = arith.mulf %805, %807 : vector<16x128xf32>
    %cst_503 = arith.constant dense<0.000000e+00> : vector<16xf32>
    %809 = vector.multi_reduction <add>, %808, %cst_503 [1] : vector<16x128xf32> to vector<16xf32>
    %810 = vector.shape_cast %809 : vector<16xf32> to vector<16x1xf32>
    %811 = vector.broadcast %7 : vector<1x1xf32> to vector<16x1xf32>
    %812 = arith.addf %810, %811 : vector<16x1xf32>
    %c0_504 = arith.constant 0 : index
    %c30_505 = arith.constant 30 : index
    %813 = vector.load %arg12[%c0_504, %c30_505] : memref<16x31xf32, #tpu.memory_space<vmem>>, vector<16x1xf32>
    tpu.vector_store %arg12[%c0_504, %c30_505], %812 {strides = array<i32>} : memref<16x31xf32, #tpu.memory_space<vmem>>, vector<16x1xf32>,
    return
  }
  func.func @transform_0(%arg0: i32) -> (i32, i32) {
    %c0_i32 = arith.constant 0 : i32
    %c0_i32_0 = arith.constant 0 : i32
    return %arg0, %c0_i32 : i32, i32
  }
  func.func @transform_1(%arg0: i32) -> (i32, i32) {
    %c0_i32 = arith.constant 0 : i32
    %c0_i32_0 = arith.constant 0 : i32
    return %arg0, %c0_i32 : i32, i32
  }
  func.func @transform_2(%arg0: i32) -> (i32, i32) {
    %c0_i32 = arith.constant 0 : i32
    %c0_i32_0 = arith.constant 0 : i32
    %c0_i32_1 = arith.constant 0 : i32
    return %c0_i32, %c0_i32_0 : i32, i32
  }
  func.func @transform_3(%arg0: i32) -> (i32, i32) {
    %c0_i32 = arith.constant 0 : i32
    %c0_i32_0 = arith.constant 0 : i32
    %c0_i32_1 = arith.constant 0 : i32
    return %c0_i32, %c0_i32_0 : i32, i32
  }
  func.func @transform_4(%arg0: i32) -> (i32, i32) {
    %c0_i32 = arith.constant 0 : i32
    %c0_i32_0 = arith.constant 0 : i32
    %c0_i32_1 = arith.constant 0 : i32
    return %c0_i32, %c0_i32_0 : i32, i32
  }
  func.func @transform_5(%arg0: i32) -> (i32, i32) {
    %c0_i32 = arith.constant 0 : i32
    %c0_i32_0 = arith.constant 0 : i32
    %c0_i32_1 = arith.constant 0 : i32
    return %c0_i32, %c0_i32_0 : i32, i32
  }
  func.func @transform_6(%arg0: i32) -> (i32, i32) {
    %c0_i32 = arith.constant 0 : i32
    %c0_i32_0 = arith.constant 0 : i32
    %c0_i32_1 = arith.constant 0 : i32
    return %c0_i32, %c0_i32_0 : i32, i32
  }
  func.func @transform_7(%arg0: i32) -> (i32, i32) {
    %c0_i32 = arith.constant 0 : i32
    %c0_i32_0 = arith.constant 0 : i32
    %c0_i32_1 = arith.constant 0 : i32
    return %c0_i32, %c0_i32_0 : i32, i32
  }
  func.func @transform_8(%arg0: i32) -> (i32, i32) {
    %c0_i32 = arith.constant 0 : i32
    %c0_i32_0 = arith.constant 0 : i32
    %c0_i32_1 = arith.constant 0 : i32
    return %c0_i32, %c0_i32_0 : i32, i32
  }
  func.func @transform_9(%arg0: i32) -> (i32, i32) {
    %c0_i32 = arith.constant 0 : i32
    %c0_i32_0 = arith.constant 0 : i32
    %c0_i32_1 = arith.constant 0 : i32
    return %c0_i32, %c0_i32_0 : i32, i32
  }
  func.func @transform_10(%arg0: i32) -> (i32, i32) {
    %c0_i32 = arith.constant 0 : i32
    %c0_i32_0 = arith.constant 0 : i32
    %c0_i32_1 = arith.constant 0 : i32
    return %c0_i32, %c0_i32_0 : i32, i32
  }
  func.func @transform_11(%arg0: i32) -> (i32, i32) {
    %c0_i32 = arith.constant 0 : i32
    %c0_i32_0 = arith.constant 0 : i32
    return %arg0, %c0_i32 : i32, i32
  }
}

</mosaic_0001>

<bundles_post_ra>
// kernel: learned_pdf_forward.1
= control target key start
LH: loop header
LB: loop body
LE: loop exit
PB: predicated region body
PF: predicated region fallthrough
CT: control target
= control target key end

     0   :  { %s16014_s0 = inlined_call_operand.vmem [shape: f32[16,13], index: 0, kind: input, shape index: {}]   ;;  %s16015_s1 = inlined_call_operand.vmem [shape: f32[16,31], index: 1, kind: input, shape index: {}]   ;;  %s16016_s2 = inlined_call_operand.vmem [shape: f32[13,128], index: 2, kind: input, shape index: {}]   ;;  %s16017_s3 = inlined_call_operand.vmem [shape: f32[1,128], index: 3, kind: input, shape index: {}]   ;;  %s16018_s4 = inlined_call_operand.vmem [shape: f32[1,128], index: 4, kind: input, shape index: {}]   ;;  %s16019_s5 = inlined_call_operand.hbm [shape: f32[128,128], index: 5, kind: input, shape index: {}]   ;;  %s16020_s6 = inlined_call_operand.vmem [shape: f32[1,128], index: 6, kind: input, shape index: {}]   ;;  %s16021_s7 = inlined_call_operand.hbm [shape: f32[128,128], index: 7, kind: input, shape index: {}]   ;;  %s16022_s8 = inlined_call_operand.vmem [shape: f32[1,128], index: 8, kind: input, shape index: {}]   ;;  %s16023_s9 = inlined_call_operand.vmem [shape: f32[1,128], index: 9, kind: input, shape index: {}]   ;;  %s16024_s10 = inlined_call_operand.<no memory space> [shape: f32[1,1], index: 10, kind: input, shape index: {}]   ;;  %s16025_s11 = inlined_call_operand.vmem [shape: f32[16,31], index: 11, kind: output, shape index: {}]  }
   0x1   :  { %v16_v0 = vstv %s16024_s10 }
   0x2   :  { %17 = vst [vmem:[#allocation2] sm:$0x1] %v16_v0 }
   0x3   :  { %18 = vsyncpa [#allocation4], 0 }
   0x4   :  { %19 = vsyncpa [#allocation6], 0  ;;  %s13664_s19 = smov [#allocation3]   ;;  %s13616_s23 = scalar_lea.hbm %s16019_s5, 2048 }
   0x5   :  { %s35_s20 = sshll.u32 %s13664_s19, 4  ;;  %p13617_p0 = scmp.ne.s32.totalorder %s16019_s5, %s13616_s23  ;;  %s36_s20 = int_to_ptr.vmem [resolvable:$true] %s35_s20 }
   0x6   :  { %p13620_p1 = scmp.lt.u32.totalorder %s13616_s23, %s16019_s5 }
   0x8   :  { %p13622_p2 = pnand %p13620_p1, %p13617_p0 }
   0xa   :  { %13625 = shalt.err (!%p13622_p2)
}
   0xb   :  { %s13626_s10 = scalar_lea.vmem %s36_s20, 2048  ;;  %p13631_p4 = scmp.lt.s32.totalorder %s36_s20, %s36_s20 }
   0xc   :  { %p13627_p3 = scmp.ne.s32.totalorder %s36_s20, %s13626_s10  ;;  %p13632_p5 = scmp.lt.s32.totalorder %s13626_s10, %s13626_s10 }
   0xe   :  { %p13633_p6 = por %p13632_p5, %p13631_p4 }
  0x10   :  { %p13634_p7 = pnand %p13633_p6, %p13627_p3 }
  0x12   :  { %13637 = shalt.err (!%p13634_p7)
}
  0x13   :  { %s13665_s28 = smov 128   ;;  %s13666_s29 = smov 8  }
  0x14   :  { %41 = dma.hbm_to_vmem [thread:$0]  %s16019_s5, 2048, %s36_s20, [#allocation4], %s13665_s28, %s13665_s28, %s13666_s29  }
  0x15   :  { %s13667_s13 = smov [#allocation5]   ;;  %s13638_s17 = scalar_lea.hbm %s16021_s7, 2048 }
  0x16   :  { %s49_s14 = sshll.u32 %s13667_s13, 4  ;;  %p13639_p8 = scmp.ne.s32.totalorder %s16021_s7, %s13638_s17  ;;  %s50_s14 = int_to_ptr.vmem [resolvable:$true] %s49_s14 }
  0x17   :  { %p13642_p9 = scmp.lt.u32.totalorder %s13638_s17, %s16021_s7 }
  0x19   :  { %p13644_p10 = pnand %p13642_p9, %p13639_p8 }
  0x1b   :  { %13647 = shalt.err (!%p13644_p10)
}
  0x1c   :  { %s13648_s23 = scalar_lea.vmem %s50_s14, 2048  ;;  %p13653_p12 = scmp.lt.s32.totalorder %s50_s14, %s50_s14 }
  0x1d   :  { %p13649_p11 = scmp.ne.s32.totalorder %s50_s14, %s13648_s23  ;;  %p13654_p13 = scmp.lt.s32.totalorder %s13648_s23, %s13648_s23 }
  0x1f   :  { %p13655_p0 = por %p13654_p13, %p13653_p12 }
  0x21   :  { %p13656_p1 = pnand %p13655_p0, %p13649_p11 }
  0x23   :  { %13659 = shalt.err (!%p13656_p1)
}
  0x24   :  { %55 = dma.hbm_to_vmem [thread:$0]  %s16021_s7, 2048, %s50_s14, [#allocation6], %s13665_s28, %s13665_s28, %s13666_s29  }
  0x25   :  { %13660 = dma.done.wait [#allocation4], 2048  }
  0x26   :  { %13661 = vsyncadd [#allocation4], 4294965248 }
  0x27   :  { %13662 = dma.done.wait [#allocation6], 2048  }
  0x28   :  { %13663 = vsyncadd [#allocation6], 4294965248  ;;  %v13668_v1 = vmov 1   ;;  %v13669_v2 = vmov 0   ;;  %vm86_vm0 = vcmask 1044480   ;;  %vm13670_vm1 = vmmov 1  }
  0x29   :  { %13193 = vset.pattern.permute.xlu1 %v13668_v1  ;;  %13192 = vset.pattern.permute.xlu0 %v13669_v2  ;;  %vm11138_vm2 = vmpackc.low %vm86_vm0, %vm13670_vm1  ;;  %vm79_vm3 = vcmask 105472   ;;  %v13821_v3 = vld [vmem:[%s16015_s1] sm:$0xff]  ;;  %v71_v5 = vld [vmem:[%s16016_s2 + $0x8] sm:$0x1f]  ;;  %v13671_v10 = vmov 2   ;;  %v13672_v11 = vmov 3  }
  0x2a   :  { %v70_v4 = vld [vmem:[%s16016_s2] sm:$0xff]  ;;  %419 = vperm.xlu1 %13193, %v13821_v3   ;;  %171 = vperm.xlu0 %13192, %v13821_v3   ;;  %v13837_v8 = vld [vmem:[%s16015_s1 + $0x8] sm:$0xff]  ;;  %v13673_v12 = vmov 4   ;;  %v13674_v13 = vmov 5   ;;  %v13675_v14 = vmov 6   ;;  %v13676_v15 = vmov 8  }
  0x2b   :  { %v11137_v6 = vpack.c.bf16 %v71_v5, %v70_v4  ;;  %v68_v7 = vld [vmem:[%s16014_s0] sm:$0xff]  ;;  %v69_v9 = vld [vmem:[%s16014_s0 + $0x8] sm:$0xff]  ;;  %v13677_v16 = vmov 9   ;;  %v13678_v17 = vmov 7   ;;  %v13679_v18 = vmov 11   ;;  %v193_v31 = vld [vmem:[#allocation3 + $0x10] sm:$0xff] }
  0x2c   :  { %8964 = vmatprep.mubr.msk.f32.mxu0 %vm79_vm3, %v68_v7  ;;  %v13680_v19 = vmov 12   ;;  %v13681_v20 = vmov 14   ;;  %v13682_v21 = vmov 15   ;;  %v13683_v22 = vmov 10   ;;  %v191_v26 = vld [vmem:[#allocation3] sm:$0xff]  ;;  %v192_v27 = vld [vmem:[#allocation3 + $0x8] sm:$0xff] }
  0x2d   :  { %11139 = vmatprep.subr.msk.bf16.mxu0 %vm11138_vm2, %v11137_v6  ;;  %v13684_v23 = vmov 17   ;;  %v13685_v24 = vmov 18   ;;  %v13686_v25 = vmov 19   ;;  %v13874_v28 = vpack.c.bf16 %v192_v27, %v191_v26  ;;  %v194_v32 = vld [vmem:[#allocation3 + $0x18] sm:$0xff]  ;;  %v195_v34 = vld [vmem:[#allocation3 + $0x20] sm:$0xff]  ;;  %v196_v35 = vld [vmem:[#allocation3 + $0x28] sm:$0xff] }
  0x2e   :  { %11142 = vmatpush3.bf16.msk.msra.mxu0 %vm11138_vm2, %v11137_v6  ;;  %424 = vperm.xlu1 %13193, %v13837_v8   ;;  %v13687_v29 = vmov 20   ;;  %v13688_v30 = vmov 13   ;;  %v13880_v33 = vpack.c.bf16 %v194_v32, %v193_v31  ;;  %v13886_v36 = vpack.c.bf16 %v196_v35, %v195_v34  ;;  %v197_v38 = vld [vmem:[#allocation3 + $0x30] sm:$0xff]  ;;  %v198_v39 = vld [vmem:[#allocation3 + $0x38] sm:$0xff]  ;;  %v199_v42 = vld [vmem:[#allocation3 + $0x40] sm:$0xff]  ;;  %s13700_s1 = smov 1  }
  0x2f   :  { %176 = vperm.xlu0 %13192, %v13837_v8   ;;  %11144 = vmatprep.subr.bf16.mxu1 %v13874_v28  ;;  %v13689_v37 = vmov 22   ;;  %v13892_v40 = vpack.c.bf16 %v198_v39, %v197_v38  ;;  %v13690_v41 = vmov 24   ;;  %v200_v43 = vld [vmem:[#allocation3 + $0x48] sm:$0xff]  ;;  %v201_v45 = vld [vmem:[#allocation3 + $0x50] sm:$0xff]  ;;  %v202_v46 = vld [vmem:[#allocation3 + $0x58] sm:$0xff]  ;;  %v13691_v48 = vmov 16  }
  0x30   :  { %11146 = vmatpush3.bf16.msra.mxu1 %v13874_v28  ;;  %v13898_v44 = vpack.c.bf16 %v200_v43, %v199_v42  ;;  %v13904_v47 = vpack.c.bf16 %v202_v46, %v201_v45  ;;  %v203_v49 = vld [vmem:[#allocation3 + $0x60] sm:$0xff]  ;;  %v204_v50 = vld [vmem:[#allocation3 + $0x68] sm:$0xff]  ;;  %v13692_v51 = vmov 25   ;;  %v205_v53 = vld [vmem:[#allocation3 + $0x70] sm:$0xff]  ;;  %v13693_v56 = vmov 27   ;;  %s13701_s2 = smov 2  }
  0x31   :  { %8965 = vmatmul.mubr.msk.f32.vlgmr.msra.gmra.mrb[0].mxu0 %vm79_vm3, %v69_v9  ;;  %11148 = vmatprep.subr.bf16.mxu1 %v13880_v33  ;;  %v13909_v52 = vpack.c.bf16 %v204_v50, %v203_v49  ;;  %v206_v54 = vld [vmem:[#allocation3 + $0x78] sm:$0xff]  ;;  %v13694_v57 = vmov 30   ;;  %v13695_v58 = vmov 21   ;;  %v13696_v59 = vmov 23   ;;  %v291_v35 = vld [vmem:[#allocation5] sm:$0xff]  ;;  %v293_v39 = vld [vmem:[#allocation5 + $0x10] sm:$0xff] }
  0x32   :  { %13195 = vset.pattern.permute.xlu1 %v13671_v10  ;;  %v13915_v55 = vpack.c.bf16 %v206_v54, %v205_v53  ;;  %v13697_v60 = vmov 26   ;;  %v13698_v61 = vmov 28   ;;  %v13699_v62 = vmov 29   ;;  %v13946_v0 = vld [vmem:[%s16017_s3] ss:$0 sm:$0xff]  ;;  %v295_v43 = vld [vmem:[#allocation5 + $0x20] sm:$0xff] }
  0x33   :  { %13194 = vset.pattern.permute.xlu0 %v13671_v10  ;;  %668 = vperm.xlu1 %13195, %v13837_v8   ;;  %v7741_v1 = vld [vmem:[%s16018_s4] ss:$0 sm:$0xff]  ;;  %v296_v45 = vld [vmem:[#allocation5 + $0x28] sm:$0xff]  ;;  %vm412_vm4 = vcmask 7168   ;;  %s13702_s17 = smov 3   ;;  %s13703_s18 = smov 4  }
  0x34   :  { %663 = vperm.xlu0 %13194, %v13821_v3   ;;  %11150 = vmatpush3.bf16.msra.mxu1 %v13880_v33  ;;  %v14015_v46 = vpack.c.bf16 %v296_v45, %v295_v43  ;;  %v298_v53 = vld [vmem:[#allocation5 + $0x38] sm:$0xff]  ;;  %vm656_vm5 = vcmask 15368   ;;  %vm900_vm6 = vcmask 23568   ;;  %s13704_s26 = smov 6   ;;  %s13705_s12 = smov 5   ;;  %vm1144_vm7 = vcmask 31768  }
  0x35   :  { %11152 = vmatprep.subr.bf16.mxu1 %v13886_v36  ;;  %vm1388_vm8 = vcmask 39968   ;;  %vm1632_vm9 = vcmask 48168   ;;  %s13707_s22 = smov 9   ;;  %vm1876_vm10 = vcmask 56368   ;;  %s13708_s25 = smov 10   ;;  %vm2120_vm11 = vcmask 64568  }
  0x36   :  { %s13709_s13 = smov 11   ;;  %vm2364_vm12 = vcmask 72768   ;;  %vm2608_vm13 = vcmask 80968   ;;  %s13711_s19 = smov 13   ;;  %vm2852_vm14 = vcmask 89168   ;;  %vm3096_vm15 = vcmask 97368  }
  0x37   :  { %13196 = vset.pattern.permute.xlu1 %v13672_v11  ;;  %s13712_s27 = smov 14   ;;  %s13713_s7 = smov 15   ;;  %vm3340_vm0 = vcmask 105568   ;;  %vm3584_vm1 = vcmask 113768   ;;  %vm3828_vm2 = vcmask 121968   ;;  %vm4072_vm3 = vcmask 130168  }
  0x38   :  { %13197 = vset.pattern.permute.xlu0 %v13672_v11  ;;  %907 = vperm.xlu1 %13196, %v13821_v3   ;;  %s13720_s16 = smov 22   ;;  %s13721_s4 = smov 23  }
  0x39   :  { %912 = vperm.xlu0 %13197, %v13837_v8   ;;  %11154 = vmatpush3.bf16.msra.mxu1 %v13886_v36  ;;  %s13722_s20 = smov 24   ;;  %s13723_s24 = smov 25  }
  0x3a   :  { %11156 = vmatprep.subr.bf16.mxu1 %v13892_v40 }
  0x3c   :  { %13198 = vset.pattern.permute.xlu1 %v13673_v12 }
  0x3d   :  { %13199 = vset.pattern.permute.xlu0 %v13674_v13  ;;  %1151 = vperm.xlu1 %13198, %v13821_v3  }
  0x3e   :  { %1395 = vperm.xlu0 %13199, %v13821_v3   ;;  %11158 = vmatpush3.bf16.msra.mxu1 %v13892_v40 }
  0x3f   :  { %11160 = vmatprep.subr.bf16.mxu1 %v13898_v44 }
  0x41   :  { %1156 = vperm.xlu1 %13198, %v13837_v8  }
  0x42   :  { %13202 = vset.pattern.permute.xlu0 %v13675_v14  ;;  %11162 = vmatpush3.bf16.msra.mxu1 %v13898_v44 }
  0x43   :  { %1644 = vperm.xlu0 %13202, %v13837_v8   ;;  %11164 = vmatprep.subr.bf16.mxu1 %v13904_v47 }
  0x45   :  { %13200 = vset.pattern.permute.xlu1 %v13674_v13 }
  0x46   :  { %1400 = vperm.xlu1 %13200, %v13837_v8   ;;  %11166 = vmatpush3.bf16.msra.mxu1 %v13904_v47 }
  0x47   :  { %13204 = vset.pattern.permute.xlu0 %v13676_v15  ;;  %11168 = vmatprep.subr.bf16.mxu1 %v13909_v52 }
  0x48   :  { %2127 = vperm.xlu0 %13204, %v13821_v3  }
  0x4a   :  { %13201 = vset.pattern.permute.xlu1 %v13675_v14  ;;  %11170 = vmatpush3.bf16.msra.mxu1 %v13909_v52 }
  0x4b   :  { %1639 = vperm.xlu1 %13201, %v13821_v3   ;;  %11172 = vmatprep.subr.bf16.mxu1 %v13915_v55 }
  0x4c   :  { %13207 = vset.pattern.permute.xlu0 %v13677_v16 }
  0x4d   :  { %2376 = vperm.xlu0 %13207, %v13837_v8  }
  0x4e   :  { %11174 = vmatpush3.bf16.msra.mxu1 %v13915_v55 }
  0x4f   :  { %13203 = vset.pattern.permute.xlu1 %v13678_v17  ;;  %11208 = vmatprep.subr.bf16.mxu1 %v13874_v28 }
  0x50   :  { %1883 = vperm.xlu1 %13203, %v13821_v3  }
  0x51   :  { %13209 = vset.pattern.permute.xlu0 %v13679_v18 }
  0x52   :  { %2859 = vperm.xlu0 %13209, %v13821_v3  }
  0x54   :  { %1888 = vperm.xlu1 %13203, %v13837_v8  }
  0x56   :  { %13212 = vset.pattern.permute.xlu0 %v13680_v19 }
  0x57   :  { %3108 = vperm.xlu0 %13212, %v13837_v8  }
  0x58   :  { %13205 = vset.pattern.permute.xlu1 %v13676_v15 }
  0x59   :  { %2132 = vperm.xlu1 %13205, %v13837_v8  }
  0x5b   :  { %13214 = vset.pattern.permute.xlu0 %v13681_v20 }
  0x5c   :  { %3591 = vperm.xlu0 %13214, %v13821_v3  }
  0x5d   :  { %13206 = vset.pattern.permute.xlu1 %v13677_v16 }
  0x5e   :  { %2371 = vperm.xlu1 %13206, %v13821_v3  }
  0x60   :  { %13217 = vset.pattern.permute.xlu0 %v13682_v21 }
  0x61   :  { %3840 = vperm.xlu0 %13217, %v13837_v8  }
  0x62   :  { %13208 = vset.pattern.permute.xlu1 %v13683_v22 }
  0x63   :  { %2615 = vperm.xlu1 %13208, %v13821_v3  }
  0x65   :  { %13219 = vset.pattern.permute.xlu0 %v13684_v23 }
  0x66   :  { %4323 = vperm.xlu0 %13219, %v13821_v3  }
  0x67   :  { %2620 = vperm.xlu1 %13208, %v13837_v8  }
  0x6a   :  { %13222 = vset.pattern.permute.xlu0 %v13685_v24 }
  0x6b   :  { %4572 = vperm.xlu0 %13222, %v13837_v8   ;;  %13210 = vset.pattern.permute.xlu1 %v13679_v18 }
  0x6c   :  { %2864 = vperm.xlu1 %13210, %v13837_v8  }
  0x6f   :  { %13223 = vset.pattern.permute.xlu0 %v13686_v25 }
  0x70   :  { %4811 = vperm.xlu0 %13223, %v13821_v3   ;;  %13211 = vset.pattern.permute.xlu1 %v13680_v19 }
  0x71   :  { %3103 = vperm.xlu1 %13211, %v13821_v3  }
  0x74   :  { %13225 = vset.pattern.permute.xlu0 %v13687_v29 }
  0x75   :  { %5055 = vperm.xlu0 %13225, %v13821_v3   ;;  %13213 = vset.pattern.permute.xlu1 %v13688_v30 }
  0x76   :  { %3347 = vperm.xlu1 %13213, %v13821_v3  }
  0x79   :  { %5060 = vperm.xlu0 %13225, %v13837_v8  }
  0x7a   :  { %3352 = vperm.xlu1 %13213, %v13837_v8  }
  0x7d   :  { %13227 = vset.pattern.permute.xlu0 %v13689_v37 }
  0x7e   :  { %5543 = vperm.xlu0 %13227, %v13821_v3   ;;  %13215 = vset.pattern.permute.xlu1 %v13681_v20 }
  0x7f   :  { %3596 = vperm.xlu1 %13215, %v13837_v8  }
  0x82   :  { %13230 = vset.pattern.permute.xlu0 %v13690_v41  ;;  %v294_v41 = vld [vmem:[#allocation5 + $0x18] sm:$0xff] }
  0x83   :  { %6031 = vperm.xlu0 %13230, %v13821_v3   ;;  %13216 = vset.pattern.permute.xlu1 %v13682_v21  ;;  %v14009_v42 = vpack.c.bf16 %v294_v41, %v293_v39 }
  0x84   :  { %3835 = vperm.xlu1 %13216, %v13821_v3  }
  0x87   :  { %6036 = vperm.xlu0 %13230, %v13837_v8  }
  0x88   :  { %13218 = vset.pattern.permute.xlu1 %v13691_v48 }
  0x89   :  { %4079 = vperm.xlu1 %13218, %v13821_v3  }
  0x8b   :  { %13232 = vset.pattern.permute.xlu0 %v13692_v51 }
  0x8c   :  { %6280 = vperm.xlu0 %13232, %v13837_v8  }
  0x8d   :  { %4084 = vperm.xlu1 %13218, %v13837_v8  }
  0x90   :  { %13234 = vset.pattern.permute.xlu0 %v13693_v56 }
  0x91   :  { %6763 = vperm.xlu0 %13234, %v13821_v3   ;;  %13220 = vset.pattern.permute.xlu1 %v13684_v23 }
  0x92   :  { %4328 = vperm.xlu1 %13220, %v13837_v8  }
  0x95   :  { %6768 = vperm.xlu0 %13234, %v13837_v8  }
  0x96   :  { %13221 = vset.pattern.permute.xlu1 %v13685_v24 }
  0x97   :  { %4567 = vperm.xlu1 %13221, %v13821_v3  }
  0x99   :  { %13237 = vset.pattern.permute.xlu0 %v13694_v57 }
  0x9a   :  { %7495 = vperm.xlu0 %13237, %v13821_v3  }
  0x9b   :  { %13224 = vset.pattern.permute.xlu1 %v13686_v25 }
  0x9c   :  { %4816 = vperm.xlu1 %13224, %v13837_v8  }
  0x9e   :  { %7500 = vperm.xlu0 %13237, %v13837_v8  }
  0xa0   :  { %13226 = vset.pattern.permute.xlu1 %v13695_v58  ;;  %v299_v58 = vld [vmem:[#allocation5 + $0x40] sm:$0xff] }
  0xa1   :  { %5299 = vperm.xlu1 %13226, %v13821_v3  }
  0xa5   :  { %5304 = vperm.xlu1 %13226, %v13837_v8  }
  0xa9   :  { %13228 = vset.pattern.permute.xlu1 %v13689_v37  ;;  %v172_v63 = vpop.permute.xlu0 %171  ;;  %v420_v2 = vpop.permute.xlu1 %419  ;;  %v292_v37 = vld [vmem:[#allocation5 + $0x8] sm:$0xff] }
  0xaa   :  { %5548 = vperm.xlu1 %13228, %v13837_v8   ;;  %v427_v4 = vmul.f32 %v13946_v0, %v420_v2  ;;  %v185_v9 = vmul.f32 %v13946_v0, %v172_v63  ;;  %v14003_v38 = vpack.c.bf16 %v292_v37, %v291_v35  ;;  %v302_v63 = vld [vmem:[#allocation5 + $0x58] sm:$0xff]  ;;  %v303_v2 = vld [vmem:[#allocation5 + $0x60] sm:$0xff] }
  0xac   :  { %11176 = vmatprep.subr.bf16.mxu0 %v14003_v38 }
  0xad   :  { %v425_v17 = vpop.permute.xlu1 %424  ;;  %11178 = vmatpush3.bf16.msra.mxu0 %v14003_v38 }
  0xae   :  { %13229 = vset.pattern.permute.xlu1 %v13696_v59  ;;  %v177_v5 = vpop.permute.xlu0 %176  ;;  %v428_v18 = vmul.f32 %v13946_v0, %v425_v17  ;;  %11180 = vmatprep.subr.bf16.mxu0 %v14009_v42  ;;  %v300_v59 = vld [vmem:[#allocation5 + $0x48] sm:$0xff] }
  0xaf   :  { %5787 = vperm.xlu1 %13229, %v13821_v3   ;;  %v186_v7 = vmul.f32 %v13946_v0, %v177_v5 }
  0xb1   :  { %11182 = vmatpush3.bf16.msra.mxu0 %v14009_v42 }
  0xb2   :  { %v669_v25 = vpop.permute.xlu1 %668  ;;  %11184 = vmatprep.subr.bf16.mxu0 %v14015_v46 }
  0xb3   :  { %5792 = vperm.xlu1 %13229, %v13837_v8   ;;  %v664_v19 = vpop.permute.xlu0 %663  ;;  %v672_v26 = vmul.f32 %v13946_v0, %v669_v25 }
  0xb4   :  { %v671_v20 = vmul.f32 %v13946_v0, %v664_v19 }
  0xb5   :  { %11186 = vmatpush3.bf16.msra.mxu0 %v14015_v46 }
  0xb7   :  { %13231 = vset.pattern.permute.xlu1 %v13692_v51  ;;  %v908_v27 = vpop.permute.xlu1 %907  ;;  %v297_v51 = vld [vmem:[#allocation5 + $0x30] sm:$0xff] }
  0xb8   :  { %6275 = vperm.xlu1 %13231, %v13821_v3   ;;  %v915_v29 = vmul.f32 %v13946_v0, %v908_v27  ;;  %v913_v48 = vpop.permute.xlu0 %912  ;;  %v14023_v56 = vpack.c.bf16 %v298_v53, %v297_v51  ;;  %v2142_v53 = vld [vmem:[#allocation3 + $0x8] sm:$0xff] }
  0xb9   :  { %v916_v49 = vmul.f32 %v13946_v0, %v913_v48 }
  0xba   :  { %11188 = vmatprep.subr.bf16.mxu0 %v14023_v56 }
  0xbb   :  { %11190 = vmatpush3.bf16.msra.mxu0 %v14023_v56 }
  0xbc   :  { %13233 = vset.pattern.permute.xlu1 %v13697_v60  ;;  %v1152_v50 = vpop.permute.xlu1 %1151 }
  0xbd   :  { %6519 = vperm.xlu1 %13233, %v13821_v3   ;;  %v1159_v54 = vmul.f32 %v13946_v0, %v1152_v50 }
  0xc1   :  { %6524 = vperm.xlu1 %13233, %v13837_v8  }
  0xc5   :  { %13235 = vset.pattern.permute.xlu1 %v13698_v61  ;;  %v14031_v61 = vpack.c.bf16 %v300_v59, %v299_v58  ;;  %v2144_v58 = vld [vmem:[#allocation3 + $0x18] sm:$0xff] }
  0xc6   :  { %7007 = vperm.xlu1 %13235, %v13821_v3  }
  0xc7   :  { %11192 = vmatprep.subr.bf16.mxu0 %v14031_v61 }
  0xc8   :  { %11194 = vmatpush3.bf16.msra.mxu0 %v14031_v61 }
  0xca   :  { %7012 = vperm.xlu1 %13235, %v13837_v8  }
  0xce   :  { %13236 = vset.pattern.permute.xlu1 %v13699_v62  ;;  %v301_v62 = vld [vmem:[#allocation5 + $0x50] sm:$0xff] }
  0xcf   :  { %7251 = vperm.xlu1 %13236, %v13821_v3  }
  0xd3   :  { %7256 = vperm.xlu1 %13236, %v13837_v8  }
 0x104   :  { %v8966_v6 = vpop.f32.mrb[0].mxu0 }
 0x105   :  { %v13953_v3 = vadd.f32 %v8966_v6, %v7741_v1  ;;  %v156_v8 = vpop.f32.mrb[1].mxu0  ;;  %v305_v6 = vld [vmem:[#allocation5 + $0x70] sm:$0xff] }
 0x106   :  { %v13956_v10 = vadd.f32 %v7741_v1, %v156_v8  ;;  %v14037_v1 = vpack.c.bf16 %v302_v63, %v301_v62  ;;  %v2146_v62 = vld [vmem:[#allocation3 + $0x28] sm:$0xff] }
 0x107   :  { %v188_v11 = vadd.f32 %v186_v7, %v13953_v3  ;;  %v430_v21 = vadd.f32 %v428_v18, %v13953_v3  ;;  %v674_v30 = vadd.f32 %v672_v26, %v13953_v3  ;;  %v918_v57 = vadd.f32 %v916_v49, %v13953_v3  ;;  %v306_v7 = vld [vmem:[#allocation5 + $0x78] sm:$0xff] }
 0x108   :  { %v187_v12 = vadd.f32 %v185_v9, %v13956_v10  ;;  %v429_v13 = vadd.f32 %v427_v4, %v13956_v10  ;;  %v673_v22 = vadd.f32 %v671_v20, %v13956_v10  ;;  %v917_v31 = vadd.f32 %v915_v29, %v13956_v10  ;;  %v304_v4 = vld [vmem:[#allocation5 + $0x68] sm:$0xff]  ;;  %11196 = vmatprep.subr.bf16.mxu0 %v14037_v1 }
 0x109   :  { %v1161_v60 = vadd.f32 %v1159_v54, %v13956_v10  ;;  %v14042_v5 = vpack.c.bf16 %v304_v4, %v303_v2  ;;  %11198 = vmatpush3.bf16.msra.mxu0 %v14037_v1  ;;  %v14048_v8 = vpack.c.bf16 %v306_v7, %v305_v6  ;;  %v2148_v6 = vld [vmem:[#allocation3 + $0x38] sm:$0xff] }
 0x10a   :  { %13238 = vtanh.f32 %v187_v12  ;;  %v1157_v12 = vpop.permute.xlu1 %1156 }
 0x10b   :  { %13240 = vtanh.f32 %v188_v11  ;;  %11200 = vmatprep.subr.bf16.mxu0 %v14042_v5 }
 0x10c   :  { %13242 = vtanh.f32 %v429_v13  ;;  %v1396_v13 = vpop.permute.xlu0 %1395 }
 0x10d   :  { %13244 = vtanh.f32 %v430_v21  ;;  %11202 = vmatpush3.bf16.msra.mxu0 %v14042_v5 }
 0x10e   :  { %13246 = vtanh.f32 %v673_v22  ;;  %11204 = vmatprep.subr.bf16.mxu0 %v14048_v8  ;;  %v1401_v20 = vpop.permute.xlu1 %1400 }
 0x10f   :  { %13248 = vtanh.f32 %v674_v30  ;;  %v1404_v21 = vmul.f32 %v13946_v0, %v1401_v20  ;;  %v2153_v20 = vld [vmem:[#allocation3 + $0x60] sm:$0xff] }
 0x110   :  { %13250 = vtanh.f32 %v917_v31  ;;  %v1645_v29 = vpop.permute.xlu0 %1644 }
 0x111   :  { %13252 = vtanh.f32 %v918_v57  ;;  %11206 = vmatpush3.bf16.msra.mxu0 %v14048_v8  ;;  %v1648_v30 = vmul.f32 %v13946_v0, %v1645_v29  ;;  %v2143_v57 = vld [vmem:[#allocation3 + $0x10] sm:$0xff] }
 0x112   :  { %13254 = vtanh.f32 %v1161_v60  ;;  %11240 = vmatprep.subr.bf16.mxu0 %v14003_v38  ;;  %v1640_v22 = vpop.permute.xlu1 %1639  ;;  %v2145_v60 = vld [vmem:[#allocation3 + $0x20] sm:$0xff] }
 0x113   :  { %v14147_v4 = vpack.c.bf16 %v2146_v62, %v2145_v60 }
 0x114   :  { %v13239_v14 = vpop.eup %13238  ;;  %v2128_v43 = vpop.permute.xlu0 %2127 }
 0x115   :  { %v13241_v15 = vpop.eup %13240  ;;  %8999 = vmatprep.mubr.f32.mxu1 %v13239_v14  ;;  %v1160_v14 = vmul.f32 %v13946_v0, %v1157_v12  ;;  %v2135_v48 = vmul.f32 %v13946_v0, %v2128_v43  ;;  %v2150_v12 = vld [vmem:[#allocation3 + $0x48] sm:$0xff] }
 0x116   :  { %v13243_v16 = vpop.eup %13242  ;;  %9000 = vmatmul.mubr.f32.vlgmr.msra.gmra.mrb[0].mxu1 %v13241_v15  ;;  %v1403_v15 = vmul.f32 %v13946_v0, %v1396_v13  ;;  %v1884_v31 = vpop.permute.xlu1 %1883 }
 0x117   :  { %11210 = vmatpush3.bf16.msra.mxu1 %v13874_v28  ;;  %9069 = vmatprep.mubr.f32.mxu1 %v13243_v16  ;;  %v13245_v23 = vpop.eup %13244  ;;  %v1162_v16 = vadd.f32 %v1160_v14, %v13953_v3  ;;  %v2151_v14 = vld [vmem:[#allocation3 + $0x50] sm:$0xff] }
 0x118   :  { %11212 = vmatprep.subr.bf16.mxu1 %v13880_v33  ;;  %v13247_v24 = vpop.eup %13246  ;;  %v1405_v17 = vadd.f32 %v1403_v15, %v13956_v10  ;;  %v2152_v15 = vld [vmem:[#allocation3 + $0x58] sm:$0xff] }
 0x119   :  { %v13249_v32 = vpop.eup %13248  ;;  %13256 = vtanh.f32 %v1162_v16 }
 0x11a   :  { %v13251_v34 = vpop.eup %13250  ;;  %13258 = vtanh.f32 %v1405_v17  ;;  %v1889_v41 = vpop.permute.xlu1 %1888 }
 0x11b   :  { %11214 = vmatpush3.bf16.msra.mxu1 %v13880_v33  ;;  %v13253_v9 = vpop.eup %13252  ;;  %v1892_v45 = vmul.f32 %v13946_v0, %v1889_v41  ;;  %v2377_v41 = vpop.permute.xlu0 %2376 }
 0x11c   :  { %11216 = vmatprep.subr.bf16.mxu1 %v13886_v36  ;;  %v13255_v11 = vpop.eup %13254  ;;  %v2380_v43 = vmul.f32 %v13946_v0, %v2377_v41 }
 0x11f   :  { %11218 = vmatpush3.bf16.msra.mxu1 %v13886_v36  ;;  %v2860_v60 = vpop.permute.xlu0 %2859 }
 0x120   :  { %11220 = vmatprep.subr.bf16.mxu1 %v13892_v40 }
 0x123   :  { %11222 = vmatpush3.bf16.msra.mxu1 %v13892_v40  ;;  %v13257_v18 = vpop.eup %13256 }
 0x124   :  { %11224 = vmatprep.subr.bf16.mxu1 %v13898_v44  ;;  %v13259_v19 = vpop.eup %13258 }
 0x127   :  { %11226 = vmatpush3.bf16.msra.mxu1 %v13898_v44 }
 0x128   :  { %11228 = vmatprep.subr.bf16.mxu1 %v13904_v47 }
 0x12b   :  { %11230 = vmatpush3.bf16.msra.mxu1 %v13904_v47 }
 0x12c   :  { %11232 = vmatprep.subr.bf16.mxu1 %v13909_v52 }
 0x12f   :  { %11234 = vmatpush3.bf16.msra.mxu1 %v13909_v52 }
 0x130   :  { %11236 = vmatprep.subr.bf16.mxu1 %v13915_v55 }
 0x133   :  { %11238 = vmatpush3.bf16.msra.mxu1 %v13915_v55 }
 0x134   :  { %11272 = vmatprep.subr.bf16.mxu1 %v13874_v28 }
 0x136   :  { %9070 = vmatmul.mubr.f32.vlgmr.msra.gmra.mrb[2].mxu1 %v13245_v23  ;;  %v1647_v23 = vmul.f32 %v13946_v0, %v1640_v22 }
 0x137   :  { %11274 = vmatpush3.bf16.msra.mxu1 %v13874_v28  ;;  %9139 = vmatprep.mubr.f32.mxu1 %v13247_v24  ;;  %v1406_v24 = vadd.f32 %v1404_v21, %v13953_v3  ;;  %v2154_v21 = vld [vmem:[#allocation3 + $0x68] sm:$0xff] }
 0x138   :  { %11276 = vmatprep.subr.bf16.mxu1 %v13880_v33  ;;  %v1649_v25 = vadd.f32 %v1647_v23, %v13956_v10  ;;  %v14174_v23 = vpack.c.bf16 %v2154_v21, %v2153_v20 }
 0x139   :  { %13260 = vtanh.f32 %v1406_v24 }
 0x13a   :  { %13262 = vtanh.f32 %v1649_v25 }
 0x13b   :  { %11278 = vmatpush3.bf16.msra.mxu1 %v13880_v33 }
 0x13c   :  { %11280 = vmatprep.subr.bf16.mxu1 %v13886_v36 }
 0x13f   :  { %11282 = vmatpush3.bf16.msra.mxu1 %v13886_v36 }
 0x140   :  { %11284 = vmatprep.subr.bf16.mxu1 %v13892_v40 }
 0x143   :  { %11286 = vmatpush3.bf16.msra.mxu1 %v13892_v40  ;;  %v13261_v26 = vpop.eup %13260 }
 0x144   :  { %11288 = vmatprep.subr.bf16.mxu1 %v13898_v44  ;;  %v13263_v27 = vpop.eup %13262 }
 0x147   :  { %11290 = vmatpush3.bf16.msra.mxu1 %v13898_v44 }
 0x148   :  { %11292 = vmatprep.subr.bf16.mxu1 %v13904_v47 }
 0x14b   :  { %11294 = vmatpush3.bf16.msra.mxu1 %v13904_v47 }
 0x14c   :  { %11296 = vmatprep.subr.bf16.mxu1 %v13909_v52 }
 0x14f   :  { %11298 = vmatpush3.bf16.msra.mxu1 %v13909_v52 }
 0x150   :  { %11300 = vmatprep.subr.bf16.mxu1 %v13915_v55 }
 0x153   :  { %11302 = vmatpush3.bf16.msra.mxu1 %v13915_v55 }
 0x154   :  { %11336 = vmatprep.subr.bf16.mxu1 %v13874_v28 }
 0x156   :  { %9140 = vmatmul.mubr.f32.vlgmr.msra.gmra.mrb[4].mxu1 %v13249_v32  ;;  %v1891_v32 = vmul.f32 %v13946_v0, %v1884_v31 }
 0x157   :  { %11338 = vmatpush3.bf16.msra.mxu1 %v13874_v28  ;;  %9209 = vmatprep.mubr.f32.mxu1 %v13251_v34  ;;  %v1650_v34 = vadd.f32 %v1648_v30, %v13953_v3 }
 0x158   :  { %11340 = vmatprep.subr.bf16.mxu1 %v13880_v33  ;;  %v1893_v35 = vadd.f32 %v1891_v32, %v13956_v10 }
 0x159   :  { %13264 = vtanh.f32 %v1650_v34 }
 0x15a   :  { %13266 = vtanh.f32 %v1893_v35 }
 0x15b   :  { %11342 = vmatpush3.bf16.msra.mxu1 %v13880_v33 }
 0x15c   :  { %11344 = vmatprep.subr.bf16.mxu1 %v13886_v36 }
 0x15f   :  { %11346 = vmatpush3.bf16.msra.mxu1 %v13886_v36 }
 0x160   :  { %11348 = vmatprep.subr.bf16.mxu1 %v13892_v40 }
 0x163   :  { %11350 = vmatpush3.bf16.msra.mxu1 %v13892_v40  ;;  %v13265_v37 = vpop.eup %13264 }
 0x164   :  { %11352 = vmatprep.subr.bf16.mxu1 %v13898_v44  ;;  %v13267_v39 = vpop.eup %13266 }
 0x167   :  { %11354 = vmatpush3.bf16.msra.mxu1 %v13898_v44 }
 0x168   :  { %11356 = vmatprep.subr.bf16.mxu1 %v13904_v47 }
 0x16b   :  { %11358 = vmatpush3.bf16.msra.mxu1 %v13904_v47 }
 0x16c   :  { %11360 = vmatprep.subr.bf16.mxu1 %v13909_v52 }
 0x16f   :  { %11362 = vmatpush3.bf16.msra.mxu1 %v13909_v52 }
 0x170   :  { %11364 = vmatprep.subr.bf16.mxu1 %v13915_v55 }
 0x173   :  { %11366 = vmatpush3.bf16.msra.mxu1 %v13915_v55 }
 0x174   :  { %11400 = vmatprep.subr.bf16.mxu1 %v13874_v28 }
 0x176   :  { %9210 = vmatmul.mubr.f32.vlgmr.msra.gmra.mrb[6].mxu1 %v13253_v9  ;;  %v2133_v9 = vpop.permute.xlu1 %2132 }
 0x177   :  { %11402 = vmatpush3.bf16.msra.mxu1 %v13874_v28  ;;  %9279 = vmatprep.mubr.f32.mxu1 %v13255_v11  ;;  %v2149_v11 = vld [vmem:[#allocation3 + $0x40] sm:$0xff]  ;;  %v2136_v16 = vmul.f32 %v13946_v0, %v2133_v9 }
 0x178   :  { %11404 = vmatprep.subr.bf16.mxu1 %v13880_v33  ;;  %v14159_v13 = vpack.c.bf16 %v2150_v12, %v2149_v11 }
 0x179   :  { %v2138_v22 = vadd.f32 %v2136_v16, %v13953_v3 }
 0x17a   :  { %v2372_v17 = vpop.permute.xlu1 %2371 }
 0x17b   :  { %11406 = vmatpush3.bf16.msra.mxu1 %v13880_v33 }
 0x17c   :  { %11408 = vmatprep.subr.bf16.mxu1 %v13886_v36 }
 0x17f   :  { %11410 = vmatpush3.bf16.msra.mxu1 %v13886_v36 }
 0x180   :  { %11412 = vmatprep.subr.bf16.mxu1 %v13892_v40 }
 0x183   :  { %11414 = vmatpush3.bf16.msra.mxu1 %v13892_v40 }
 0x184   :  { %11416 = vmatprep.subr.bf16.mxu1 %v13898_v44 }
 0x187   :  { %11418 = vmatpush3.bf16.msra.mxu1 %v13898_v44 }
 0x188   :  { %11420 = vmatprep.subr.bf16.mxu1 %v13904_v47 }
 0x18b   :  { %11422 = vmatpush3.bf16.msra.mxu1 %v13904_v47 }
 0x18c   :  { %11424 = vmatprep.subr.bf16.mxu1 %v13909_v52 }
 0x18f   :  { %11426 = vmatpush3.bf16.msra.mxu1 %v13909_v52 }
 0x190   :  { %11428 = vmatprep.subr.bf16.mxu1 %v13915_v55 }
 0x193   :  { %11430 = vmatpush3.bf16.msra.mxu1 %v13915_v55 }
 0x194   :  { %11464 = vmatprep.subr.bf16.mxu1 %v13874_v28 }
 0x196   :  { %9280 = vmatmul.mubr.f32.vlgmr.msra.gmra.mrb[8].mxu1 %v13257_v18  ;;  %v2379_v18 = vmul.f32 %v13946_v0, %v2372_v17 }
 0x197   :  { %11466 = vmatpush3.bf16.msra.mxu1 %v13874_v28  ;;  %9349 = vmatprep.mubr.f32.mxu1 %v13259_v19  ;;  %v14167_v19 = vpack.c.bf16 %v2152_v15, %v2151_v14 }
 0x198   :  { %11468 = vmatprep.subr.bf16.mxu1 %v13880_v33  ;;  %v2381_v24 = vadd.f32 %v2379_v18, %v13956_v10 }
 0x19b   :  { %11470 = vmatpush3.bf16.msra.mxu1 %v13880_v33 }
 0x19c   :  { %11472 = vmatprep.subr.bf16.mxu1 %v13886_v36 }
 0x19f   :  { %11474 = vmatpush3.bf16.msra.mxu1 %v13886_v36 }
 0x1a0   :  { %11476 = vmatprep.subr.bf16.mxu1 %v13892_v40 }
 0x1a3   :  { %11478 = vmatpush3.bf16.msra.mxu1 %v13892_v40 }
 0x1a4   :  { %11480 = vmatprep.subr.bf16.mxu1 %v13898_v44 }
 0x1a7   :  { %11482 = vmatpush3.bf16.msra.mxu1 %v13898_v44 }
 0x1a8   :  { %11484 = vmatprep.subr.bf16.mxu1 %v13904_v47 }
 0x1ab   :  { %11486 = vmatpush3.bf16.msra.mxu1 %v13904_v47 }
 0x1ac   :  { %11488 = vmatprep.subr.bf16.mxu1 %v13909_v52 }
 0x1af   :  { %11490 = vmatpush3.bf16.msra.mxu1 %v13909_v52 }
 0x1b0   :  { %11492 = vmatprep.subr.bf16.mxu1 %v13915_v55 }
 0x1b3   :  { %11494 = vmatpush3.bf16.msra.mxu1 %v13915_v55 }
 0x1b4   :  { %11528 = vmatprep.subr.bf16.mxu1 %v13874_v28 }
 0x1b6   :  { %9350 = vmatmul.mubr.f32.vlgmr.msra.gmra.mrb[10].mxu1 %v13261_v26  ;;  %v2155_v26 = vld [vmem:[#allocation3 + $0x70] sm:$0xff] }
 0x1b7   :  { %11530 = vmatpush3.bf16.msra.mxu1 %v13874_v28  ;;  %9419 = vmatprep.mubr.f32.mxu1 %v13263_v27  ;;  %v2156_v27 = vld [vmem:[#allocation3 + $0x78] sm:$0xff] }
 0x1b8   :  { %11532 = vmatprep.subr.bf16.mxu1 %v13880_v33  ;;  %v14183_v32 = vpack.c.bf16 %v2156_v27, %v2155_v26 }
 0x1bb   :  { %11534 = vmatpush3.bf16.msra.mxu1 %v13880_v33 }
 0x1bc   :  { %11536 = vmatprep.subr.bf16.mxu1 %v13886_v36 }
 0x1bf   :  { %11538 = vmatpush3.bf16.msra.mxu1 %v13886_v36 }
 0x1c0   :  { %11540 = vmatprep.subr.bf16.mxu1 %v13892_v40 }
 0x1c3   :  { %11542 = vmatpush3.bf16.msra.mxu1 %v13892_v40 }
 0x1c4   :  { %11544 = vmatprep.subr.bf16.mxu1 %v13898_v44 }
 0x1c7   :  { %11546 = vmatpush3.bf16.msra.mxu1 %v13898_v44 }
 0x1c8   :  { %11548 = vmatprep.subr.bf16.mxu1 %v13904_v47 }
 0x1cb   :  { %11550 = vmatpush3.bf16.msra.mxu1 %v13904_v47 }
 0x1cc   :  { %11552 = vmatprep.subr.bf16.mxu1 %v13909_v52 }
 0x1cf   :  { %11554 = vmatpush3.bf16.msra.mxu1 %v13909_v52 }
 0x1d0   :  { %11556 = vmatprep.subr.bf16.mxu1 %v13915_v55 }
 0x1d3   :  { %11558 = vmatpush3.bf16.msra.mxu1 %v13915_v55 }
 0x1d4   :  { %11592 = vmatprep.subr.bf16.mxu1 %v13874_v28 }
 0x1d6   :  { %9420 = vmatmul.mubr.f32.vlgmr.msra.gmra.mrb[12].mxu1 %v13265_v37 }
 0x1d7   :  { %11594 = vmatpush3.bf16.msra.mxu1 %v13874_v28  ;;  %9489 = vmatprep.mubr.f32.mxu1 %v13267_v39  ;;  %v14128_v28 = vld [vmem:[%s16020_s6] ss:$0 sm:$0xff] }
 0x1d8   :  { %11596 = vmatprep.subr.bf16.mxu1 %v13880_v33 }
 0x1db   :  { %11598 = vmatpush3.bf16.msra.mxu1 %v13880_v33  ;;  %v1894_v33 = vadd.f32 %v1892_v45, %v13953_v3  ;;  %v2616_v45 = vpop.permute.xlu1 %2615 }
 0x1dc   :  { %11600 = vmatprep.subr.bf16.mxu1 %v13886_v36 }
 0x1dd   :  { %13268 = vtanh.f32 %v1894_v33  ;;  %v2382_v33 = vadd.f32 %v2380_v43, %v13953_v3 }
 0x1df   :  { %11602 = vmatpush3.bf16.msra.mxu1 %v13886_v36  ;;  %v2137_v36 = vadd.f32 %v2135_v48, %v13956_v10  ;;  %v2623_v48 = vmul.f32 %v13946_v0, %v2616_v45 }
 0x1e0   :  { %11604 = vmatprep.subr.bf16.mxu1 %v13892_v40 }
 0x1e1   :  { %13270 = vtanh.f32 %v2137_v36  ;;  %v2625_v36 = vadd.f32 %v2623_v48, %v13956_v10 }
 0x1e3   :  { %11606 = vmatpush3.bf16.msra.mxu1 %v13892_v40 }
 0x1e4   :  { %11608 = vmatprep.subr.bf16.mxu1 %v13898_v44 }
 0x1e7   :  { %11610 = vmatpush3.bf16.msra.mxu1 %v13898_v44  ;;  %v2141_v44 = vld [vmem:[#allocation3] sm:$0xff]  ;;  %v13269_v59 = vpop.eup %13268 }
 0x1e8   :  { %11612 = vmatprep.subr.bf16.mxu1 %v13904_v47  ;;  %v14139_v54 = vpack.c.bf16 %v2142_v53, %v2141_v44 }
 0x1e9   :  { %v9001_v49 = vpop.f32.mrb[0].mxu1 }
 0x1ea   :  { %v286_v40 = vadd.f32 %v9001_v49, %v14128_v28  ;;  %v280_v50 = vpop.f32.mrb[1].mxu1 }
 0x1eb   :  { %v281_v51 = vadd.f32 %v14128_v28, %v280_v50  ;;  %11614 = vmatpush3.bf16.msra.mxu1 %v13904_v47  ;;  %v14143_v47 = vpack.c.bf16 %v2144_v58, %v2143_v57  ;;  %v13271_v63 = vpop.eup %13270 }
 0x1ec   :  { %11616 = vmatprep.subr.bf16.mxu1 %v13909_v52 }
 0x1ed   :  { %13272 = vtanh.f32 %v281_v51 }
 0x1ee   :  { %13274 = vtanh.f32 %v286_v40 }
 0x1ef   :  { %11618 = vmatpush3.bf16.msra.mxu1 %v13909_v52  ;;  %13276 = vtanh.f32 %v2138_v22 }
 0x1f0   :  { %11620 = vmatprep.subr.bf16.mxu1 %v13915_v55  ;;  %13278 = vtanh.f32 %v2381_v24 }
 0x1f3   :  { %11622 = vmatpush3.bf16.msra.mxu1 %v13915_v55  ;;  %v2147_v55 = vld [vmem:[#allocation3 + $0x30] sm:$0xff] }
 0x1f4   :  { %11656 = vmatprep.subr.bf16.mxu1 %v14139_v54  ;;  %v14153_v7 = vpack.c.bf16 %v2148_v6, %v2147_v55 }
 0x1f6   :  { %9490 = vmatmul.mubr.f32.vlgmr.msra.gmra.mrb[14].mxu1 %v13269_v59  ;;  %v2621_v59 = vpop.permute.xlu1 %2620 }
 0x1f7   :  { %v13273_v2 = vpop.eup %13272  ;;  %11658 = vmatpush3.bf16.msra.mxu1 %v14139_v54  ;;  %9559 = vmatprep.mubr.f32.mxu1 %v13271_v63  ;;  %v2624_v62 = vmul.f32 %v13946_v0, %v2621_v59  ;;  %v2867_v63 = vmul.f32 %v13946_v0, %v2860_v60  ;;  %v1761_v59 = vld [vmem:[#allocation5 + $0x40] sm:$0xff] }
 0x1f8   :  { %v13275_v52 = vpop.eup %13274  ;;  %9034 = vmatprep.mubr.f32.mxu0 %v13273_v2  ;;  %11660 = vmatprep.subr.bf16.mxu1 %v14143_v47 }
 0x1f9   :  { %9035 = vmatmul.mubr.f32.vlgmr.msra.gmra.mrb[2].mxu0 %v13275_v52  ;;  %v13277_v34 = vpop.eup %13276  ;;  %v2626_v2 = vadd.f32 %v2624_v62, %v13953_v3  ;;  %v2869_v52 = vadd.f32 %v2867_v63, %v13956_v10 }
 0x1fa   :  { %11242 = vmatpush3.bf16.msra.mxu0 %v14003_v38  ;;  %v13279_v35 = vpop.eup %13278  ;;  %v2865_v17 = vpop.permute.xlu1 %2864 }
 0x1fb   :  { %11662 = vmatpush3.bf16.msra.mxu1 %v14143_v47  ;;  %11244 = vmatprep.subr.bf16.mxu0 %v14009_v42  ;;  %v2868_v18 = vmul.f32 %v13946_v0, %v2865_v17 }
 0x1fc   :  { %11664 = vmatprep.subr.bf16.mxu1 %v14147_v4 }
 0x1fd   :  { %v2870_v22 = vadd.f32 %v2868_v18, %v13953_v3 }
 0x1fe   :  { %11246 = vmatpush3.bf16.msra.mxu0 %v14009_v42  ;;  %v3104_v20 = vpop.permute.xlu1 %3103 }
 0x1ff   :  { %11666 = vmatpush3.bf16.msra.mxu1 %v14147_v4  ;;  %11248 = vmatprep.subr.bf16.mxu0 %v14015_v46  ;;  %v3111_v21 = vmul.f32 %v13946_v0, %v3104_v20  ;;  %v1767_v20 = vld [vmem:[#allocation5 + $0x70] sm:$0xff] }
 0x200   :  { %11668 = vmatprep.subr.bf16.mxu1 %v14153_v7 }
 0x201   :  { %v3113_v24 = vadd.f32 %v3111_v21, %v13956_v10  ;;  %v1768_v21 = vld [vmem:[#allocation5 + $0x78] sm:$0xff] }
 0x202   :  { %11250 = vmatpush3.bf16.msra.mxu0 %v14015_v46 }
 0x203   :  { %11670 = vmatpush3.bf16.msra.mxu1 %v14153_v7  ;;  %11252 = vmatprep.subr.bf16.mxu0 %v14023_v56 }
 0x204   :  { %11672 = vmatprep.subr.bf16.mxu1 %v14159_v13 }
 0x206   :  { %11254 = vmatpush3.bf16.msra.mxu0 %v14023_v56 }
 0x207   :  { %11674 = vmatpush3.bf16.msra.mxu1 %v14159_v13  ;;  %11256 = vmatprep.subr.bf16.mxu0 %v14031_v61 }
 0x208   :  { %11676 = vmatprep.subr.bf16.mxu1 %v14167_v19 }
 0x209   :  { %v9071_v25 = vpop.f32.mrb[2].mxu1 }
 0x20a   :  { %v528_v29 = vadd.f32 %v9071_v25, %v14128_v28  ;;  %v522_v30 = vpop.f32.mrb[3].mxu1  ;;  %11258 = vmatpush3.bf16.msra.mxu0 %v14031_v61 }
 0x20b   :  { %v523_v31 = vadd.f32 %v14128_v28, %v522_v30  ;;  %11678 = vmatpush3.bf16.msra.mxu1 %v14167_v19  ;;  %11260 = vmatprep.subr.bf16.mxu0 %v14037_v1 }
 0x20c   :  { %11680 = vmatprep.subr.bf16.mxu1 %v14174_v23 }
 0x20d   :  { %13280 = vtanh.f32 %v523_v31 }
 0x20e   :  { %13282 = vtanh.f32 %v528_v29  ;;  %11262 = vmatpush3.bf16.msra.mxu0 %v14037_v1 }
 0x20f   :  { %11682 = vmatpush3.bf16.msra.mxu1 %v14174_v23  ;;  %11264 = vmatprep.subr.bf16.mxu0 %v14042_v5  ;;  %13284 = vtanh.f32 %v2382_v33 }
 0x210   :  { %11684 = vmatprep.subr.bf16.mxu1 %v14183_v32  ;;  %13286 = vtanh.f32 %v2625_v36  ;;  %v1755_v36 = vld [vmem:[#allocation5 + $0x10] sm:$0xff] }
 0x212   :  { %11266 = vmatpush3.bf16.msra.mxu0 %v14042_v5 }
 0x213   :  { %11686 = vmatpush3.bf16.msra.mxu1 %v14183_v32  ;;  %11268 = vmatprep.subr.bf16.mxu0 %v14048_v8 }
 0x214   :  { %11720 = vmatprep.subr.bf16.mxu1 %v14139_v54 }
 0x216   :  { %11270 = vmatpush3.bf16.msra.mxu0 %v14048_v8  ;;  %9560 = vmatmul.mubr.f32.vlgmr.msra.gmra.mrb[16].mxu1 %v13277_v34 }
 0x217   :  { %v13281_v37 = vpop.eup %13280  ;;  %11722 = vmatpush3.bf16.msra.mxu1 %v14139_v54  ;;  %9629 = vmatprep.mubr.f32.mxu1 %v13279_v35  ;;  %v3109_v35 = vpop.permute.xlu0 %3108 }
 0x218   :  { %v13283_v39 = vpop.eup %13282  ;;  %9104 = vmatprep.mubr.f32.mxu0 %v13281_v37  ;;  %11304 = vmatprep.subr.bf16.mxu0 %v14003_v38 }
 0x219   :  { %9105 = vmatmul.mubr.f32.vlgmr.msra.gmra.mrb[4].mxu0 %v13283_v39  ;;  %11724 = vmatprep.subr.bf16.mxu1 %v14143_v47  ;;  %v13285_v44 = vpop.eup %13284  ;;  %v3348_v39 = vpop.permute.xlu1 %3347 }
 0x21a   :  { %11306 = vmatpush3.bf16.msra.mxu0 %v14003_v38  ;;  %v13287_v53 = vpop.eup %13286 }
 0x21b   :  { %11726 = vmatpush3.bf16.msra.mxu1 %v14143_v47  ;;  %11308 = vmatprep.subr.bf16.mxu0 %v14009_v42  ;;  %v3592_v62 = vpop.permute.xlu0 %3591 }
 0x21c   :  { %11728 = vmatprep.subr.bf16.mxu1 %v14147_v4 }
 0x21d   :  { %v3353_v60 = vpop.permute.xlu1 %3352 }
 0x21e   :  { %11310 = vmatpush3.bf16.msra.mxu0 %v14009_v42 }
 0x21f   :  { %11730 = vmatpush3.bf16.msra.mxu1 %v14147_v4  ;;  %11312 = vmatprep.subr.bf16.mxu0 %v14015_v46 }
 0x220   :  { %11732 = vmatprep.subr.bf16.mxu1 %v14153_v7 }
 0x222   :  { %11314 = vmatpush3.bf16.msra.mxu0 %v14015_v46 }
 0x223   :  { %11734 = vmatpush3.bf16.msra.mxu1 %v14153_v7  ;;  %11316 = vmatprep.subr.bf16.mxu0 %v14023_v56 }
 0x224   :  { %11736 = vmatprep.subr.bf16.mxu1 %v14159_v13 }
 0x226   :  { %11318 = vmatpush3.bf16.msra.mxu0 %v14023_v56 }
 0x227   :  { %11738 = vmatpush3.bf16.msra.mxu1 %v14159_v13  ;;  %11320 = vmatprep.subr.bf16.mxu0 %v14031_v61 }
 0x228   :  { %11740 = vmatprep.subr.bf16.mxu1 %v14167_v19 }
 0x229   :  { %v9141_v49 = vpop.f32.mrb[4].mxu1 }
 0x22a   :  { %v772_v40 = vadd.f32 %v9141_v49, %v14128_v28  ;;  %v766_v50 = vpop.f32.mrb[5].mxu1  ;;  %11322 = vmatpush3.bf16.msra.mxu0 %v14031_v61 }
 0x22b   :  { %v767_v51 = vadd.f32 %v14128_v28, %v766_v50  ;;  %11742 = vmatpush3.bf16.msra.mxu1 %v14167_v19  ;;  %11324 = vmatprep.subr.bf16.mxu0 %v14037_v1 }
 0x22c   :  { %11744 = vmatprep.subr.bf16.mxu1 %v14174_v23 }
 0x22d   :  { %13288 = vtanh.f32 %v767_v51 }
 0x22e   :  { %13290 = vtanh.f32 %v772_v40  ;;  %11326 = vmatpush3.bf16.msra.mxu0 %v14037_v1 }
 0x22f   :  { %11746 = vmatpush3.bf16.msra.mxu1 %v14174_v23  ;;  %11328 = vmatprep.subr.bf16.mxu0 %v14042_v5  ;;  %13292 = vtanh.f32 %v2626_v2 }
 0x230   :  { %11748 = vmatprep.subr.bf16.mxu1 %v14183_v32  ;;  %13294 = vtanh.f32 %v2869_v52  ;;  %v1763_v52 = vld [vmem:[#allocation5 + $0x50] sm:$0xff] }
 0x232   :  { %11330 = vmatpush3.bf16.msra.mxu0 %v14042_v5 }
 0x233   :  { %11750 = vmatpush3.bf16.msra.mxu1 %v14183_v32  ;;  %11332 = vmatprep.subr.bf16.mxu0 %v14048_v8 }
 0x234   :  { %11784 = vmatprep.subr.bf16.mxu1 %v14139_v54 }
 0x236   :  { %11334 = vmatpush3.bf16.msra.mxu0 %v14048_v8  ;;  %9630 = vmatmul.mubr.f32.vlgmr.msra.gmra.mrb[18].mxu1 %v13285_v44  ;;  %v1757_v44 = vld [vmem:[#allocation5 + $0x20] sm:$0xff] }
 0x237   :  { %v13289_v57 = vpop.eup %13288  ;;  %11786 = vmatpush3.bf16.msra.mxu1 %v14139_v54  ;;  %9699 = vmatprep.mubr.f32.mxu1 %v13287_v53  ;;  %v1758_v53 = vld [vmem:[#allocation5 + $0x28] sm:$0xff] }
 0x238   :  { %v13291_v58 = vpop.eup %13290  ;;  %9174 = vmatprep.mubr.f32.mxu0 %v13289_v57  ;;  %11368 = vmatprep.subr.bf16.mxu0 %v14003_v38  ;;  %v1760_v57 = vld [vmem:[#allocation5 + $0x38] sm:$0xff] }
 0x239   :  { %9175 = vmatmul.mubr.f32.vlgmr.msra.gmra.mrb[6].mxu0 %v13291_v58  ;;  %11788 = vmatprep.subr.bf16.mxu1 %v14143_v47  ;;  %v13293_v12 = vpop.eup %13292 }
 0x23a   :  { %11370 = vmatpush3.bf16.msra.mxu0 %v14003_v38  ;;  %v13295_v14 = vpop.eup %13294 }
 0x23b   :  { %11790 = vmatpush3.bf16.msra.mxu1 %v14143_v47  ;;  %11372 = vmatprep.subr.bf16.mxu0 %v14009_v42 }
 0x23c   :  { %11792 = vmatprep.subr.bf16.mxu1 %v14147_v4 }
 0x23e   :  { %11374 = vmatpush3.bf16.msra.mxu0 %v14009_v42 }
 0x23f   :  { %11794 = vmatpush3.bf16.msra.mxu1 %v14147_v4  ;;  %11376 = vmatprep.subr.bf16.mxu0 %v14015_v46 }
 0x240   :  { %11796 = vmatprep.subr.bf16.mxu1 %v14153_v7 }
 0x242   :  { %11378 = vmatpush3.bf16.msra.mxu0 %v14015_v46 }
 0x243   :  { %11798 = vmatpush3.bf16.msra.mxu1 %v14153_v7  ;;  %11380 = vmatprep.subr.bf16.mxu0 %v14023_v56 }
 0x244   :  { %11800 = vmatprep.subr.bf16.mxu1 %v14159_v13 }
 0x246   :  { %11382 = vmatpush3.bf16.msra.mxu0 %v14023_v56 }
 0x247   :  { %11802 = vmatpush3.bf16.msra.mxu1 %v14159_v13  ;;  %11384 = vmatprep.subr.bf16.mxu0 %v14031_v61 }
 0x248   :  { %11804 = vmatprep.subr.bf16.mxu1 %v14167_v19 }
 0x249   :  { %v9211_v55 = vpop.f32.mrb[6].mxu1 }
 0x24a   :  { %v1016_v6 = vadd.f32 %v9211_v55, %v14128_v28  ;;  %v1010_v9 = vpop.f32.mrb[7].mxu1  ;;  %11386 = vmatpush3.bf16.msra.mxu0 %v14031_v61  ;;  %v1764_v55 = vld [vmem:[#allocation5 + $0x58] sm:$0xff] }
 0x24b   :  { %v1011_v11 = vadd.f32 %v14128_v28, %v1010_v9  ;;  %11806 = vmatpush3.bf16.msra.mxu1 %v14167_v19  ;;  %11388 = vmatprep.subr.bf16.mxu0 %v14037_v1 }
 0x24c   :  { %11808 = vmatprep.subr.bf16.mxu1 %v14174_v23 }
 0x24d   :  { %13296 = vtanh.f32 %v1011_v11  ;;  %v1765_v11 = vld [vmem:[#allocation5 + $0x60] sm:$0xff] }
 0x24e   :  { %13298 = vtanh.f32 %v1016_v6  ;;  %11390 = vmatpush3.bf16.msra.mxu0 %v14037_v1  ;;  %v14383_v6 = vld [vmem:[%s16020_s6] ss:$0 sm:$0xff] }
 0x24f   :  { %11810 = vmatpush3.bf16.msra.mxu1 %v14174_v23  ;;  %11392 = vmatprep.subr.bf16.mxu0 %v14042_v5  ;;  %13300 = vtanh.f32 %v2870_v22  ;;  %v3605_v22 = vld [vmem:[#allocation3] sm:$0xff] }
 0x250   :  { %11812 = vmatprep.subr.bf16.mxu1 %v14183_v32  ;;  %13302 = vtanh.f32 %v3113_v24  ;;  %v3606_v24 = vld [vmem:[#allocation3 + $0x8] sm:$0xff] }
 0x252   :  { %11394 = vmatpush3.bf16.msra.mxu0 %v14042_v5 }
 0x253   :  { %11814 = vmatpush3.bf16.msra.mxu1 %v14183_v32  ;;  %11396 = vmatprep.subr.bf16.mxu0 %v14048_v8 }
 0x254   :  { %11848 = vmatprep.subr.bf16.mxu1 %v14139_v54 }
 0x256   :  { %11398 = vmatpush3.bf16.msra.mxu0 %v14048_v8  ;;  %9700 = vmatmul.mubr.f32.vlgmr.msra.gmra.mrb[20].mxu1 %v13293_v12  ;;  %v1766_v12 = vld [vmem:[#allocation5 + $0x68] sm:$0xff] }
 0x257   :  { %v13297_v15 = vpop.eup %13296  ;;  %11850 = vmatpush3.bf16.msra.mxu1 %v14139_v54  ;;  %9769 = vmatprep.mubr.f32.mxu1 %v13295_v14  ;;  %v14396_v18 = vpack.c.bf16 %v1766_v12, %v1765_v11 }
 0x258   :  { %v13299_v16 = vpop.eup %13298  ;;  %9244 = vmatprep.mubr.f32.mxu0 %v13297_v15  ;;  %11432 = vmatprep.subr.bf16.mxu0 %v14003_v38 }
 0x259   :  { %9245 = vmatmul.mubr.f32.vlgmr.msra.gmra.mrb[8].mxu0 %v13299_v16  ;;  %11852 = vmatprep.subr.bf16.mxu1 %v14143_v47  ;;  %v13301_v29 = vpop.eup %13300 }
 0x25a   :  { %11434 = vmatpush3.bf16.msra.mxu0 %v14003_v38  ;;  %v13303_v30 = vpop.eup %13302 }
 0x25b   :  { %11854 = vmatpush3.bf16.msra.mxu1 %v14143_v47  ;;  %11436 = vmatprep.subr.bf16.mxu0 %v14009_v42 }
 0x25c   :  { %11856 = vmatprep.subr.bf16.mxu1 %v14147_v4 }
 0x25e   :  { %11438 = vmatpush3.bf16.msra.mxu0 %v14009_v42 }
 0x25f   :  { %11858 = vmatpush3.bf16.msra.mxu1 %v14147_v4  ;;  %11440 = vmatprep.subr.bf16.mxu0 %v14015_v46 }
 0x260   :  { %11860 = vmatprep.subr.bf16.mxu1 %v14153_v7 }
 0x262   :  { %11442 = vmatpush3.bf16.msra.mxu0 %v14015_v46 }
 0x263   :  { %11862 = vmatpush3.bf16.msra.mxu1 %v14153_v7  ;;  %11444 = vmatprep.subr.bf16.mxu0 %v14023_v56 }
 0x264   :  { %11864 = vmatprep.subr.bf16.mxu1 %v14159_v13 }
 0x266   :  { %11446 = vmatpush3.bf16.msra.mxu0 %v14023_v56 }
 0x267   :  { %11866 = vmatpush3.bf16.msra.mxu1 %v14159_v13  ;;  %11448 = vmatprep.subr.bf16.mxu0 %v14031_v61 }
 0x268   :  { %11868 = vmatprep.subr.bf16.mxu1 %v14167_v19 }
 0x269   :  { %v9281_v25 = vpop.f32.mrb[8].mxu1 }
 0x26a   :  { %v1260_v26 = vadd.f32 %v9281_v25, %v14128_v28  ;;  %v1254_v27 = vpop.f32.mrb[9].mxu1  ;;  %11450 = vmatpush3.bf16.msra.mxu0 %v14031_v61  ;;  %v14405_v25 = vpack.c.bf16 %v3606_v24, %v3605_v22  ;;  %v3841_v24 = vpop.permute.xlu0 %3840 }
 0x26b   :  { %v1255_v0 = vadd.f32 %v14128_v28, %v1254_v27  ;;  %11870 = vmatpush3.bf16.msra.mxu1 %v14167_v19  ;;  %11452 = vmatprep.subr.bf16.mxu0 %v14037_v1  ;;  %v3608_v27 = vld [vmem:[#allocation3 + $0x18] sm:$0xff] }
 0x26c   :  { %11872 = vmatprep.subr.bf16.mxu1 %v14174_v23 }
 0x26d   :  { %13304 = vtanh.f32 %v1255_v0 }
 0x26e   :  { %13306 = vtanh.f32 %v1260_v26  ;;  %11454 = vmatpush3.bf16.msra.mxu0 %v14037_v1  ;;  %v3607_v26 = vld [vmem:[#allocation3 + $0x10] sm:$0xff] }
 0x26f   :  { %11874 = vmatpush3.bf16.msra.mxu1 %v14174_v23  ;;  %11456 = vmatprep.subr.bf16.mxu0 %v14042_v5 }
 0x270   :  { %11876 = vmatprep.subr.bf16.mxu1 %v14183_v32 }
 0x272   :  { %11458 = vmatpush3.bf16.msra.mxu0 %v14042_v5 }
 0x273   :  { %11878 = vmatpush3.bf16.msra.mxu1 %v14183_v32  ;;  %11460 = vmatprep.subr.bf16.mxu0 %v14048_v8 }
 0x274   :  { %11912 = vmatprep.subr.bf16.mxu1 %v14139_v54 }
 0x276   :  { %11462 = vmatpush3.bf16.msra.mxu0 %v14048_v8  ;;  %9770 = vmatmul.mubr.f32.vlgmr.msra.gmra.mrb[22].mxu1 %v13301_v29  ;;  %v3609_v29 = vld [vmem:[#allocation3 + $0x20] sm:$0xff] }
 0x277   :  { %v13305_v31 = vpop.eup %13304  ;;  %11914 = vmatpush3.bf16.msra.mxu1 %v14139_v54  ;;  %9839 = vmatprep.mubr.f32.mxu1 %v13303_v30  ;;  %v3610_v30 = vld [vmem:[#allocation3 + $0x28] sm:$0xff] }
 0x278   :  { %v13307_v34 = vpop.eup %13306  ;;  %9314 = vmatprep.mubr.f32.mxu0 %v13305_v31  ;;  %11496 = vmatprep.subr.bf16.mxu0 %v14003_v38 }
 0x279   :  { %9315 = vmatmul.mubr.f32.vlgmr.msra.gmra.mrb[10].mxu0 %v13307_v34  ;;  %11916 = vmatprep.subr.bf16.mxu1 %v14143_v47 }
 0x27a   :  { %11498 = vmatpush3.bf16.msra.mxu0 %v14003_v38  ;;  %v14323_v38 = vld [vmem:[%s16017_s3] ss:$0 sm:$0xff] }
 0x27b   :  { %11918 = vmatpush3.bf16.msra.mxu1 %v14143_v47  ;;  %11500 = vmatprep.subr.bf16.mxu0 %v14009_v42  ;;  %v3112_v37 = vmul.f32 %v14323_v38, %v3109_v35  ;;  %v3356_v63 = vmul.f32 %v14323_v38, %v3353_v60  ;;  %v14452_v60 = vld [vmem:[%s16022_s8] ss:$0 sm:$0xff] }
 0x27c   :  { %11920 = vmatprep.subr.bf16.mxu1 %v14147_v4 }
 0x27d   :  { %v3358_v9 = vadd.f32 %v3356_v63, %v13953_v3 }
 0x27e   :  { %11502 = vmatpush3.bf16.msra.mxu0 %v14009_v42  ;;  %v3355_v42 = vmul.f32 %v14323_v38, %v3348_v39  ;;  %v3612_v39 = vld [vmem:[#allocation3 + $0x38] sm:$0xff] }
 0x27f   :  { %11922 = vmatpush3.bf16.msra.mxu1 %v14147_v4  ;;  %11504 = vmatprep.subr.bf16.mxu0 %v14015_v46 }
 0x280   :  { %11924 = vmatprep.subr.bf16.mxu1 %v14153_v7  ;;  %v3357_v41 = vadd.f32 %v3355_v42, %v13956_v10  ;;  %v3597_v42 = vpop.permute.xlu1 %3596 }
 0x282   :  { %11506 = vmatpush3.bf16.msra.mxu0 %v14015_v46  ;;  %v3114_v46 = vadd.f32 %v3112_v37, %v13953_v3  ;;  %v3611_v37 = vld [vmem:[#allocation3 + $0x30] sm:$0xff] }
 0x283   :  { %11926 = vmatpush3.bf16.msra.mxu1 %v14153_v7  ;;  %11508 = vmatprep.subr.bf16.mxu0 %v14023_v56 }
 0x284   :  { %11928 = vmatprep.subr.bf16.mxu1 %v14159_v13  ;;  %13308 = vtanh.f32 %v3114_v46  ;;  %v14423_v46 = vpack.c.bf16 %v3612_v39, %v3611_v37 }
 0x285   :  { %13310 = vtanh.f32 %v3357_v41  ;;  %v3613_v41 = vld [vmem:[#allocation3 + $0x40] sm:$0xff] }
 0x286   :  { %11510 = vmatpush3.bf16.msra.mxu0 %v14023_v56  ;;  %v1753_v56 = vld [vmem:[#allocation5] sm:$0xff] }
 0x287   :  { %11930 = vmatpush3.bf16.msra.mxu1 %v14159_v13  ;;  %11512 = vmatprep.subr.bf16.mxu0 %v14031_v61 }
 0x288   :  { %11932 = vmatprep.subr.bf16.mxu1 %v14167_v19 }
 0x289   :  { %v9351_v43 = vpop.f32.mrb[10].mxu1 }
 0x28a   :  { %v1504_v45 = vadd.f32 %v9351_v43, %v14128_v28  ;;  %v1498_v48 = vpop.f32.mrb[11].mxu1  ;;  %11514 = vmatpush3.bf16.msra.mxu0 %v14031_v61  ;;  %v1754_v61 = vld [vmem:[#allocation5 + $0x8] sm:$0xff] }
 0x28b   :  { %v1499_v33 = vadd.f32 %v14128_v28, %v1498_v48  ;;  %11934 = vmatpush3.bf16.msra.mxu1 %v14167_v19  ;;  %11516 = vmatprep.subr.bf16.mxu0 %v14037_v1  ;;  %v14350_v28 = vpack.c.bf16 %v1754_v61, %v1753_v56  ;;  %v3614_v43 = vld [vmem:[#allocation3 + $0x48] sm:$0xff]  ;;  %v3836_v48 = vpop.permute.xlu1 %3835  ;;  %v3616_v56 = vld [vmem:[#allocation3 + $0x58] sm:$0xff]  ;;  %v3600_v61 = vmul.f32 %v14323_v38, %v3597_v42 }
 0x28c   :  { %11936 = vmatprep.subr.bf16.mxu1 %v14174_v23 }
 0x28d   :  { %13312 = vtanh.f32 %v1499_v33  ;;  %v3615_v33 = vld [vmem:[#allocation3 + $0x50] sm:$0xff] }
 0x28e   :  { %13314 = vtanh.f32 %v1504_v45  ;;  %11518 = vmatpush3.bf16.msra.mxu0 %v14037_v1  ;;  %v1756_v1 = vld [vmem:[#allocation5 + $0x18] sm:$0xff]  ;;  %v13309_v49 = vpop.eup %13308  ;;  %v14429_v45 = vpack.c.bf16 %v3614_v43, %v3613_v41 }
 0x28f   :  { %11938 = vmatpush3.bf16.msra.mxu1 %v14174_v23  ;;  %11520 = vmatprep.subr.bf16.mxu0 %v14042_v5  ;;  %v13311_v40 = vpop.eup %13310  ;;  %13316 = vtanh.f32 %v3358_v9  ;;  %v4080_v22 = vpop.permute.xlu1 %4079 }
 0x290   :  { %11940 = vmatprep.subr.bf16.mxu1 %v14183_v32 }
 0x292   :  { %11522 = vmatpush3.bf16.msra.mxu0 %v14042_v5  ;;  %v14354_v5 = vpack.c.bf16 %v1756_v1, %v1755_v36  ;;  %v3843_v36 = vmul.f32 %v14323_v38, %v3836_v48  ;;  %v14437_v1 = vpack.c.bf16 %v3616_v56, %v3615_v33 }
 0x293   :  { %11942 = vmatpush3.bf16.msra.mxu1 %v14183_v32  ;;  %11524 = vmatprep.subr.bf16.mxu0 %v14048_v8 }
 0x294   :  { %11976 = vmatprep.subr.bf16.mxu1 %v14139_v54 }
 0x296   :  { %11526 = vmatpush3.bf16.msra.mxu0 %v14048_v8  ;;  %9840 = vmatmul.mubr.f32.vlgmr.msra.gmra.mrb[24].mxu1 %v13309_v49  ;;  %v14361_v8 = vpack.c.bf16 %v1758_v53, %v1757_v44  ;;  %v3617_v49 = vld [vmem:[#allocation3 + $0x60] sm:$0xff]  ;;  %v3845_v44 = vadd.f32 %v3843_v36, %v13956_v10 }
 0x297   :  { %v13313_v50 = vpop.eup %13312  ;;  %11978 = vmatpush3.bf16.msra.mxu1 %v14139_v54  ;;  %9909 = vmatprep.mubr.f32.mxu1 %v13311_v40  ;;  %v1759_v54 = vld [vmem:[#allocation5 + $0x30] sm:$0xff]  ;;  %v3618_v40 = vld [vmem:[#allocation3 + $0x68] sm:$0xff] }
 0x298   :  { %v13315_v51 = vpop.eup %13314  ;;  %9384 = vmatprep.mubr.f32.mxu0 %v13313_v50  ;;  %11560 = vmatprep.subr.bf16.mxu0 %v14350_v28  ;;  %v14367_v58 = vpack.c.bf16 %v1760_v57, %v1759_v54  ;;  %v3602_v50 = vadd.f32 %v3600_v61, %v13953_v3  ;;  %v3619_v54 = vld [vmem:[#allocation3 + $0x70] sm:$0xff]  ;;  %v3620_v57 = vld [vmem:[#allocation3 + $0x78] sm:$0xff] }
 0x299   :  { %9385 = vmatmul.mubr.f32.vlgmr.msra.gmra.mrb[12].mxu0 %v13315_v51  ;;  %11980 = vmatprep.subr.bf16.mxu1 %v14143_v47  ;;  %v13317_v0 = vpop.eup %13316  ;;  %v14444_v51 = vpack.c.bf16 %v3618_v40, %v3617_v49 }
 0x29a   :  { %11562 = vmatpush3.bf16.msra.mxu0 %v14350_v28 }
 0x29b   :  { %11982 = vmatpush3.bf16.msra.mxu1 %v14143_v47  ;;  %11564 = vmatprep.subr.bf16.mxu0 %v14354_v5  ;;  %v1762_v47 = vld [vmem:[#allocation5 + $0x48] sm:$0xff] }
 0x29c   :  { %11984 = vmatprep.subr.bf16.mxu1 %v14147_v4  ;;  %v14374_v2 = vpack.c.bf16 %v1762_v47, %v1761_v59 }
 0x29e   :  { %11566 = vmatpush3.bf16.msra.mxu0 %v14354_v5 }
 0x29f   :  { %11986 = vmatpush3.bf16.msra.mxu1 %v14147_v4  ;;  %11568 = vmatprep.subr.bf16.mxu0 %v14361_v8  ;;  %v3599_v4 = vmul.f32 %v14323_v38, %v3592_v62 }
 0x2a0   :  { %11988 = vmatprep.subr.bf16.mxu1 %v14153_v7 }
 0x2a1   :  { %v3601_v14 = vadd.f32 %v3599_v4, %v13956_v10  ;;  %v14458_v4 = vpack.c.bf16 %v3620_v57, %v3619_v54 }
 0x2a2   :  { %11570 = vmatpush3.bf16.msra.mxu0 %v14361_v8 }
 0x2a3   :  { %11990 = vmatpush3.bf16.msra.mxu1 %v14153_v7  ;;  %11572 = vmatprep.subr.bf16.mxu0 %v14367_v58  ;;  %v14386_v7 = vpack.c.bf16 %v1764_v55, %v1763_v52  ;;  %13318 = vtanh.f32 %v3601_v14 }
 0x2a4   :  { %11992 = vmatprep.subr.bf16.mxu1 %v14159_v13 }
 0x2a6   :  { %11574 = vmatpush3.bf16.msra.mxu0 %v14367_v58 }
 0x2a7   :  { %11994 = vmatpush3.bf16.msra.mxu1 %v14159_v13  ;;  %11576 = vmatprep.subr.bf16.mxu0 %v14374_v2 }
 0x2a8   :  { %11996 = vmatprep.subr.bf16.mxu1 %v14167_v19 }
 0x2a9   :  { %v9421_v15 = vpop.f32.mrb[12].mxu1 }
 0x2aa   :  { %v1748_v13 = vadd.f32 %v9421_v15, %v14383_v6  ;;  %v1742_v16 = vpop.f32.mrb[13].mxu1  ;;  %11578 = vmatpush3.bf16.msra.mxu0 %v14374_v2  ;;  %v14475_v15 = vld [vmem:[%s16023_s9] ss:$0 sm:$0xff] }
 0x2ab   :  { %v1743_v17 = vadd.f32 %v14383_v6, %v1742_v16  ;;  %11998 = vmatpush3.bf16.msra.mxu1 %v14167_v19  ;;  %11580 = vmatprep.subr.bf16.mxu0 %v14386_v7  ;;  %v14402_v19 = vpack.c.bf16 %v1768_v21, %v1767_v20 }
 0x2ac   :  { %12000 = vmatprep.subr.bf16.mxu1 %v14174_v23 }
 0x2ad   :  { %13320 = vtanh.f32 %v1743_v17  ;;  %v13319_v31 = vpop.eup %13318 }
 0x2ae   :  { %13322 = vtanh.f32 %v1748_v13  ;;  %11582 = vmatpush3.bf16.msra.mxu0 %v14386_v7 }
 0x2af   :  { %12002 = vmatpush3.bf16.msra.mxu1 %v14174_v23  ;;  %11584 = vmatprep.subr.bf16.mxu0 %v14396_v18  ;;  %v14411_v23 = vpack.c.bf16 %v3608_v27, %v3607_v26  ;;  %13324 = vtanh.f32 %v3602_v50  ;;  %v3844_v26 = vmul.f32 %v14323_v38, %v3841_v24  ;;  %v4087_v27 = vmul.f32 %v14323_v38, %v4080_v22  ;;  %v4085_v50 = vpop.permute.xlu1 %4084 }
 0x2b0   :  { %12004 = vmatprep.subr.bf16.mxu1 %v14183_v32  ;;  %13326 = vtanh.f32 %v3845_v44  ;;  %v4324_v44 = vpop.permute.xlu0 %4323 }
 0x2b1   :  { %v4331_v54 = vmul.f32 %v14323_v38, %v4324_v44 }
 0x2b2   :  { %11586 = vmatpush3.bf16.msra.mxu0 %v14396_v18 }
 0x2b3   :  { %12006 = vmatpush3.bf16.msra.mxu1 %v14183_v32  ;;  %11588 = vmatprep.subr.bf16.mxu0 %v14402_v19  ;;  %v14416_v32 = vpack.c.bf16 %v3610_v30, %v3609_v29  ;;  %v4089_v29 = vadd.f32 %v4087_v27, %v13956_v10 }
 0x2b4   :  { %12040 = vmatprep.subr.bf16.mxu1 %v14405_v25 }
 0x2b6   :  { %11590 = vmatpush3.bf16.msra.mxu0 %v14402_v19  ;;  %9910 = vmatmul.mubr.f32.vlgmr.msra.gmra.mrb[26].mxu1 %v13317_v0  ;;  %v3846_v0 = vadd.f32 %v3844_v26, %v13953_v3 }
 0x2b7   :  { %v13321_v34 = vpop.eup %13320  ;;  %12042 = vmatpush3.bf16.msra.mxu1 %v14405_v25  ;;  %9979 = vmatprep.mubr.f32.mxu1 %v13319_v31 }
 0x2b8   :  { %v13323_v35 = vpop.eup %13322  ;;  %9454 = vmatprep.mubr.f32.mxu0 %v13321_v34  ;;  %11624 = vmatprep.subr.bf16.mxu0 %v14350_v28 }
 0x2b9   :  { %9455 = vmatmul.mubr.f32.vlgmr.msra.gmra.mrb[14].mxu0 %v13323_v35  ;;  %12044 = vmatprep.subr.bf16.mxu1 %v14411_v23  ;;  %v13325_v11 = vpop.eup %13324 }
 0x2ba   :  { %11626 = vmatpush3.bf16.msra.mxu0 %v14350_v28  ;;  %v13327_v12 = vpop.eup %13326 }
 0x2bb   :  { %12046 = vmatpush3.bf16.msra.mxu1 %v14411_v23  ;;  %11628 = vmatprep.subr.bf16.mxu0 %v14354_v5 }
 0x2bc   :  { %12048 = vmatprep.subr.bf16.mxu1 %v14416_v32 }
 0x2be   :  { %11630 = vmatpush3.bf16.msra.mxu0 %v14354_v5 }
 0x2bf   :  { %12050 = vmatpush3.bf16.msra.mxu1 %v14416_v32  ;;  %11632 = vmatprep.subr.bf16.mxu0 %v14361_v8 }
 0x2c0   :  { %12052 = vmatprep.subr.bf16.mxu1 %v14423_v46 }
 0x2c2   :  { %11634 = vmatpush3.bf16.msra.mxu0 %v14361_v8 }
 0x2c3   :  { %12054 = vmatpush3.bf16.msra.mxu1 %v14423_v46  ;;  %11636 = vmatprep.subr.bf16.mxu0 %v14367_v58 }
 0x2c4   :  { %12056 = vmatprep.subr.bf16.mxu1 %v14429_v45 }
 0x2c6   :  { %11638 = vmatpush3.bf16.msra.mxu0 %v14367_v58 }
 0x2c7   :  { %12058 = vmatpush3.bf16.msra.mxu1 %v14429_v45  ;;  %11640 = vmatprep.subr.bf16.mxu0 %v14374_v2 }
 0x2c8   :  { %12060 = vmatprep.subr.bf16.mxu1 %v14437_v1 }
 0x2c9   :  { %v9491_v53 = vpop.f32.mrb[14].mxu1 }
 0x2ca   :  { %v1992_v59 = vadd.f32 %v9491_v53, %v14383_v6  ;;  %v1986_v47 = vpop.f32.mrb[15].mxu1  ;;  %11642 = vmatpush3.bf16.msra.mxu0 %v14374_v2  ;;  %v4088_v53 = vmul.f32 %v14323_v38, %v4085_v50 }
 0x2cb   :  { %v1987_v62 = vadd.f32 %v14383_v6, %v1986_v47  ;;  %12062 = vmatpush3.bf16.msra.mxu1 %v14437_v1  ;;  %11644 = vmatprep.subr.bf16.mxu0 %v14386_v7 }
 0x2cc   :  { %v9036_v63 = vpop.f32.mrb[2].mxu0  ;;  %12064 = vmatprep.subr.bf16.mxu1 %v14444_v51  ;;  %v4090_v57 = vadd.f32 %v4088_v53, %v13953_v3 }
 0x2cd   :  { %13328 = vtanh.f32 %v1987_v62  ;;  %v386_v52 = vadd.f32 %v9036_v63, %v14452_v60  ;;  %v380_v55 = vpop.f32.mrb[3].mxu0 }
 0x2ce   :  { %13330 = vtanh.f32 %v1992_v59  ;;  %v381_v9 = vadd.f32 %v14452_v60, %v380_v55  ;;  %11646 = vmatpush3.bf16.msra.mxu0 %v14386_v7  ;;  %v4333_v59 = vadd.f32 %v4331_v54, %v13956_v10  ;;  %v2977_v54 = vld [vmem:[#allocation5 + $0x20] sm:$0xff] }
 0x2cf   :  { %13332 = vtanh.f32 %v386_v52  ;;  %12066 = vmatpush3.bf16.msra.mxu1 %v14444_v51  ;;  %11648 = vmatprep.subr.bf16.mxu0 %v14396_v18 }
 0x2d0   :  { %13334 = vtanh.f32 %v381_v9  ;;  %12068 = vmatprep.subr.bf16.mxu1 %v14458_v4 }
 0x2d1   :  { %13336 = vtanh.f32 %v3846_v0 }
 0x2d2   :  { %11650 = vmatpush3.bf16.msra.mxu0 %v14396_v18  ;;  %13338 = vtanh.f32 %v4089_v29  ;;  %v14576_v29 = vpop.permute.xlu0 %4572 }
 0x2d3   :  { %12070 = vmatpush3.bf16.msra.mxu1 %v14458_v4  ;;  %11652 = vmatprep.subr.bf16.mxu0 %v14402_v19 }
 0x2d4   :  { %12104 = vmatprep.subr.bf16.mxu1 %v14405_v25 }
 0x2d6   :  { %11654 = vmatpush3.bf16.msra.mxu0 %v14402_v19  ;;  %9980 = vmatmul.mubr.f32.vlgmr.msra.gmra.mrb[28].mxu1 %v13325_v11 }
 0x2d7   :  { %v13329_v14 = vpop.eup %13328  ;;  %12106 = vmatpush3.bf16.msra.mxu1 %v14405_v25  ;;  %10049 = vmatprep.mubr.f32.mxu1 %v13327_v12 }
 0x2d8   :  { %v13331_v13 = vpop.eup %13330  ;;  %9524 = vmatprep.mubr.f32.mxu0 %v13329_v14  ;;  %11688 = vmatprep.subr.bf16.mxu0 %v14350_v28  ;;  %v4329_v14 = vpop.permute.xlu1 %4328 }
 0x2d9   :  { %v13333_v16 = vpop.eup %13332  ;;  %9525 = vmatmul.mubr.f32.vlgmr.msra.gmra.mrb[16].mxu0 %v13331_v13  ;;  %12108 = vmatprep.subr.bf16.mxu1 %v14411_v23 }
 0x2da   :  { %v13335_v17 = vpop.eup %13334  ;;  %11690 = vmatpush3.bf16.msra.mxu0 %v14350_v28  ;;  %v399_v20 = vmul.f32 %v13333_v16, %v14475_v15 }
 0x2db   :  { %12110 = vmatpush3.bf16.msra.mxu1 %v14411_v23  ;;  %11692 = vmatprep.subr.bf16.mxu0 %v14354_v5  ;;  %v398_v21 = vmul.f32 %v13335_v17, %v14475_v15  ;;  %v13337_v43 = vpop.eup %13336 }
 0x2dc   :  { %402 = vadd.xlane.f32.xlu0 %v399_v20  ;;  %12112 = vmatprep.subr.bf16.mxu1 %v14416_v32  ;;  %v13339_v48 = vpop.eup %13338 }
 0x2dd   :  { %400 = vadd.xlane.f32.xlu1 %v398_v21  ;;  %v4568_v21 = vpop.permute.xlu1 %4567 }
 0x2de   :  { %11694 = vmatpush3.bf16.msra.mxu0 %v14354_v5 }
 0x2df   :  { %12114 = vmatpush3.bf16.msra.mxu1 %v14416_v32  ;;  %11696 = vmatprep.subr.bf16.mxu0 %v14361_v8 }
 0x2e0   :  { %12116 = vmatprep.subr.bf16.mxu1 %v14423_v46 }
 0x2e1   :  { %v14569_v0 = vpop.permute.xlu1 %4816 }
 0x2e2   :  { %11698 = vmatpush3.bf16.msra.mxu0 %v14361_v8 }
 0x2e3   :  { %12118 = vmatpush3.bf16.msra.mxu1 %v14423_v46  ;;  %11700 = vmatprep.subr.bf16.mxu0 %v14367_v58 }
 0x2e4   :  { %12120 = vmatprep.subr.bf16.mxu1 %v14429_v45 }
 0x2e6   :  { %11702 = vmatpush3.bf16.msra.mxu0 %v14367_v58 }
 0x2e7   :  { %12122 = vmatpush3.bf16.msra.mxu1 %v14429_v45  ;;  %11704 = vmatprep.subr.bf16.mxu0 %v14374_v2 }
 0x2e8   :  { %12124 = vmatprep.subr.bf16.mxu1 %v14437_v1 }
 0x2e9   :  { %v9561_v30 = vpop.f32.mrb[16].mxu1 }
 0x2ea   :  { %v2236_v31 = vadd.f32 %v9561_v30, %v14383_v6  ;;  %v2230_v34 = vpop.f32.mrb[17].mxu1  ;;  %11706 = vmatpush3.bf16.msra.mxu0 %v14374_v2  ;;  %v4332_v30 = vmul.f32 %v14323_v38, %v4329_v14 }
 0x2eb   :  { %v2231_v35 = vadd.f32 %v14383_v6, %v2230_v34  ;;  %12126 = vmatpush3.bf16.msra.mxu1 %v14437_v1  ;;  %11708 = vmatprep.subr.bf16.mxu0 %v14386_v7  ;;  %v14582_v34 = vpop.permute.xlu1 %5299 }
 0x2ec   :  { %v9106_v37 = vpop.f32.mrb[4].mxu0  ;;  %12128 = vmatprep.subr.bf16.mxu1 %v14444_v51 }
 0x2ed   :  { %13340 = vtanh.f32 %v2231_v35  ;;  %v628_v39 = vadd.f32 %v9106_v37, %v14452_v60  ;;  %v622_v42 = vpop.f32.mrb[5].mxu0  ;;  %v14591_v35 = vpop.permute.xlu0 %4811 }
 0x2ee   :  { %13342 = vtanh.f32 %v2236_v31  ;;  %v623_v41 = vadd.f32 %v14452_v60, %v622_v42  ;;  %11710 = vmatpush3.bf16.msra.mxu0 %v14386_v7  ;;  %v4575_v31 = vmul.f32 %v14323_v38, %v4568_v21 }
 0x2ef   :  { %13344 = vtanh.f32 %v628_v39  ;;  %12130 = vmatpush3.bf16.msra.mxu1 %v14444_v51  ;;  %11712 = vmatprep.subr.bf16.mxu0 %v14396_v18  ;;  %v14593_v39 = vpop.permute.xlu1 %5304 }
 0x2f0   :  { %13346 = vtanh.f32 %v623_v41  ;;  %12132 = vmatprep.subr.bf16.mxu1 %v14458_v4 }
 0x2f1   :  { %13348 = vtanh.f32 %v4090_v57  ;;  %v2978_v57 = vld [vmem:[#allocation5 + $0x28] sm:$0xff] }
 0x2f2   :  { %11714 = vmatpush3.bf16.msra.mxu0 %v14396_v18  ;;  %13350 = vtanh.f32 %v4333_v59 }
 0x2f3   :  { %12134 = vmatpush3.bf16.msra.mxu1 %v14458_v4  ;;  %11716 = vmatprep.subr.bf16.mxu0 %v14402_v19 }
 0x2f4   :  { %12168 = vmatprep.subr.bf16.mxu1 %v14405_v25 }
 0x2f6   :  { %11718 = vmatpush3.bf16.msra.mxu0 %v14402_v19  ;;  %10050 = vmatmul.mubr.f32.vlgmr.msra.gmra.mrb[30].mxu1 %v13337_v43 }
 0x2f7   :  { %v13341_v33 = vpop.eup %13340  ;;  %12170 = vmatpush3.bf16.msra.mxu1 %v14405_v25  ;;  %10119 = vmatprep.mubr.f32.mxu1 %v13339_v48 }
 0x2f8   :  { %v13343_v56 = vpop.eup %13342  ;;  %9594 = vmatprep.mubr.f32.mxu0 %v13341_v33  ;;  %11752 = vmatprep.subr.bf16.mxu0 %v14350_v28 }
 0x2f9   :  { %v13345_v61 = vpop.eup %13344  ;;  %9595 = vmatmul.mubr.f32.vlgmr.msra.gmra.mrb[18].mxu0 %v13343_v56  ;;  %12172 = vmatprep.subr.bf16.mxu1 %v14411_v23 }
 0x2fa   :  { %v13347_v36 = vpop.eup %13346  ;;  %11754 = vmatpush3.bf16.msra.mxu0 %v14350_v28  ;;  %v641_v49 = vmul.f32 %v13345_v61, %v14475_v15  ;;  %v2976_v61 = vld [vmem:[#allocation5 + $0x18] sm:$0xff] }
 0x2fb   :  { %12174 = vmatpush3.bf16.msra.mxu1 %v14411_v23  ;;  %11756 = vmatprep.subr.bf16.mxu0 %v14354_v5  ;;  %v640_v40 = vmul.f32 %v13347_v36, %v14475_v15  ;;  %v13349_v13 = vpop.eup %13348 }
 0x2fc   :  { %644 = vadd.xlane.f32.xlu1 %v641_v49  ;;  %12176 = vmatprep.subr.bf16.mxu1 %v14416_v32  ;;  %v13351_v16 = vpop.eup %13350 }
 0x2fd   :  { %642 = vadd.xlane.f32.xlu0 %v640_v40 }
 0x2fe   :  { %11758 = vmatpush3.bf16.msra.mxu0 %v14354_v5 }
 0x2ff   :  { %12178 = vmatpush3.bf16.msra.mxu1 %v14416_v32  ;;  %11760 = vmatprep.subr.bf16.mxu0 %v14361_v8 }
 0x300   :  { %12180 = vmatprep.subr.bf16.mxu1 %v14423_v46 }
 0x302   :  { %11762 = vmatpush3.bf16.msra.mxu0 %v14361_v8 }
 0x303   :  { %12182 = vmatpush3.bf16.msra.mxu1 %v14423_v46  ;;  %11764 = vmatprep.subr.bf16.mxu0 %v14367_v58 }
 0x304   :  { %12184 = vmatprep.subr.bf16.mxu1 %v14429_v45 }
 0x306   :  { %11766 = vmatpush3.bf16.msra.mxu0 %v14367_v58 }
 0x307   :  { %12186 = vmatpush3.bf16.msra.mxu1 %v14429_v45  ;;  %11768 = vmatprep.subr.bf16.mxu0 %v14374_v2 }
 0x308   :  { %12188 = vmatprep.subr.bf16.mxu1 %v14437_v1 }
 0x309   :  { %v9631_v47 = vpop.f32.mrb[18].mxu1 }
 0x30a   :  { %v2480_v62 = vadd.f32 %v9631_v47, %v14383_v6  ;;  %v2474_v63 = vpop.f32.mrb[19].mxu1  ;;  %11770 = vmatpush3.bf16.msra.mxu0 %v14374_v2 }
 0x30b   :  { %v2475_v52 = vadd.f32 %v14383_v6, %v2474_v63  ;;  %12190 = vmatpush3.bf16.msra.mxu1 %v14437_v1  ;;  %11772 = vmatprep.subr.bf16.mxu0 %v14386_v7  ;;  %v14632_v63 = vpack.c.bf16 %v2978_v57, %v2977_v54 }
 0x30c   :  { %v9176_v55 = vpop.f32.mrb[6].mxu0  ;;  %12192 = vmatprep.subr.bf16.mxu1 %v14444_v51 }
 0x30d   :  { %13352 = vtanh.f32 %v2475_v52  ;;  %v872_v9 = vadd.f32 %v9176_v55, %v14452_v60  ;;  %v866_v11 = vpop.f32.mrb[7].mxu0  ;;  %v2979_v55 = vld [vmem:[#allocation5 + $0x30] sm:$0xff] }
 0x30e   :  { %13354 = vtanh.f32 %v2480_v62  ;;  %v867_v12 = vadd.f32 %v14452_v60, %v866_v11  ;;  %11774 = vmatpush3.bf16.msra.mxu0 %v14386_v7  ;;  %v2982_v11 = vld [vmem:[#allocation5 + $0x48] sm:$0xff] }
 0x30f   :  { %13356 = vtanh.f32 %v872_v9  ;;  %12194 = vmatpush3.bf16.msra.mxu1 %v14444_v51  ;;  %11776 = vmatprep.subr.bf16.mxu0 %v14396_v18  ;;  %v2980_v9 = vld [vmem:[#allocation5 + $0x38] sm:$0xff] }
 0x310   :  { %13358 = vtanh.f32 %v867_v12  ;;  %12196 = vmatprep.subr.bf16.mxu1 %v14458_v4 }
 0x312   :  { %11778 = vmatpush3.bf16.msra.mxu0 %v14396_v18 }
 0x313   :  { %12198 = vmatpush3.bf16.msra.mxu1 %v14458_v4  ;;  %11780 = vmatprep.subr.bf16.mxu0 %v14402_v19 }
 0x314   :  { %12232 = vmatprep.subr.bf16.mxu1 %v14405_v25 }
 0x316   :  { %11782 = vmatpush3.bf16.msra.mxu0 %v14402_v19  ;;  %10120 = vmatmul.mubr.f32.vlgmr.msra.gmra.mrb[32].mxu1 %v13349_v13  ;;  %v4576_v13 = vmul.f32 %v14323_v38, %v14576_v29 }
 0x317   :  { %v13353_v17 = vpop.eup %13352  ;;  %12234 = vmatpush3.bf16.msra.mxu1 %v14405_v25  ;;  %10189 = vmatprep.mubr.f32.mxu1 %v13351_v16  ;;  %v4819_v16 = vmul.f32 %v14323_v38, %v14591_v35 }
 0x318   :  { %v13355_v20 = vpop.eup %13354  ;;  %9664 = vmatprep.mubr.f32.mxu0 %v13353_v17  ;;  %11816 = vmatprep.subr.bf16.mxu0 %v14350_v28  ;;  %v2983_v17 = vld [vmem:[#allocation5 + $0x50] sm:$0xff]  ;;  %v4578_v38 = vadd.f32 %v4576_v13, %v13953_v3 }
 0x319   :  { %v13357_v22 = vpop.eup %13356  ;;  %9665 = vmatmul.mubr.f32.vlgmr.msra.gmra.mrb[20].mxu0 %v13355_v20  ;;  %12236 = vmatprep.subr.bf16.mxu1 %v14411_v23  ;;  %v2984_v20 = vld [vmem:[#allocation5 + $0x58] sm:$0xff]  ;;  %v4821_v29 = vadd.f32 %v4819_v16, %v13956_v10  ;;  %v4831_v13 = vld [vmem:[#allocation3 + $0x30] sm:$0xff] }
 0x31a   :  { %v13359_v24 = vpop.eup %13358  ;;  %11818 = vmatpush3.bf16.msra.mxu0 %v14350_v28  ;;  %v885_v26 = vmul.f32 %v13357_v22, %v14475_v15  ;;  %v14667_v22 = vpack.c.bf16 %v2984_v20, %v2983_v17  ;;  %v4832_v16 = vld [vmem:[#allocation3 + $0x38] sm:$0xff] }
 0x31b   :  { %12238 = vmatpush3.bf16.msra.mxu1 %v14411_v23  ;;  %11820 = vmatprep.subr.bf16.mxu0 %v14354_v5  ;;  %v884_v27 = vmul.f32 %v13359_v24, %v14475_v15 }
 0x31c   :  { %888 = vadd.xlane.f32.xlu1 %v885_v26  ;;  %12240 = vmatprep.subr.bf16.mxu1 %v14416_v32  ;;  %v2985_v26 = vld [vmem:[#allocation5 + $0x60] sm:$0xff] }
 0x31d   :  { %886 = vadd.xlane.f32.xlu0 %v884_v27  ;;  %v2986_v27 = vld [vmem:[#allocation5 + $0x68] sm:$0xff] }
 0x31e   :  { %11822 = vmatpush3.bf16.msra.mxu0 %v14354_v5  ;;  %v4334_v5 = vadd.f32 %v4332_v30, %v13953_v3 }
 0x31f   :  { %12242 = vmatpush3.bf16.msra.mxu1 %v14416_v32  ;;  %11824 = vmatprep.subr.bf16.mxu0 %v14361_v8 }
 0x320   :  { %12244 = vmatprep.subr.bf16.mxu1 %v14423_v46  ;;  %13360 = vtanh.f32 %v4334_v5 }
 0x322   :  { %11826 = vmatpush3.bf16.msra.mxu0 %v14361_v8  ;;  %v4577_v8 = vadd.f32 %v4575_v31, %v13956_v10 }
 0x323   :  { %12246 = vmatpush3.bf16.msra.mxu1 %v14423_v46  ;;  %11828 = vmatprep.subr.bf16.mxu0 %v14367_v58 }
 0x324   :  { %12248 = vmatprep.subr.bf16.mxu1 %v14429_v45  ;;  %13362 = vtanh.f32 %v4577_v8  ;;  %v14679_v8 = vpack.c.bf16 %v2986_v27, %v2985_v26  ;;  %v14724_v27 = vpack.c.bf16 %v4832_v16, %v4831_v13  ;;  %v14771_v13 = vld [vmem:[%s16022_s8] ss:$0 sm:$0xff] }
 0x326   :  { %11830 = vmatpush3.bf16.msra.mxu0 %v14367_v58 }
 0x327   :  { %12250 = vmatpush3.bf16.msra.mxu1 %v14429_v45  ;;  %11832 = vmatprep.subr.bf16.mxu0 %v14374_v2 }
 0x328   :  { %12252 = vmatprep.subr.bf16.mxu1 %v14437_v1 }
 0x329   :  { %v9701_v37 = vpop.f32.mrb[20].mxu1 }
 0x32a   :  { %v2724_v42 = vadd.f32 %v9701_v37, %v14383_v6  ;;  %v2718_v41 = vpop.f32.mrb[21].mxu1  ;;  %11834 = vmatpush3.bf16.msra.mxu0 %v14374_v2  ;;  %v14604_v2 = vpop.permute.xlu0 %5055  ;;  %v2987_v37 = vld [vmem:[#allocation5 + $0x70] sm:$0xff] }
 0x32b   :  { %v2719_v58 = vadd.f32 %v14383_v6, %v2718_v41  ;;  %12254 = vmatpush3.bf16.msra.mxu1 %v14437_v1  ;;  %11836 = vmatprep.subr.bf16.mxu0 %v14386_v7  ;;  %v14608_v6 = vpop.permute.xlu1 %5548  ;;  %v13361_v36 = vpop.eup %13360 }
 0x32c   :  { %v9246_v43 = vpop.f32.mrb[8].mxu0  ;;  %12256 = vmatprep.subr.bf16.mxu1 %v14444_v51 }
 0x32d   :  { %13364 = vtanh.f32 %v2719_v58  ;;  %v1116_v48 = vadd.f32 %v9246_v43, %v14452_v60  ;;  %v1110_v33 = vpop.f32.mrb[9].mxu0 }
 0x32e   :  { %13366 = vtanh.f32 %v2724_v42  ;;  %v1111_v56 = vadd.f32 %v14452_v60, %v1110_v33  ;;  %11838 = vmatpush3.bf16.msra.mxu0 %v14386_v7  ;;  %v2975_v7 = vld [vmem:[#allocation5 + $0x10] sm:$0xff]  ;;  %v14615_v49 = vpop.permute.xlu0 %5060  ;;  %v13363_v40 = vpop.eup %13362  ;;  %v2988_v42 = vld [vmem:[#allocation5 + $0x78] sm:$0xff]  ;;  %v4826_v33 = vld [vmem:[#allocation3 + $0x8] sm:$0xff] }
 0x32f   :  { %13368 = vtanh.f32 %v1116_v48  ;;  %12258 = vmatpush3.bf16.msra.mxu1 %v14444_v51  ;;  %11840 = vmatprep.subr.bf16.mxu0 %v14396_v18  ;;  %v14617_v50 = vpop.permute.xlu1 %5787  ;;  %v4825_v48 = vld [vmem:[#allocation3] sm:$0xff] }
 0x330   :  { %13370 = vtanh.f32 %v1111_v56  ;;  %12260 = vmatprep.subr.bf16.mxu1 %v14458_v4 }
 0x331   :  { %13372 = vtanh.f32 %v4578_v38 }
 0x332   :  { %11842 = vmatpush3.bf16.msra.mxu0 %v14396_v18  ;;  %v14621_v18 = vpack.c.bf16 %v2976_v61, %v2975_v7  ;;  %v14627_v62 = vpop.permute.xlu0 %5543  ;;  %13374 = vtanh.f32 %v4821_v29  ;;  %v14691_v7 = vpack.c.bf16 %v2988_v42, %v2987_v37  ;;  %v14694_v61 = vpack.c.bf16 %v4826_v33, %v4825_v48  ;;  %v4833_v29 = vld [vmem:[#allocation3 + $0x40] sm:$0xff]  ;;  %v14740_v37 = vld [vmem:[%s16017_s3] ss:$0 sm:$0xff] }
 0x333   :  { %12262 = vmatpush3.bf16.msra.mxu1 %v14458_v4  ;;  %11844 = vmatprep.subr.bf16.mxu0 %v14402_v19  ;;  %v14634_v52 = vpop.permute.xlu1 %5792  ;;  %v4820_v42 = vmul.f32 %v14740_v37, %v14569_v0  ;;  %v4837_v33 = vld [vmem:[#allocation3 + $0x60] sm:$0xff] }
 0x334   :  { %12296 = vmatprep.subr.bf16.mxu1 %v14405_v25 }
 0x335   :  { %v4822_v0 = vadd.f32 %v4820_v42, %v13953_v3 }
 0x336   :  { %11846 = vmatpush3.bf16.msra.mxu0 %v14402_v19  ;;  %10190 = vmatmul.mubr.f32.vlgmr.msra.gmra.mrb[34].mxu1 %v13361_v36  ;;  %v14643_v12 = vpop.permute.xlu0 %6031  ;;  %v3217_v36 = vld [vmem:[#allocation5] sm:$0xff] }
 0x337   :  { %v13365_v44 = vpop.eup %13364  ;;  %12298 = vmatpush3.bf16.msra.mxu1 %v14405_v25  ;;  %10259 = vmatprep.mubr.f32.mxu1 %v13363_v40  ;;  %v14645_v14 = vpop.permute.xlu1 %6275  ;;  %v3218_v40 = vld [vmem:[#allocation5 + $0x8] sm:$0xff] }
 0x338   :  { %v13367_v53 = vpop.eup %13366  ;;  %9734 = vmatprep.mubr.f32.mxu0 %v13365_v44  ;;  %11880 = vmatprep.subr.bf16.mxu0 %v14350_v28  ;;  %v4827_v44 = vld [vmem:[#allocation3 + $0x10] sm:$0xff]  ;;  %v14704_v54 = vpack.c.bf16 %v3218_v40, %v3217_v36  ;;  %v14759_v40 = vld [vmem:[#allocation2] ss:$0 sm:$0xff] }
 0x339   :  { %v13369_v59 = vpop.eup %13368  ;;  %9735 = vmatmul.mubr.f32.vlgmr.msra.gmra.mrb[22].mxu0 %v13367_v53  ;;  %12300 = vmatprep.subr.bf16.mxu1 %v14411_v23 }
 0x33a   :  { %v13371_v47 = vpop.eup %13370  ;;  %11882 = vmatpush3.bf16.msra.mxu0 %v14350_v28  ;;  %v1129_v19 = vmul.f32 %v13369_v59, %v14475_v15  ;;  %v14640_v28 = vpack.c.bf16 %v2980_v9, %v2979_v55  ;;  %v14658_v21 = vpop.permute.xlu0 %6036 }
 0x33b   :  { %12302 = vmatpush3.bf16.msra.mxu1 %v14411_v23  ;;  %11884 = vmatprep.subr.bf16.mxu0 %v14621_v18  ;;  %v1128_v25 = vmul.f32 %v13371_v47, %v14475_v15  ;;  %v2981_v23 = vld [vmem:[#allocation5 + $0x40] sm:$0xff]  ;;  %v14670_v24 = vpop.permute.xlu1 %6519  ;;  %v13373_v57 = vpop.eup %13372 }
 0x33c   :  { %1132 = vadd.xlane.f32.xlu0 %v1129_v19  ;;  %12304 = vmatprep.subr.bf16.mxu1 %v14416_v32  ;;  %v4829_v47 = vld [vmem:[#allocation3 + $0x20] sm:$0xff]  ;;  %v4830_v19 = vld [vmem:[#allocation3 + $0x28] sm:$0xff] }
 0x33d   :  { %1130 = vadd.xlane.f32.xlu1 %v1128_v25  ;;  %v13375_v25 = vpop.eup %13374  ;;  %v14711_v9 = vpack.c.bf16 %v4830_v19, %v4829_v47  ;;  %v4839_v47 = vld [vmem:[#allocation3 + $0x70] sm:$0xff]  ;;  %v4840_v19 = vld [vmem:[#allocation3 + $0x78] sm:$0xff] }
 0x33e   :  { %11886 = vmatpush3.bf16.msra.mxu0 %v14621_v18  ;;  %v14682_v41 = vpop.permute.xlu0 %6280 }
 0x33f   :  { %12306 = vmatpush3.bf16.msra.mxu1 %v14416_v32  ;;  %11888 = vmatprep.subr.bf16.mxu0 %v14632_v63  ;;  %v14652_v32 = vpack.c.bf16 %v2982_v11, %v2981_v23 }
 0x340   :  { %12308 = vmatprep.subr.bf16.mxu1 %v14423_v46 }
 0x342   :  { %11890 = vmatpush3.bf16.msra.mxu0 %v14632_v63  ;;  %v14697_v53 = vpop.permute.xlu0 %6763 }
 0x343   :  { %12310 = vmatpush3.bf16.msra.mxu1 %v14423_v46  ;;  %11892 = vmatprep.subr.bf16.mxu0 %v14640_v28  ;;  %v14664_v46 = vld [vmem:[%s16020_s6] ss:$0 sm:$0xff] }
 0x344   :  { %12312 = vmatprep.subr.bf16.mxu1 %v14429_v45 }
 0x346   :  { %11894 = vmatpush3.bf16.msra.mxu0 %v14640_v28  ;;  %v14713_v11 = vpop.permute.xlu0 %6768 }
 0x347   :  { %12314 = vmatpush3.bf16.msra.mxu1 %v14429_v45  ;;  %11896 = vmatprep.subr.bf16.mxu0 %v14652_v32 }
 0x348   :  { %12316 = vmatprep.subr.bf16.mxu1 %v14437_v1 }
 0x349   :  { %v9771_v45 = vpop.f32.mrb[22].mxu1 }
 0x34a   :  { %v2968_v30 = vadd.f32 %v9771_v45, %v14664_v46  ;;  %v2962_v31 = vpop.f32.mrb[23].mxu1  ;;  %11898 = vmatpush3.bf16.msra.mxu0 %v14652_v32  ;;  %v4834_v45 = vld [vmem:[#allocation3 + $0x48] sm:$0xff] }
 0x34b   :  { %v2963_v5 = vadd.f32 %v14664_v46, %v2962_v31  ;;  %12318 = vmatpush3.bf16.msra.mxu1 %v14437_v1  ;;  %11900 = vmatprep.subr.bf16.mxu0 %v14667_v22  ;;  %v14685_v1 = vpop.permute.xlu1 %6524 }
 0x34c   :  { %v9316_v35 = vpop.f32.mrb[10].mxu0  ;;  %12320 = vmatprep.subr.bf16.mxu1 %v14444_v51 }
 0x34d   :  { %13376 = vtanh.f32 %v2963_v5  ;;  %v1360_v58 = vadd.f32 %v9316_v35, %v14452_v60  ;;  %v1354_v43 = vpop.f32.mrb[11].mxu0  ;;  %v4835_v5 = vld [vmem:[#allocation3 + $0x50] sm:$0xff]  ;;  %v4836_v35 = vld [vmem:[#allocation3 + $0x58] sm:$0xff] }
 0x34e   :  { %13378 = vtanh.f32 %v2968_v30  ;;  %v1355_v56 = vadd.f32 %v14452_v60, %v1354_v43  ;;  %11902 = vmatpush3.bf16.msra.mxu0 %v14667_v22  ;;  %v4828_v60 = vld [vmem:[#allocation3 + $0x18] sm:$0xff]  ;;  %v14727_v30 = vpop.permute.xlu0 %7495  ;;  %v14749_v43 = vpack.c.bf16 %v4836_v35, %v4835_v5 }
 0x34f   :  { %13380 = vtanh.f32 %v1360_v58  ;;  %12322 = vmatpush3.bf16.msra.mxu1 %v14444_v51  ;;  %11904 = vmatprep.subr.bf16.mxu0 %v14679_v8  ;;  %v14701_v51 = vpop.permute.xlu1 %7007  ;;  %v14706_v59 = vpack.c.bf16 %v4828_v60, %v4827_v44  ;;  %v5063_v58 = vmul.f32 %v14740_v37, %v14604_v2 }
 0x350   :  { %13382 = vtanh.f32 %v1355_v56  ;;  %12324 = vmatprep.subr.bf16.mxu1 %v14458_v4  ;;  %v4838_v56 = vld [vmem:[#allocation3 + $0x68] sm:$0xff] }
 0x351   :  { %v14762_v2 = vpack.c.bf16 %v4838_v56, %v4837_v33  ;;  %v5065_v44 = vadd.f32 %v5063_v58, %v13956_v10  ;;  %13384 = vtanh.f32 %v4822_v0  ;;  %v14803_v33 = vld [vmem:[%s16023_s9] ss:$0 sm:$0xff] }
 0x352   :  { %11906 = vmatpush3.bf16.msra.mxu0 %v14679_v8  ;;  %v14751_v48 = vpop.permute.xlu0 %7500 }
 0x353   :  { %12326 = vmatpush3.bf16.msra.mxu1 %v14458_v4  ;;  %11908 = vmatprep.subr.bf16.mxu0 %v14691_v7  ;;  %v14716_v20 = vpop.permute.xlu1 %7012  ;;  %13386 = vtanh.f32 %v5065_v44 }
 0x354   :  { %12360 = vmatprep.subr.bf16.mxu1 %v14694_v61 }
 0x356   :  { %11910 = vmatpush3.bf16.msra.mxu0 %v14691_v7  ;;  %10260 = vmatmul.mubr.f32.vlgmr.msra.gmra.mrb[36].mxu1 %v13373_v57 }
 0x357   :  { %v13377_v55 = vpop.eup %13376  ;;  %12362 = vmatpush3.bf16.msra.mxu1 %v14694_v61  ;;  %10329 = vmatprep.mubr.f32.mxu1 %v13375_v25  ;;  %v14731_v31 = vpop.permute.xlu1 %7251 }
 0x358   :  { %v13379_v4 = vpop.eup %13378  ;;  %9804 = vmatprep.mubr.f32.mxu0 %v13377_v55  ;;  %11944 = vmatprep.subr.bf16.mxu0 %v14704_v54 }
 0x359   :  { %v13381_v23 = vpop.eup %13380  ;;  %9805 = vmatmul.mubr.f32.vlgmr.msra.gmra.mrb[24].mxu0 %v13379_v4  ;;  %12364 = vmatprep.subr.bf16.mxu1 %v14706_v59 }
 0x35a   :  { %v13383_v17 = vpop.eup %13382  ;;  %11946 = vmatpush3.bf16.msra.mxu0 %v14704_v54  ;;  %v1373_v38 = vmul.f32 %v13381_v23, %v14475_v15 }
 0x35b   :  { %12366 = vmatpush3.bf16.msra.mxu1 %v14706_v59  ;;  %11948 = vmatprep.subr.bf16.mxu0 %v14621_v18  ;;  %v1372_v26 = vmul.f32 %v13383_v17, %v14475_v15  ;;  %v14734_v15 = vpack.c.bf16 %v4834_v45, %v4833_v29  ;;  %v14753_v36 = vpop.permute.xlu1 %7256  ;;  %v13385_v35 = vpop.eup %13384 }
 0x35c   :  { %1376 = vadd.xlane.f32.xlu0 %v1373_v38  ;;  %12368 = vmatprep.subr.bf16.mxu1 %v14711_v9 }
 0x35d   :  { %1374 = vadd.xlane.f32.xlu1 %v1372_v26  ;;  %v14782_v26 = vpack.c.bf16 %v4840_v19, %v4839_v47  ;;  %v13387_v42 = vpop.eup %13386  ;;  %v5064_v47 = vmul.f32 %v14740_v37, %v14615_v49  ;;  %v5307_v19 = vmul.f32 %v14740_v37, %v14582_v34 }
 0x35e   :  { %11950 = vmatpush3.bf16.msra.mxu0 %v14621_v18 }
 0x35f   :  { %12370 = vmatpush3.bf16.msra.mxu1 %v14711_v9  ;;  %11952 = vmatprep.subr.bf16.mxu0 %v14632_v63 }
 0x360   :  { %12372 = vmatprep.subr.bf16.mxu1 %v14724_v27 }
 0x362   :  { %11954 = vmatpush3.bf16.msra.mxu0 %v14632_v63 }
 0x363   :  { %12374 = vmatpush3.bf16.msra.mxu1 %v14724_v27  ;;  %11956 = vmatprep.subr.bf16.mxu0 %v14640_v28 }
 0x364   :  { %12376 = vmatprep.subr.bf16.mxu1 %v14734_v15 }
 0x366   :  { %11958 = vmatpush3.bf16.msra.mxu0 %v14640_v28 }
 0x367   :  { %12378 = vmatpush3.bf16.msra.mxu1 %v14734_v15  ;;  %11960 = vmatprep.subr.bf16.mxu0 %v14652_v32 }
 0x368   :  { %12380 = vmatprep.subr.bf16.mxu1 %v14749_v43 }
 0x369   :  { %v9841_v60 = vpop.f32.mrb[24].mxu1  ;;  %v403_v57 = vpop.xlane.xlu0 %402 }
 0x36a   :  { %v3212_v25 = vadd.f32 %v9841_v60, %v14664_v46  ;;  %v3206_v55 = vpop.f32.mrb[25].mxu1  ;;  %11962 = vmatpush3.bf16.msra.mxu0 %v14652_v32  ;;  %v411_v4 = vadd.f32 %v14759_v40, %v403_v57  ;;  %v401_v23 = vpop.xlane.xlu1 %400 }
 0x36b   :  { %v3207_v16 = vadd.f32 %v14664_v46, %v3206_v55  ;;  %12382 = vmatpush3.bf16.msra.mxu1 %v14749_v43  ;;  %v410_v17 = vadd.f32 %v14759_v40, %v401_v23  ;;  %11964 = vmatprep.subr.bf16.mxu0 %v14667_v22  ;;  %v5309_v55 = vadd.f32 %v5307_v19, %v13956_v10 }
 0x36c   :  { %414 = vst.msk [vmem:[%s16025_s11 + $0x8] sm:$0xff] %vm412_vm4, %v411_v4  ;;  %v9386_v38 = vpop.f32.mrb[12].mxu0  ;;  %12384 = vmatprep.subr.bf16.mxu1 %v14762_v2 }
 0x36d   :  { %13388 = vtanh.f32 %v3207_v16  ;;  %413 = vst.msk [vmem:[%s16025_s11] sm:$0xff] %vm412_vm4, %v410_v17  ;;  %v1604_v29 = vadd.f32 %v9386_v38, %v14771_v13  ;;  %v1598_v45 = vpop.f32.mrb[13].mxu0  ;;  %vm4316_vm4 = vcmask 138368  }
 0x36e   :  { %13390 = vtanh.f32 %v3212_v25  ;;  %v1599_v5 = vadd.f32 %v14771_v13, %v1598_v45  ;;  %11966 = vmatpush3.bf16.msra.mxu0 %v14667_v22  ;;  %v5066_v25 = vadd.f32 %v5064_v47, %v13953_v3 }
 0x36f   :  { %13392 = vtanh.f32 %v1604_v29  ;;  %12386 = vmatpush3.bf16.msra.mxu1 %v14762_v2  ;;  %11968 = vmatprep.subr.bf16.mxu0 %v14679_v8 }
 0x370   :  { %13394 = vtanh.f32 %v1599_v5  ;;  %12388 = vmatprep.subr.bf16.mxu1 %v14782_v26 }
 0x371   :  { %13396 = vtanh.f32 %v5066_v25 }
 0x372   :  { %11970 = vmatpush3.bf16.msra.mxu0 %v14679_v8  ;;  %13398 = vtanh.f32 %v5309_v55 }
 0x373   :  { %12390 = vmatpush3.bf16.msra.mxu1 %v14782_v26  ;;  %11972 = vmatprep.subr.bf16.mxu0 %v14691_v7 }
 0x374   :  { %12424 = vmatprep.subr.bf16.mxu1 %v14694_v61 }
 0x376   :  { %11974 = vmatpush3.bf16.msra.mxu0 %v14691_v7  ;;  %10330 = vmatmul.mubr.f32.vlgmr.msra.gmra.mrb[38].mxu1 %v13385_v35 }
 0x377   :  { %v13389_v58 = vpop.eup %13388  ;;  %12426 = vmatpush3.bf16.msra.mxu1 %v14694_v61  ;;  %10399 = vmatprep.mubr.f32.mxu1 %v13387_v42 }
 0x378   :  { %v13391_v56 = vpop.eup %13390  ;;  %9874 = vmatprep.mubr.f32.mxu0 %v13389_v58  ;;  %12008 = vmatprep.subr.bf16.mxu0 %v14704_v54 }
 0x379   :  { %v13393_v0 = vpop.eup %13392  ;;  %9875 = vmatmul.mubr.f32.vlgmr.msra.gmra.mrb[26].mxu0 %v13391_v56  ;;  %12428 = vmatprep.subr.bf16.mxu1 %v14706_v59 }
 0x37a   :  { %v13395_v44 = vpop.eup %13394  ;;  %12010 = vmatpush3.bf16.msra.mxu0 %v14704_v54  ;;  %v1617_v60 = vmul.f32 %v13393_v0, %v14803_v33 }
 0x37b   :  { %12430 = vmatpush3.bf16.msra.mxu1 %v14706_v59  ;;  %12012 = vmatprep.subr.bf16.mxu0 %v14621_v18  ;;  %v1616_v57 = vmul.f32 %v13395_v44, %v14803_v33  ;;  %v13397_v35 = vpop.eup %13396 }
 0x37c   :  { %1620 = vadd.xlane.f32.xlu0 %v1617_v60  ;;  %12432 = vmatprep.subr.bf16.mxu1 %v14711_v9  ;;  %v13399_v42 = vpop.eup %13398  ;;  %v5308_v60 = vmul.f32 %v14740_v37, %v14593_v39 }
 0x37d   :  { %1618 = vadd.xlane.f32.xlu1 %v1616_v57  ;;  %v5551_v57 = vmul.f32 %v14740_v37, %v14627_v62 }
 0x37e   :  { %12014 = vmatpush3.bf16.msra.mxu0 %v14621_v18  ;;  %v5310_v47 = vadd.f32 %v5308_v60, %v13953_v3 }
 0x37f   :  { %12434 = vmatpush3.bf16.msra.mxu1 %v14711_v9  ;;  %12016 = vmatprep.subr.bf16.mxu0 %v14632_v63  ;;  %v5553_v39 = vadd.f32 %v5551_v57, %v13956_v10 }
 0x380   :  { %12436 = vmatprep.subr.bf16.mxu1 %v14724_v27 }
 0x382   :  { %12018 = vmatpush3.bf16.msra.mxu0 %v14632_v63 }
 0x383   :  { %12438 = vmatpush3.bf16.msra.mxu1 %v14724_v27  ;;  %12020 = vmatprep.subr.bf16.mxu0 %v14640_v28 }
 0x384   :  { %12440 = vmatprep.subr.bf16.mxu1 %v14734_v15 }
 0x386   :  { %12022 = vmatpush3.bf16.msra.mxu0 %v14640_v28 }
 0x387   :  { %12442 = vmatpush3.bf16.msra.mxu1 %v14734_v15  ;;  %12024 = vmatprep.subr.bf16.mxu0 %v14652_v32 }
 0x388   :  { %12444 = vmatprep.subr.bf16.mxu1 %v14749_v43 }
 0x389   :  { %v9911_v49 = vpop.f32.mrb[26].mxu1  ;;  %v645_v4 = vpop.xlane.xlu1 %644 }
 0x38a   :  { %v3456_v23 = vadd.f32 %v9911_v49, %v14664_v46  ;;  %v3450_v16 = vpop.f32.mrb[27].mxu1  ;;  %12026 = vmatpush3.bf16.msra.mxu0 %v14652_v32  ;;  %v647_v17 = vadd.f32 %v14759_v40, %v645_v4  ;;  %v643_v29 = vpop.xlane.xlu0 %642 }
 0x38b   :  { %v3451_v34 = vadd.f32 %v14664_v46, %v3450_v16  ;;  %12446 = vmatpush3.bf16.msra.mxu1 %v14749_v43  ;;  %12028 = vmatprep.subr.bf16.mxu0 %v14667_v22  ;;  %v646_v5 = vadd.f32 %v14759_v40, %v643_v29 }
 0x38c   :  { %v9456_v38 = vpop.f32.mrb[14].mxu0  ;;  %12448 = vmatprep.subr.bf16.mxu1 %v14762_v2 }
 0x38d   :  { %13400 = vtanh.f32 %v3451_v34  ;;  %v1842_v45 = vpop.f32.mrb[15].mxu0  ;;  %v1848_v0 = vadd.f32 %v9456_v38, %v14771_v13 }
 0x38e   :  { %13402 = vtanh.f32 %v3456_v23  ;;  %12030 = vmatpush3.bf16.msra.mxu0 %v14667_v22  ;;  %652 = vrot.lane.b32.xlu1 %v647_v17, %s13700_s1  ;;  %v1843_v44 = vadd.f32 %v14771_v13, %v1842_v45 }
 0x38f   :  { %12450 = vmatpush3.bf16.msra.mxu1 %v14762_v2  ;;  %12032 = vmatprep.subr.bf16.mxu0 %v14679_v8  ;;  %13404 = vtanh.f32 %v1848_v0 }
 0x390   :  { %12452 = vmatprep.subr.bf16.mxu1 %v14782_v26  ;;  %13406 = vtanh.f32 %v1843_v44 }
 0x391   :  { %13408 = vtanh.f32 %v5310_v47 }
 0x392   :  { %12034 = vmatpush3.bf16.msra.mxu0 %v14679_v8  ;;  %650 = vrot.lane.b32.xlu0 %v646_v5, %s13700_s1  ;;  %13410 = vtanh.f32 %v5553_v39  ;;  %v4196_v39 = vld [vmem:[#allocation5 + $0x18] sm:$0xff] }
 0x393   :  { %12454 = vmatpush3.bf16.msra.mxu1 %v14782_v26  ;;  %12036 = vmatprep.subr.bf16.mxu0 %v14691_v7 }
 0x394   :  { %12488 = vmatprep.subr.bf16.mxu1 %v14694_v61 }
 0x396   :  { %12038 = vmatpush3.bf16.msra.mxu0 %v14691_v7  ;;  %10400 = vmatmul.mubr.f32.vlgmr.msra.gmra.mrb[40].mxu1 %v13397_v35 }
 0x397   :  { %v13401_v58 = vpop.eup %13400  ;;  %12490 = vmatpush3.bf16.msra.mxu1 %v14694_v61  ;;  %10469 = vmatprep.mubr.f32.mxu1 %v13399_v42 }
 0x398   :  { %v13403_v56 = vpop.eup %13402  ;;  %9944 = vmatprep.mubr.f32.mxu0 %v13401_v58  ;;  %12072 = vmatprep.subr.bf16.mxu0 %v14704_v54 }
 0x399   :  { %9945 = vmatmul.mubr.f32.vlgmr.msra.gmra.mrb[28].mxu0 %v13403_v56  ;;  %12492 = vmatprep.subr.bf16.mxu1 %v14706_v59  ;;  %v13405_v49 = vpop.eup %13404  ;;  %v5552_v56 = vmul.f32 %v14740_v37, %v14608_v6 }
 0x39a   :  { %12074 = vmatpush3.bf16.msra.mxu0 %v14704_v54  ;;  %v13407_v23 = vpop.eup %13406  ;;  %v1861_v34 = vmul.f32 %v13405_v49, %v14803_v33 }
 0x39b   :  { %12494 = vmatpush3.bf16.msra.mxu1 %v14706_v59  ;;  %12076 = vmatprep.subr.bf16.mxu0 %v14621_v18  ;;  %v1860_v17 = vmul.f32 %v13407_v23, %v14803_v33  ;;  %v13409_v38 = vpop.eup %13408  ;;  %v4198_v23 = vld [vmem:[#allocation5 + $0x28] sm:$0xff] }
 0x39c   :  { %12496 = vmatprep.subr.bf16.mxu1 %v14711_v9  ;;  %v13411_v29 = vpop.eup %13410 }
 0x39e   :  { %12078 = vmatpush3.bf16.msra.mxu0 %v14621_v18 }
 0x39f   :  { %12498 = vmatpush3.bf16.msra.mxu1 %v14711_v9  ;;  %12080 = vmatprep.subr.bf16.mxu0 %v14632_v63 }
 0x3a0   :  { %12500 = vmatprep.subr.bf16.mxu1 %v14724_v27 }
 0x3a2   :  { %12082 = vmatpush3.bf16.msra.mxu0 %v14632_v63 }
 0x3a3   :  { %12502 = vmatpush3.bf16.msra.mxu1 %v14724_v27  ;;  %12084 = vmatprep.subr.bf16.mxu0 %v14640_v28 }
 0x3a4   :  { %12504 = vmatprep.subr.bf16.mxu1 %v14734_v15 }
 0x3a6   :  { %12086 = vmatpush3.bf16.msra.mxu0 %v14640_v28 }
 0x3a7   :  { %12506 = vmatpush3.bf16.msra.mxu1 %v14734_v15  ;;  %12088 = vmatprep.subr.bf16.mxu0 %v14652_v32 }
 0x3a8   :  { %12508 = vmatprep.subr.bf16.mxu1 %v14749_v43 }
 0x3a9   :  { %v9981_v19 = vpop.f32.mrb[28].mxu1  ;;  %v889_v58 = vpop.xlane.xlu1 %888 }
 0x3aa   :  { %v3700_v25 = vadd.f32 %v9981_v19, %v14664_v46  ;;  %v3694_v55 = vpop.f32.mrb[29].mxu1  ;;  %12090 = vmatpush3.bf16.msra.mxu0 %v14652_v32  ;;  %v887_v35 = vpop.xlane.xlu0 %886  ;;  %v891_v0 = vadd.f32 %v14759_v40, %v889_v58 }
 0x3ab   :  { %v3695_v62 = vadd.f32 %v14664_v46, %v3694_v55  ;;  %12510 = vmatpush3.bf16.msra.mxu1 %v14749_v43  ;;  %12092 = vmatprep.subr.bf16.mxu0 %v14667_v22  ;;  %v890_v42 = vadd.f32 %v14759_v40, %v887_v35  ;;  %v4203_v35 = vld [vmem:[#allocation5 + $0x50] sm:$0xff] }
 0x3ac   :  { %v14880_v4 = vpop.f32.mrb[16].mxu0  ;;  %12512 = vmatprep.subr.bf16.mxu1 %v14762_v2 }
 0x3ad   :  { %13412 = vtanh.f32 %v3695_v62  ;;  %v14883_v16 = vpop.f32.mrb[17].mxu0 }
 0x3ae   :  { %13414 = vtanh.f32 %v3700_v25  ;;  %12094 = vmatpush3.bf16.msra.mxu0 %v14667_v22 }
 0x3af   :  { %12514 = vmatpush3.bf16.msra.mxu1 %v14762_v2  ;;  %12096 = vmatprep.subr.bf16.mxu0 %v14679_v8 }
 0x3b0   :  { %12516 = vmatprep.subr.bf16.mxu1 %v14782_v26 }
 0x3b1   :  { %1864 = vadd.xlane.f32.xlu0 %v1861_v34 }
 0x3b2   :  { %12098 = vmatpush3.bf16.msra.mxu0 %v14679_v8  ;;  %1862 = vadd.xlane.f32.xlu1 %v1860_v17  ;;  %v4202_v17 = vld [vmem:[#allocation5 + $0x48] sm:$0xff] }
 0x3b3   :  { %12518 = vmatpush3.bf16.msra.mxu1 %v14782_v26  ;;  %12100 = vmatprep.subr.bf16.mxu0 %v14691_v7 }
 0x3b4   :  { %12552 = vmatprep.subr.bf16.mxu1 %v14694_v61 }
 0x3b6   :  { %12102 = vmatpush3.bf16.msra.mxu0 %v14691_v7  ;;  %10470 = vmatmul.mubr.f32.vlgmr.msra.gmra.mrb[42].mxu1 %v13409_v38 }
 0x3b7   :  { %v13413_v45 = vpop.eup %13412  ;;  %12554 = vmatpush3.bf16.msra.mxu1 %v14694_v61  ;;  %10539 = vmatprep.mubr.f32.mxu1 %v13411_v29  ;;  %v5796_v29 = vmul.f32 %v14740_v37, %v14634_v52 }
 0x3b8   :  { %v13415_v5 = vpop.eup %13414  ;;  %10014 = vmatprep.mubr.f32.mxu0 %v13413_v45  ;;  %12136 = vmatprep.subr.bf16.mxu0 %v14704_v54 }
 0x3b9   :  { %10015 = vmatmul.mubr.f32.vlgmr.msra.gmra.mrb[30].mxu0 %v13415_v5  ;;  %12556 = vmatprep.subr.bf16.mxu1 %v14706_v59  ;;  %v5798_v52 = vadd.f32 %v5796_v29, %v13953_v3 }
 0x3ba   :  { %12138 = vmatpush3.bf16.msra.mxu0 %v14704_v54 }
 0x3bb   :  { %12558 = vmatpush3.bf16.msra.mxu1 %v14706_v59  ;;  %12140 = vmatprep.subr.bf16.mxu0 %v14621_v18 }
 0x3bc   :  { %12560 = vmatprep.subr.bf16.mxu1 %v14711_v9 }
 0x3be   :  { %12142 = vmatpush3.bf16.msra.mxu0 %v14621_v18  ;;  %v5795_v18 = vmul.f32 %v14740_v37, %v14617_v50 }
 0x3bf   :  { %12562 = vmatpush3.bf16.msra.mxu1 %v14711_v9  ;;  %12144 = vmatprep.subr.bf16.mxu0 %v14632_v63 }
 0x3c0   :  { %12564 = vmatprep.subr.bf16.mxu1 %v14724_v27  ;;  %v5797_v6 = vadd.f32 %v5795_v18, %v13956_v10 }
 0x3c2   :  { %12146 = vmatpush3.bf16.msra.mxu0 %v14632_v63  ;;  %v5554_v63 = vadd.f32 %v5552_v56, %v13953_v3 }
 0x3c3   :  { %12566 = vmatpush3.bf16.msra.mxu1 %v14724_v27  ;;  %894 = vrot.lane.b32.xlu1 %v890_v42, %s13701_s2  ;;  %v4204_v42 = vld [vmem:[#allocation5 + $0x58] sm:$0xff] }
 0x3c4   :  { %12148 = vmatprep.subr.bf16.mxu0 %v14640_v28  ;;  %12568 = vmatprep.subr.bf16.mxu1 %v14734_v15  ;;  %13416 = vtanh.f32 %v5554_v63  ;;  %v4206_v63 = vld [vmem:[#allocation5 + $0x68] sm:$0xff] }
 0x3c5   :  { %13418 = vtanh.f32 %v5797_v6 }
 0x3c6   :  { %12150 = vmatpush3.bf16.msra.mxu0 %v14640_v28 }
 0x3c7   :  { %12570 = vmatpush3.bf16.msra.mxu1 %v14734_v15  ;;  %896 = vrot.lane.b32.xlu0 %v891_v0, %s13701_s2  ;;  %v4205_v0 = vld [vmem:[#allocation5 + $0x60] sm:$0xff]  ;;  %s13719_s2 = smov 21  }
 0x3c8   :  { %12152 = vmatprep.subr.bf16.mxu0 %v14652_v32  ;;  %12572 = vmatprep.subr.bf16.mxu1 %v14749_v43 }
 0x3c9   :  { %v10051_v50 = vpop.f32.mrb[30].mxu1 }
 0x3ca   :  { %v3944_v44 = vadd.f32 %v10051_v50, %v14664_v46  ;;  %v3938_v60 = vpop.f32.mrb[31].mxu1  ;;  %12154 = vmatpush3.bf16.msra.mxu0 %v14652_v32  ;;  %v2087_v32 = vadd.f32 %v14771_v13, %v14883_v16  ;;  %v4200_v16 = vld [vmem:[#allocation5 + $0x38] sm:$0xff]  ;;  %v1131_v29 = vpop.xlane.xlu1 %1130 }
 0x3cb   :  { %v3939_v28 = vadd.f32 %v14664_v46, %v3938_v60  ;;  %12574 = vmatpush3.bf16.msra.mxu1 %v14749_v43  ;;  %12156 = vmatprep.subr.bf16.mxu0 %v14667_v22  ;;  %v2092_v46 = vadd.f32 %v14880_v4, %v14771_v13  ;;  %v4197_v4 = vld [vmem:[#allocation5 + $0x20] sm:$0xff] }
 0x3cc   :  { %v9596_v57 = vpop.f32.mrb[18].mxu0  ;;  %12576 = vmatprep.subr.bf16.mxu1 %v14762_v2 }
 0x3cd   :  { %13420 = vtanh.f32 %v3939_v28  ;;  %v14929_v47 = vpop.f32.mrb[19].mxu0  ;;  %v2336_v55 = vadd.f32 %v9596_v57, %v14771_v13  ;;  %v14993_v28 = vpack.c.bf16 %v4206_v63, %v4205_v0  ;;  %v6054_v0 = vld [vmem:[#allocation3 + $0x48] sm:$0xff] }
 0x3ce   :  { %13422 = vtanh.f32 %v3944_v44  ;;  %12158 = vmatpush3.bf16.msra.mxu0 %v14667_v22  ;;  %v4195_v22 = vld [vmem:[#allocation5 + $0x10] sm:$0xff]  ;;  %v13417_v19 = vpop.eup %13416 }
 0x3cf   :  { %12578 = vmatpush3.bf16.msra.mxu1 %v14762_v2  ;;  %12160 = vmatprep.subr.bf16.mxu0 %v14679_v8  ;;  %v13419_v25 = vpop.eup %13418  ;;  %13424 = vtanh.f32 %v2087_v32  ;;  %v14946_v62 = vpack.c.bf16 %v4196_v39, %v4195_v22  ;;  %v4207_v32 = vld [vmem:[#allocation5 + $0x70] sm:$0xff]  ;;  %v6045_v39 = vld [vmem:[#allocation3] sm:$0xff] }
 0x3d0   :  { %12580 = vmatprep.subr.bf16.mxu1 %v14782_v26  ;;  %13426 = vtanh.f32 %v2092_v46  ;;  %v4208_v46 = vld [vmem:[#allocation5 + $0x78] sm:$0xff] }
 0x3d1   :  { %13428 = vtanh.f32 %v2336_v55  ;;  %v4438_v55 = vld [vmem:[#allocation5 + $0x8] sm:$0xff] }
 0x3d2   :  { %12162 = vmatpush3.bf16.msra.mxu0 %v14679_v8  ;;  %13430 = vtanh.f32 %v5798_v52 }
 0x3d3   :  { %12582 = vmatpush3.bf16.msra.mxu1 %v14782_v26  ;;  %12164 = vmatprep.subr.bf16.mxu0 %v14691_v7 }
 0x3d4   :  { %12616 = vmatprep.subr.bf16.mxu1 %v14694_v61 }
 0x3d6   :  { %12166 = vmatpush3.bf16.msra.mxu0 %v14691_v7  ;;  %10540 = vmatmul.mubr.f32.vlgmr.msra.gmra.mrb[44].mxu1 %v13417_v19  ;;  %v14953_v7 = vpack.c.bf16 %v4198_v23, %v4197_v4  ;;  %v6046_v19 = vld [vmem:[#allocation3 + $0x8] sm:$0xff]  ;;  %v6047_v4 = vld [vmem:[#allocation3 + $0x10] sm:$0xff]  ;;  %v6048_v23 = vld [vmem:[#allocation3 + $0x18] sm:$0xff] }
 0x3d7   :  { %v13421_v8 = vpop.eup %13420  ;;  %12618 = vmatpush3.bf16.msra.mxu1 %v14694_v61  ;;  %10609 = vmatprep.mubr.f32.mxu1 %v13419_v25  ;;  %v4199_v61 = vld [vmem:[#allocation5 + $0x30] sm:$0xff]  ;;  %v15006_v25 = vpack.c.bf16 %v6046_v19, %v6045_v39  ;;  %v6057_v39 = vld [vmem:[#allocation3 + $0x60] sm:$0xff]  ;;  %v6058_v19 = vld [vmem:[#allocation3 + $0x68] sm:$0xff] }
 0x3d8   :  { %v13423_v49 = vpop.eup %13422  ;;  %10084 = vmatprep.mubr.f32.mxu0 %v13421_v8  ;;  %12200 = vmatprep.subr.bf16.mxu0 %v14704_v54  ;;  %v14959_v34 = vpack.c.bf16 %v4200_v16, %v4199_v61  ;;  %v4437_v8 = vld [vmem:[#allocation5] sm:$0xff] }
 0x3d9   :  { %10085 = vmatmul.mubr.f32.vlgmr.msra.gmra.mrb[32].mxu0 %v13423_v49  ;;  %12620 = vmatprep.subr.bf16.mxu1 %v14706_v59  ;;  %v1133_v49 = vpop.xlane.xlu0 %1132  ;;  %v15012_v61 = vpack.c.bf16 %v4438_v55, %v4437_v8  ;;  %v6049_v16 = vld [vmem:[#allocation3 + $0x20] sm:$0xff] }
 0x3da   :  { %12202 = vmatpush3.bf16.msra.mxu0 %v14704_v54  ;;  %v13425_v54 = vpop.eup %13424 }
 0x3db   :  { %12622 = vmatpush3.bf16.msra.mxu1 %v14706_v59  ;;  %12204 = vmatprep.subr.bf16.mxu0 %v14946_v62  ;;  %v4201_v59 = vld [vmem:[#allocation5 + $0x40] sm:$0xff]  ;;  %v13427_v38 = vpop.eup %13426  ;;  %v2104_v45 = vmul.f32 %v13425_v54, %v14803_v33  ;;  %v6050_v54 = vld [vmem:[#allocation3 + $0x28] sm:$0xff] }
 0x3dc   :  { %12624 = vmatprep.subr.bf16.mxu1 %v14711_v9  ;;  %v14971_v5 = vpack.c.bf16 %v4202_v17, %v4201_v59  ;;  %v13429_v58 = vpop.eup %13428  ;;  %v2105_v56 = vmul.f32 %v13427_v38, %v14803_v33  ;;  %v1135_v17 = vadd.f32 %v14759_v40, %v1133_v49  ;;  %v15016_v38 = vpack.c.bf16 %v6048_v23, %v6047_v4  ;;  %v6059_v4 = vld [vmem:[#allocation3 + $0x70] sm:$0xff]  ;;  %v6060_v23 = vld [vmem:[#allocation3 + $0x78] sm:$0xff] }
 0x3dd   :  { %v2349_v18 = vmul.f32 %v13429_v58, %v14803_v33  ;;  %v1134_v58 = vadd.f32 %v14759_v40, %v1131_v29  ;;  %v15070_v29 = vpack.c.bf16 %v6060_v23, %v6059_v4 }
 0x3de   :  { %12206 = vmatpush3.bf16.msra.mxu0 %v14946_v62 }
 0x3df   :  { %12626 = vmatpush3.bf16.msra.mxu1 %v14711_v9  ;;  %12208 = vmatprep.subr.bf16.mxu0 %v14953_v7  ;;  %v6039_v9 = vmul.f32 %v14740_v37, %v14643_v12  ;;  %v14980_v12 = vld [vmem:[%s16020_s6] ss:$0 sm:$0xff] }
 0x3e0   :  { %12628 = vmatprep.subr.bf16.mxu1 %v14724_v27 }
 0x3e1   :  { %v6041_v6 = vadd.f32 %v6039_v9, %v13956_v10 }
 0x3e2   :  { %12210 = vmatpush3.bf16.msra.mxu0 %v14953_v7 }
 0x3e3   :  { %12630 = vmatpush3.bf16.msra.mxu1 %v14724_v27  ;;  %12212 = vmatprep.subr.bf16.mxu0 %v14959_v34  ;;  %v14982_v27 = vpack.c.bf16 %v4204_v42, %v4203_v35  ;;  %13432 = vtanh.f32 %v6041_v6  ;;  %v6051_v35 = vld [vmem:[#allocation3 + $0x30] sm:$0xff]  ;;  %v6052_v42 = vld [vmem:[#allocation3 + $0x38] sm:$0xff] }
 0x3e4   :  { %12632 = vmatprep.subr.bf16.mxu1 %v14734_v15  ;;  %v15028_v52 = vpack.c.bf16 %v6052_v42, %v6051_v35  ;;  %v15077_v35 = vld [vmem:[%s16022_s8] ss:$0 sm:$0xff] }
 0x3e6   :  { %12214 = vmatpush3.bf16.msra.mxu0 %v14959_v34  ;;  %2106 = vadd.xlane.f32.xlu0 %v2104_v45  ;;  %v15019_v45 = vpack.c.bf16 %v6050_v54, %v6049_v16 }
 0x3e7   :  { %12634 = vmatpush3.bf16.msra.mxu1 %v14734_v15  ;;  %2108 = vadd.xlane.f32.xlu1 %v2105_v56 }
 0x3e8   :  { %12216 = vmatprep.subr.bf16.mxu0 %v14971_v5  ;;  %12636 = vmatprep.subr.bf16.mxu1 %v14749_v43 }
 0x3e9   :  { %v10121_v50 = vpop.f32.mrb[32].mxu1 }
 0x3ea   :  { %v4188_v15 = vadd.f32 %v10121_v50, %v14980_v12  ;;  %v4182_v44 = vpop.f32.mrb[33].mxu1  ;;  %12218 = vmatpush3.bf16.msra.mxu0 %v14971_v5  ;;  %2352 = vadd.xlane.f32.xlu0 %v2349_v18  ;;  %v1375_v56 = vpop.xlane.xlu1 %1374  ;;  %v6053_v18 = vld [vmem:[#allocation3 + $0x40] sm:$0xff]  ;;  %v6055_v50 = vld [vmem:[#allocation3 + $0x50] sm:$0xff] }
 0x3eb   :  { %v4183_v60 = vadd.f32 %v14980_v12, %v4182_v44  ;;  %12638 = vmatpush3.bf16.msra.mxu1 %v14749_v43  ;;  %12220 = vmatprep.subr.bf16.mxu0 %v14982_v27  ;;  %v15003_v43 = vpack.c.bf16 %v4208_v46, %v4207_v32  ;;  %v1378_v63 = vadd.f32 %v14759_v40, %v1375_v56  ;;  %v15048_v46 = vpop.xlane.xlu0 %1376 }
 0x3ec   :  { %v14995_v57 = vpop.f32.mrb[20].mxu0  ;;  %12640 = vmatprep.subr.bf16.mxu1 %v14762_v2  ;;  %v15036_v6 = vpack.c.bf16 %v6054_v0, %v6053_v18  ;;  %v6040_v44 = vmul.f32 %v14740_v37, %v14658_v21 }
 0x3ed   :  { %13434 = vtanh.f32 %v4183_v60  ;;  %v14998_v22 = vpop.f32.mrb[21].mxu0  ;;  %v6283_v60 = vmul.f32 %v14740_v37, %v14645_v14  ;;  %v15056_v14 = vpack.c.bf16 %v6058_v19, %v6057_v39 }
 0x3ee   :  { %13436 = vtanh.f32 %v4188_v15  ;;  %12222 = vmatpush3.bf16.msra.mxu0 %v14982_v27  ;;  %v6056_v15 = vld [vmem:[#allocation3 + $0x58] sm:$0xff]  ;;  %v6042_v8 = vadd.f32 %v6040_v44, %v13953_v3 }
 0x3ef   :  { %12642 = vmatpush3.bf16.msra.mxu1 %v14762_v2  ;;  %12224 = vmatprep.subr.bf16.mxu0 %v14993_v28  ;;  %v13431_v2 = vpop.eup %13430  ;;  %v15046_v32 = vpack.c.bf16 %v6056_v15, %v6055_v50  ;;  %v6285_v21 = vadd.f32 %v6283_v60, %v13956_v10  ;;  %v15104_v15 = vld [vmem:[%s16023_s9] ss:$0 sm:$0xff] }
 0x3f0   :  { %12644 = vmatprep.subr.bf16.mxu1 %v14782_v26  ;;  %v13433_v59 = vpop.eup %13432  ;;  %13438 = vtanh.f32 %v6042_v8 }
 0x3f1   :  { %13440 = vtanh.f32 %v6285_v21  ;;  %v6284_v21 = vmul.f32 %v14740_v37, %v14682_v41 }
 0x3f2   :  { %12226 = vmatpush3.bf16.msra.mxu0 %v14993_v28 }
 0x3f3   :  { %12646 = vmatpush3.bf16.msra.mxu1 %v14782_v26  ;;  %12228 = vmatprep.subr.bf16.mxu0 %v15003_v43 }
 0x3f4   :  { %12680 = vmatprep.subr.bf16.mxu1 %v15006_v25 }
 0x3f6   :  { %12230 = vmatpush3.bf16.msra.mxu0 %v15003_v43  ;;  %10610 = vmatmul.mubr.f32.vlgmr.msra.gmra.mrb[46].mxu1 %v13431_v2 }
 0x3f7   :  { %v13435_v26 = vpop.eup %13434  ;;  %12682 = vmatpush3.bf16.msra.mxu1 %v15006_v25  ;;  %10679 = vmatprep.mubr.f32.mxu1 %v13433_v59 }
 0x3f8   :  { %v13437_v9 = vpop.eup %13436  ;;  %10154 = vmatprep.mubr.f32.mxu0 %v13435_v26  ;;  %1140 = vrot.lane.b32.xlu1 %v1135_v17, %s13702_s17  ;;  %v2575_v17 = vadd.f32 %v14771_v13, %v14998_v22 }
 0x3f9   :  { %10155 = vmatmul.mubr.f32.vlgmr.msra.gmra.mrb[34].mxu0 %v13437_v9  ;;  %12264 = vmatprep.subr.bf16.mxu0 %v15012_v61  ;;  %v2331_v9 = vadd.f32 %v14771_v13, %v14929_v47 }
 0x3fa   :  { %12266 = vmatpush3.bf16.msra.mxu0 %v15012_v61  ;;  %12684 = vmatprep.subr.bf16.mxu1 %v15016_v38  ;;  %v13439_v56 = vpop.eup %13438 }
 0x3fb   :  { %12686 = vmatpush3.bf16.msra.mxu1 %v15016_v38  ;;  %12268 = vmatprep.subr.bf16.mxu0 %v14946_v62  ;;  %v13441_v18 = vpop.eup %13440 }
 0x3fc   :  { %1138 = vrot.lane.b32.xlu1 %v1134_v58, %s13702_s17  ;;  %12688 = vmatprep.subr.bf16.mxu1 %v15019_v45  ;;  %s13706_s17 = smov 7  }
 0x3fe   :  { %12270 = vmatpush3.bf16.msra.mxu0 %v14946_v62 }
 0x3ff   :  { %12690 = vmatpush3.bf16.msra.mxu1 %v15019_v45  ;;  %12272 = vmatprep.subr.bf16.mxu0 %v14953_v7 }
 0x400   :  { %1382 = vrot.lane.b32.xlu0 %v1378_v63, %s13703_s18  ;;  %12692 = vmatprep.subr.bf16.mxu1 %v15028_v52 }
 0x402   :  { %12274 = vmatpush3.bf16.msra.mxu0 %v14953_v7 }
 0x403   :  { %12694 = vmatpush3.bf16.msra.mxu1 %v15028_v52  ;;  %12276 = vmatprep.subr.bf16.mxu0 %v14959_v34 }
 0x404   :  { %12696 = vmatprep.subr.bf16.mxu1 %v15036_v6 }
 0x406   :  { %12278 = vmatpush3.bf16.msra.mxu0 %v14959_v34 }
 0x407   :  { %12698 = vmatpush3.bf16.msra.mxu1 %v15036_v6  ;;  %12280 = vmatprep.subr.bf16.mxu0 %v14971_v5 }
 0x408   :  { %12700 = vmatprep.subr.bf16.mxu1 %v15046_v32 }
 0x409   :  { %v10191_v55 = vpop.f32.mrb[34].mxu1  ;;  %v15058_v49 = vpop.xlane.xlu0 %1620 }
 0x40a   :  { %v4432_v2 = vadd.f32 %v10191_v55, %v14980_v12  ;;  %v4426_v16 = vpop.f32.mrb[35].mxu1  ;;  %12282 = vmatpush3.bf16.msra.mxu0 %v14971_v5  ;;  %v15062_v54 = vpop.xlane.xlu1 %1618  ;;  %v6286_v55 = vadd.f32 %v6284_v21, %v13953_v3 }
 0x40b   :  { %v4427_v59 = vadd.f32 %v14980_v12, %v4426_v16  ;;  %12702 = vmatpush3.bf16.msra.mxu1 %v15046_v32  ;;  %12284 = vmatprep.subr.bf16.mxu0 %v14982_v27 }
 0x40c   :  { %v9736_v26 = vpop.f32.mrb[22].mxu0  ;;  %12704 = vmatprep.subr.bf16.mxu1 %v15056_v14 }
 0x40d   :  { %13442 = vtanh.f32 %v4427_v59  ;;  %v15079_v42 = vpop.f32.mrb[23].mxu0  ;;  %v651_v58 = vpop.permute.xlu0 %650  ;;  %v2824_v47 = vadd.f32 %v9736_v26, %v15077_v35  ;;  %v1379_v59 = vadd.f32 %v14759_v40, %v15048_v46 }
 0x40e   :  { %13444 = vtanh.f32 %v4432_v2  ;;  %657 = vst.msk [vmem:[%s16025_s11] sm:$0xff] %vm656_vm5, %v651_v58  ;;  %12286 = vmatpush3.bf16.msra.mxu0 %v14982_v27  ;;  %v653_v22 = vpop.permute.xlu1 %652  ;;  %v15160_v58 = vld [vmem:[#allocation2] ss:$0 sm:$0xff] }
 0x40f   :  { %658 = vst.msk [vmem:[%s16025_s11 + $0x8] sm:$0xff] %vm656_vm5, %v653_v22  ;;  %12706 = vmatpush3.bf16.msra.mxu1 %v15056_v14  ;;  %12288 = vmatprep.subr.bf16.mxu0 %v14993_v28  ;;  %13446 = vtanh.f32 %v2575_v17  ;;  %vm4560_vm5 = vcmask 146568  }
 0x410   :  { %12708 = vmatprep.subr.bf16.mxu1 %v15070_v29  ;;  %13448 = vtanh.f32 %v2331_v9 }
 0x411   :  { %13450 = vtanh.f32 %v2824_v47 }
 0x412   :  { %12290 = vmatpush3.bf16.msra.mxu0 %v14993_v28  ;;  %13452 = vtanh.f32 %v6286_v55 }
 0x413   :  { %12710 = vmatpush3.bf16.msra.mxu1 %v15070_v29  ;;  %12292 = vmatprep.subr.bf16.mxu0 %v15003_v43 }
 0x414   :  { %12744 = vmatprep.subr.bf16.mxu1 %v15006_v25 }
 0x416   :  { %12294 = vmatpush3.bf16.msra.mxu0 %v15003_v43  ;;  %10680 = vmatmul.mubr.f32.vlgmr.msra.gmra.mrb[48].mxu1 %v13439_v56  ;;  %v2580_v56 = vadd.f32 %v14995_v57, %v14771_v13 }
 0x417   :  { %v13443_v0 = vpop.eup %13442  ;;  %12746 = vmatpush3.bf16.msra.mxu1 %v15006_v25  ;;  %10749 = vmatprep.mubr.f32.mxu1 %v13441_v18 }
 0x418   :  { %v13445_v63 = vpop.eup %13444  ;;  %10224 = vmatprep.mubr.f32.mxu0 %v13443_v0  ;;  %12328 = vmatprep.subr.bf16.mxu0 %v15012_v61  ;;  %v15172_v0 = vld [vmem:[%s16017_s3] ss:$0 sm:$0xff] }
 0x419   :  { %10225 = vmatmul.mubr.f32.vlgmr.msra.gmra.mrb[36].mxu0 %v13445_v63  ;;  %12748 = vmatprep.subr.bf16.mxu1 %v15016_v38  ;;  %v13447_v50 = vpop.eup %13446  ;;  %v6528_v63 = vmul.f32 %v15172_v0, %v14685_v1  ;;  %v6771_v57 = vmul.f32 %v15172_v0, %v14697_v53 }
 0x41a   :  { %12330 = vmatpush3.bf16.msra.mxu0 %v15012_v61  ;;  %v13449_v44 = vpop.eup %13448  ;;  %v2592_v60 = vmul.f32 %v13447_v50, %v15104_v15 }
 0x41b   :  { %12750 = vmatpush3.bf16.msra.mxu1 %v15016_v38  ;;  %12332 = vmatprep.subr.bf16.mxu0 %v14946_v62  ;;  %v13451_v39 = vpop.eup %13450  ;;  %v2348_v19 = vmul.f32 %v13449_v44, %v14803_v33  ;;  %v6527_v33 = vmul.f32 %v14740_v37, %v14670_v24  ;;  %v6530_v1 = vadd.f32 %v6528_v63, %v13953_v3 }
 0x41c   :  { %12752 = vmatprep.subr.bf16.mxu1 %v15019_v45  ;;  %v2837_v8 = vmul.f32 %v13451_v39, %v15104_v15  ;;  %v13453_v17 = vpop.eup %13452  ;;  %v6773_v44 = vadd.f32 %v6771_v57, %v13956_v10 }
 0x41d   :  { %v6529_v41 = vadd.f32 %v6527_v33, %v13956_v10 }
 0x41e   :  { %12334 = vmatpush3.bf16.msra.mxu0 %v14946_v62 }
 0x41f   :  { %12754 = vmatpush3.bf16.msra.mxu1 %v15019_v45  ;;  %2594 = vadd.xlane.f32.xlu0 %v2592_v60  ;;  %13454 = vtanh.f32 %v6529_v41 }
 0x420   :  { %2350 = vadd.xlane.f32.xlu1 %v2348_v19  ;;  %12336 = vmatprep.subr.bf16.mxu0 %v14953_v7 }
 0x421   :  { %12756 = vmatprep.subr.bf16.mxu1 %v15028_v52 }
 0x422   :  { %12338 = vmatpush3.bf16.msra.mxu0 %v14953_v7 }
 0x423   :  { %12758 = vmatpush3.bf16.msra.mxu1 %v15028_v52  ;;  %2840 = vadd.xlane.f32.xlu0 %v2837_v8 }
 0x424   :  { %12340 = vmatprep.subr.bf16.mxu0 %v14959_v34  ;;  %12760 = vmatprep.subr.bf16.mxu1 %v15036_v6 }
 0x426   :  { %12342 = vmatpush3.bf16.msra.mxu0 %v14959_v34 }
 0x427   :  { %12762 = vmatpush3.bf16.msra.mxu1 %v15036_v6  ;;  %12344 = vmatprep.subr.bf16.mxu0 %v14971_v5 }
 0x428   :  { %12764 = vmatprep.subr.bf16.mxu1 %v15046_v32 }
 0x429   :  { %v10261_v4 = vpop.f32.mrb[36].mxu1  ;;  %v13455_v26 = vpop.eup %13454 }
 0x42a   :  { %v4676_v23 = vadd.f32 %v10261_v4, %v14980_v12  ;;  %v4670_v24 = vpop.f32.mrb[37].mxu1  ;;  %12346 = vmatpush3.bf16.msra.mxu0 %v14971_v5 }
 0x42b   :  { %v4671_v37 = vadd.f32 %v14980_v12, %v4670_v24  ;;  %12766 = vmatpush3.bf16.msra.mxu1 %v15046_v32  ;;  %12348 = vmatprep.subr.bf16.mxu0 %v14982_v27 }
 0x42c   :  { %v15135_v2 = vpop.f32.mrb[24].mxu0  ;;  %12768 = vmatprep.subr.bf16.mxu1 %v15056_v14 }
 0x42d   :  { %13456 = vtanh.f32 %v4671_v37  ;;  %v15138_v16 = vpop.f32.mrb[25].mxu0 }
 0x42e   :  { %13458 = vtanh.f32 %v4676_v23  ;;  %12350 = vmatpush3.bf16.msra.mxu0 %v14982_v27  ;;  %v3063_v55 = vadd.f32 %v15077_v35, %v15138_v16 }
 0x42f   :  { %12770 = vmatpush3.bf16.msra.mxu1 %v15056_v14  ;;  %12352 = vmatprep.subr.bf16.mxu0 %v14993_v28  ;;  %13460 = vtanh.f32 %v2580_v56 }
 0x430   :  { %12772 = vmatprep.subr.bf16.mxu1 %v15070_v29  ;;  %13462 = vtanh.f32 %v6530_v1 }
 0x431   :  { %1384 = vrot.lane.b32.xlu1 %v1379_v59, %s13703_s18  ;;  %13464 = vtanh.f32 %v6773_v44  ;;  %s13710_s18 = smov 12  }
 0x432   :  { %12354 = vmatpush3.bf16.msra.mxu0 %v14993_v28 }
 0x433   :  { %12774 = vmatpush3.bf16.msra.mxu1 %v15070_v29  ;;  %12356 = vmatprep.subr.bf16.mxu0 %v15003_v43 }
 0x434   :  { %12808 = vmatprep.subr.bf16.mxu1 %v15006_v25 }
 0x436   :  { %12358 = vmatpush3.bf16.msra.mxu0 %v15003_v43  ;;  %10750 = vmatmul.mubr.f32.vlgmr.msra.gmra.mrb[50].mxu1 %v13453_v17 }
 0x437   :  { %v13457_v40 = vpop.eup %13456  ;;  %12810 = vmatpush3.bf16.msra.mxu1 %v15006_v25  ;;  %10819 = vmatprep.mubr.f32.mxu1 %v13455_v26 }
 0x438   :  { %v13459_v46 = vpop.eup %13458  ;;  %10294 = vmatprep.mubr.f32.mxu0 %v13457_v40  ;;  %12392 = vmatprep.subr.bf16.mxu0 %v15012_v61  ;;  %v6772_v40 = vmul.f32 %v15172_v0, %v14713_v11 }
 0x439   :  { %10295 = vmatmul.mubr.f32.vlgmr.msra.gmra.mrb[38].mxu0 %v13459_v46  ;;  %12812 = vmatprep.subr.bf16.mxu1 %v15016_v38  ;;  %v13461_v33 = vpop.eup %13460  ;;  %v1623_v46 = vadd.f32 %v15160_v58, %v15058_v49  ;;  %v1622_v49 = vadd.f32 %v15160_v58, %v15062_v54 }
 0x43a   :  { %12394 = vmatpush3.bf16.msra.mxu0 %v15012_v61  ;;  %v2593_v41 = vmul.f32 %v13461_v33, %v15104_v15  ;;  %v13463_v4 = vpop.eup %13462  ;;  %v6774_v11 = vadd.f32 %v6772_v40, %v13953_v3  ;;  %v5420_v33 = vld [vmem:[#allocation5 + $0x38] sm:$0xff] }
 0x43b   :  { %12814 = vmatpush3.bf16.msra.mxu1 %v15016_v38  ;;  %12396 = vmatprep.subr.bf16.mxu0 %v14946_v62  ;;  %v13465_v24 = vpop.eup %13464 }
 0x43c   :  { %12816 = vmatprep.subr.bf16.mxu1 %v15019_v45 }
 0x43e   :  { %12398 = vmatpush3.bf16.msra.mxu0 %v14946_v62  ;;  %v1865_v9 = vpop.xlane.xlu0 %1864 }
 0x43f   :  { %v1867_v22 = vadd.f32 %v15160_v58, %v1865_v9  ;;  %12818 = vmatpush3.bf16.msra.mxu1 %v15019_v45  ;;  %v1863_v47 = vpop.xlane.xlu1 %1862  ;;  %12400 = vmatprep.subr.bf16.mxu0 %v14953_v7 }
 0x440   :  { %12820 = vmatprep.subr.bf16.mxu1 %v15028_v52  ;;  %v1866_v50 = vadd.f32 %v15160_v58, %v1863_v47 }
 0x441   :  { %1872 = vrot.lane.b32.xlu0 %v1867_v22, %s13704_s26 }
 0x442   :  { %12402 = vmatpush3.bf16.msra.mxu0 %v14953_v7  ;;  %v897_v18 = vpop.permute.xlu0 %896 }
 0x443   :  { %902 = vst.msk [vmem:[%s16025_s11 + $0x8] sm:$0xff] %vm900_vm6, %v897_v18  ;;  %12822 = vmatpush3.bf16.msra.mxu1 %v15028_v52  ;;  %v895_v13 = vpop.permute.xlu1 %894  ;;  %12404 = vmatprep.subr.bf16.mxu0 %v14959_v34  ;;  %v5415_v18 = vld [vmem:[#allocation5 + $0x10] sm:$0xff] }
 0x444   :  { %901 = vst.msk [vmem:[%s16025_s11] sm:$0xff] %vm900_vm6, %v895_v13  ;;  %12824 = vmatprep.subr.bf16.mxu1 %v15036_v6  ;;  %vm4804_vm6 = vcmask 154768  }
 0x445   :  { %1870 = vrot.lane.b32.xlu0 %v1866_v50, %s13704_s26  ;;  %s13717_s26 = smov 19  }
 0x446   :  { %12406 = vmatpush3.bf16.msra.mxu0 %v14959_v34 }
 0x447   :  { %12826 = vmatpush3.bf16.msra.mxu1 %v15036_v6  ;;  %12408 = vmatprep.subr.bf16.mxu0 %v14971_v5 }
 0x448   :  { %12828 = vmatprep.subr.bf16.mxu1 %v15046_v32 }
 0x449   :  { %v10331_v53 = vpop.f32.mrb[38].mxu1 }
 0x44a   :  { %v4920_v60 = vadd.f32 %v10331_v53, %v14980_v12  ;;  %v4914_v39 = vpop.f32.mrb[39].mxu1  ;;  %12410 = vmatpush3.bf16.msra.mxu0 %v14971_v5  ;;  %v5417_v53 = vld [vmem:[#allocation5 + $0x20] sm:$0xff] }
 0x44b   :  { %v4915_v19 = vadd.f32 %v14980_v12, %v4914_v39  ;;  %12830 = vmatpush3.bf16.msra.mxu1 %v15046_v32  ;;  %12412 = vmatprep.subr.bf16.mxu0 %v14982_v27 }
 0x44c   :  { %v9876_v8 = vpop.f32.mrb[26].mxu0  ;;  %12832 = vmatprep.subr.bf16.mxu1 %v15056_v14 }
 0x44d   :  { %13466 = vtanh.f32 %v4915_v19  ;;  %v15200_v21 = vpop.f32.mrb[27].mxu0  ;;  %v3312_v23 = vadd.f32 %v9876_v8, %v15077_v35  ;;  %v5419_v8 = vld [vmem:[#allocation5 + $0x30] sm:$0xff] }
 0x44e   :  { %13468 = vtanh.f32 %v4920_v60  ;;  %12414 = vmatpush3.bf16.msra.mxu0 %v14982_v27  ;;  %v5418_v60 = vld [vmem:[#allocation5 + $0x28] sm:$0xff] }
 0x44f   :  { %12834 = vmatpush3.bf16.msra.mxu1 %v15056_v14  ;;  %12416 = vmatprep.subr.bf16.mxu0 %v14993_v28  ;;  %13470 = vtanh.f32 %v3063_v55 }
 0x450   :  { %12836 = vmatprep.subr.bf16.mxu1 %v15070_v29  ;;  %13472 = vtanh.f32 %v3312_v23  ;;  %v5423_v23 = vld [vmem:[#allocation5 + $0x50] sm:$0xff] }
 0x451   :  { %13474 = vtanh.f32 %v6774_v11 }
 0x452   :  { %12418 = vmatpush3.bf16.msra.mxu0 %v14993_v28 }
 0x453   :  { %12838 = vmatpush3.bf16.msra.mxu1 %v15070_v29  ;;  %12420 = vmatprep.subr.bf16.mxu0 %v15003_v43 }
 0x454   :  { %12872 = vmatprep.subr.bf16.mxu1 %v15006_v25 }
 0x455   :  { %2596 = vadd.xlane.f32.xlu1 %v2593_v41  ;;  %v5422_v41 = vld [vmem:[#allocation5 + $0x48] sm:$0xff] }
 0x456   :  { %12422 = vmatpush3.bf16.msra.mxu0 %v15003_v43  ;;  %10820 = vmatmul.mubr.f32.vlgmr.msra.gmra.mrb[52].mxu1 %v13463_v4  ;;  %v7016_v4 = vmul.f32 %v15172_v0, %v14716_v20  ;;  %v15320_v20 = vld [vmem:[%s16020_s6] ss:$0 sm:$0xff] }
 0x457   :  { %v13467_v37 = vpop.eup %13466  ;;  %12874 = vmatpush3.bf16.msra.mxu1 %v15006_v25  ;;  %10889 = vmatprep.mubr.f32.mxu1 %v13465_v24  ;;  %v5424_v24 = vld [vmem:[#allocation5 + $0x58] sm:$0xff] }
 0x458   :  { %v13469_v16 = vpop.eup %13468  ;;  %10364 = vmatprep.mubr.f32.mxu0 %v13467_v37  ;;  %12456 = vmatprep.subr.bf16.mxu0 %v15012_v61  ;;  %v7018_v37 = vadd.f32 %v7016_v4, %v13953_v3 }
 0x459   :  { %10365 = vmatmul.mubr.f32.vlgmr.msra.gmra.mrb[40].mxu0 %v13469_v16  ;;  %12876 = vmatprep.subr.bf16.mxu1 %v15016_v38  ;;  %v13471_v59 = vpop.eup %13470  ;;  %v5425_v16 = vld [vmem:[#allocation5 + $0x60] sm:$0xff] }
 0x45a   :  { %12458 = vmatpush3.bf16.msra.mxu0 %v15012_v61  ;;  %v3080_v17 = vmul.f32 %v13471_v59, %v15104_v15  ;;  %v13473_v26 = vpop.eup %13472  ;;  %v5426_v59 = vld [vmem:[#allocation5 + $0x68] sm:$0xff] }
 0x45b   :  { %12878 = vmatpush3.bf16.msra.mxu1 %v15016_v38  ;;  %12460 = vmatprep.subr.bf16.mxu0 %v14946_v62  ;;  %v13475_v63 = vpop.eup %13474 }
 0x45c   :  { %12880 = vmatprep.subr.bf16.mxu1 %v15019_v45 }
 0x45e   :  { %12462 = vmatpush3.bf16.msra.mxu0 %v14946_v62  ;;  %v7015_v62 = vmul.f32 %v15172_v0, %v14701_v51 }
 0x45f   :  { %12882 = vmatpush3.bf16.msra.mxu1 %v15019_v45  ;;  %12464 = vmatprep.subr.bf16.mxu0 %v14953_v7 }
 0x460   :  { %12884 = vmatprep.subr.bf16.mxu1 %v15028_v52  ;;  %v7017_v51 = vadd.f32 %v7015_v62, %v13956_v10 }
 0x462   :  { %12466 = vmatpush3.bf16.msra.mxu0 %v14953_v7  ;;  %v3325_v7 = vmul.f32 %v13473_v26, %v15104_v15  ;;  %13476 = vtanh.f32 %v7017_v51  ;;  %v5427_v51 = vld [vmem:[#allocation5 + $0x70] sm:$0xff] }
 0x463   :  { %12886 = vmatpush3.bf16.msra.mxu1 %v15028_v52  ;;  %12468 = vmatprep.subr.bf16.mxu0 %v14959_v34 }
 0x464   :  { %3082 = vadd.xlane.f32.xlu0 %v3080_v17  ;;  %12888 = vmatprep.subr.bf16.mxu1 %v15036_v6 }
 0x466   :  { %12470 = vmatpush3.bf16.msra.mxu0 %v14959_v34  ;;  %1628 = vrot.lane.b32.xlu1 %v1623_v46, %s13705_s12  ;;  %v15332_v46 = vpack.c.bf16 %v5426_v59, %v5425_v16  ;;  %v7277_v16 = vld [vmem:[#allocation3 + $0x60] sm:$0xff]  ;;  %v7278_v59 = vld [vmem:[#allocation3 + $0x68] sm:$0xff] }
 0x467   :  { %12890 = vmatpush3.bf16.msra.mxu1 %v15036_v6  ;;  %12472 = vmatprep.subr.bf16.mxu0 %v14971_v5 }
 0x468   :  { %3328 = vadd.xlane.f32.xlu0 %v3325_v7  ;;  %12892 = vmatprep.subr.bf16.mxu1 %v15046_v32 }
 0x469   :  { %v10401_v9 = vpop.f32.mrb[40].mxu1 }
 0x46a   :  { %v5164_v34 = vadd.f32 %v10401_v9, %v14980_v12  ;;  %v5158_v22 = vpop.f32.mrb[41].mxu1  ;;  %12474 = vmatpush3.bf16.msra.mxu0 %v14971_v5  ;;  %1626 = vrot.lane.b32.xlu1 %v1622_v49, %s13705_s12  ;;  %v5428_v49 = vld [vmem:[#allocation5 + $0x78] sm:$0xff] }
 0x46b   :  { %v5159_v47 = vadd.f32 %v14980_v12, %v5158_v22  ;;  %12894 = vmatpush3.bf16.msra.mxu1 %v15046_v32  ;;  %12476 = vmatprep.subr.bf16.mxu0 %v14982_v27  ;;  %v7265_v22 = vld [vmem:[#allocation3] sm:$0xff] }
 0x46c   :  { %v15251_v56 = vpop.f32.mrb[28].mxu0  ;;  %12896 = vmatprep.subr.bf16.mxu1 %v15056_v14  ;;  %v13477_v50 = vpop.eup %13476 }
 0x46d   :  { %13478 = vtanh.f32 %v5159_v47  ;;  %v15254_v54 = vpop.f32.mrb[29].mxu0  ;;  %v7266_v47 = vld [vmem:[#allocation3 + $0x8] sm:$0xff] }
 0x46e   :  { %13480 = vtanh.f32 %v5164_v34  ;;  %12478 = vmatpush3.bf16.msra.mxu0 %v14982_v27  ;;  %v5416_v27 = vld [vmem:[#allocation5 + $0x18] sm:$0xff] }
 0x46f   :  { %12898 = vmatpush3.bf16.msra.mxu1 %v15056_v14  ;;  %12480 = vmatprep.subr.bf16.mxu0 %v14993_v28  ;;  %v15270_v57 = vpack.c.bf16 %v5416_v27, %v5415_v18  ;;  %v15347_v27 = vpack.c.bf16 %v7266_v47, %v7265_v22 }
 0x470   :  { %12900 = vmatprep.subr.bf16.mxu1 %v15070_v29 }
 0x472   :  { %12482 = vmatpush3.bf16.msra.mxu0 %v14993_v28 }
 0x473   :  { %12902 = vmatpush3.bf16.msra.mxu1 %v15070_v29  ;;  %v15262_v5 = vpop.xlane.xlu0 %2106  ;;  %12484 = vmatprep.subr.bf16.mxu0 %v15003_v43 }
 0x474   :  { %v15265_v12 = vpop.xlane.xlu1 %2108  ;;  %12936 = vmatprep.subr.bf16.mxu1 %v15006_v25 }
 0x475   :  { %v2111_v4 = vadd.f32 %v15160_v58, %v15265_v12  ;;  %v2110_v12 = vadd.f32 %v15160_v58, %v15262_v5  ;;  %v7280_v5 = vld [vmem:[#allocation3 + $0x78] sm:$0xff] }
 0x476   :  { %12486 = vmatpush3.bf16.msra.mxu0 %v15003_v43  ;;  %10890 = vmatmul.mubr.f32.vlgmr.msra.gmra.mrb[54].mxu1 %v13475_v63  ;;  %v2819_v43 = vadd.f32 %v15077_v35, %v15079_v42  ;;  %v5421_v42 = vld [vmem:[#allocation5 + $0x40] sm:$0xff] }
 0x477   :  { %v13479_v13 = vpop.eup %13478  ;;  %12938 = vmatpush3.bf16.msra.mxu1 %v15006_v25  ;;  %10959 = vmatprep.mubr.f32.mxu1 %v13477_v50  ;;  %v2353_v28 = vpop.xlane.xlu0 %2352  ;;  %v15283_v25 = vpack.c.bf16 %v5418_v60, %v5417_v53  ;;  %v5657_v63 = vld [vmem:[#allocation5] sm:$0xff]  ;;  %v5658_v50 = vld [vmem:[#allocation5 + $0x8] sm:$0xff] }
 0x478   :  { %v13481_v1 = vpop.eup %13480  ;;  %10434 = vmatprep.mubr.f32.mxu0 %v13479_v13  ;;  %v1141_v44 = vpop.permute.xlu1 %1140  ;;  %12520 = vmatprep.subr.bf16.mxu0 %v15012_v61  ;;  %v2355_v39 = vadd.f32 %v15160_v58, %v2353_v28  ;;  %13482 = vtanh.f32 %v2819_v43  ;;  %v7267_v13 = vld [vmem:[#allocation3 + $0x10] sm:$0xff]  ;;  %v7268_v28 = vld [vmem:[#allocation3 + $0x18] sm:$0xff]  ;;  %v7269_v53 = vld [vmem:[#allocation3 + $0x20] sm:$0xff] }
 0x479   :  { %1146 = vst.msk [vmem:[%s16025_s11 + $0x8] sm:$0xff] %vm1144_vm7, %v1141_v44  ;;  %10435 = vmatmul.mubr.f32.vlgmr.msra.gmra.mrb[42].mxu0 %v13481_v1  ;;  %12940 = vmatprep.subr.bf16.mxu1 %v15016_v38  ;;  %v15355_v44 = vpack.c.bf16 %v7268_v28, %v7267_v13  ;;  %v7270_v60 = vld [vmem:[#allocation3 + $0x28] sm:$0xff]  ;;  %v3307_v28 = vadd.f32 %v15077_v35, %v15200_v21 }
 0x47a   :  { %12522 = vmatpush3.bf16.msra.mxu0 %v15012_v61  ;;  %v3068_v61 = vadd.f32 %v15135_v2, %v15077_v35  ;;  %v15309_v2 = vpack.c.bf16 %v5422_v41, %v5421_v42  ;;  %v7274_v42 = vld [vmem:[#allocation3 + $0x48] sm:$0xff]  ;;  %v3551_v21 = vadd.f32 %v15077_v35, %v15254_v54 }
 0x47b   :  { %12942 = vmatpush3.bf16.msra.mxu1 %v15016_v38  ;;  %12524 = vmatprep.subr.bf16.mxu0 %v15270_v57  ;;  %v1383_v55 = vpop.permute.xlu0 %1382  ;;  %v15301_v38 = vpack.c.bf16 %v5420_v33, %v5419_v8  ;;  %v7271_v8 = vld [vmem:[#allocation3 + $0x30] sm:$0xff]  ;;  %v7272_v33 = vld [vmem:[#allocation3 + $0x38] sm:$0xff] }
 0x47c   :  { %v1139_v19 = vpop.permute.xlu1 %1138  ;;  %12944 = vmatprep.subr.bf16.mxu1 %v15019_v45  ;;  %13484 = vtanh.f32 %v3068_v61  ;;  %v7273_v61 = vld [vmem:[#allocation3 + $0x40] sm:$0xff] }
 0x47d   :  { %1145 = vst.msk [vmem:[%s16025_s11] sm:$0xff] %vm1144_vm7, %v1139_v19  ;;  %13486 = vtanh.f32 %v7018_v37  ;;  %v15360_v19 = vpack.c.bf16 %v7270_v60, %v7269_v53  ;;  %v15373_v41 = vpack.c.bf16 %v7274_v42, %v7273_v61  ;;  %v7503_v37 = vmul.f32 %v15172_v0, %v14727_v30  ;;  %v15460_v60 = vld [vmem:[%s16023_s9] ss:$0 sm:$0xff] }
 0x47e   :  { %12526 = vmatpush3.bf16.msra.mxu0 %v15270_v57  ;;  %2360 = vrot.lane.b32.xlu0 %v2355_v39, %s13666_s29  ;;  %1389 = vst.msk [vmem:[%s16025_s11] sm:$0xff] %vm1388_vm8, %v1383_v55  ;;  %v15367_v55 = vpack.c.bf16 %v7272_v33, %v7271_v8  ;;  %vm5048_vm7 = vcmask 162968  }
 0x47f   :  { %12946 = vmatpush3.bf16.msra.mxu1 %v15019_v45  ;;  %12528 = vmatprep.subr.bf16.mxu0 %v15283_v25  ;;  %v7259_v45 = vmul.f32 %v15172_v0, %v14731_v31  ;;  %v7505_v30 = vadd.f32 %v7503_v37, %v13956_v10 }
 0x480   :  { %12948 = vmatprep.subr.bf16.mxu1 %v15028_v52 }
 0x481   :  { %v7261_v31 = vadd.f32 %v7259_v45, %v13956_v10  ;;  %v7275_v45 = vld [vmem:[#allocation3 + $0x50] sm:$0xff] }
 0x482   :  { %12530 = vmatpush3.bf16.msra.mxu0 %v15283_v25  ;;  %v13483_v17 = vpop.eup %13482 }
 0x483   :  { %12950 = vmatpush3.bf16.msra.mxu1 %v15028_v52  ;;  %12532 = vmatprep.subr.bf16.mxu0 %v15301_v38  ;;  %v15323_v52 = vpack.c.bf16 %v5424_v24, %v5423_v23  ;;  %13488 = vtanh.f32 %v7261_v31  ;;  %v2836_v7 = vmul.f32 %v13483_v17, %v15104_v15  ;;  %v7276_v23 = vld [vmem:[#allocation3 + $0x58] sm:$0xff]  ;;  %v7260_v24 = vmul.f32 %v15172_v0, %v14753_v36 }
 0x484   :  { %12952 = vmatprep.subr.bf16.mxu1 %v15036_v6  ;;  %v15385_v31 = vpack.c.bf16 %v7276_v23, %v7275_v45  ;;  %v15395_v17 = vpack.c.bf16 %v7278_v59, %v7277_v16 }
 0x485   :  { %v7262_v36 = vadd.f32 %v7260_v24, %v13953_v3 }
 0x486   :  { %12534 = vmatpush3.bf16.msra.mxu0 %v15301_v38  ;;  %v13485_v9 = vpop.eup %13484 }
 0x487   :  { %12954 = vmatpush3.bf16.msra.mxu1 %v15036_v6  ;;  %12536 = vmatprep.subr.bf16.mxu0 %v15309_v2  ;;  %v3081_v18 = vmul.f32 %v13485_v9, %v15104_v15  ;;  %v13487_v1 = vpop.eup %13486 }
 0x488   :  { %12956 = vmatprep.subr.bf16.mxu1 %v15046_v32 }
 0x489   :  { %v10471_v26 = vpop.f32.mrb[42].mxu1 }
 0x48a   :  { %v5408_v40 = vadd.f32 %v10471_v26, %v15320_v20  ;;  %v5402_v6 = vpop.f32.mrb[43].mxu1  ;;  %12538 = vmatpush3.bf16.msra.mxu0 %v15309_v2 }
 0x48b   :  { %v5403_v62 = vadd.f32 %v15320_v20, %v5402_v6  ;;  %12958 = vmatpush3.bf16.msra.mxu1 %v15046_v32  ;;  %12540 = vmatprep.subr.bf16.mxu0 %v15323_v52  ;;  %v15343_v32 = vpack.c.bf16 %v5428_v49, %v5427_v51 }
 0x48c   :  { %v15335_v11 = vpop.f32.mrb[30].mxu0  ;;  %12960 = vmatprep.subr.bf16.mxu1 %v15056_v14 }
 0x48d   :  { %13490 = vtanh.f32 %v5403_v62  ;;  %v15338_v34 = vpop.f32.mrb[31].mxu0  ;;  %v13489_v43 = vpop.eup %13488 }
 0x48e   :  { %13492 = vtanh.f32 %v5408_v40  ;;  %12542 = vmatpush3.bf16.msra.mxu0 %v15323_v52  ;;  %2838 = vadd.xlane.f32.xlu1 %v2836_v7  ;;  %v7279_v40 = vld [vmem:[#allocation3 + $0x70] sm:$0xff] }
 0x48f   :  { %12962 = vmatpush3.bf16.msra.mxu1 %v15056_v14  ;;  %12544 = vmatprep.subr.bf16.mxu0 %v15332_v46  ;;  %v15353_v14 = vpack.c.bf16 %v5658_v50, %v5657_v63  ;;  %13494 = vtanh.f32 %v7262_v36  ;;  %v15405_v51 = vpack.c.bf16 %v7280_v5, %v7279_v40 }
 0x490   :  { %12964 = vmatprep.subr.bf16.mxu1 %v15070_v29  ;;  %13496 = vtanh.f32 %v7505_v30 }
 0x492   :  { %12546 = vmatpush3.bf16.msra.mxu0 %v15332_v46  ;;  %3084 = vadd.xlane.f32.xlu1 %v3081_v18 }
 0x493   :  { %12966 = vmatpush3.bf16.msra.mxu1 %v15070_v29  ;;  %12548 = vmatprep.subr.bf16.mxu0 %v15343_v32 }
 0x494   :  { %13000 = vmatprep.subr.bf16.mxu1 %v15347_v27 }
 0x496   :  { %12550 = vmatpush3.bf16.msra.mxu0 %v15343_v32  ;;  %10960 = vmatmul.mubr.f32.vlgmr.msra.gmra.mrb[56].mxu1 %v13487_v1  ;;  %v3800_v1 = vadd.f32 %v15335_v11, %v15077_v35 }
 0x497   :  { %v13491_v39 = vpop.eup %13490  ;;  %13002 = vmatpush3.bf16.msra.mxu1 %v15347_v27  ;;  %11029 = vmatprep.mubr.f32.mxu1 %v13489_v43 }
 0x498   :  { %v13493_v29 = vpop.eup %13492  ;;  %10504 = vmatprep.mubr.f32.mxu0 %v13491_v39  ;;  %12584 = vmatprep.subr.bf16.mxu0 %v15353_v14 }
 0x499   :  { %10505 = vmatmul.mubr.f32.vlgmr.msra.gmra.mrb[44].mxu0 %v13493_v29  ;;  %13004 = vmatprep.subr.bf16.mxu1 %v15355_v44  ;;  %v13495_v18 = vpop.eup %13494 }
 0x49a   :  { %12586 = vmatpush3.bf16.msra.mxu0 %v15353_v14  ;;  %v13497_v63 = vpop.eup %13496 }
 0x49b   :  { %13006 = vmatpush3.bf16.msra.mxu1 %v15355_v44  ;;  %12588 = vmatprep.subr.bf16.mxu0 %v15270_v57 }
 0x49c   :  { %13008 = vmatprep.subr.bf16.mxu1 %v15360_v19 }
 0x49e   :  { %12590 = vmatpush3.bf16.msra.mxu0 %v15270_v57 }
 0x49f   :  { %13010 = vmatpush3.bf16.msra.mxu1 %v15360_v19  ;;  %12592 = vmatprep.subr.bf16.mxu0 %v15283_v25 }
 0x4a0   :  { %13012 = vmatprep.subr.bf16.mxu1 %v15367_v55 }
 0x4a2   :  { %12594 = vmatpush3.bf16.msra.mxu0 %v15283_v25 }
 0x4a3   :  { %13014 = vmatpush3.bf16.msra.mxu1 %v15367_v55  ;;  %2116 = vrot.lane.b32.xlu1 %v2111_v4, %s13706_s17 }
 0x4a4   :  { %12596 = vmatprep.subr.bf16.mxu0 %v15301_v38  ;;  %13016 = vmatprep.subr.bf16.mxu1 %v15373_v41 }
 0x4a6   :  { %12598 = vmatpush3.bf16.msra.mxu0 %v15301_v38 }
 0x4a7   :  { %13018 = vmatpush3.bf16.msra.mxu1 %v15373_v41  ;;  %2114 = vrot.lane.b32.xlu1 %v2110_v12, %s13706_s17 }
 0x4a8   :  { %12600 = vmatprep.subr.bf16.mxu0 %v15309_v2  ;;  %13020 = vmatprep.subr.bf16.mxu1 %v15385_v31 }
 0x4a9   :  { %v10541_v26 = vpop.f32.mrb[44].mxu1 }
 0x4aa   :  { %v5652_v6 = vadd.f32 %v10541_v26, %v15320_v20  ;;  %v5646_v62 = vpop.f32.mrb[45].mxu1  ;;  %12602 = vmatpush3.bf16.msra.mxu0 %v15309_v2 }
 0x4ab   :  { %v5647_v7 = vadd.f32 %v15320_v20, %v5646_v62  ;;  %13022 = vmatpush3.bf16.msra.mxu1 %v15385_v31  ;;  %12604 = vmatprep.subr.bf16.mxu0 %v15323_v52 }
 0x4ac   :  { %v15402_v10 = vpop.f32.mrb[32].mxu0  ;;  %13024 = vmatprep.subr.bf16.mxu1 %v15395_v17 }
 0x4ad   :  { %13498 = vtanh.f32 %v5647_v7  ;;  %v15407_v49 = vpop.f32.mrb[33].mxu0  ;;  %v2351_v9 = vpop.xlane.xlu1 %2350  ;;  %v13614_v7 = vld [vmem:[%s16022_s8] ss:$0 sm:$0xff] }
 0x4ae   :  { %13500 = vtanh.f32 %v5652_v6  ;;  %12606 = vmatpush3.bf16.msra.mxu0 %v15323_v52  ;;  %v2354_v22 = vadd.f32 %v15160_v58, %v2351_v9  ;;  %v15532_v9 = vld [vmem:[%s16022_s8] ss:$0 sm:$0xff] }
 0x4af   :  { %13026 = vmatpush3.bf16.msra.mxu1 %v15395_v17  ;;  %12608 = vmatprep.subr.bf16.mxu0 %v15332_v46  ;;  %13502 = vtanh.f32 %v3307_v28 }
 0x4b0   :  { %2358 = vrot.lane.b32.xlu0 %v2354_v22, %s13666_s29  ;;  %13028 = vmatprep.subr.bf16.mxu1 %v15405_v51  ;;  %v4044_v22 = vadd.f32 %v15402_v10, %v15532_v9 }
 0x4b1   :  { %v1385_v47 = vpop.permute.xlu1 %1384 }
 0x4b2   :  { %1390 = vst.msk [vmem:[%s16025_s11 + $0x8] sm:$0xff] %vm1388_vm8, %v1385_v47  ;;  %12610 = vmatpush3.bf16.msra.mxu0 %v15332_v46  ;;  %vm5292_vm8 = vcmask 171168  }
 0x4b3   :  { %13030 = vmatpush3.bf16.msra.mxu1 %v15405_v51  ;;  %12612 = vmatprep.subr.bf16.mxu0 %v15343_v32 }
 0x4b4   :  { %13064 = vmatprep.subr.bf16.mxu1 %v15347_v27 }
 0x4b6   :  { %12614 = vmatpush3.bf16.msra.mxu0 %v15343_v32  ;;  %11030 = vmatmul.mubr.f32.vlgmr.msra.gmra.mrb[58].mxu1 %v13495_v18 }
 0x4b7   :  { %v13499_v50 = vpop.eup %13498  ;;  %13066 = vmatpush3.bf16.msra.mxu1 %v15347_v27  ;;  %11099 = vmatprep.mubr.f32.mxu1 %v13497_v63  ;;  %v3556_v27 = vadd.f32 %v15251_v56, %v15077_v35  ;;  %v7504_v56 = vmul.f32 %v15172_v0, %v14751_v48 }
 0x4b8   :  { %v13501_v13 = vpop.eup %13500  ;;  %10574 = vmatprep.mubr.f32.mxu0 %v13499_v50  ;;  %12648 = vmatprep.subr.bf16.mxu0 %v15353_v14 }
 0x4b9   :  { %10575 = vmatmul.mubr.f32.vlgmr.msra.gmra.mrb[46].mxu0 %v13501_v13  ;;  %13068 = vmatprep.subr.bf16.mxu1 %v15355_v44  ;;  %13504 = vtanh.f32 %v3556_v27  ;;  %v13503_v54 = vpop.eup %13502 }
 0x4ba   :  { %12650 = vmatpush3.bf16.msra.mxu0 %v15353_v14  ;;  %13506 = vtanh.f32 %v3551_v21  ;;  %v3324_v48 = vmul.f32 %v13503_v54, %v15104_v15 }
 0x4bb   :  { %13070 = vmatpush3.bf16.msra.mxu1 %v15355_v44  ;;  %12652 = vmatprep.subr.bf16.mxu0 %v15270_v57  ;;  %13508 = vtanh.f32 %v3800_v1  ;;  %v7506_v44 = vadd.f32 %v7504_v56, %v13953_v3 }
 0x4bc   :  { %13072 = vmatprep.subr.bf16.mxu1 %v15360_v19 }
 0x4bd   :  { %13510 = vtanh.f32 %v7506_v44 }
 0x4be   :  { %12654 = vmatpush3.bf16.msra.mxu0 %v15270_v57 }
 0x4bf   :  { %13074 = vmatpush3.bf16.msra.mxu1 %v15360_v19  ;;  %12656 = vmatprep.subr.bf16.mxu0 %v15283_v25 }
 0x4c0   :  { %13076 = vmatprep.subr.bf16.mxu1 %v15367_v55 }
 0x4c2   :  { %12658 = vmatpush3.bf16.msra.mxu0 %v15283_v25 }
 0x4c3   :  { %13078 = vmatpush3.bf16.msra.mxu1 %v15367_v55  ;;  %12660 = vmatprep.subr.bf16.mxu0 %v15301_v38  ;;  %v13505_v0 = vpop.eup %13504 }
 0x4c4   :  { %13080 = vmatprep.subr.bf16.mxu1 %v15373_v41  ;;  %v13507_v3 = vpop.eup %13506  ;;  %v3569_v29 = vmul.f32 %v13505_v0, %v15460_v60 }
 0x4c5   :  { %v3568_v19 = vmul.f32 %v13507_v3, %v15460_v60  ;;  %v13509_v8 = vpop.eup %13508 }
 0x4c6   :  { %12662 = vmatpush3.bf16.msra.mxu0 %v15301_v38  ;;  %v3813_v33 = vmul.f32 %v13509_v8, %v15460_v60 }
 0x4c7   :  { %13082 = vmatpush3.bf16.msra.mxu1 %v15373_v41  ;;  %12664 = vmatprep.subr.bf16.mxu0 %v15309_v2  ;;  %v13511_v55 = vpop.eup %13510  ;;  %v2595_v41 = vpop.xlane.xlu0 %2594 }
 0x4c8   :  { %13084 = vmatprep.subr.bf16.mxu1 %v15385_v31 }
 0x4c9   :  { %v10611_v35 = vpop.f32.mrb[46].mxu1 }
 0x4ca   :  { %v5896_v11 = vadd.f32 %v10611_v35, %v15320_v20  ;;  %v5890_v53 = vpop.f32.mrb[47].mxu1  ;;  %12666 = vmatpush3.bf16.msra.mxu0 %v15309_v2 }
 0x4cb   :  { %v5891_v43 = vadd.f32 %v15320_v20, %v5890_v53  ;;  %13086 = vmatpush3.bf16.msra.mxu1 %v15385_v31  ;;  %3326 = vadd.xlane.f32.xlu1 %v3324_v48  ;;  %v2841_v4 = vpop.xlane.xlu0 %2840  ;;  %v2598_v31 = vadd.f32 %v15160_v58, %v2595_v41  ;;  %v6880_v41 = vld [vmem:[#allocation5 + $0x18] sm:$0xff] }
 0x4cc   :  { %v15464_v15 = vpop.f32.mrb[34].mxu0  ;;  %12668 = vmatprep.subr.bf16.mxu0 %v15323_v52  ;;  %13088 = vmatprep.subr.bf16.mxu1 %v15395_v17  ;;  %v2843_v12 = vadd.f32 %v15160_v58, %v2841_v4 }
 0x4cd   :  { %13512 = vtanh.f32 %v5891_v43  ;;  %v15468_v39 = vpop.f32.mrb[35].mxu0 }
 0x4ce   :  { %13514 = vtanh.f32 %v5896_v11  ;;  %12670 = vmatpush3.bf16.msra.mxu0 %v15323_v52 }
 0x4cf   :  { %13090 = vmatpush3.bf16.msra.mxu1 %v15395_v17  ;;  %3572 = vadd.xlane.f32.xlu1 %v3569_v29  ;;  %v1873_v24 = vpop.permute.xlu0 %1872 }
 0x4d0   :  { %3570 = vadd.xlane.f32.xlu0 %v3568_v19  ;;  %12672 = vmatprep.subr.bf16.mxu0 %v15332_v46 }
 0x4d1   :  { %13092 = vmatprep.subr.bf16.mxu1 %v15405_v51 }
 0x4d2   :  { %12674 = vmatpush3.bf16.msra.mxu0 %v15332_v46 }
 0x4d3   :  { %13094 = vmatpush3.bf16.msra.mxu1 %v15405_v51  ;;  %12676 = vmatprep.subr.bf16.mxu0 %v15343_v32  ;;  %v1871_v17 = vpop.permute.xlu0 %1870  ;;  %v3795_v51 = vadd.f32 %v13614_v7, %v15338_v34 }
 0x4d4   :  { %3816 = vadd.xlane.f32.xlu0 %v3813_v33 }
 0x4d6   :  { %12678 = vmatpush3.bf16.msra.mxu0 %v15343_v32  ;;  %11100 = vmatmul.mubr.f32.vlgmr.msra.gmra.mrb[60].mxu1 %v13511_v55 }
 0x4d7   :  { %v13513_v61 = vpop.eup %13512  ;;  %12712 = vmatprep.subr.bf16.mxu0 %v15353_v14 }
 0x4d8   :  { %v13515_v42 = vpop.eup %13514  ;;  %10644 = vmatprep.mubr.f32.mxu0 %v13513_v61  ;;  %v4288_v61 = vadd.f32 %v15464_v15, %v15532_v9 }
 0x4d9   :  { %10645 = vmatmul.mubr.f32.vlgmr.msra.gmra.mrb[48].mxu0 %v13515_v42  ;;  %v6879_v42 = vld [vmem:[#allocation5 + $0x10] sm:$0xff] }
 0x4da   :  { %12714 = vmatpush3.bf16.msra.mxu0 %v15353_v14  ;;  %v15607_v15 = vpack.c.bf16 %v6880_v41, %v6879_v42  ;;  %v7135_v42 = vld [vmem:[#allocation5 + $0x70] sm:$0xff]  ;;  %v7136_v41 = vld [vmem:[#allocation5 + $0x78] sm:$0xff] }
 0x4db   :  { %12716 = vmatprep.subr.bf16.mxu0 %v15270_v57 }
 0x4de   :  { %12718 = vmatpush3.bf16.msra.mxu0 %v15270_v57 }
 0x4df   :  { %12720 = vmatprep.subr.bf16.mxu0 %v15283_v25 }
 0x4e2   :  { %12722 = vmatpush3.bf16.msra.mxu0 %v15283_v25  ;;  %v2597_v45 = vpop.xlane.xlu1 %2596 }
 0x4e3   :  { %v2599_v23 = vadd.f32 %v15160_v58, %v2597_v45  ;;  %12724 = vmatprep.subr.bf16.mxu0 %v15301_v38 }
 0x4e5   :  { %2604 = vrot.lane.b32.xlu1 %v2599_v23, %s13707_s22  ;;  %v4283_v23 = vadd.f32 %v15532_v9, %v15468_v39 }
 0x4e6   :  { %12726 = vmatpush3.bf16.msra.mxu0 %v15301_v38  ;;  %v1629_v37 = vpop.permute.xlu1 %1628 }
 0x4e7   :  { %1634 = vst.msk [vmem:[%s16025_s11 + $0x8] sm:$0xff] %vm1632_vm9, %v1629_v37  ;;  %12728 = vmatprep.subr.bf16.mxu0 %v15309_v2  ;;  %v6881_v37 = vld [vmem:[#allocation5 + $0x20] sm:$0xff] }
 0x4e8   :  { %1878 = vst.msk [vmem:[%s16025_s11 + $0x8] sm:$0xff] %vm1876_vm10, %v1873_v24 }
 0x4e9   :  { %v10681_v16 = vpop.f32.mrb[48].mxu1  ;;  %2602 = vrot.lane.b32.xlu1 %v2598_v31, %s13707_s22  ;;  %v6882_v31 = vld [vmem:[#allocation5 + $0x28] sm:$0xff] }
 0x4ea   :  { %v6140_v59 = vadd.f32 %v10681_v16, %v15320_v20  ;;  %2848 = vrot.lane.b32.xlu0 %v2843_v12, %s13708_s25  ;;  %v6134_v36 = vpop.f32.mrb[49].mxu1  ;;  %12730 = vmatpush3.bf16.msra.mxu0 %v15309_v2  ;;  %v1627_v30 = vpop.permute.xlu1 %1626  ;;  %v15614_v39 = vpack.c.bf16 %v6882_v31, %v6881_v37 }
 0x4eb   :  { %v6135_v26 = vadd.f32 %v15320_v20, %v6134_v36  ;;  %1633 = vst.msk [vmem:[%s16025_s11] sm:$0xff] %vm1632_vm9, %v1627_v30  ;;  %12732 = vmatprep.subr.bf16.mxu0 %v15323_v52  ;;  %vm5536_vm9 = vcmask 179368  }
 0x4ec   :  { %v15510_v40 = vpop.f32.mrb[36].mxu0  ;;  %1877 = vst.msk [vmem:[%s16025_s11] sm:$0xff] %vm1876_vm10, %v1871_v17  ;;  %vm5780_vm10 = vcmask 187568  }
 0x4ed   :  { %13516 = vtanh.f32 %v6135_v26  ;;  %v15516_v5 = vpop.f32.mrb[37].mxu0  ;;  %v4532_v12 = vadd.f32 %v15510_v40, %v15532_v9 }
 0x4ee   :  { %13518 = vtanh.f32 %v6140_v59  ;;  %12734 = vmatpush3.bf16.msra.mxu0 %v15323_v52 }
 0x4ef   :  { %12736 = vmatprep.subr.bf16.mxu0 %v15332_v46  ;;  %13520 = vtanh.f32 %v3795_v51 }
 0x4f0   :  { %13522 = vtanh.f32 %v4044_v22 }
 0x4f1   :  { %v3083_v54 = vpop.xlane.xlu0 %3082 }
 0x4f2   :  { %12738 = vmatpush3.bf16.msra.mxu0 %v15332_v46  ;;  %v3086_v3 = vadd.f32 %v15160_v58, %v3083_v54 }
 0x4f3   :  { %12740 = vmatprep.subr.bf16.mxu0 %v15343_v32 }
 0x4f5   :  { %v15562_v35 = vpop.xlane.xlu0 %3328 }
 0x4f6   :  { %12742 = vmatpush3.bf16.msra.mxu0 %v15343_v32 }
 0x4f7   :  { %v13517_v6 = vpop.eup %13516  ;;  %12776 = vmatprep.subr.bf16.mxu0 %v15353_v14 }
 0x4f8   :  { %v13519_v62 = vpop.eup %13518  ;;  %10714 = vmatprep.mubr.f32.mxu0 %v13517_v6 }
 0x4f9   :  { %10715 = vmatmul.mubr.f32.vlgmr.msra.gmra.mrb[50].mxu0 %v13519_v62  ;;  %v13521_v34 = vpop.eup %13520  ;;  %v2361_v43 = vpop.permute.xlu0 %2360 }
 0x4fa   :  { %12778 = vmatpush3.bf16.msra.mxu0 %v15353_v14  ;;  %v3812_v10 = vmul.f32 %v13521_v34, %v15460_v60  ;;  %v13523_v13 = vpop.eup %13522 }
 0x4fb   :  { %12780 = vmatprep.subr.bf16.mxu0 %v15270_v57  ;;  %v4057_v21 = vmul.f32 %v13523_v13, %v15460_v60 }
 0x4fe   :  { %12782 = vmatpush3.bf16.msra.mxu0 %v15270_v57 }
 0x4ff   :  { %12784 = vmatprep.subr.bf16.mxu0 %v15283_v25 }
 0x502   :  { %12786 = vmatpush3.bf16.msra.mxu0 %v15283_v25 }
 0x503   :  { %12788 = vmatprep.subr.bf16.mxu0 %v15301_v38 }
 0x506   :  { %12790 = vmatpush3.bf16.msra.mxu0 %v15301_v38 }
 0x507   :  { %12792 = vmatprep.subr.bf16.mxu0 %v15309_v2 }
 0x509   :  { %v10751_v47 = vpop.f32.mrb[50].mxu1 }
 0x50a   :  { %v6384_v18 = vadd.f32 %v10751_v47, %v15320_v20  ;;  %v6378_v63 = vpop.f32.mrb[51].mxu1  ;;  %12794 = vmatpush3.bf16.msra.mxu0 %v15309_v2 }
 0x50b   :  { %v6379_v50 = vadd.f32 %v15320_v20, %v6378_v63  ;;  %12796 = vmatprep.subr.bf16.mxu0 %v15323_v52  ;;  %v7127_v63 = vld [vmem:[#allocation5 + $0x30] sm:$0xff] }
 0x50c   :  { %v15548_v28 = vpop.f32.mrb[38].mxu0 }
 0x50d   :  { %13524 = vtanh.f32 %v6379_v50  ;;  %v15550_v27 = vpop.f32.mrb[39].mxu0  ;;  %3814 = vadd.xlane.f32.xlu1 %v3812_v10  ;;  %v7128_v10 = vld [vmem:[#allocation5 + $0x38] sm:$0xff] }
 0x50e   :  { %13526 = vtanh.f32 %v6384_v18  ;;  %12798 = vmatpush3.bf16.msra.mxu0 %v15323_v52  ;;  %v15649_v13 = vpack.c.bf16 %v7128_v10, %v7127_v63  ;;  %v4771_v37 = vadd.f32 %v15532_v9, %v15550_v27 }
 0x50f   :  { %12800 = vmatprep.subr.bf16.mxu0 %v15332_v46 }
 0x511   :  { %4060 = vadd.xlane.f32.xlu1 %v4057_v21 }
 0x512   :  { %12802 = vmatpush3.bf16.msra.mxu0 %v15332_v46 }
 0x513   :  { %12804 = vmatprep.subr.bf16.mxu0 %v15343_v32 }
 0x516   :  { %12806 = vmatpush3.bf16.msra.mxu0 %v15343_v32 }
 0x517   :  { %v13525_v1 = vpop.eup %13524  ;;  %12840 = vmatprep.subr.bf16.mxu0 %v15353_v14 }
 0x518   :  { %v13527_v56 = vpop.eup %13526  ;;  %10784 = vmatprep.mubr.f32.mxu0 %v13525_v1  ;;  %v7130_v1 = vld [vmem:[#allocation5 + $0x48] sm:$0xff] }
 0x519   :  { %10785 = vmatmul.mubr.f32.vlgmr.msra.gmra.mrb[52].mxu0 %v13527_v56 }
 0x51a   :  { %12842 = vmatpush3.bf16.msra.mxu0 %v15353_v14 }
 0x51b   :  { %v2839_v44 = vpop.xlane.xlu1 %2838  ;;  %12844 = vmatprep.subr.bf16.mxu0 %v15270_v57 }
 0x51c   :  { %v2842_v48 = vadd.f32 %v15160_v58, %v2839_v44 }
 0x51e   :  { %12846 = vmatpush3.bf16.msra.mxu0 %v15270_v57  ;;  %2846 = vrot.lane.b32.xlu0 %v2842_v48, %s13708_s25  ;;  %s13724_s25 = smov 26  }
 0x51f   :  { %v3085_v0 = vpop.xlane.xlu1 %3084  ;;  %12848 = vmatprep.subr.bf16.mxu0 %v15283_v25 }
 0x520   :  { %v3087_v11 = vadd.f32 %v15160_v58, %v3085_v0  ;;  %v7132_v0 = vld [vmem:[#allocation5 + $0x58] sm:$0xff] }
 0x522   :  { %12850 = vmatpush3.bf16.msra.mxu0 %v15283_v25  ;;  %3092 = vrot.lane.b32.xlu1 %v3087_v11, %s13709_s13  ;;  %v4039_v25 = vadd.f32 %v15532_v9, %v15407_v49  ;;  %v2359_v58 = vpop.permute.xlu0 %2358 }
 0x523   :  { %v2117_v53 = vpop.permute.xlu1 %2116  ;;  %12852 = vmatprep.subr.bf16.mxu0 %v15301_v38 }
 0x524   :  { %2122 = vst.msk [vmem:[%s16025_s11 + $0x8] sm:$0xff] %vm2120_vm11, %v2117_v53  ;;  %13528 = vtanh.f32 %v4039_v25  ;;  %v4527_v53 = vadd.f32 %v15532_v9, %v15516_v5  ;;  %v7134_v25 = vld [vmem:[#allocation5 + $0x68] sm:$0xff]  ;;  %v4776_v5 = vadd.f32 %v15548_v28, %v15532_v9  ;;  %v15695_v28 = vpack.c.bf16 %v7136_v41, %v7135_v42 }
 0x525   :  { %2366 = vst.msk [vmem:[%s16025_s11 + $0x8] sm:$0xff] %vm2364_vm12, %v2361_v43 }
 0x526   :  { %12854 = vmatpush3.bf16.msra.mxu0 %v15301_v38  ;;  %3090 = vrot.lane.b32.xlu1 %v3086_v3, %s13709_s13  ;;  %v15676_v3 = vld [vmem:[%s16020_s6] ss:$0 sm:$0xff]  ;;  %s13726_s6 = smov 28  }
 0x527   :  { %v2115_v57 = vpop.permute.xlu1 %2114  ;;  %12856 = vmatprep.subr.bf16.mxu0 %v15309_v2 }
 0x528   :  { %2121 = vst.msk [vmem:[%s16025_s11] sm:$0xff] %vm2120_vm11, %v2115_v57  ;;  %v7133_v57 = vld [vmem:[#allocation5 + $0x60] sm:$0xff]  ;;  %vm6024_vm11 = vcmask 195768  }
 0x529   :  { %v10821_v29 = vpop.f32.mrb[52].mxu1  ;;  %2365 = vst.msk [vmem:[%s16025_s11] sm:$0xff] %vm2364_vm12, %v2359_v58  ;;  %vm6268_vm12 = vcmask 203968  }
 0x52a   :  { %v6628_v19 = vadd.f32 %v10821_v29, %v15320_v20  ;;  %v6622_v8 = vpop.f32.mrb[53].mxu1  ;;  %12858 = vmatpush3.bf16.msra.mxu0 %v15309_v2 }
 0x52b   :  { %v6623_v33 = vadd.f32 %v15320_v20, %v6622_v8  ;;  %12860 = vmatprep.subr.bf16.mxu0 %v15323_v52 }
 0x52c   :  { %v15593_v49 = vpop.f32.mrb[40].mxu0 }
 0x52d   :  { %13530 = vtanh.f32 %v6623_v33  ;;  %v15595_v55 = vpop.f32.mrb[41].mxu0  ;;  %v15687_v33 = vpack.c.bf16 %v7134_v25, %v7133_v57 }
 0x52e   :  { %13532 = vtanh.f32 %v6628_v19  ;;  %12862 = vmatpush3.bf16.msra.mxu0 %v15323_v52  ;;  %v13529_v4 = vpop.eup %13528 }
 0x52f   :  { %12864 = vmatprep.subr.bf16.mxu0 %v15332_v46  ;;  %13534 = vtanh.f32 %v4288_v61  ;;  %v4056_v16 = vmul.f32 %v13529_v4, %v15460_v60 }
 0x530   :  { %13536 = vtanh.f32 %v4283_v23  ;;  %v7366_v23 = vld [vmem:[#allocation5 + $0x8] sm:$0xff] }
 0x531   :  { %13538 = vtanh.f32 %v4532_v12 }
 0x532   :  { %12866 = vmatpush3.bf16.msra.mxu0 %v15332_v46 }
 0x533   :  { %12868 = vmatprep.subr.bf16.mxu0 %v15343_v32 }
 0x536   :  { %12870 = vmatpush3.bf16.msra.mxu0 %v15343_v32 }
 0x537   :  { %v13531_v45 = vpop.eup %13530  ;;  %12904 = vmatprep.subr.bf16.mxu0 %v15353_v14 }
 0x538   :  { %v13533_v24 = vpop.eup %13532  ;;  %10854 = vmatprep.mubr.f32.mxu0 %v13531_v45  ;;  %v7365_v45 = vld [vmem:[#allocation5] sm:$0xff] }
 0x539   :  { %10855 = vmatmul.mubr.f32.vlgmr.msra.gmra.mrb[54].mxu0 %v13533_v24  ;;  %v13535_v59 = vpop.eup %13534  ;;  %v13031_v24 = vpack.c.bf16 %v7366_v23, %v7365_v45 }
 0x53a   :  { %12906 = vmatpush3.bf16.msra.mxu0 %v15353_v14  ;;  %v4301_v36 = vmul.f32 %v13535_v59, %v15460_v60  ;;  %v13537_v30 = vpop.eup %13536  ;;  %v5020_v59 = vadd.f32 %v15593_v49, %v15532_v9 }
 0x53b   :  { %12908 = vmatprep.subr.bf16.mxu0 %v15607_v15  ;;  %v4300_v17 = vmul.f32 %v13537_v30, %v15460_v60  ;;  %v13539_v26 = vpop.eup %13538 }
 0x53d   :  { %4058 = vadd.xlane.f32.xlu0 %v4056_v16 }
 0x53e   :  { %12910 = vmatpush3.bf16.msra.mxu0 %v15607_v15 }
 0x53f   :  { %12912 = vmatprep.subr.bf16.mxu0 %v15614_v39 }
 0x541   :  { %4304 = vadd.xlane.f32.xlu0 %v4301_v36 }
 0x542   :  { %12914 = vmatpush3.bf16.msra.mxu0 %v15614_v39 }
 0x543   :  { %12916 = vmatprep.subr.bf16.mxu0 %v15301_v38 }
 0x546   :  { %12918 = vmatpush3.bf16.msra.mxu0 %v15301_v38  ;;  %v4545_v38 = vmul.f32 %v13539_v26, %v15460_v60 }
 0x547   :  { %12920 = vmatprep.subr.bf16.mxu0 %v15309_v2 }
 0x549   :  { %v10891_v40 = vpop.f32.mrb[54].mxu1 }
 0x54a   :  { %v6872_v6 = vadd.f32 %v10891_v40, %v15320_v20  ;;  %v6866_v62 = vpop.f32.mrb[55].mxu1  ;;  %12922 = vmatpush3.bf16.msra.mxu0 %v15309_v2  ;;  %4302 = vadd.xlane.f32.xlu1 %v4300_v17  ;;  %v15637_v2 = vld [vmem:[#allocation2] ss:$0 sm:$0xff] }
 0x54b   :  { %v6867_v7 = vadd.f32 %v15320_v20, %v6866_v62  ;;  %12924 = vmatprep.subr.bf16.mxu0 %v15323_v52  ;;  %v3331_v20 = vadd.f32 %v15637_v2, %v15562_v35  ;;  %v7131_v35 = vld [vmem:[#allocation5 + $0x50] sm:$0xff] }
 0x54c   :  { %v15628_v51 = vpop.f32.mrb[42].mxu0  ;;  %v15679_v43 = vpack.c.bf16 %v7132_v0, %v7131_v35 }
 0x54d   :  { %13540 = vtanh.f32 %v6867_v7  ;;  %v15631_v22 = vpop.f32.mrb[43].mxu0 }
 0x54e   :  { %13542 = vtanh.f32 %v6872_v6  ;;  %12926 = vmatpush3.bf16.msra.mxu0 %v15323_v52  ;;  %4548 = vadd.xlane.f32.xlu1 %v4545_v38  ;;  %v5259_v41 = vadd.f32 %v15532_v9, %v15631_v22 }
 0x54f   :  { %12928 = vmatprep.subr.bf16.mxu0 %v15332_v46  ;;  %13544 = vtanh.f32 %v4527_v53  ;;  %v15771_v53 = vld [vmem:[%s16023_s9] ss:$0 sm:$0xff]  ;;  %s13714_s9 = smov 16  }
 0x552   :  { %12930 = vmatpush3.bf16.msra.mxu0 %v15332_v46 }
 0x553   :  { %12932 = vmatprep.subr.bf16.mxu0 %v15343_v32 }
 0x556   :  { %12934 = vmatpush3.bf16.msra.mxu0 %v15343_v32 }
 0x557   :  { %v13541_v34 = vpop.eup %13540  ;;  %3336 = vrot.lane.b32.xlu0 %v3331_v20, %s13710_s18  ;;  %12968 = vmatprep.subr.bf16.mxu0 %v15353_v14 }
 0x558   :  { %v13543_v52 = vpop.eup %13542  ;;  %10924 = vmatprep.mubr.f32.mxu0 %v13541_v34  ;;  %v3327_v47 = vpop.xlane.xlu1 %3326 }
 0x559   :  { %v3330_v18 = vadd.f32 %v15637_v2, %v3327_v47  ;;  %10925 = vmatmul.mubr.f32.vlgmr.msra.gmra.mrb[56].mxu0 %v13543_v52  ;;  %v13545_v31 = vpop.eup %13544 }
 0x55a   :  { %12970 = vmatpush3.bf16.msra.mxu0 %v15353_v14  ;;  %v7129_v14 = vld [vmem:[#allocation5 + $0x40] sm:$0xff]  ;;  %v4544_v36 = vmul.f32 %v13545_v31, %v15460_v60 }
 0x55b   :  { %3334 = vrot.lane.b32.xlu0 %v3330_v18, %s13710_s18  ;;  %12972 = vmatprep.subr.bf16.mxu0 %v15607_v15  ;;  %v15660_v44 = vpack.c.bf16 %v7130_v1, %v7129_v14  ;;  %v5015_v14 = vadd.f32 %v15532_v9, %v15595_v55  ;;  %s13715_s18 = smov 17  }
 0x55c   :  { %v3573_v46 = vpop.xlane.xlu1 %3572 }
 0x55d   :  { %v3571_v32 = vpop.xlane.xlu0 %3570  ;;  %v3575_v50 = vadd.f32 %v15637_v2, %v3573_v46 }
 0x55e   :  { %12974 = vmatpush3.bf16.msra.mxu0 %v15607_v15  ;;  %v3574_v56 = vadd.f32 %v15637_v2, %v3571_v32 }
 0x55f   :  { %3580 = vrot.lane.b32.xlu1 %v3575_v50, %s13711_s19  ;;  %12976 = vmatprep.subr.bf16.mxu0 %v15614_v39 }
 0x560   :  { %v2605_v21 = vpop.permute.xlu1 %2604 }
 0x561   :  { %v15652_v54 = vpop.xlane.xlu0 %3816  ;;  %2610 = vst.msk [vmem:[%s16025_s11 + $0x8] sm:$0xff] %vm2608_vm13, %v2605_v21 }
 0x562   :  { %12978 = vmatpush3.bf16.msra.mxu0 %v15614_v39  ;;  %v3819_v47 = vadd.f32 %v15637_v2, %v15652_v54 }
 0x563   :  { %3578 = vrot.lane.b32.xlu1 %v3574_v56, %s13711_s19  ;;  %12980 = vmatprep.subr.bf16.mxu0 %v15649_v13  ;;  %s13716_s19 = smov 18  }
 0x564   :  { %v2603_v48 = vpop.permute.xlu1 %2602 }
 0x565   :  { %v2849_v11 = vpop.permute.xlu0 %2848  ;;  %2609 = vst.msk [vmem:[%s16025_s11] sm:$0xff] %vm2608_vm13, %v2603_v48  ;;  %v5264_v48 = vadd.f32 %v15628_v51, %v15532_v9  ;;  %vm6512_vm13 = vcmask 212168  }
 0x566   :  { %2854 = vst.msk [vmem:[%s16025_s11 + $0x8] sm:$0xff] %vm2852_vm14, %v2849_v11  ;;  %12982 = vmatpush3.bf16.msra.mxu0 %v15649_v13 }
 0x567   :  { %12984 = vmatprep.subr.bf16.mxu0 %v15660_v44 }
 0x569   :  { %v10961_v58 = vpop.f32.mrb[56].mxu1 }
 0x56a   :  { %v7116_v29 = vadd.f32 %v10961_v58, %v15676_v3  ;;  %v7110_v19 = vpop.f32.mrb[57].mxu1  ;;  %12986 = vmatpush3.bf16.msra.mxu0 %v15660_v44 }
 0x56b   :  { %v7111_v8 = vadd.f32 %v15676_v3, %v7110_v19  ;;  %12988 = vmatprep.subr.bf16.mxu0 %v15679_v43 }
 0x56c   :  { %v15689_v61 = vpop.f32.mrb[44].mxu0 }
 0x56d   :  { %13546 = vtanh.f32 %v7111_v8  ;;  %v15691_v4 = vpop.f32.mrb[45].mxu0  ;;  %v5508_v45 = vadd.f32 %v15689_v61, %v15532_v9 }
 0x56e   :  { %13548 = vtanh.f32 %v7116_v29  ;;  %12990 = vmatpush3.bf16.msra.mxu0 %v15679_v43 }
 0x56f   :  { %13550 = vtanh.f32 %v4776_v5  ;;  %12992 = vmatprep.subr.bf16.mxu0 %v15687_v33 }
 0x570   :  { %13552 = vtanh.f32 %v4771_v37 }
 0x571   :  { %13554 = vtanh.f32 %v5020_v59 }
 0x572   :  { %12994 = vmatpush3.bf16.msra.mxu0 %v15687_v33 }
 0x573   :  { %12996 = vmatprep.subr.bf16.mxu0 %v15695_v28 }
 0x576   :  { %12998 = vmatpush3.bf16.msra.mxu0 %v15695_v28 }
 0x577   :  { %v13547_v12 = vpop.eup %13546  ;;  %13032 = vmatprep.subr.bf16.mxu0 %v13031_v24 }
 0x578   :  { %v13549_v16 = vpop.eup %13548  ;;  %10994 = vmatprep.mubr.f32.mxu0 %v13547_v12 }
 0x579   :  { %v13551_v30 = vpop.eup %13550  ;;  %10995 = vmatmul.mubr.f32.vlgmr.msra.gmra.mrb[58].mxu0 %v13549_v16 }
 0x57a   :  { %13034 = vmatpush3.bf16.msra.mxu0 %v13031_v24  ;;  %4546 = vadd.xlane.f32.xlu0 %v4544_v36  ;;  %v4789_v27 = vmul.f32 %v13551_v30, %v15460_v60  ;;  %v13553_v17 = vpop.eup %13552 }
 0x57b   :  { %13036 = vmatprep.subr.bf16.mxu0 %v15607_v15  ;;  %v4788_v49 = vmul.f32 %v13553_v17, %v15460_v60  ;;  %v13555_v26 = vpop.eup %13554 }
 0x57c   :  { %v5033_v6 = vmul.f32 %v13555_v26, %v15460_v60 }
 0x57e   :  { %13038 = vmatpush3.bf16.msra.mxu0 %v15607_v15  ;;  %4792 = vadd.xlane.f32.xlu0 %v4789_v27 }
 0x57f   :  { %13040 = vmatprep.subr.bf16.mxu0 %v15614_v39 }
 0x582   :  { %13042 = vmatpush3.bf16.msra.mxu0 %v15614_v39 }
 0x583   :  { %13044 = vmatprep.subr.bf16.mxu0 %v15649_v13 }
 0x586   :  { %13046 = vmatpush3.bf16.msra.mxu0 %v15649_v13 }
 0x587   :  { %4790 = vadd.xlane.f32.xlu1 %v4788_v49  ;;  %13048 = vmatprep.subr.bf16.mxu0 %v15660_v44 }
 0x589   :  { %v11031_v40 = vpop.f32.mrb[58].mxu1 }
 0x58a   :  { %v7360_v62 = vadd.f32 %v11031_v40, %v15676_v3  ;;  %v7354_v7 = vpop.f32.mrb[59].mxu1  ;;  %13050 = vmatpush3.bf16.msra.mxu0 %v15660_v44 }
 0x58b   :  { %v7355_v38 = vadd.f32 %v15676_v3, %v7354_v7  ;;  %5036 = vadd.xlane.f32.xlu1 %v5033_v6  ;;  %13052 = vmatprep.subr.bf16.mxu0 %v15679_v43 }
 0x58c   :  { %v15719_v20 = vpop.f32.mrb[46].mxu0 }
 0x58d   :  { %13556 = vtanh.f32 %v7355_v38  ;;  %v15721_v34 = vpop.f32.mrb[47].mxu0  ;;  %v15824_v38 = vld [vmem:[%s16022_s8] ss:$0 sm:$0xff]  ;;  %s13725_s8 = smov 27  }
 0x58e   :  { %13558 = vtanh.f32 %v7360_v62  ;;  %13054 = vmatpush3.bf16.msra.mxu0 %v15679_v43 }
 0x58f   :  { %13056 = vmatprep.subr.bf16.mxu0 %v15687_v33  ;;  %13560 = vtanh.f32 %v5015_v14 }
 0x590   :  { %v2847_v52 = vpop.permute.xlu0 %2846 }
 0x591   :  { %2853 = vst.msk [vmem:[%s16025_s11] sm:$0xff] %vm2852_vm14, %v2847_v52  ;;  %vm6756_vm14 = vcmask 220368  }
 0x592   :  { %13058 = vmatpush3.bf16.msra.mxu0 %v15687_v33 }
 0x593   :  { %13060 = vmatprep.subr.bf16.mxu0 %v15695_v28 }
 0x594   :  { %3824 = vrot.lane.b32.xlu0 %v3819_v47, %s13712_s27  ;;  %v5752_v47 = vadd.f32 %v15719_v20, %v15824_v38 }
 0x596   :  { %13062 = vmatpush3.bf16.msra.mxu0 %v15695_v28 }
 0x597   :  { %v13557_v18 = vpop.eup %13556  ;;  %13096 = vmatprep.subr.bf16.mxu0 %v13031_v24 }
 0x598   :  { %v13559_v46 = vpop.eup %13558  ;;  %11064 = vmatprep.mubr.f32.mxu0 %v13557_v18 }
 0x599   :  { %11065 = vmatmul.mubr.f32.vlgmr.msra.gmra.mrb[60].mxu0 %v13559_v46  ;;  %v13561_v55 = vpop.eup %13560  ;;  %v5747_v46 = vadd.f32 %v15824_v38, %v15721_v34 }
 0x59a   :  { %13098 = vmatpush3.bf16.msra.mxu0 %v13031_v24  ;;  %v3815_v63 = vpop.xlane.xlu1 %3814  ;;  %v5032_v51 = vmul.f32 %v13561_v55, %v15460_v60  ;;  %v5503_v24 = vadd.f32 %v15532_v9, %v15691_v4 }
 0x59b   :  { %v3818_v10 = vadd.f32 %v15637_v2, %v3815_v63  ;;  %13100 = vmatprep.subr.bf16.mxu0 %v15607_v15 }
 0x59d   :  { %3822 = vrot.lane.b32.xlu0 %v3818_v10, %s13712_s27  ;;  %s13718_s27 = smov 20  }
 0x59e   :  { %13102 = vmatpush3.bf16.msra.mxu0 %v15607_v15  ;;  %v4061_v32 = vpop.xlane.xlu1 %4060 }
 0x59f   :  { %v4063_v50 = vadd.f32 %v15637_v2, %v4061_v32  ;;  %13104 = vmatprep.subr.bf16.mxu0 %v15614_v39 }
 0x5a1   :  { %4068 = vrot.lane.b32.xlu1 %v4063_v50, %s13713_s7 }
 0x5a2   :  { %13106 = vmatpush3.bf16.msra.mxu0 %v15614_v39  ;;  %v3093_v21 = vpop.permute.xlu1 %3092 }
 0x5a3   :  { %3098 = vst.msk [vmem:[%s16025_s11 + $0x8] sm:$0xff] %vm3096_vm15, %v3093_v21  ;;  %13108 = vmatprep.subr.bf16.mxu0 %v15649_v13 }
 0x5a6   :  { %13110 = vmatpush3.bf16.msra.mxu0 %v15649_v13  ;;  %v3091_v15 = vpop.permute.xlu1 %3090 }
 0x5a7   :  { %3097 = vst.msk [vmem:[%s16025_s11] sm:$0xff] %vm3096_vm15, %v3091_v15  ;;  %13112 = vmatprep.subr.bf16.mxu0 %v15660_v44  ;;  %vm7000_vm15 = vcmask 228568  }
 0x5a9   :  { %v11101_v39 = vpop.f32.mrb[60].mxu1 }
 0x5aa   :  { %v7604_v1 = vadd.f32 %v11101_v39, %v15676_v3  ;;  %v7598_v56 = vpop.f32.mrb[61].mxu1  ;;  %13114 = vmatpush3.bf16.msra.mxu0 %v15660_v44 }
 0x5ab   :  { %v7599_v54 = vadd.f32 %v15676_v3, %v7598_v56  ;;  %13116 = vmatprep.subr.bf16.mxu0 %v15679_v43 }
 0x5ac   :  { %v15756_v13 = vpop.f32.mrb[48].mxu0 }
 0x5ad   :  { %13562 = vtanh.f32 %v7599_v54  ;;  %v15760_v35 = vpop.f32.mrb[49].mxu0  ;;  %v5996_v63 = vadd.f32 %v15756_v13, %v15824_v38 }
 0x5ae   :  { %13564 = vtanh.f32 %v7604_v1  ;;  %13118 = vmatpush3.bf16.msra.mxu0 %v15679_v43  ;;  %v5991_v10 = vadd.f32 %v15824_v38, %v15760_v35 }
 0x5af   :  { %13120 = vmatprep.subr.bf16.mxu0 %v15687_v33  ;;  %13566 = vtanh.f32 %v5264_v48 }
 0x5b0   :  { %13568 = vtanh.f32 %v5259_v41 }
 0x5b1   :  { %13570 = vtanh.f32 %v5508_v45 }
 0x5b2   :  { %13122 = vmatpush3.bf16.msra.mxu0 %v15687_v33  ;;  %13572 = vtanh.f32 %v5503_v24 }
 0x5b3   :  { %13124 = vmatprep.subr.bf16.mxu0 %v15695_v28  ;;  %13574 = vtanh.f32 %v5752_v47 }
 0x5b4   :  { %13576 = vtanh.f32 %v5747_v46 }
 0x5b5   :  { %13578 = vtanh.f32 %v5996_v63 }
 0x5b6   :  { %13126 = vmatpush3.bf16.msra.mxu0 %v15695_v28  ;;  %13580 = vtanh.f32 %v5991_v10 }
 0x5b7   :  { %v13563_v44 = vpop.eup %13562 }
 0x5b8   :  { %v13565_v0 = vpop.eup %13564  ;;  %11134 = vmatprep.mubr.f32.mxu0 %v13563_v44 }
 0x5b9   :  { %11135 = vmatmul.mubr.f32.vlgmr.msra.gmra.mrb[62].mxu0 %v13565_v0  ;;  %v13567_v11 = vpop.eup %13566 }
 0x5ba   :  { %v5277_v3 = vmul.f32 %v13567_v11, %v15771_v53  ;;  %v13569_v22 = vpop.eup %13568 }
 0x5bb   :  { %v5276_v12 = vmul.f32 %v13569_v22, %v15771_v53  ;;  %v13571_v16 = vpop.eup %13570 }
 0x5bc   :  { %5034 = vadd.xlane.f32.xlu0 %v5032_v51  ;;  %v5521_v61 = vmul.f32 %v13571_v16, %v15771_v53  ;;  %v13573_v59 = vpop.eup %13572 }
 0x5bd   :  { %v5520_v36 = vmul.f32 %v13573_v59, %v15771_v53  ;;  %v13575_v32 = vpop.eup %13574 }
 0x5be   :  { %v5765_v50 = vmul.f32 %v13575_v32, %v15771_v53  ;;  %v13577_v21 = vpop.eup %13576 }
 0x5bf   :  { %v5764_v14 = vmul.f32 %v13577_v21, %v15771_v53  ;;  %v13579_v34 = vpop.eup %13578 }
 0x5c0   :  { %5280 = vadd.xlane.f32.xlu0 %v5277_v3  ;;  %v6009_v39 = vmul.f32 %v13579_v34, %v15771_v53  ;;  %v13581_v1 = vpop.eup %13580 }
 0x5c1   :  { %v6008_v56 = vmul.f32 %v13581_v1, %v15771_v53 }
 0x5ca   :  { %v4059_v43 = vpop.xlane.xlu0 %4058 }
 0x5cb   :  { %v4062_v57 = vadd.f32 %v15637_v2, %v4059_v43 }
 0x5cc   :  { %v15775_v25 = vpop.f32.mrb[50].mxu0 }
 0x5cd   :  { %v15777_v58 = vpop.f32.mrb[51].mxu0  ;;  %4066 = vrot.lane.b32.xlu1 %v4062_v57, %s13713_s7  ;;  %v6240_v43 = vadd.f32 %v15775_v25, %v15824_v38 }
 0x5ce   :  { %v4305_v60 = vpop.xlane.xlu0 %4304  ;;  %v6235_v57 = vadd.f32 %v15824_v38, %v15777_v58 }
 0x5cf   :  { %v4307_v19 = vadd.f32 %v15637_v2, %v4305_v60  ;;  %13582 = vtanh.f32 %v6240_v43 }
 0x5d0   :  { %13584 = vtanh.f32 %v6235_v57 }
 0x5d2   :  { %v3337_v29 = vpop.permute.xlu0 %3336 }
 0x5d3   :  { %3342 = vst.msk [vmem:[%s16025_s11 + $0x8] sm:$0xff] %vm3340_vm0, %v3337_v29 }
 0x5d6   :  { %v3335_v5 = vpop.permute.xlu0 %3334  ;;  %4312 = vrot.lane.b32.xlu0 %v4307_v19, %s13714_s9 }
 0x5d7   :  { %3341 = vst.msk [vmem:[%s16025_s11] sm:$0xff] %vm3340_vm0, %v3335_v5  ;;  %v4303_v8 = vpop.xlane.xlu1 %4302  ;;  %vm7244_vm0 = vcmask 236768  }
 0x5d8   :  { %v4306_v33 = vadd.f32 %v15637_v2, %v4303_v8 }
 0x5d9   :  { %v13583_v8 = vpop.eup %13582 }
 0x5da   :  { %4310 = vrot.lane.b32.xlu0 %v4306_v33, %s13714_s9  ;;  %v6253_v25 = vmul.f32 %v13583_v8, %v15771_v53 }
 0x5db   :  { %v4549_v42 = vpop.xlane.xlu1 %4548 }
 0x5dc   :  { %v4551_v30 = vadd.f32 %v15637_v2, %v4549_v42  ;;  %v13585_v42 = vpop.eup %13584 }
 0x5dd   :  { %v6252_v41 = vmul.f32 %v13585_v42, %v15771_v53 }
 0x5df   :  { %v3581_v28 = vpop.permute.xlu1 %3580 }
 0x5e0   :  { %3586 = vst.msk [vmem:[%s16025_s11 + $0x8] sm:$0xff] %vm3584_vm1, %v3581_v28 }
 0x5e3   :  { %v3579_v23 = vpop.permute.xlu1 %3578 }
 0x5e4   :  { %3585 = vst.msk [vmem:[%s16025_s11] sm:$0xff] %vm3584_vm1, %v3579_v23  ;;  %vm7488_vm1 = vcmask 244968  }
 0x5ec   :  { %v15800_v37 = vpop.f32.mrb[52].mxu0 }
 0x5ed   :  { %v15802_v31 = vpop.f32.mrb[53].mxu0  ;;  %v6484_v60 = vadd.f32 %v15800_v37, %v15824_v38 }
 0x5ef   :  { %13586 = vtanh.f32 %v6484_v60 }
 0x5f1   :  { %5278 = vadd.xlane.f32.xlu1 %v5276_v12 }
 0x5f5   :  { %5524 = vadd.xlane.f32.xlu1 %v5521_v61 }
 0x5f9   :  { %5522 = vadd.xlane.f32.xlu0 %v5520_v36  ;;  %v13587_v28 = vpop.eup %13586 }
 0x5fa   :  { %v6497_v23 = vmul.f32 %v13587_v28, %v15771_v53 }
 0x606   :  { %4556 = vrot.lane.b32.xlu1 %v4551_v30, %s13715_s18 }
 0x607   :  { %v4547_v9 = vpop.xlane.xlu0 %4546 }
 0x608   :  { %v4550_v4 = vadd.f32 %v15637_v2, %v4547_v9 }
 0x60a   :  { %4554 = vrot.lane.b32.xlu1 %v4550_v4, %s13715_s18 }
 0x60b   :  { %v4793_v27 = vpop.xlane.xlu0 %4792 }
 0x60c   :  { %v4795_v17 = vadd.f32 %v15637_v2, %v4793_v27  ;;  %v15810_v49 = vpop.f32.mrb[54].mxu0 }
 0x60d   :  { %v15812_v26 = vpop.f32.mrb[55].mxu0  ;;  %v6728_v29 = vadd.f32 %v15810_v49, %v15824_v38 }
 0x60f   :  { %v3825_v40 = vpop.permute.xlu0 %3824  ;;  %4800 = vrot.lane.b32.xlu0 %v4795_v17, %s13716_s19  ;;  %13588 = vtanh.f32 %v6728_v29 }
 0x610   :  { %3830 = vst.msk [vmem:[%s16025_s11 + $0x8] sm:$0xff] %vm3828_vm2, %v3825_v40 }
 0x613   :  { %v3823_v6 = vpop.permute.xlu0 %3822 }
 0x614   :  { %3829 = vst.msk [vmem:[%s16025_s11] sm:$0xff] %vm3828_vm2, %v3823_v6  ;;  %v4791_v62 = vpop.xlane.xlu1 %4790  ;;  %vm7732_vm2 = vcmask 253168  }
 0x615   :  { %v4794_v7 = vadd.f32 %v15637_v2, %v4791_v62  ;;  %v6479_v62 = vadd.f32 %v15824_v38, %v15802_v31 }
 0x617   :  { %4798 = vrot.lane.b32.xlu0 %v4794_v7, %s13716_s19 }
 0x618   :  { %v5037_v52 = vpop.xlane.xlu1 %5036 }
 0x619   :  { %v5039_v13 = vadd.f32 %v15637_v2, %v5037_v52  ;;  %v13589_v24 = vpop.eup %13588 }
 0x61a   :  { %v6741_v22 = vmul.f32 %v13589_v24, %v15771_v53 }
 0x61c   :  { %v4069_v18 = vpop.permute.xlu1 %4068 }
 0x61d   :  { %4074 = vst.msk [vmem:[%s16025_s11 + $0x8] sm:$0xff] %vm4072_vm3, %v4069_v18  ;;  %v6723_v18 = vadd.f32 %v15824_v38, %v15812_v26 }
 0x62c   :  { %v10926_v20 = vpop.f32.mrb[56].mxu0 }
 0x62d   :  { %v15839_v15 = vpop.f32.mrb[57].mxu0  ;;  %v6972_v33 = vadd.f32 %v10926_v20, %v15824_v38 }
 0x62e   :  { %5768 = vadd.xlane.f32.xlu1 %v5765_v50  ;;  %v6967_v46 = vadd.f32 %v15824_v38, %v15839_v15 }
 0x62f   :  { %13590 = vtanh.f32 %v6972_v33 }
 0x632   :  { %5766 = vadd.xlane.f32.xlu1 %v5764_v14 }
 0x636   :  { %6012 = vadd.xlane.f32.xlu1 %v6009_v39 }
 0x639   :  { %v13591_v37 = vpop.eup %13590 }
 0x63a   :  { %6010 = vadd.xlane.f32.xlu1 %v6008_v56  ;;  %v6985_v61 = vmul.f32 %v13591_v37, %v15771_v53 }
 0x63f   :  { %v4067_v54 = vpop.permute.xlu1 %4066 }
 0x640   :  { %4073 = vst.msk [vmem:[%s16025_s11] sm:$0xff] %vm4072_vm3, %v4067_v54 }
 0x649   :  { %v5035_v48 = vpop.xlane.xlu0 %5034 }
 0x64a   :  { %v5038_v55 = vadd.f32 %v15637_v2, %v5035_v48 }
 0x64b   :  { %5044 = vrot.lane.b32.xlu1 %v5039_v13, %s13717_s26 }
 0x64c   :  { %v10996_v35 = vpop.f32.mrb[58].mxu0 }
 0x64d   :  { %v15850_v44 = vpop.f32.mrb[59].mxu0  ;;  %v5281_v0 = vpop.xlane.xlu0 %5280  ;;  %v7216_v58 = vadd.f32 %v10996_v35, %v15824_v38 }
 0x64e   :  { %v5283_v51 = vadd.f32 %v15637_v2, %v5281_v0  ;;  %v7211_v31 = vadd.f32 %v15824_v38, %v15850_v44 }
 0x64f   :  { %5042 = vrot.lane.b32.xlu1 %v5038_v55, %s13717_s26  ;;  %13592 = vtanh.f32 %v7216_v58  ;;  %s13727_s26 = smov 29  }
 0x650   :  { %5288 = vrot.lane.b32.xlu0 %v5283_v51, %s13718_s27 }
 0x651   :  { %v4313_v11 = vpop.permute.xlu0 %4312 }
 0x652   :  { %4318 = vst.msk [vmem:[%s16025_s11 + $0x8] sm:$0xff] %vm4316_vm4, %v4313_v11 }
 0x655   :  { %v4311_v3 = vpop.permute.xlu0 %4310 }
 0x656   :  { %4317 = vst.msk [vmem:[%s16025_s11] sm:$0xff] %vm4316_vm4, %v4311_v3 }
 0x659   :  { %v13593_v59 = vpop.eup %13592 }
 0x65a   :  { %v7229_v30 = vmul.f32 %v13593_v59, %v15771_v53 }
 0x66c   :  { %v11066_v19 = vpop.f32.mrb[60].mxu0 }
 0x66d   :  { %v7454_v5 = vpop.f32.mrb[61].mxu0  ;;  %v7460_v45 = vadd.f32 %v11066_v19, %v15824_v38 }
 0x66e   :  { %v7455_v20 = vadd.f32 %v15824_v38, %v7454_v5 }
 0x66f   :  { %13594 = vtanh.f32 %v7460_v45 }
 0x673   :  { %6256 = vadd.xlane.f32.xlu1 %v6253_v25 }
 0x677   :  { %6254 = vadd.xlane.f32.xlu1 %v6252_v41 }
 0x679   :  { %v13595_v9 = vpop.eup %13594 }
 0x67a   :  { %v7473_v17 = vmul.f32 %v13595_v9, %v15771_v53 }
 0x67b   :  { %6500 = vadd.xlane.f32.xlu1 %v6497_v23 }
 0x67e   :  { %v5279_v12 = vpop.xlane.xlu1 %5278 }
 0x67f   :  { %v5282_v16 = vadd.f32 %v15637_v2, %v5279_v12  ;;  %6744 = vadd.xlane.f32.xlu1 %v6741_v22 }
 0x681   :  { %5286 = vrot.lane.b32.xlu0 %v5282_v16, %s13718_s27  ;;  %s13728_s27 = smov 30  }
 0x682   :  { %v5525_v36 = vpop.xlane.xlu1 %5524 }
 0x683   :  { %6988 = vadd.xlane.f32.xlu1 %v6985_v61  ;;  %v5527_v54 = vadd.f32 %v15637_v2, %v5525_v36 }
 0x686   :  { %v5523_v4 = vpop.xlane.xlu0 %5522  ;;  %v4557_v27 = vpop.permute.xlu1 %4556 }
 0x687   :  { %4562 = vst.msk [vmem:[%s16025_s11 + $0x8] sm:$0xff] %vm4560_vm5, %v4557_v27  ;;  %7232 = vadd.xlane.f32.xlu1 %v7229_v30  ;;  %v5526_v3 = vadd.f32 %v15637_v2, %v5523_v4 }
 0x68a   :  { %v4801_v49 = vpop.permute.xlu0 %4800  ;;  %v4555_v40 = vpop.permute.xlu1 %4554 }
 0x68b   :  { %4806 = vst.msk [vmem:[%s16025_s11 + $0x8] sm:$0xff] %vm4804_vm6, %v4801_v49  ;;  %7476 = vadd.xlane.f32.xlu1 %v7473_v17 }
 0x68c   :  { %4561 = vst.msk [vmem:[%s16025_s11] sm:$0xff] %vm4560_vm5, %v4555_v40  ;;  %v11136_v6 = vpop.f32.mrb[62].mxu0 }
 0x68d   :  { %v7704_v7 = vadd.f32 %v11136_v6, %v15824_v38  ;;  %v7698_v52 = vpop.f32.mrb[63].mxu0 }
 0x68e   :  { %v4799_v47 = vpop.permute.xlu0 %4798  ;;  %v7699_v26 = vadd.f32 %v15824_v38, %v7698_v52 }
 0x68f   :  { %13596 = vtanh.f32 %v7704_v7  ;;  %4805 = vst.msk [vmem:[%s16025_s11] sm:$0xff] %vm4804_vm6, %v4799_v47 }
 0x690   :  { %13598 = vtanh.f32 %v6479_v62 }
 0x691   :  { %13600 = vtanh.f32 %v6723_v18 }
 0x692   :  { %13602 = vtanh.f32 %v6967_v46 }
 0x693   :  { %13604 = vtanh.f32 %v7211_v31 }
 0x694   :  { %13606 = vtanh.f32 %v7455_v20 }
 0x695   :  { %13608 = vtanh.f32 %v7699_v26 }
 0x699   :  { %v13597_v63 = vpop.eup %13596 }
 0x69a   :  { %v7717_v10 = vmul.f32 %v13597_v63, %v15771_v53  ;;  %v13599_v32 = vpop.eup %13598 }
 0x69b   :  { %v6496_v50 = vmul.f32 %v13599_v32, %v15771_v53  ;;  %v13601_v21 = vpop.eup %13600 }
 0x69c   :  { %7720 = vadd.xlane.f32.xlu1 %v7717_v10  ;;  %v6740_v15 = vmul.f32 %v13601_v21, %v15771_v53  ;;  %v13603_v14 = vpop.eup %13602 }
 0x69d   :  { %v6984_v34 = vmul.f32 %v13603_v14, %v15771_v53  ;;  %v13605_v39 = vpop.eup %13604 }
 0x69e   :  { %v7228_v1 = vmul.f32 %v13605_v39, %v15771_v53  ;;  %v13607_v56 = vpop.eup %13606 }
 0x69f   :  { %v7472_v13 = vmul.f32 %v13607_v56, %v15771_v53  ;;  %v13609_v38 = vpop.eup %13608 }
 0x6a0   :  { %6498 = vadd.xlane.f32.xlu0 %v6496_v50  ;;  %v7716_v48 = vmul.f32 %v13609_v38, %v15771_v53 }
 0x6a4   :  { %6742 = vadd.xlane.f32.xlu0 %v6740_v15 }
 0x6a8   :  { %6986 = vadd.xlane.f32.xlu0 %v6984_v34 }
 0x6ac   :  { %7230 = vadd.xlane.f32.xlu0 %v7228_v1 }
 0x6ad   :  { %5532 = vrot.lane.b32.xlu1 %v5527_v54, %s13719_s2 }
 0x6b0   :  { %7474 = vadd.xlane.f32.xlu0 %v7472_v13 }
 0x6b4   :  { %7718 = vadd.xlane.f32.xlu0 %v7716_v48 }
 0x6bb   :  { %v5769_v35 = vpop.xlane.xlu1 %5768 }
 0x6bc   :  { %v5771_v51 = vadd.f32 %v15637_v2, %v5769_v35 }
 0x6bf   :  { %v5767_v55 = vpop.xlane.xlu1 %5766 }
 0x6c0   :  { %v5770_v44 = vadd.f32 %v15637_v2, %v5767_v55 }
 0x6c2   :  { %5774 = vrot.lane.b32.xlu1 %v5770_v44, %s13720_s16  ;;  %v5289_v57 = vpop.permute.xlu0 %5288 }
 0x6c3   :  { %v6013_v0 = vpop.xlane.xlu1 %6012 }
 0x6c4   :  { %v6015_v43 = vadd.f32 %v15637_v2, %v6013_v0 }
 0x6c6   :  { %5776 = vrot.lane.b32.xlu1 %v5771_v51, %s13720_s16 }
 0x6c7   :  { %v6011_v11 = vpop.xlane.xlu1 %6010 }
 0x6c8   :  { %v6014_v60 = vadd.f32 %v15637_v2, %v6011_v11 }
 0x6ca   :  { %5530 = vrot.lane.b32.xlu0 %v5526_v3, %s13719_s2  ;;  %6020 = vrot.lane.b32.xlu1 %v6015_v43, %s13721_s4 }
 0x6cb   :  { %v5045_v53 = vpop.permute.xlu1 %5044 }
 0x6cc   :  { %5050 = vst.msk [vmem:[%s16025_s11 + $0x8] sm:$0xff] %vm5048_vm7, %v5045_v53 }
 0x6cd   :  { %5294 = vst.msk [vmem:[%s16025_s11 + $0x8] sm:$0xff] %vm5292_vm8, %v5289_v57 }
 0x6ce   :  { %6018 = vrot.lane.b32.xlu0 %v6014_v60, %s13721_s4 }
 0x6cf   :  { %v5043_v29 = vpop.permute.xlu1 %5042 }
 0x6d0   :  { %5049 = vst.msk [vmem:[%s16025_s11] sm:$0xff] %vm5048_vm7, %v5043_v29 }
 0x6f3   :  { %v5287_v19 = vpop.permute.xlu0 %5286 }
 0x6f4   :  { %5293 = vst.msk [vmem:[%s16025_s11] sm:$0xff] %vm5292_vm8, %v5287_v19 }
 0x700   :  { %v6257_v5 = vpop.xlane.xlu1 %6256 }
 0x701   :  { %v6259_v8 = vadd.f32 %v15637_v2, %v6257_v5 }
 0x703   :  { %6264 = vrot.lane.b32.xlu1 %v6259_v8, %s13722_s20 }
 0x704   :  { %v6255_v33 = vpop.xlane.xlu1 %6254 }
 0x705   :  { %v6258_v25 = vadd.f32 %v15637_v2, %v6255_v33 }
 0x707   :  { %6262 = vrot.lane.b32.xlu0 %v6258_v25, %s13722_s20 }
 0x708   :  { %v6501_v42 = vpop.xlane.xlu1 %6500 }
 0x709   :  { %v6503_v58 = vadd.f32 %v15637_v2, %v6501_v42 }
 0x70b   :  { %6508 = vrot.lane.b32.xlu1 %v6503_v58, %s13723_s24 }
 0x70c   :  { %v6745_v41 = vpop.xlane.xlu1 %6744 }
 0x70d   :  { %v6747_v28 = vadd.f32 %v15637_v2, %v6745_v41 }
 0x70f   :  { %6752 = vrot.lane.b32.xlu1 %v6747_v28, %s13724_s25 }
 0x710   :  { %v6989_v45 = vpop.xlane.xlu1 %6988 }
 0x711   :  { %v6991_v23 = vadd.f32 %v15637_v2, %v6989_v45 }
 0x713   :  { %6996 = vrot.lane.b32.xlu1 %v6991_v23, %s13725_s8 }
 0x714   :  { %v7233_v24 = vpop.xlane.xlu1 %7232 }
 0x715   :  { %v7235_v22 = vadd.f32 %v15637_v2, %v7233_v24 }
 0x717   :  { %7240 = vrot.lane.b32.xlu1 %v7235_v22, %s13726_s6 }
 0x718   :  { %v7477_v37 = vpop.xlane.xlu1 %7476 }
 0x719   :  { %v7479_v12 = vadd.f32 %v15637_v2, %v7477_v37 }
 0x71b   :  { %7484 = vrot.lane.b32.xlu1 %v7479_v12, %s13727_s26 }
 0x729   :  { %v7721_v16 = vpop.xlane.xlu1 %7720 }
 0x72a   :  { %v7723_v61 = vadd.f32 %v15637_v2, %v7721_v16 }
 0x72c   :  { %7728 = vrot.lane.b32.xlu1 %v7723_v61, %s13728_s27 }
 0x72d   :  { %v6499_v59 = vpop.xlane.xlu0 %6498  ;;  %v5533_v36 = vpop.permute.xlu1 %5532 }
 0x72e   :  { %v6502_v30 = vadd.f32 %v15637_v2, %v6499_v59  ;;  %5538 = vst.msk [vmem:[%s16025_s11 + $0x8] sm:$0xff] %vm5536_vm9, %v5533_v36 }
 0x730   :  { %6506 = vrot.lane.b32.xlu0 %v6502_v30, %s13723_s24 }
 0x731   :  { %v6743_v9 = vpop.xlane.xlu0 %6742 }
 0x732   :  { %v6746_v4 = vadd.f32 %v15637_v2, %v6743_v9 }
 0x734   :  { %6750 = vrot.lane.b32.xlu0 %v6746_v4, %s13724_s25  ;;  %v5775_v27 = vpop.permute.xlu1 %5774 }
 0x735   :  { %v6987_v17 = vpop.xlane.xlu0 %6986 }
 0x736   :  { %v6990_v49 = vadd.f32 %v15637_v2, %v6987_v17 }
 0x738   :  { %6994 = vrot.lane.b32.xlu0 %v6990_v49, %s13725_s8  ;;  %v5777_v40 = vpop.permute.xlu1 %5776 }
 0x739   :  { %5782 = vst.msk [vmem:[%s16025_s11 + $0x8] sm:$0xff] %vm5780_vm10, %v5777_v40  ;;  %v7231_v6 = vpop.xlane.xlu0 %7230 }
 0x73a   :  { %v7234_v62 = vadd.f32 %v15637_v2, %v7231_v6 }
 0x73c   :  { %7238 = vrot.lane.b32.xlu0 %v7234_v62, %s13726_s6  ;;  %v6021_v7 = vpop.permute.xlu1 %6020 }
 0x73d   :  { %6026 = vst.msk [vmem:[%s16025_s11 + $0x8] sm:$0xff] %vm6024_vm11, %v6021_v7  ;;  %v7475_v52 = vpop.xlane.xlu0 %7474 }
 0x73e   :  { %v7478_v47 = vadd.f32 %v15637_v2, %v7475_v52 }
 0x740   :  { %7482 = vrot.lane.b32.xlu0 %v7478_v47, %s13727_s26 }
 0x741   :  { %v7719_v18 = vpop.xlane.xlu0 %7718 }
 0x742   :  { %v7722_v46 = vadd.f32 %v15637_v2, %v7719_v18 }
 0x744   :  { %7726 = vrot.lane.b32.xlu0 %v7722_v46, %s13728_s27 }
 0x745   :  { %v5531_v63 = vpop.permute.xlu0 %5530 }
 0x746   :  { %5537 = vst.msk [vmem:[%s16025_s11] sm:$0xff] %vm5536_vm9, %v5531_v63 }
 0x747   :  { %5781 = vst.msk [vmem:[%s16025_s11] sm:$0xff] %vm5780_vm10, %v5775_v27 }
 0x749   :  { %v6019_v31 = vpop.permute.xlu0 %6018 }
 0x74a   :  { %6025 = vst.msk [vmem:[%s16025_s11] sm:$0xff] %vm6024_vm11, %v6019_v31 }
 0x775   :  { %v6265_v10 = vpop.permute.xlu1 %6264 }
 0x776   :  { %6270 = vst.msk [vmem:[%s16025_s11 + $0x8] sm:$0xff] %vm6268_vm12, %v6265_v10 }
 0x779   :  { %v6263_v2 = vpop.permute.xlu0 %6262 }
 0x77a   :  { %6269 = vst.msk [vmem:[%s16025_s11] sm:$0xff] %vm6268_vm12, %v6263_v2 }
 0x77d   :  { %v6509_v32 = vpop.permute.xlu1 %6508 }
 0x77e   :  { %6514 = vst.msk [vmem:[%s16025_s11 + $0x8] sm:$0xff] %vm6512_vm13, %v6509_v32 }
 0x781   :  { %v6753_v20 = vpop.permute.xlu1 %6752 }
 0x782   :  { %6758 = vst.msk [vmem:[%s16025_s11 + $0x8] sm:$0xff] %vm6756_vm14, %v6753_v20 }
 0x785   :  { %v6997_v50 = vpop.permute.xlu1 %6996 }
 0x786   :  { %7002 = vst.msk [vmem:[%s16025_s11 + $0x8] sm:$0xff] %vm7000_vm15, %v6997_v50 }
 0x789   :  { %v7241_v21 = vpop.permute.xlu1 %7240 }
 0x78a   :  { %7246 = vst.msk [vmem:[%s16025_s11 + $0x8] sm:$0xff] %vm7244_vm0, %v7241_v21 }
 0x78d   :  { %v7485_v26 = vpop.permute.xlu1 %7484 }
 0x78e   :  { %7490 = vst.msk [vmem:[%s16025_s11 + $0x8] sm:$0xff] %vm7488_vm1, %v7485_v26 }
 0x79e   :  { %v7729_v15 = vpop.permute.xlu1 %7728 }
 0x79f   :  { %7734 = vst.msk [vmem:[%s16025_s11 + $0x8] sm:$0xff] %vm7732_vm2, %v7729_v15 }
 0x7a2   :  { %v6507_v14 = vpop.permute.xlu0 %6506 }
 0x7a3   :  { %6513 = vst.msk [vmem:[%s16025_s11] sm:$0xff] %vm6512_vm13, %v6507_v14 }
 0x7a6   :  { %v6751_v34 = vpop.permute.xlu0 %6750 }
 0x7a7   :  { %6757 = vst.msk [vmem:[%s16025_s11] sm:$0xff] %vm6756_vm14, %v6751_v34 }
 0x7aa   :  { %v6995_v39 = vpop.permute.xlu0 %6994 }
 0x7ab   :  { %7001 = vst.msk [vmem:[%s16025_s11] sm:$0xff] %vm7000_vm15, %v6995_v39 }
 0x7ae   :  { %v7239_v1 = vpop.permute.xlu0 %7238 }
 0x7af   :  { %7245 = vst.msk [vmem:[%s16025_s11] sm:$0xff] %vm7244_vm0, %v7239_v1 }
 0x7b2   :  { %v7483_v56 = vpop.permute.xlu0 %7482 }
 0x7b3   :  { %7489 = vst.msk [vmem:[%s16025_s11] sm:$0xff] %vm7488_vm1, %v7483_v56 }
 0x7b6   :  { %v7727_v54 = vpop.permute.xlu0 %7726 }
 0x7b7   :  { %7733 = vst.msk [vmem:[%s16025_s11] sm:$0xff] %vm7732_vm2, %v7727_v54 }
 0x7b8   :  { %7739 = vsyncpa [#allocation4], 1 }
 0x7b9   :  { %7740 = vsyncpa [#allocation6], 1 }

</bundles_post_ra>
